<compile_context>
chip_gen: v6e
topology: v6e:2x2x1
jax: 0.10.0
libtpu: 0.0.40
codegen_flags: <defaults>
</compile_context>

<pallas_src>
import functools

import jax
import jax.numpy as jnp
import numpy as np
from jax import lax
from jax.experimental import pallas as pl
from jax.experimental.pallas import tpu as pltpu


# ----------------------------------------------------------------------------
# Pallas kernel: one batch element per grid step, full 2-layer GRN-GOB update.
# ----------------------------------------------------------------------------
def _grngob_kernel(
    # per-batch data refs (block = one batch element)
    sent_ref, word_ref, smask_ref, wmask_ref,
    ov_ref, s2smask_ref, label_ref, label_t_ref,
    mask_se_ref, mask_se_t_ref, sloge2e_ref, e2emask_ref,
    # weights (constant index maps -> VMEM resident across grid steps)
    w0_ref, b0_ref, w1_ref, b1_ref, w2_ref, b2_ref, w3_ref, b3_ref,
    wrz_s_ref, brz_s_ref, wc_s_ref, bc_s_ref, wu_s_ref, bu_s_ref,
    wrz_e_ref, brz_e_ref, wc_e_ref, bc_e_ref, wu_e_ref, bu_e_ref,
    wrz_g_ref, brz_g_ref, wc_g_ref, bc_g_ref, wu_g_ref, bu_g_ref,
    # outputs
    sh_out_ref, g_out_ref,
    *, num_layers, s_hid, e_hid, label_dim):
  f32 = jnp.float32
  Hs, He, L = s_hid, e_hid, label_dim

  sent = sent_ref[0]            # [S, Es]
  word = word_ref[0]            # [W, Ee]
  smask = smask_ref[0]          # [S, 1]  (0/1 float)
  wmask = wmask_ref[0]          # [W, 1]
  ov = ov_ref[0]                # [S, S, 2L]  order_emb ++ value_emb (pre-masked)
  s2smask = s2smask_ref[0]      # [S, S]
  label = label_ref[0]          # [S, W, L]
  label_t = label_t_ref[0]      # [W, S, L]
  mask_se = mask_se_ref[0]      # [S, W]
  mask_se_t = mask_se_t_ref[0]  # [W, S]
  sloge2e = sloge2e_ref[0]      # [W, W]  = S_param * log(e2ematrix)
  e2emask = e2emask_ref[0]      # [W, W]

  S = sent.shape[0]
  W = word.shape[0]

  # Gate weights, pre-transposed to [in, out]; split along the input axis so the
  # pairwise "Linear over concat" becomes per-node matmuls + broadcast add.
  w0 = w0_ref[...]                                    # [2Hs+2L, Hs]
  w0_i, w0_j, w0_cd = w0[:Hs], w0[Hs:2 * Hs], w0[2 * Hs:]
  b0 = b0_ref[...]                                    # [1, Hs]
  w1 = w1_ref[...]                                    # [Hs+He+L, He+L]
  w1_s, w1_e, w1_l = w1[:Hs], w1[Hs:Hs + He], w1[Hs + He:]
  b1 = b1_ref[...]
  w2 = w2_ref[...]                                    # [He+Hs+L, Hs+L]
  w2_e, w2_s, w2_l = w2[:He], w2[He:He + Hs], w2[He + Hs:]
  b2 = b2_ref[...]
  w3 = w3_ref[...]                                    # [2He, He]
  w3_k, w3_m = w3[:He], w3[He:]
  b3 = b3_ref[...]

  # GRU weights (loaded once, reused by both layers).
  wrz_s, brz_s = wrz_s_ref[...], brz_s_ref[...]
  wc_s, bc_s = wc_s_ref[...], bc_s_ref[...]
  wu_s, bu_s = wu_s_ref[...], bu_s_ref[...]
  wrz_e, brz_e = wrz_e_ref[...], brz_e_ref[...]
  wc_e, bc_e = wc_e_ref[...], bc_e_ref[...]
  wu_e, bu_e = wu_e_ref[...], bu_e_ref[...]
  wrz_g, brz_g = wrz_g_ref[...], brz_g_ref[...]
  wc_g, bc_g = wc_g_ref[...], bc_g_ref[...]
  wu_g, bu_g = wu_g_ref[...], bu_g_ref[...]

  # batched matmul: contract last lhs dim with rhs dim 1, batch over dim 0.
  dn_batch = (((2,), (1,)), ((0,), (0,)))

  # Loop-invariant projections of the static edge embeddings (hoisted).
  cd0 = lax.dot_general(ov, jnp.broadcast_to(w0_cd[None], (S, 2 * L, Hs)),
                        dn_batch, preferred_element_type=f32)        # [S,S,Hs]
  c1 = lax.dot_general(label, jnp.broadcast_to(w1_l[None], (S, L, He + L)),
                       dn_batch, preferred_element_type=f32)         # [S,W,He+L]
  c2 = lax.dot_general(label_t, jnp.broadcast_to(w2_l[None], (W, L, Hs + L)),
                       dn_batch, preferred_element_type=f32)         # [W,S,Hs+L]

  def gru(x, h, wrz, brz, wc, bc, wu, bu, hdim):
    # r = sigmoid(Wr [x,h] + br), z = sigmoid(Wz [x,h] + bz)   (Wr,Wz stacked)
    rz_in = jnp.concatenate([x, h], axis=-1)
    rz = jax.nn.sigmoid(jnp.dot(rz_in, wrz, preferred_element_type=f32) + brz)
    r, z = rz[:, :hdim], rz[:, hdim:]
    u = jnp.tanh(jnp.dot(x, wc, preferred_element_type=f32) + bc
                 + r * (jnp.dot(h, wu, preferred_element_type=f32) + bu))
    return z * h + (1.0 - z) * u

  s_h = jnp.zeros((S, Hs), f32)
  e_h = jnp.zeros((W, He), f32)
  g_h = jnp.zeros((1, Hs), f32)

  for _ in range(num_layers):
    # ---- gate0: sentence <- sentence --------------------------------------
    p0i = jnp.dot(s_h, w0_i, preferred_element_type=f32)            # [S,Hs]
    p0j = jnp.dot(s_h, w0_j, preferred_element_type=f32)            # [S,Hs]
    gs = jax.nn.sigmoid(p0i[:, None, :] + p0j[None, :, :] + cd0 + b0[None])
    s_neigh_s_h = jnp.sum(s_h[None, :, :] * gs * s2smask[:, :, None], axis=1)

    # ---- gate1: sentence <- entity ----------------------------------------
    p1s = jnp.dot(s_h, w1_s, preferred_element_type=f32)            # [S,He+L]
    p1e = jnp.dot(e_h, w1_e, preferred_element_type=f32)            # [W,He+L]
    g1 = jax.nn.sigmoid(p1s[:, None, :] + p1e[None, :, :] + c1 + b1[None])
    m_se = mask_se[:, :, None]
    s_neigh_e_h = jnp.concatenate(
        [jnp.sum(e_h[None, :, :] * g1[:, :, :He] * m_se, axis=1),
         jnp.sum(label * g1[:, :, He:] * m_se, axis=1)], axis=-1)   # [S,He+L]

    # ---- gate2: entity <- sentence ----------------------------------------
    p2e = jnp.dot(e_h, w2_e, preferred_element_type=f32)            # [W,Hs+L]
    p2s = jnp.dot(s_h, w2_s, preferred_element_type=f32)            # [S,Hs+L]
    g2 = jax.nn.sigmoid(p2e[:, None, :] + p2s[None, :, :] + c2 + b2[None])
    m_set = mask_se_t[:, :, None]
    e_neigh_s_h = jnp.concatenate(
        [jnp.sum(s_h[None, :, :] * g2[:, :, :Hs] * m_set, axis=1),
         jnp.sum(label_t * g2[:, :, Hs:] * m_set, axis=1)], axis=-1)  # [W,Hs+L]

    # ---- gate3: entity <- entity ------------------------------------------
    p3k = jnp.dot(e_h, w3_k, preferred_element_type=f32)            # [W,He]
    p3m = jnp.dot(e_h, w3_m, preferred_element_type=f32)            # [W,He]
    g3 = jax.nn.sigmoid(p3k[:, None, :] + p3m[None, :, :] + b3[None]
                        + sloge2e[:, :, None])
    e_neigh_e_h = jnp.sum(e_h[:, None, :] * e2emask[:, :, None] * g3, axis=1)

    # ---- SGRU state update --------------------------------------------------
    s_input = jnp.concatenate([sent, s_neigh_s_h, s_neigh_e_h], axis=-1)
    e_input = jnp.concatenate([word, e_neigh_e_h, e_neigh_s_h], axis=-1)

    x_s = jnp.concatenate([s_input, jnp.broadcast_to(g_h, (S, Hs))], axis=-1)
    new_sh = gru(x_s, s_h, wrz_s, brz_s, wc_s, bc_s, wu_s, bu_s, Hs)

    x_e = jnp.concatenate([e_input, jnp.broadcast_to(g_h, (W, Hs))], axis=-1)
    new_eh = gru(x_e, e_h, wrz_e, brz_e, wc_e, bc_e, wu_e, bu_e, He)

    new_sh = new_sh * smask           # masked_fill(smask == 0, 0)
    new_eh = new_eh * wmask

    sh_mean = (jnp.sum(new_sh, axis=0, keepdims=True)
               / jnp.sum(smask, axis=0, keepdims=True))             # [1,Hs]
    eh_mean = (jnp.sum(new_eh, axis=0, keepdims=True)
               / (jnp.sum(wmask, axis=0, keepdims=True) + 1.0))     # [1,He]
    mean = jnp.concatenate([sh_mean, eh_mean], axis=-1)             # [1,Hs+He]
    new_g = gru(mean, g_h, wrz_g, brz_g, wc_g, bc_g, wu_g, bu_g, Hs)

    s_h, e_h, g_h = new_sh, new_eh, new_g

  sh_out_ref[0] = s_h.astype(sh_out_ref.dtype)
  g_out_ref[0] = g_h.astype(g_out_ref.dtype)


# ----------------------------------------------------------------------------
# Wrapper: host/JAX preprocessing + pallas_call
# ----------------------------------------------------------------------------
def grngob_forward(sent, word, smask, wmask, graph, params, num_layers=2):
  f32 = jnp.float32
  B, S, _ = sent.shape
  W = word.shape[1]
  Hs, He, L = params["s_hidden"], params["e_hidden"], params["label_dim"]

  # ---- embedding lookups & static edge features (no Pallas equivalent) -----
  label_emb = jnp.take(params["edgeemb"], graph["matrix"], axis=0)          # [B,S,W,L]
  order_emb = jnp.take(params["s_orderemb"], graph["s2sorder"], axis=0)     # [B,S,S,L]
  value_emb = jnp.take(params["s_edgeemb"], graph["s2smatrix"], axis=0)     # [B,S,S,L]
  s2smask = graph["s2smask"].astype(f32)
  order_emb = order_emb * s2smask[..., None]
  value_emb = value_emb * s2smask[..., None]
  ov_emb = jnp.concatenate([order_emb, value_emb], axis=-1)                 # [B,S,S,2L]
  label_emb_t = jnp.swapaxes(label_emb, 1, 2)                               # [B,W,S,L]
  mask_se = graph["mask_se"].astype(f32)
  mask_se_t = jnp.swapaxes(mask_se, 1, 2)
  sloge2e = params["S"] * jnp.log(graph["e2ematrix"])                       # [B,W,W]
  e2emask = graph["e2emask"].astype(f32)
  smask_col = (smask != 0).astype(f32)[..., None]                           # [B,S,1]
  wmask_col = (wmask != 0).astype(f32)[..., None]                           # [B,W,1]

  # ---- weights in kernel layout: transposed to [in, out]; r/z stacked ------
  def t(w):
    return jnp.asarray(w, f32).T

  def row(b):
    return jnp.asarray(b, f32)[None, :]

  w0t, b0 = t(params["gate0_w"]), row(params["gate0_b"])
  w1t, b1 = t(params["gate1_w"]), row(params["gate1_b"])
  w2t, b2 = t(params["gate2_w"]), row(params["gate2_b"])
  w3t, b3 = t(params["gate3_w"]), row(params["gate3_b"])

  def gru_pack(p):
    wrz = jnp.concatenate([t(p["wr"]), t(p["wz"])], axis=1)
    brz = jnp.concatenate([row(p["br"]), row(p["bz"])], axis=1)
    return wrz, brz, t(p["wc"]), row(p["bc"]), t(p["wu"]), row(p["bu"])

  s_gru = gru_pack(params["s_gru"])
  e_gru = gru_pack(params["e_gru"])
  g_gru = gru_pack(params["g_gru"])

  data_inputs = [sent.astype(f32), word.astype(f32), smask_col, wmask_col,
                 ov_emb, s2smask, label_emb, label_emb_t, mask_se, mask_se_t,
                 sloge2e, e2emask]
  weight_inputs = [w0t, b0, w1t, b1, w2t, b2, w3t, b3,
                   *s_gru, *e_gru, *g_gru]

  def batch_spec(a):
    nd = a.ndim
    return pl.BlockSpec((1,) + a.shape[1:],
                        lambda b, _nd=nd: (b,) + (0,) * (_nd - 1))

  def const_spec(a):
    nd = a.ndim
    return pl.BlockSpec(a.shape, lambda b, _nd=nd: (0,) * _nd)

  in_specs = ([batch_spec(a) for a in data_inputs]
              + [const_spec(a) for a in weight_inputs])
  out_specs = (pl.BlockSpec((1, S, Hs), lambda b: (b, 0, 0)),
               pl.BlockSpec((1, 1, Hs), lambda b: (b, 0, 0)))
  out_shape = (jax.ShapeDtypeStruct((B, S, Hs), f32),
               jax.ShapeDtypeStruct((B, 1, Hs), f32))

  # ---- rough cost estimate (advisory, for XLA scheduling) -------------------
  Es, Ee = sent.shape[-1], word.shape[-1]
  xs = Es + Hs + (He + L) + Hs
  xe = Ee + He + (Hs + L) + Hs
  xg = Hs + He
  hoisted = (2 * S * S * 2 * L * Hs + 2 * S * W * L * (He + L)
             + 2 * W * S * L * (Hs + L))
  per_layer = (2 * 2 * S * Hs * Hs
               + 2 * S * Hs * (He + L) + 2 * W * He * (He + L)
               + 2 * W * He * (Hs + L) + 2 * S * Hs * (Hs + L)
               + 2 * 2 * W * He * He
               + 2 * S * ((xs + Hs) * 2 * Hs + xs * Hs + Hs * Hs)
               + 2 * W * ((xe + He) * 2 * He + xe * He + He * He)
               + 2 * ((xg + Hs) * 2 * Hs + xg * Hs + Hs * Hs))
  flops = B * (hoisted + num_layers * per_layer)
  transcend = B * num_layers * (S * S * Hs + S * W * (He + L) + W * S * (Hs + L)
                                + W * W * He + 3 * S * Hs + 3 * W * He + 3 * Hs)
  bytes_acc = (sum(int(np.prod(a.shape)) * 4 for a in data_inputs + weight_inputs)
               + (B * S * Hs + B * Hs) * 4)

  kernel = functools.partial(_grngob_kernel, num_layers=num_layers,
                             s_hid=Hs, e_hid=He, label_dim=L)
  s_h, g_h = pl.pallas_call(
      kernel,
      out_shape=out_shape,
      grid_spec=pltpu.PrefetchScalarGridSpec(
          num_scalar_prefetch=0,
          grid=(B,),
          in_specs=in_specs,
          out_specs=out_specs),
      compiler_params=pltpu.CompilerParams(
          dimension_semantics=("parallel",)),
      cost_estimate=pl.CostEstimate(flops=int(flops),
                                    transcendentals=int(transcend),
                                    bytes_accessed=int(bytes_acc)),
  )(*data_inputs, *weight_inputs)
  return s_h, g_h[:, 0, :]


# ----------------------------------------------------------------------------
# Host preprocessing: Python-list graph structures -> dense matrices
# (mirrors the list-driven scatters in GRNGOB.forward; no Pallas equivalent)
# ----------------------------------------------------------------------------
def build_graph_tensors(batch, snum, wnum, elocs, slocs, ecom, smask_np):
  matrix = np.zeros((batch, snum, wnum), dtype=np.int32)
  for ib, eloc in enumerate(elocs):
    for ixw, loc in enumerate(eloc):
      for aftersf_ixs, r in loc:
        matrix[ib, np.asarray(aftersf_ixs, dtype=np.int64), ixw] = r
  mask_se = (matrix != 0).astype(np.float32)
  mask_se_t = mask_se.transpose(0, 2, 1)

  s2smatrix = np.zeros((batch, snum, snum), dtype=np.int64)
  s2sorder = np.zeros((batch, snum, snum), dtype=np.int64)
  for ib, sloc in enumerate(slocs):
    for (i0, i1, p) in sloc:
      s2smatrix[ib, i0, i1] = int(p * 10)
      s2smatrix[ib, i1, i0] = int(10 * (1.0001 - p))
      if p > 0.5:
        s2sorder[ib, i0, i1], s2sorder[ib, i1, i0] = 1, 0
      else:
        s2sorder[ib, i0, i1], s2sorder[ib, i1, i0] = 0, 1

  eyemask = (1 - np.eye(snum, dtype=np.int64))[None]       # zero diagonal
  svalid = (smask_np != 0)[:, None, :]                      # smask.unsqueeze(1)
  s2smask = (np.matmul(mask_se, mask_se_t) != 0) & (eyemask != 0) & svalid
  s2smask = s2smask.astype(np.float32)
  s2sorder = ((s2sorder != 0) & (eyemask != 0) & svalid).astype(np.int32)
  s2smatrix = (s2smatrix * eyemask).astype(np.int32)

  e2ematrix = np.zeros((batch, wnum, wnum), dtype=np.float32)
  e2emask = np.zeros((batch, wnum, wnum), dtype=np.float32)
  for ib in range(batch):
    for rel in ecom[ib]:
      r0, r1, v = int(rel[0]), int(rel[1]), float(rel[2])
      if v < 0.5:
        v = 0.0
      e2ematrix[ib, r0, r1] = v
      e2ematrix[ib, r1, r0] = v
      e2emask[ib, r0, r1] = 1.0 if v > 0 else 0.0
      e2emask[ib, r1, r0] = e2emask[ib, r0, r1]
  e2ematrix = e2ematrix / (e2ematrix.sum(-1, keepdims=True) + 1e-9)
  e2ematrix = np.where(e2ematrix == 0.0, 1e-9, e2ematrix).astype(np.float32)

  return {"matrix": jnp.asarray(matrix),
          "mask_se": jnp.asarray(mask_se),
          "s2smask": jnp.asarray(s2smask),
          "s2sorder": jnp.asarray(s2sorder),
          "s2smatrix": jnp.asarray(s2smatrix),
          "e2ematrix": jnp.asarray(e2ematrix),
          "e2emask": jnp.asarray(e2emask)}


# ----------------------------------------------------------------------------
# Pure-JAX reference (literal translation of the PyTorch module, eval mode)
# ----------------------------------------------------------------------------
def grngob_reference(sent, word, smask, wmask, graph, params, num_layers=2):
  f32 = jnp.float32
  B, S, _ = sent.shape
  W = word.shape[1]
  Hs, He, L = params["s_hidden"], params["e_hidden"], params["label_dim"]

  mask_se = graph["mask_se"].astype(f32)
  mask_se_t = jnp.swapaxes(mask_se, 1, 2)
  label_emb = jnp.take(params["edgeemb"], graph["matrix"], axis=0)
  label_emb_t = jnp.swapaxes(label_emb, 1, 2)
  s2smask = graph["s2smask"].astype(f32)
  order_emb = jnp.take(params["s_orderemb"], graph["s2sorder"], axis=0) * s2smask[..., None]
  value_emb = jnp.take(params["s_edgeemb"], graph["s2smatrix"], axis=0) * s2smask[..., None]
  e2ematrix = graph["e2ematrix"]
  e2emask = graph["e2emask"].astype(f32)
  smask_f = (smask != 0).astype(f32)
  wmask_f = (wmask != 0).astype(f32)

  def linear(x, w, b):
    return jnp.matmul(x, jnp.asarray(w, f32).T) + jnp.asarray(b, f32)

  def gru_cell(p, x, h):
    rz_in = jnp.concatenate([x, h], axis=-1)
    r = jax.nn.sigmoid(linear(rz_in, p["wr"], p["br"]))
    z = jax.nn.sigmoid(linear(rz_in, p["wz"], p["bz"]))
    u = jnp.tanh(linear(x, p["wc"], p["bc"]) + r * linear(h, p["wu"], p["bu"]))
    return z * h + (1.0 - z) * u

  s_h = jnp.zeros((B, S, Hs), f32)
  e_h = jnp.zeros((B, W, He), f32)
  g_h = jnp.zeros((B, Hs), f32)

  for _ in range(num_layers):
    s_h_expand = jnp.broadcast_to(s_h[:, :, None, :], (B, S, S, Hs))
    s_h_expand_t = jnp.broadcast_to(s_h[:, None, :, :], (B, S, S, Hs))
    s_s_l = jnp.concatenate([s_h_expand, s_h_expand_t, order_emb, value_emb], axis=-1)
    gs = jax.nn.sigmoid(linear(s_s_l, params["gate0_w"], params["gate0_b"]))
    s_neigh_s_h = jnp.sum(s_h_expand_t * gs * s2smask[..., None], axis=2)

    s_h_e = jnp.broadcast_to(s_h[:, :, None, :], (B, S, W, Hs))
    e_h_e = jnp.broadcast_to(e_h[:, None, :, :], (B, S, W, He))
    e_h_edge = jnp.concatenate([e_h_e, label_emb], axis=-1)
    s_e_l = jnp.concatenate([s_h_e, e_h_edge], axis=-1)
    g1 = jax.nn.sigmoid(linear(s_e_l, params["gate1_w"], params["gate1_b"]))
    s_neigh_e_h = jnp.sum(e_h_edge * g1 * mask_se[..., None], axis=2)

    s_h_e2 = jnp.broadcast_to(s_h[:, None, :, :], (B, W, S, Hs))
    s_h_edge = jnp.concatenate([s_h_e2, label_emb_t], axis=-1)
    e_h_e2 = jnp.broadcast_to(e_h[:, :, None, :], (B, W, S, He))
    e_s_l = jnp.concatenate([e_h_e2, s_h_edge], axis=-1)
    g2 = jax.nn.sigmoid(linear(e_s_l, params["gate2_w"], params["gate2_b"]))
    e_neigh_s_h = jnp.sum(s_h_edge * g2 * mask_se_t[..., None], axis=2)

    e_h_e3 = jnp.broadcast_to(e_h[:, :, None, :], (B, W, W, He))
    e_nei = jnp.swapaxes(e_h_e3, 1, 2)
    es = linear(jnp.concatenate([e_h_e3, e_nei], axis=-1),
                params["gate3_w"], params["gate3_b"])
    g3 = jax.nn.sigmoid(es + params["S"] * jnp.log(e2ematrix)[..., None])
    e_neigh_e_h = jnp.sum(e_h_e3 * e2emask[..., None] * g3, axis=2)

    s_input = jnp.concatenate([sent, s_neigh_s_h, s_neigh_e_h], axis=-1)
    e_input = jnp.concatenate([word, e_neigh_e_h, e_neigh_s_h], axis=-1)

    g_exp_s = jnp.broadcast_to(g_h[:, None, :], (B, S, Hs))
    new_sh = gru_cell(params["s_gru"], jnp.concatenate([s_input, g_exp_s], axis=-1), s_h)
    g_exp_e = jnp.broadcast_to(g_h[:, None, :], (B, W, Hs))
    new_eh = gru_cell(params["e_gru"], jnp.concatenate([e_input, g_exp_e], axis=-1), e_h)

    new_sh = new_sh * smask_f[..., None]
    new_eh = new_eh * wmask_f[..., None]
    sh_mean = jnp.sum(new_sh, axis=1) / jnp.sum(smask_f, axis=1, keepdims=True)
    eh_mean = jnp.sum(new_eh, axis=1) / (jnp.sum(wmask_f, axis=1, keepdims=True) + 1.0)
    mean = jnp.concatenate([sh_mean, eh_mean], axis=-1)
    new_g = gru_cell(params["g_gru"], mean, g_h)

    s_h, e_h, g_h = new_sh, new_eh, new_g

  return s_h, g_h


# ----------------------------------------------------------------------------
if __name__ == "__main__":
  B, S, W = 2, 8, 6
  s_emb = 32          # GRNGOB requires s_emb == s_hidden (s_h = zeros_like(sent))
  e_emb = 48
  s_hidden = 32
  e_hidden = 32
  label_dim = 16
  num_layers = 2

  key = jax.random.PRNGKey(0)
  keys = list(jax.random.split(key, 48))
  kit = iter(keys)

  def rnd(shape, scale=0.1):
    return scale * jax.random.normal(next(kit), shape, dtype=jnp.float32)

  sent = jax.random.normal(next(kit), (B, S, s_emb), dtype=jnp.float32)
  word = jax.random.normal(next(kit), (B, W, e_emb), dtype=jnp.float32)

  smask = jnp.array([[1, 1, 1, 1, 1, 1, 1, 1],
                     [1, 1, 1, 1, 1, 0, 0, 0]], dtype=jnp.int32)
  wmask = jnp.array([[1, 1, 1, 1, 1, 1],
                     [1, 1, 1, 1, 0, 0]], dtype=jnp.int32)

  elocs = [
      [[([0, 1], 1)], [([1, 2], 2)], [([2, 3], 3)],
       [([3, 4], 1)], [([4, 5], 2), ([6], 3)], [([5, 7], 1)]],
      [[([0, 1], 2)], [([1, 2], 1)], [([2, 3], 3)],
       [([0, 4], 1)], [([3], 2)], []],
  ]
  slocs = [
      [(0, 1, 0.9), (1, 2, 0.8), (2, 3, 0.3), (3, 4, 0.7),
       (4, 5, 0.6), (5, 6, 0.4), (6, 7, 0.95)],
      [(0, 1, 0.2), (1, 2, 0.85), (2, 3, 0.55), (3, 4, 0.35), (0, 2, 0.75)],
  ]
  ecom = [
      [[0, 1, 0.9], [1, 2, 0.3], [2, 3, 0.8], [4, 5, 0.6], [0, 3, 0.7]],
      [[0, 1, 0.55], [2, 3, 0.45], [1, 4, 0.95], [3, 5, 0.65]],
  ]

  graph = build_graph_tensors(B, S, W, elocs, slocs, ecom, np.asarray(smask))

  g_dim = s_hidden
  xs_dim = s_emb + s_hidden + (e_hidden + label_dim) + g_dim
  xe_dim = e_emb + e_hidden + (s_hidden + label_dim) + g_dim
  xg_dim = s_hidden + e_hidden

  def gru_params(xdim, hdim):
    return {"wr": rnd((hdim, xdim + hdim)), "br": rnd((hdim,)),
            "wz": rnd((hdim, xdim + hdim)), "bz": rnd((hdim,)),
            "wc": rnd((hdim, xdim)), "bc": rnd((hdim,)),
            "wu": rnd((hdim, hdim)), "bu": rnd((hdim,))}

  params = {
      "s_hidden": s_hidden, "e_hidden": e_hidden, "label_dim": label_dim,
      "s_orderemb": rnd((2, label_dim), 1.0),
      "s_edgeemb": rnd((11, label_dim), 1.0),
      "edgeemb": rnd((4, label_dim), 1.0),
      "gate0_w": rnd((s_hidden, 2 * s_hidden + 2 * label_dim)),
      "gate0_b": rnd((s_hidden,)),
      "gate1_w": rnd((e_hidden + label_dim, s_hidden + e_hidden + label_dim)),
      "gate1_b": rnd((e_hidden + label_dim,)),
      "gate2_w": rnd((s_hidden + label_dim, s_hidden + e_hidden + label_dim)),
      "gate2_b": rnd((s_hidden + label_dim,)),
      "gate3_w": rnd((e_hidden, 2 * e_hidden)),
      "gate3_b": rnd((e_hidden,)),
      "S": jnp.float32(0.5),
      "s_gru": gru_params(xs_dim, s_hidden),
      "e_gru": gru_params(xe_dim, e_hidden),
      "g_gru": gru_params(xg_dim, g_dim),
  }

  s_h_k, g_h_k = grngob_forward(sent, word, smask, wmask, graph, params, num_layers)
  s_h_k, g_h_k = jax.block_until_ready((s_h_k, g_h_k))

  s_h_r, g_h_r = grngob_reference(sent, word, smask, wmask, graph, params, num_layers)

  assert s_h_k.shape == (B, S, s_hidden)
  assert g_h_k.shape == (B, s_hidden)
  ok = (jnp.allclose(s_h_k, s_h_r, atol=1e-2, rtol=1e-2)
        and jnp.allclose(g_h_k, g_h_r, atol=1e-2, rtol=1e-2))
  if not ok:
    max_err = max(float(jnp.max(jnp.abs(s_h_k - s_h_r))),
                  float(jnp.max(jnp.abs(g_h_k - g_h_r))))
    raise AssertionError(f"kernel does not match reference (max abs err {max_err:.3e})")

  print("KERNEL_OK")
</pallas_src>

<mosaic_0001>
module attributes {stable_mosaic.version = 11 : i64} {
  func.func @_grngob_kernel(%arg0: i32, %arg1: memref<1x8x32xf32, #tpu.memory_space<vmem>>, %arg2: memref<1x6x48xf32, #tpu.memory_space<vmem>>, %arg3: memref<1x8x1xf32, #tpu.memory_space<vmem>>, %arg4: memref<1x6x1xf32, #tpu.memory_space<vmem>>, %arg5: memref<1x8x8x32xf32, #tpu.memory_space<vmem>>, %arg6: memref<1x8x8xf32, #tpu.memory_space<vmem>>, %arg7: memref<1x8x6x16xf32, #tpu.memory_space<vmem>>, %arg8: memref<1x6x8x16xf32, #tpu.memory_space<vmem>>, %arg9: memref<1x8x6xf32, #tpu.memory_space<vmem>>, %arg10: memref<1x6x8xf32, #tpu.memory_space<vmem>>, %arg11: memref<1x6x6xf32, #tpu.memory_space<vmem>>, %arg12: memref<1x6x6xf32, #tpu.memory_space<vmem>>, %arg13: memref<96x32xf32, #tpu.memory_space<vmem>>, %arg14: memref<1x32xf32, #tpu.memory_space<vmem>>, %arg15: memref<80x48xf32, #tpu.memory_space<vmem>>, %arg16: memref<1x48xf32, #tpu.memory_space<vmem>>, %arg17: memref<80x48xf32, #tpu.memory_space<vmem>>, %arg18: memref<1x48xf32, #tpu.memory_space<vmem>>, %arg19: memref<64x32xf32, #tpu.memory_space<vmem>>, %arg20: memref<1x32xf32, #tpu.memory_space<vmem>>, %arg21: memref<176x64xf32, #tpu.memory_space<vmem>>, %arg22: memref<1x64xf32, #tpu.memory_space<vmem>>, %arg23: memref<144x32xf32, #tpu.memory_space<vmem>>, %arg24: memref<1x32xf32, #tpu.memory_space<vmem>>, %arg25: memref<32x32xf32, #tpu.memory_space<vmem>>, %arg26: memref<1x32xf32, #tpu.memory_space<vmem>>, %arg27: memref<192x64xf32, #tpu.memory_space<vmem>>, %arg28: memref<1x64xf32, #tpu.memory_space<vmem>>, %arg29: memref<160x32xf32, #tpu.memory_space<vmem>>, %arg30: memref<1x32xf32, #tpu.memory_space<vmem>>, %arg31: memref<32x32xf32, #tpu.memory_space<vmem>>, %arg32: memref<1x32xf32, #tpu.memory_space<vmem>>, %arg33: memref<96x64xf32, #tpu.memory_space<vmem>>, %arg34: memref<1x64xf32, #tpu.memory_space<vmem>>, %arg35: memref<64x32xf32, #tpu.memory_space<vmem>>, %arg36: memref<1x32xf32, #tpu.memory_space<vmem>>, %arg37: memref<32x32xf32, #tpu.memory_space<vmem>>, %arg38: memref<1x32xf32, #tpu.memory_space<vmem>>, %arg39: memref<1x8x32xf32, #tpu.memory_space<vmem>>, %arg40: memref<1x1x32xf32, #tpu.memory_space<vmem>>) attributes {dimension_semantics = [#tpu.dimension_semantics<parallel>], iteration_bounds = array<i64: 2>, scalar_prefetch = 0 : i64, scratch_operands = 0 : i64, tpu.core_type = #tpu.core_type<tc>, window_params = [{transform_indices = @transform_0, window_bounds = array<i64: 1, 8, 32>}, {transform_indices = @transform_1, window_bounds = array<i64: 1, 6, 48>}, {transform_indices = @transform_2, window_bounds = array<i64: 1, 8, 1>}, {transform_indices = @transform_3, window_bounds = array<i64: 1, 6, 1>}, {transform_indices = @transform_4, window_bounds = array<i64: 1, 8, 8, 32>}, {transform_indices = @transform_5, window_bounds = array<i64: 1, 8, 8>}, {transform_indices = @transform_6, window_bounds = array<i64: 1, 8, 6, 16>}, {transform_indices = @transform_7, window_bounds = array<i64: 1, 6, 8, 16>}, {transform_indices = @transform_8, window_bounds = array<i64: 1, 8, 6>}, {transform_indices = @transform_9, window_bounds = array<i64: 1, 6, 8>}, {transform_indices = @transform_10, window_bounds = array<i64: 1, 6, 6>}, {transform_indices = @transform_11, window_bounds = array<i64: 1, 6, 6>}, {pipeline_mode = #tpu.pipeline_mode<synchronous>, transform_indices = @transform_12, window_bounds = array<i64: 96, 32>}, {pipeline_mode = #tpu.pipeline_mode<synchronous>, transform_indices = @transform_13, window_bounds = array<i64: 1, 32>}, {pipeline_mode = #tpu.pipeline_mode<synchronous>, transform_indices = @transform_14, window_bounds = array<i64: 80, 48>}, {pipeline_mode = #tpu.pipeline_mode<synchronous>, transform_indices = @transform_15, window_bounds = array<i64: 1, 48>}, {pipeline_mode = #tpu.pipeline_mode<synchronous>, transform_indices = @transform_16, window_bounds = array<i64: 80, 48>}, {pipeline_mode = #tpu.pipeline_mode<synchronous>, transform_indices = @transform_17, window_bounds = array<i64: 1, 48>}, {pipeline_mode = #tpu.pipeline_mode<synchronous>, transform_indices = @transform_18, window_bounds = array<i64: 64, 32>}, {pipeline_mode = #tpu.pipeline_mode<synchronous>, transform_indices = @transform_19, window_bounds = array<i64: 1, 32>}, {pipeline_mode = #tpu.pipeline_mode<synchronous>, transform_indices = @transform_20, window_bounds = array<i64: 176, 64>}, {pipeline_mode = #tpu.pipeline_mode<synchronous>, transform_indices = @transform_21, window_bounds = array<i64: 1, 64>}, {pipeline_mode = #tpu.pipeline_mode<synchronous>, transform_indices = @transform_22, window_bounds = array<i64: 144, 32>}, {pipeline_mode = #tpu.pipeline_mode<synchronous>, transform_indices = @transform_23, window_bounds = array<i64: 1, 32>}, {pipeline_mode = #tpu.pipeline_mode<synchronous>, transform_indices = @transform_24, window_bounds = array<i64: 32, 32>}, {pipeline_mode = #tpu.pipeline_mode<synchronous>, transform_indices = @transform_25, window_bounds = array<i64: 1, 32>}, {pipeline_mode = #tpu.pipeline_mode<synchronous>, transform_indices = @transform_26, window_bounds = array<i64: 192, 64>}, {pipeline_mode = #tpu.pipeline_mode<synchronous>, transform_indices = @transform_27, window_bounds = array<i64: 1, 64>}, {pipeline_mode = #tpu.pipeline_mode<synchronous>, transform_indices = @transform_28, window_bounds = array<i64: 160, 32>}, {pipeline_mode = #tpu.pipeline_mode<synchronous>, transform_indices = @transform_29, window_bounds = array<i64: 1, 32>}, {pipeline_mode = #tpu.pipeline_mode<synchronous>, transform_indices = @transform_30, window_bounds = array<i64: 32, 32>}, {pipeline_mode = #tpu.pipeline_mode<synchronous>, transform_indices = @transform_31, window_bounds = array<i64: 1, 32>}, {pipeline_mode = #tpu.pipeline_mode<synchronous>, transform_indices = @transform_32, window_bounds = array<i64: 96, 64>}, {pipeline_mode = #tpu.pipeline_mode<synchronous>, transform_indices = @transform_33, window_bounds = array<i64: 1, 64>}, {pipeline_mode = #tpu.pipeline_mode<synchronous>, transform_indices = @transform_34, window_bounds = array<i64: 64, 32>}, {pipeline_mode = #tpu.pipeline_mode<synchronous>, transform_indices = @transform_35, window_bounds = array<i64: 1, 32>}, {pipeline_mode = #tpu.pipeline_mode<synchronous>, transform_indices = @transform_36, window_bounds = array<i64: 32, 32>}, {pipeline_mode = #tpu.pipeline_mode<synchronous>, transform_indices = @transform_37, window_bounds = array<i64: 1, 32>}, {transform_indices = @transform_38, window_bounds = array<i64: 1, 8, 32>}, {transform_indices = @transform_39, window_bounds = array<i64: 1, 1, 32>}]} {
    %c0 = arith.constant 0 : index
    %c0_0 = arith.constant 0 : index
    %c0_1 = arith.constant 0 : index
    %0 = vector.load %arg1[%c0, %c0_0, %c0_1] : memref<1x8x32xf32, #tpu.memory_space<vmem>>, vector<1x8x32xf32>
    %1 = vector.shape_cast %0 : vector<1x8x32xf32> to vector<8x32xf32>
    %c0_2 = arith.constant 0 : index
    %c0_3 = arith.constant 0 : index
    %c0_4 = arith.constant 0 : index
    %2 = vector.load %arg2[%c0_2, %c0_3, %c0_4] : memref<1x6x48xf32, #tpu.memory_space<vmem>>, vector<1x6x48xf32>
    %3 = vector.shape_cast %2 : vector<1x6x48xf32> to vector<6x48xf32>
    %c0_5 = arith.constant 0 : index
    %c0_6 = arith.constant 0 : index
    %c0_7 = arith.constant 0 : index
    %4 = vector.load %arg3[%c0_5, %c0_6, %c0_7] : memref<1x8x1xf32, #tpu.memory_space<vmem>>, vector<1x8x1xf32>
    %5 = vector.shape_cast %4 : vector<1x8x1xf32> to vector<8x1xf32>
    %c0_8 = arith.constant 0 : index
    %c0_9 = arith.constant 0 : index
    %c0_10 = arith.constant 0 : index
    %6 = vector.load %arg4[%c0_8, %c0_9, %c0_10] : memref<1x6x1xf32, #tpu.memory_space<vmem>>, vector<1x6x1xf32>
    %7 = vector.shape_cast %6 : vector<1x6x1xf32> to vector<6x1xf32>
    %c0_11 = arith.constant 0 : index
    %c0_12 = arith.constant 0 : index
    %c0_13 = arith.constant 0 : index
    %c0_14 = arith.constant 0 : index
    %8 = vector.load %arg5[%c0_11, %c0_12, %c0_13, %c0_14] : memref<1x8x8x32xf32, #tpu.memory_space<vmem>>, vector<1x8x8x32xf32>
    %9 = vector.shape_cast %8 : vector<1x8x8x32xf32> to vector<8x8x32xf32>
    %c0_15 = arith.constant 0 : index
    %c0_16 = arith.constant 0 : index
    %c0_17 = arith.constant 0 : index
    %10 = vector.load %arg6[%c0_15, %c0_16, %c0_17] : memref<1x8x8xf32, #tpu.memory_space<vmem>>, vector<1x8x8xf32>
    %11 = vector.shape_cast %10 : vector<1x8x8xf32> to vector<8x8xf32>
    %c0_18 = arith.constant 0 : index
    %c0_19 = arith.constant 0 : index
    %c0_20 = arith.constant 0 : index
    %c0_21 = arith.constant 0 : index
    %12 = vector.load %arg7[%c0_18, %c0_19, %c0_20, %c0_21] : memref<1x8x6x16xf32, #tpu.memory_space<vmem>>, vector<1x8x6x16xf32>
    %13 = vector.shape_cast %12 : vector<1x8x6x16xf32> to vector<8x6x16xf32>
    %c0_22 = arith.constant 0 : index
    %c0_23 = arith.constant 0 : index
    %c0_24 = arith.constant 0 : index
    %c0_25 = arith.constant 0 : index
    %14 = vector.load %arg8[%c0_22, %c0_23, %c0_24, %c0_25] : memref<1x6x8x16xf32, #tpu.memory_space<vmem>>, vector<1x6x8x16xf32>
    %15 = vector.shape_cast %14 : vector<1x6x8x16xf32> to vector<6x8x16xf32>
    %c0_26 = arith.constant 0 : index
    %c0_27 = arith.constant 0 : index
    %c0_28 = arith.constant 0 : index
    %16 = vector.load %arg9[%c0_26, %c0_27, %c0_28] : memref<1x8x6xf32, #tpu.memory_space<vmem>>, vector<1x8x6xf32>
    %17 = vector.shape_cast %16 : vector<1x8x6xf32> to vector<8x6xf32>
    %c0_29 = arith.constant 0 : index
    %c0_30 = arith.constant 0 : index
    %c0_31 = arith.constant 0 : index
    %18 = vector.load %arg10[%c0_29, %c0_30, %c0_31] : memref<1x6x8xf32, #tpu.memory_space<vmem>>, vector<1x6x8xf32>
    %19 = vector.shape_cast %18 : vector<1x6x8xf32> to vector<6x8xf32>
    %c0_32 = arith.constant 0 : index
    %c0_33 = arith.constant 0 : index
    %c0_34 = arith.constant 0 : index
    %20 = vector.load %arg11[%c0_32, %c0_33, %c0_34] : memref<1x6x6xf32, #tpu.memory_space<vmem>>, vector<1x6x6xf32>
    %21 = vector.shape_cast %20 : vector<1x6x6xf32> to vector<6x6xf32>
    %c0_35 = arith.constant 0 : index
    %c0_36 = arith.constant 0 : index
    %c0_37 = arith.constant 0 : index
    %22 = vector.load %arg12[%c0_35, %c0_36, %c0_37] : memref<1x6x6xf32, #tpu.memory_space<vmem>>, vector<1x6x6xf32>
    %23 = vector.shape_cast %22 : vector<1x6x6xf32> to vector<6x6xf32>
    %c0_38 = arith.constant 0 : index
    %c0_39 = arith.constant 0 : index
    %24 = vector.load %arg13[%c0_38, %c0_39] : memref<96x32xf32, #tpu.memory_space<vmem>>, vector<96x32xf32>
    %25 = vector.extract_strided_slice %24 {offsets = [0, 0], sizes = [32, 32], strides = [1, 1]} : vector<96x32xf32> to vector<32x32xf32>
    %26 = vector.extract_strided_slice %24 {offsets = [32, 0], sizes = [32, 32], strides = [1, 1]} : vector<96x32xf32> to vector<32x32xf32>
    %27 = vector.extract_strided_slice %24 {offsets = [64, 0], sizes = [32, 32], strides = [1, 1]} : vector<96x32xf32> to vector<32x32xf32>
    %c0_40 = arith.constant 0 : index
    %c0_41 = arith.constant 0 : index
    %28 = vector.load %arg14[%c0_40, %c0_41] : memref<1x32xf32, #tpu.memory_space<vmem>>, vector<1x32xf32>
    %c0_42 = arith.constant 0 : index
    %c0_43 = arith.constant 0 : index
    %29 = vector.load %arg15[%c0_42, %c0_43] : memref<80x48xf32, #tpu.memory_space<vmem>>, vector<80x48xf32>
    %30 = vector.extract_strided_slice %29 {offsets = [0, 0], sizes = [32, 48], strides = [1, 1]} : vector<80x48xf32> to vector<32x48xf32>
    %31 = vector.extract_strided_slice %29 {offsets = [32, 0], sizes = [32, 48], strides = [1, 1]} : vector<80x48xf32> to vector<32x48xf32>
    %32 = vector.extract_strided_slice %29 {offsets = [64, 0], sizes = [16, 48], strides = [1, 1]} : vector<80x48xf32> to vector<16x48xf32>
    %c0_44 = arith.constant 0 : index
    %c0_45 = arith.constant 0 : index
    %33 = vector.load %arg16[%c0_44, %c0_45] : memref<1x48xf32, #tpu.memory_space<vmem>>, vector<1x48xf32>
    %c0_46 = arith.constant 0 : index
    %c0_47 = arith.constant 0 : index
    %34 = vector.load %arg17[%c0_46, %c0_47] : memref<80x48xf32, #tpu.memory_space<vmem>>, vector<80x48xf32>
    %35 = vector.extract_strided_slice %34 {offsets = [0, 0], sizes = [32, 48], strides = [1, 1]} : vector<80x48xf32> to vector<32x48xf32>
    %36 = vector.extract_strided_slice %34 {offsets = [32, 0], sizes = [32, 48], strides = [1, 1]} : vector<80x48xf32> to vector<32x48xf32>
    %37 = vector.extract_strided_slice %34 {offsets = [64, 0], sizes = [16, 48], strides = [1, 1]} : vector<80x48xf32> to vector<16x48xf32>
    %c0_48 = arith.constant 0 : index
    %c0_49 = arith.constant 0 : index
    %38 = vector.load %arg18[%c0_48, %c0_49] : memref<1x48xf32, #tpu.memory_space<vmem>>, vector<1x48xf32>
    %c0_50 = arith.constant 0 : index
    %c0_51 = arith.constant 0 : index
    %39 = vector.load %arg19[%c0_50, %c0_51] : memref<64x32xf32, #tpu.memory_space<vmem>>, vector<64x32xf32>
    %40 = vector.extract_strided_slice %39 {offsets = [0, 0], sizes = [32, 32], strides = [1, 1]} : vector<64x32xf32> to vector<32x32xf32>
    %41 = vector.extract_strided_slice %39 {offsets = [32, 0], sizes = [32, 32], strides = [1, 1]} : vector<64x32xf32> to vector<32x32xf32>
    %c0_52 = arith.constant 0 : index
    %c0_53 = arith.constant 0 : index
    %42 = vector.load %arg20[%c0_52, %c0_53] : memref<1x32xf32, #tpu.memory_space<vmem>>, vector<1x32xf32>
    %c0_54 = arith.constant 0 : index
    %c0_55 = arith.constant 0 : index
    %43 = vector.load %arg21[%c0_54, %c0_55] : memref<176x64xf32, #tpu.memory_space<vmem>>, vector<176x64xf32>
    %c0_56 = arith.constant 0 : index
    %c0_57 = arith.constant 0 : index
    %44 = vector.load %arg22[%c0_56, %c0_57] : memref<1x64xf32, #tpu.memory_space<vmem>>, vector<1x64xf32>
    %c0_58 = arith.constant 0 : index
    %c0_59 = arith.constant 0 : index
    %45 = vector.load %arg23[%c0_58, %c0_59] : memref<144x32xf32, #tpu.memory_space<vmem>>, vector<144x32xf32>
    %c0_60 = arith.constant 0 : index
    %c0_61 = arith.constant 0 : index
    %46 = vector.load %arg24[%c0_60, %c0_61] : memref<1x32xf32, #tpu.memory_space<vmem>>, vector<1x32xf32>
    %c0_62 = arith.constant 0 : index
    %c0_63 = arith.constant 0 : index
    %47 = vector.load %arg25[%c0_62, %c0_63] : memref<32x32xf32, #tpu.memory_space<vmem>>, vector<32x32xf32>
    %c0_64 = arith.constant 0 : index
    %c0_65 = arith.constant 0 : index
    %48 = vector.load %arg26[%c0_64, %c0_65] : memref<1x32xf32, #tpu.memory_space<vmem>>, vector<1x32xf32>
    %c0_66 = arith.constant 0 : index
    %c0_67 = arith.constant 0 : index
    %49 = vector.load %arg27[%c0_66, %c0_67] : memref<192x64xf32, #tpu.memory_space<vmem>>, vector<192x64xf32>
    %c0_68 = arith.constant 0 : index
    %c0_69 = arith.constant 0 : index
    %50 = vector.load %arg28[%c0_68, %c0_69] : memref<1x64xf32, #tpu.memory_space<vmem>>, vector<1x64xf32>
    %c0_70 = arith.constant 0 : index
    %c0_71 = arith.constant 0 : index
    %51 = vector.load %arg29[%c0_70, %c0_71] : memref<160x32xf32, #tpu.memory_space<vmem>>, vector<160x32xf32>
    %c0_72 = arith.constant 0 : index
    %c0_73 = arith.constant 0 : index
    %52 = vector.load %arg30[%c0_72, %c0_73] : memref<1x32xf32, #tpu.memory_space<vmem>>, vector<1x32xf32>
    %c0_74 = arith.constant 0 : index
    %c0_75 = arith.constant 0 : index
    %53 = vector.load %arg31[%c0_74, %c0_75] : memref<32x32xf32, #tpu.memory_space<vmem>>, vector<32x32xf32>
    %c0_76 = arith.constant 0 : index
    %c0_77 = arith.constant 0 : index
    %54 = vector.load %arg32[%c0_76, %c0_77] : memref<1x32xf32, #tpu.memory_space<vmem>>, vector<1x32xf32>
    %c0_78 = arith.constant 0 : index
    %c0_79 = arith.constant 0 : index
    %55 = vector.load %arg33[%c0_78, %c0_79] : memref<96x64xf32, #tpu.memory_space<vmem>>, vector<96x64xf32>
    %c0_80 = arith.constant 0 : index
    %c0_81 = arith.constant 0 : index
    %56 = vector.load %arg34[%c0_80, %c0_81] : memref<1x64xf32, #tpu.memory_space<vmem>>, vector<1x64xf32>
    %c0_82 = arith.constant 0 : index
    %c0_83 = arith.constant 0 : index
    %57 = vector.load %arg35[%c0_82, %c0_83] : memref<64x32xf32, #tpu.memory_space<vmem>>, vector<64x32xf32>
    %c0_84 = arith.constant 0 : index
    %c0_85 = arith.constant 0 : index
    %58 = vector.load %arg36[%c0_84, %c0_85] : memref<1x32xf32, #tpu.memory_space<vmem>>, vector<1x32xf32>
    %c0_86 = arith.constant 0 : index
    %c0_87 = arith.constant 0 : index
    %59 = vector.load %arg37[%c0_86, %c0_87] : memref<32x32xf32, #tpu.memory_space<vmem>>, vector<32x32xf32>
    %c0_88 = arith.constant 0 : index
    %c0_89 = arith.constant 0 : index
    %60 = vector.load %arg38[%c0_88, %c0_89] : memref<1x32xf32, #tpu.memory_space<vmem>>, vector<1x32xf32>
    %61 = vector.shape_cast %27 : vector<32x32xf32> to vector<1x32x32xf32>
    %62 = vector.shape_cast %61 : vector<1x32x32xf32> to vector<1x32x32xf32>
    %63 = vector.broadcast %62 : vector<1x32x32xf32> to vector<8x32x32xf32>
    %cst = arith.constant dense<0.000000e+00> : vector<8x8x32xf32>
    %64 = tpu.matmul %9, %63, %cst {dimension_numbers = #tpu.dot_dimension_numbers<[2], [1], [1], [2], [0, 0, 0, 1, 1, 2], [0], [0]>} : vector<8x8x32xf32>, vector<8x32x32xf32>, vector<8x8x32xf32> -> vector<8x8x32xf32>
    %65 = vector.shape_cast %32 : vector<16x48xf32> to vector<1x16x48xf32>
    %66 = vector.shape_cast %65 : vector<1x16x48xf32> to vector<1x16x48xf32>
    %67 = vector.broadcast %66 : vector<1x16x48xf32> to vector<8x16x48xf32>
    %cst_90 = arith.constant dense<0.000000e+00> : vector<8x6x48xf32>
    %68 = tpu.matmul %13, %67, %cst_90 {dimension_numbers = #tpu.dot_dimension_numbers<[2], [1], [1], [2], [0, 0, 0, 1, 1, 2], [0], [0]>} : vector<8x6x16xf32>, vector<8x16x48xf32>, vector<8x6x48xf32> -> vector<8x6x48xf32>
    %69 = vector.shape_cast %37 : vector<16x48xf32> to vector<1x16x48xf32>
    %70 = vector.shape_cast %69 : vector<1x16x48xf32> to vector<1x16x48xf32>
    %71 = vector.broadcast %70 : vector<1x16x48xf32> to vector<6x16x48xf32>
    %cst_91 = arith.constant dense<0.000000e+00> : vector<6x8x48xf32>
    %72 = tpu.matmul %15, %71, %cst_91 {dimension_numbers = #tpu.dot_dimension_numbers<[2], [1], [1], [2], [0, 0, 0, 1, 1, 2], [0], [0]>} : vector<6x8x16xf32>, vector<6x16x48xf32>, vector<6x8x48xf32> -> vector<6x8x48xf32>
    %cst_92 = arith.constant 0.000000e+00 : f32
    %73 = vector.broadcast %cst_92 : f32 to vector<8x32xf32>
    %cst_93 = arith.constant 0.000000e+00 : f32
    %74 = vector.broadcast %cst_93 : f32 to vector<6x32xf32>
    %cst_94 = arith.constant 0.000000e+00 : f32
    %75 = vector.broadcast %cst_94 : f32 to vector<1x32xf32>
    %cst_95 = arith.constant dense<0.000000e+00> : vector<8x32xf32>
    %76 = tpu.matmul %73, %25, %cst_95 {dimension_numbers = #tpu.dot_dimension_numbers<[1], [0], [0], [1], [0, 0, 1, 1], [], []>} : vector<8x32xf32>, vector<32x32xf32>, vector<8x32xf32> -> vector<8x32xf32>
    %cst_96 = arith.constant dense<0.000000e+00> : vector<8x32xf32>
    %77 = tpu.matmul %73, %26, %cst_96 {dimension_numbers = #tpu.dot_dimension_numbers<[1], [0], [0], [1], [0, 0, 1, 1], [], []>} : vector<8x32xf32>, vector<32x32xf32>, vector<8x32xf32> -> vector<8x32xf32>
    %78 = vector.shape_cast %76 : vector<8x32xf32> to vector<8x1x32xf32>
    %79 = vector.shape_cast %77 : vector<8x32xf32> to vector<1x8x32xf32>
    %80 = vector.broadcast %78 : vector<8x1x32xf32> to vector<8x8x32xf32>
    %81 = vector.broadcast %79 : vector<1x8x32xf32> to vector<8x8x32xf32>
    %82 = arith.addf %80, %81 : vector<8x8x32xf32>
    %83 = arith.addf %82, %64 : vector<8x8x32xf32>
    %84 = vector.shape_cast %28 : vector<1x32xf32> to vector<1x1x32xf32>
    %85 = vector.broadcast %84 : vector<1x1x32xf32> to vector<8x8x32xf32>
    %86 = arith.addf %83, %85 : vector<8x8x32xf32>
    %87 = arith.negf %86 : vector<8x8x32xf32>
    %88 = math.exp %87 : vector<8x8x32xf32>
    %cst_97 = arith.constant 1.000000e+00 : f32
    %89 = vector.broadcast %cst_97 : f32 to vector<8x8x32xf32>
    %90 = arith.addf %89, %88 : vector<8x8x32xf32>
    %91 = arith.divf %89, %90 : vector<8x8x32xf32>
    %92 = vector.shape_cast %73 : vector<8x32xf32> to vector<1x8x32xf32>
    %93 = vector.broadcast %92 : vector<1x8x32xf32> to vector<8x8x32xf32>
    %94 = arith.mulf %93, %91 : vector<8x8x32xf32>
    %95 = vector.shape_cast %11 : vector<8x8xf32> to vector<8x8x1xf32>
    %96 = vector.broadcast %95 : vector<8x8x1xf32> to vector<8x8x32xf32>
    %97 = arith.mulf %94, %96 : vector<8x8x32xf32>
    %cst_98 = arith.constant dense<0.000000e+00> : vector<8x32xf32>
    %98 = vector.multi_reduction <add>, %97, %cst_98 [1] : vector<8x8x32xf32> to vector<8x32xf32>
    %cst_99 = arith.constant dense<0.000000e+00> : vector<8x48xf32>
    %99 = tpu.matmul %73, %30, %cst_99 {dimension_numbers = #tpu.dot_dimension_numbers<[1], [0], [0], [1], [0, 0, 1, 1], [], []>} : vector<8x32xf32>, vector<32x48xf32>, vector<8x48xf32> -> vector<8x48xf32>
    %cst_100 = arith.constant dense<0.000000e+00> : vector<6x48xf32>
    %100 = tpu.matmul %74, %31, %cst_100 {dimension_numbers = #tpu.dot_dimension_numbers<[1], [0], [0], [1], [0, 0, 1, 1], [], []>} : vector<6x32xf32>, vector<32x48xf32>, vector<6x48xf32> -> vector<6x48xf32>
    %101 = vector.shape_cast %99 : vector<8x48xf32> to vector<8x1x48xf32>
    %102 = vector.shape_cast %100 : vector<6x48xf32> to vector<1x6x48xf32>
    %103 = vector.broadcast %101 : vector<8x1x48xf32> to vector<8x6x48xf32>
    %104 = vector.broadcast %102 : vector<1x6x48xf32> to vector<8x6x48xf32>
    %105 = arith.addf %103, %104 : vector<8x6x48xf32>
    %106 = arith.addf %105, %68 : vector<8x6x48xf32>
    %107 = vector.shape_cast %33 : vector<1x48xf32> to vector<1x1x48xf32>
    %108 = vector.broadcast %107 : vector<1x1x48xf32> to vector<8x6x48xf32>
    %109 = arith.addf %106, %108 : vector<8x6x48xf32>
    %110 = arith.negf %109 : vector<8x6x48xf32>
    %111 = math.exp %110 : vector<8x6x48xf32>
    %cst_101 = arith.constant 1.000000e+00 : f32
    %112 = vector.broadcast %cst_101 : f32 to vector<8x6x48xf32>
    %113 = arith.addf %112, %111 : vector<8x6x48xf32>
    %114 = arith.divf %112, %113 : vector<8x6x48xf32>
    %115 = vector.shape_cast %17 : vector<8x6xf32> to vector<8x6x1xf32>
    %116 = vector.shape_cast %74 : vector<6x32xf32> to vector<1x6x32xf32>
    %117 = vector.extract_strided_slice %114 {offsets = [0, 0, 0], sizes = [8, 6, 32], strides = [1, 1, 1]} : vector<8x6x48xf32> to vector<8x6x32xf32>
    %118 = vector.broadcast %116 : vector<1x6x32xf32> to vector<8x6x32xf32>
    %119 = arith.mulf %118, %117 : vector<8x6x32xf32>
    %120 = vector.broadcast %115 : vector<8x6x1xf32> to vector<8x6x32xf32>
    %121 = arith.mulf %119, %120 : vector<8x6x32xf32>
    %cst_102 = arith.constant dense<0.000000e+00> : vector<8x32xf32>
    %122 = vector.multi_reduction <add>, %121, %cst_102 [1] : vector<8x6x32xf32> to vector<8x32xf32>
    %123 = vector.extract_strided_slice %114 {offsets = [0, 0, 32], sizes = [8, 6, 16], strides = [1, 1, 1]} : vector<8x6x48xf32> to vector<8x6x16xf32>
    %124 = arith.mulf %13, %123 : vector<8x6x16xf32>
    %125 = vector.broadcast %115 : vector<8x6x1xf32> to vector<8x6x16xf32>
    %126 = arith.mulf %124, %125 : vector<8x6x16xf32>
    %cst_103 = arith.constant dense<0.000000e+00> : vector<8x16xf32>
    %127 = vector.multi_reduction <add>, %126, %cst_103 [1] : vector<8x6x16xf32> to vector<8x16xf32>
    %128 = tpu.concatenate %122, %127 in 1 : vector<8x32xf32>, vector<8x16xf32> -> vector<8x48xf32>
    %cst_104 = arith.constant dense<0.000000e+00> : vector<6x48xf32>
    %129 = tpu.matmul %74, %35, %cst_104 {dimension_numbers = #tpu.dot_dimension_numbers<[1], [0], [0], [1], [0, 0, 1, 1], [], []>} : vector<6x32xf32>, vector<32x48xf32>, vector<6x48xf32> -> vector<6x48xf32>
    %cst_105 = arith.constant dense<0.000000e+00> : vector<8x48xf32>
    %130 = tpu.matmul %73, %36, %cst_105 {dimension_numbers = #tpu.dot_dimension_numbers<[1], [0], [0], [1], [0, 0, 1, 1], [], []>} : vector<8x32xf32>, vector<32x48xf32>, vector<8x48xf32> -> vector<8x48xf32>
    %131 = vector.shape_cast %129 : vector<6x48xf32> to vector<6x1x48xf32>
    %132 = vector.shape_cast %130 : vector<8x48xf32> to vector<1x8x48xf32>
    %133 = vector.broadcast %131 : vector<6x1x48xf32> to vector<6x8x48xf32>
    %134 = vector.broadcast %132 : vector<1x8x48xf32> to vector<6x8x48xf32>
    %135 = arith.addf %133, %134 : vector<6x8x48xf32>
    %136 = arith.addf %135, %72 : vector<6x8x48xf32>
    %137 = vector.shape_cast %38 : vector<1x48xf32> to vector<1x1x48xf32>
    %138 = vector.broadcast %137 : vector<1x1x48xf32> to vector<6x8x48xf32>
    %139 = arith.addf %136, %138 : vector<6x8x48xf32>
    %140 = arith.negf %139 : vector<6x8x48xf32>
    %141 = math.exp %140 : vector<6x8x48xf32>
    %cst_106 = arith.constant 1.000000e+00 : f32
    %142 = vector.broadcast %cst_106 : f32 to vector<6x8x48xf32>
    %143 = arith.addf %142, %141 : vector<6x8x48xf32>
    %144 = arith.divf %142, %143 : vector<6x8x48xf32>
    %145 = vector.shape_cast %19 : vector<6x8xf32> to vector<6x8x1xf32>
    %146 = vector.shape_cast %73 : vector<8x32xf32> to vector<1x8x32xf32>
    %147 = vector.extract_strided_slice %144 {offsets = [0, 0, 0], sizes = [6, 8, 32], strides = [1, 1, 1]} : vector<6x8x48xf32> to vector<6x8x32xf32>
    %148 = vector.broadcast %146 : vector<1x8x32xf32> to vector<6x8x32xf32>
    %149 = arith.mulf %148, %147 : vector<6x8x32xf32>
    %150 = vector.broadcast %145 : vector<6x8x1xf32> to vector<6x8x32xf32>
    %151 = arith.mulf %149, %150 : vector<6x8x32xf32>
    %cst_107 = arith.constant dense<0.000000e+00> : vector<6x32xf32>
    %152 = vector.multi_reduction <add>, %151, %cst_107 [1] : vector<6x8x32xf32> to vector<6x32xf32>
    %153 = vector.extract_strided_slice %144 {offsets = [0, 0, 32], sizes = [6, 8, 16], strides = [1, 1, 1]} : vector<6x8x48xf32> to vector<6x8x16xf32>
    %154 = arith.mulf %15, %153 : vector<6x8x16xf32>
    %155 = vector.broadcast %145 : vector<6x8x1xf32> to vector<6x8x16xf32>
    %156 = arith.mulf %154, %155 : vector<6x8x16xf32>
    %cst_108 = arith.constant dense<0.000000e+00> : vector<6x16xf32>
    %157 = vector.multi_reduction <add>, %156, %cst_108 [1] : vector<6x8x16xf32> to vector<6x16xf32>
    %158 = tpu.concatenate %152, %157 in 1 : vector<6x32xf32>, vector<6x16xf32> -> vector<6x48xf32>
    %cst_109 = arith.constant dense<0.000000e+00> : vector<6x32xf32>
    %159 = tpu.matmul %74, %40, %cst_109 {dimension_numbers = #tpu.dot_dimension_numbers<[1], [0], [0], [1], [0, 0, 1, 1], [], []>} : vector<6x32xf32>, vector<32x32xf32>, vector<6x32xf32> -> vector<6x32xf32>
    %cst_110 = arith.constant dense<0.000000e+00> : vector<6x32xf32>
    %160 = tpu.matmul %74, %41, %cst_110 {dimension_numbers = #tpu.dot_dimension_numbers<[1], [0], [0], [1], [0, 0, 1, 1], [], []>} : vector<6x32xf32>, vector<32x32xf32>, vector<6x32xf32> -> vector<6x32xf32>
    %161 = vector.shape_cast %159 : vector<6x32xf32> to vector<6x1x32xf32>
    %162 = vector.shape_cast %160 : vector<6x32xf32> to vector<1x6x32xf32>
    %163 = vector.broadcast %161 : vector<6x1x32xf32> to vector<6x6x32xf32>
    %164 = vector.broadcast %162 : vector<1x6x32xf32> to vector<6x6x32xf32>
    %165 = arith.addf %163, %164 : vector<6x6x32xf32>
    %166 = vector.shape_cast %42 : vector<1x32xf32> to vector<1x1x32xf32>
    %167 = vector.broadcast %166 : vector<1x1x32xf32> to vector<6x6x32xf32>
    %168 = arith.addf %165, %167 : vector<6x6x32xf32>
    %169 = vector.shape_cast %21 : vector<6x6xf32> to vector<6x6x1xf32>
    %170 = vector.broadcast %169 : vector<6x6x1xf32> to vector<6x6x32xf32>
    %171 = arith.addf %168, %170 : vector<6x6x32xf32>
    %172 = arith.negf %171 : vector<6x6x32xf32>
    %173 = math.exp %172 : vector<6x6x32xf32>
    %cst_111 = arith.constant 1.000000e+00 : f32
    %174 = vector.broadcast %cst_111 : f32 to vector<6x6x32xf32>
    %175 = arith.addf %174, %173 : vector<6x6x32xf32>
    %176 = arith.divf %174, %175 : vector<6x6x32xf32>
    %177 = vector.shape_cast %74 : vector<6x32xf32> to vector<6x1x32xf32>
    %178 = vector.shape_cast %23 : vector<6x6xf32> to vector<6x6x1xf32>
    %179 = vector.broadcast %177 : vector<6x1x32xf32> to vector<6x6x32xf32>
    %180 = vector.broadcast %178 : vector<6x6x1xf32> to vector<6x6x32xf32>
    %181 = arith.mulf %179, %180 : vector<6x6x32xf32>
    %182 = arith.mulf %181, %176 : vector<6x6x32xf32>
    %cst_112 = arith.constant dense<0.000000e+00> : vector<6x32xf32>
    %183 = vector.multi_reduction <add>, %182, %cst_112 [1] : vector<6x6x32xf32> to vector<6x32xf32>
    %184 = tpu.concatenate %1, %98, %128 in 1 : vector<8x32xf32>, vector<8x32xf32>, vector<8x48xf32> -> vector<8x112xf32>
    %185 = tpu.concatenate %3, %183, %158 in 1 : vector<6x48xf32>, vector<6x32xf32>, vector<6x48xf32> -> vector<6x128xf32>
    %186 = vector.shape_cast %75 : vector<1x32xf32> to vector<1x32xf32>
    %187 = vector.broadcast %186 : vector<1x32xf32> to vector<8x32xf32>
    %188 = tpu.concatenate %184, %187 in 1 : vector<8x112xf32>, vector<8x32xf32> -> vector<8x144xf32>
    %189 = tpu.concatenate %188, %73 in 1 : vector<8x144xf32>, vector<8x32xf32> -> vector<8x176xf32>
    %cst_113 = arith.constant dense<0.000000e+00> : vector<8x64xf32>
    %190 = tpu.matmul %189, %43, %cst_113 {dimension_numbers = #tpu.dot_dimension_numbers<[1], [0], [0], [1], [0, 0, 1, 1], [], []>} : vector<8x176xf32>, vector<176x64xf32>, vector<8x64xf32> -> vector<8x64xf32>
    %191 = vector.broadcast %44 : vector<1x64xf32> to vector<8x64xf32>
    %192 = arith.addf %190, %191 : vector<8x64xf32>
    %193 = arith.negf %192 : vector<8x64xf32>
    %194 = math.exp %193 : vector<8x64xf32>
    %cst_114 = arith.constant 1.000000e+00 : f32
    %195 = vector.broadcast %cst_114 : f32 to vector<8x64xf32>
    %196 = arith.addf %195, %194 : vector<8x64xf32>
    %197 = arith.divf %195, %196 : vector<8x64xf32>
    %198 = vector.extract_strided_slice %197 {offsets = [0, 0], sizes = [8, 32], strides = [1, 1]} : vector<8x64xf32> to vector<8x32xf32>
    %199 = vector.extract_strided_slice %197 {offsets = [0, 32], sizes = [8, 32], strides = [1, 1]} : vector<8x64xf32> to vector<8x32xf32>
    %cst_115 = arith.constant dense<0.000000e+00> : vector<8x32xf32>
    %200 = tpu.matmul %188, %45, %cst_115 {dimension_numbers = #tpu.dot_dimension_numbers<[1], [0], [0], [1], [0, 0, 1, 1], [], []>} : vector<8x144xf32>, vector<144x32xf32>, vector<8x32xf32> -> vector<8x32xf32>
    %201 = vector.broadcast %46 : vector<1x32xf32> to vector<8x32xf32>
    %202 = arith.addf %200, %201 : vector<8x32xf32>
    %cst_116 = arith.constant dense<0.000000e+00> : vector<8x32xf32>
    %203 = tpu.matmul %73, %47, %cst_116 {dimension_numbers = #tpu.dot_dimension_numbers<[1], [0], [0], [1], [0, 0, 1, 1], [], []>} : vector<8x32xf32>, vector<32x32xf32>, vector<8x32xf32> -> vector<8x32xf32>
    %204 = vector.broadcast %48 : vector<1x32xf32> to vector<8x32xf32>
    %205 = arith.addf %203, %204 : vector<8x32xf32>
    %206 = arith.mulf %198, %205 : vector<8x32xf32>
    %207 = arith.addf %202, %206 : vector<8x32xf32>
    %208 = math.tanh %207 : vector<8x32xf32>
    %209 = arith.mulf %199, %73 : vector<8x32xf32>
    %cst_117 = arith.constant 1.000000e+00 : f32
    %210 = vector.broadcast %cst_117 : f32 to vector<8x32xf32>
    %211 = arith.subf %210, %199 : vector<8x32xf32>
    %212 = arith.mulf %211, %208 : vector<8x32xf32>
    %213 = arith.addf %209, %212 : vector<8x32xf32>
    %214 = vector.shape_cast %75 : vector<1x32xf32> to vector<1x32xf32>
    %215 = vector.broadcast %214 : vector<1x32xf32> to vector<6x32xf32>
    %216 = tpu.concatenate %185, %215 in 1 : vector<6x128xf32>, vector<6x32xf32> -> vector<6x160xf32>
    %217 = tpu.concatenate %216, %74 in 1 : vector<6x160xf32>, vector<6x32xf32> -> vector<6x192xf32>
    %cst_118 = arith.constant dense<0.000000e+00> : vector<6x64xf32>
    %218 = tpu.matmul %217, %49, %cst_118 {dimension_numbers = #tpu.dot_dimension_numbers<[1], [0], [0], [1], [0, 0, 1, 1], [], []>} : vector<6x192xf32>, vector<192x64xf32>, vector<6x64xf32> -> vector<6x64xf32>
    %219 = vector.broadcast %50 : vector<1x64xf32> to vector<6x64xf32>
    %220 = arith.addf %218, %219 : vector<6x64xf32>
    %221 = arith.negf %220 : vector<6x64xf32>
    %222 = math.exp %221 : vector<6x64xf32>
    %cst_119 = arith.constant 1.000000e+00 : f32
    %223 = vector.broadcast %cst_119 : f32 to vector<6x64xf32>
    %224 = arith.addf %223, %222 : vector<6x64xf32>
    %225 = arith.divf %223, %224 : vector<6x64xf32>
    %226 = vector.extract_strided_slice %225 {offsets = [0, 0], sizes = [6, 32], strides = [1, 1]} : vector<6x64xf32> to vector<6x32xf32>
    %227 = vector.extract_strided_slice %225 {offsets = [0, 32], sizes = [6, 32], strides = [1, 1]} : vector<6x64xf32> to vector<6x32xf32>
    %cst_120 = arith.constant dense<0.000000e+00> : vector<6x32xf32>
    %228 = tpu.matmul %216, %51, %cst_120 {dimension_numbers = #tpu.dot_dimension_numbers<[1], [0], [0], [1], [0, 0, 1, 1], [], []>} : vector<6x160xf32>, vector<160x32xf32>, vector<6x32xf32> -> vector<6x32xf32>
    %229 = vector.broadcast %52 : vector<1x32xf32> to vector<6x32xf32>
    %230 = arith.addf %228, %229 : vector<6x32xf32>
    %cst_121 = arith.constant dense<0.000000e+00> : vector<6x32xf32>
    %231 = tpu.matmul %74, %53, %cst_121 {dimension_numbers = #tpu.dot_dimension_numbers<[1], [0], [0], [1], [0, 0, 1, 1], [], []>} : vector<6x32xf32>, vector<32x32xf32>, vector<6x32xf32> -> vector<6x32xf32>
    %232 = vector.broadcast %54 : vector<1x32xf32> to vector<6x32xf32>
    %233 = arith.addf %231, %232 : vector<6x32xf32>
    %234 = arith.mulf %226, %233 : vector<6x32xf32>
    %235 = arith.addf %230, %234 : vector<6x32xf32>
    %236 = math.tanh %235 : vector<6x32xf32>
    %237 = arith.mulf %227, %74 : vector<6x32xf32>
    %cst_122 = arith.constant 1.000000e+00 : f32
    %238 = vector.broadcast %cst_122 : f32 to vector<6x32xf32>
    %239 = arith.subf %238, %227 : vector<6x32xf32>
    %240 = arith.mulf %239, %236 : vector<6x32xf32>
    %241 = arith.addf %237, %240 : vector<6x32xf32>
    %242 = vector.broadcast %5 : vector<8x1xf32> to vector<8x32xf32>
    %243 = arith.mulf %213, %242 : vector<8x32xf32>
    %244 = vector.broadcast %7 : vector<6x1xf32> to vector<6x32xf32>
    %245 = arith.mulf %241, %244 : vector<6x32xf32>
    %cst_123 = arith.constant dense<0.000000e+00> : vector<32xf32>
    %246 = vector.multi_reduction <add>, %243, %cst_123 [0] : vector<8x32xf32> to vector<32xf32>
    %247 = vector.shape_cast %246 : vector<32xf32> to vector<1x32xf32>
    %cst_124 = arith.constant dense<0.000000e+00> : vector<1xf32>
    %248 = vector.multi_reduction <add>, %5, %cst_124 [0] : vector<8x1xf32> to vector<1xf32>
    %249 = vector.shape_cast %248 : vector<1xf32> to vector<1x1xf32>
    %250 = vector.broadcast %249 : vector<1x1xf32> to vector<1x32xf32>
    %251 = arith.divf %247, %250 : vector<1x32xf32>
    %cst_125 = arith.constant dense<0.000000e+00> : vector<32xf32>
    %252 = vector.multi_reduction <add>, %245, %cst_125 [0] : vector<6x32xf32> to vector<32xf32>
    %253 = vector.shape_cast %252 : vector<32xf32> to vector<1x32xf32>
    %cst_126 = arith.constant dense<0.000000e+00> : vector<1xf32>
    %254 = vector.multi_reduction <add>, %7, %cst_126 [0] : vector<6x1xf32> to vector<1xf32>
    %255 = vector.shape_cast %254 : vector<1xf32> to vector<1x1xf32>
    %cst_127 = arith.constant 1.000000e+00 : f32
    %256 = vector.broadcast %cst_127 : f32 to vector<1x1xf32>
    %257 = arith.addf %255, %256 : vector<1x1xf32>
    %258 = vector.broadcast %257 : vector<1x1xf32> to vector<1x32xf32>
    %259 = arith.divf %253, %258 : vector<1x32xf32>
    %260 = tpu.concatenate %251, %259 in 1 : vector<1x32xf32>, vector<1x32xf32> -> vector<1x64xf32>
    %261 = tpu.concatenate %260, %75 in 1 : vector<1x64xf32>, vector<1x32xf32> -> vector<1x96xf32>
    %cst_128 = arith.constant dense<0.000000e+00> : vector<1x64xf32>
    %262 = tpu.matmul %261, %55, %cst_128 {dimension_numbers = #tpu.dot_dimension_numbers<[1], [0], [0], [1], [0, 0, 1, 1], [], []>} : vector<1x96xf32>, vector<96x64xf32>, vector<1x64xf32> -> vector<1x64xf32>
    %263 = arith.addf %262, %56 : vector<1x64xf32>
    %264 = arith.negf %263 : vector<1x64xf32>
    %265 = math.exp %264 : vector<1x64xf32>
    %cst_129 = arith.constant 1.000000e+00 : f32
    %266 = vector.broadcast %cst_129 : f32 to vector<1x64xf32>
    %267 = arith.addf %266, %265 : vector<1x64xf32>
    %268 = arith.divf %266, %267 : vector<1x64xf32>
    %269 = vector.extract_strided_slice %268 {offsets = [0, 0], sizes = [1, 32], strides = [1, 1]} : vector<1x64xf32> to vector<1x32xf32>
    %270 = vector.extract_strided_slice %268 {offsets = [0, 32], sizes = [1, 32], strides = [1, 1]} : vector<1x64xf32> to vector<1x32xf32>
    %cst_130 = arith.constant dense<0.000000e+00> : vector<1x32xf32>
    %271 = tpu.matmul %260, %57, %cst_130 {dimension_numbers = #tpu.dot_dimension_numbers<[1], [0], [0], [1], [0, 0, 1, 1], [], []>} : vector<1x64xf32>, vector<64x32xf32>, vector<1x32xf32> -> vector<1x32xf32>
    %272 = arith.addf %271, %58 : vector<1x32xf32>
    %cst_131 = arith.constant dense<0.000000e+00> : vector<1x32xf32>
    %273 = tpu.matmul %75, %59, %cst_131 {dimension_numbers = #tpu.dot_dimension_numbers<[1], [0], [0], [1], [0, 0, 1, 1], [], []>} : vector<1x32xf32>, vector<32x32xf32>, vector<1x32xf32> -> vector<1x32xf32>
    %274 = arith.addf %273, %60 : vector<1x32xf32>
    %275 = arith.mulf %269, %274 : vector<1x32xf32>
    %276 = arith.addf %272, %275 : vector<1x32xf32>
    %277 = math.tanh %276 : vector<1x32xf32>
    %278 = arith.mulf %270, %75 : vector<1x32xf32>
    %cst_132 = arith.constant 1.000000e+00 : f32
    %279 = vector.broadcast %cst_132 : f32 to vector<1x32xf32>
    %280 = arith.subf %279, %270 : vector<1x32xf32>
    %281 = arith.mulf %280, %277 : vector<1x32xf32>
    %282 = arith.addf %278, %281 : vector<1x32xf32>
    %cst_133 = arith.constant dense<0.000000e+00> : vector<8x32xf32>
    %283 = tpu.matmul %243, %25, %cst_133 {dimension_numbers = #tpu.dot_dimension_numbers<[1], [0], [0], [1], [0, 0, 1, 1], [], []>} : vector<8x32xf32>, vector<32x32xf32>, vector<8x32xf32> -> vector<8x32xf32>
    %cst_134 = arith.constant dense<0.000000e+00> : vector<8x32xf32>
    %284 = tpu.matmul %243, %26, %cst_134 {dimension_numbers = #tpu.dot_dimension_numbers<[1], [0], [0], [1], [0, 0, 1, 1], [], []>} : vector<8x32xf32>, vector<32x32xf32>, vector<8x32xf32> -> vector<8x32xf32>
    %285 = vector.shape_cast %283 : vector<8x32xf32> to vector<8x1x32xf32>
    %286 = vector.shape_cast %284 : vector<8x32xf32> to vector<1x8x32xf32>
    %287 = vector.broadcast %285 : vector<8x1x32xf32> to vector<8x8x32xf32>
    %288 = vector.broadcast %286 : vector<1x8x32xf32> to vector<8x8x32xf32>
    %289 = arith.addf %287, %288 : vector<8x8x32xf32>
    %290 = arith.addf %289, %64 : vector<8x8x32xf32>
    %291 = vector.shape_cast %28 : vector<1x32xf32> to vector<1x1x32xf32>
    %292 = vector.broadcast %291 : vector<1x1x32xf32> to vector<8x8x32xf32>
    %293 = arith.addf %290, %292 : vector<8x8x32xf32>
    %294 = arith.negf %293 : vector<8x8x32xf32>
    %295 = math.exp %294 : vector<8x8x32xf32>
    %cst_135 = arith.constant 1.000000e+00 : f32
    %296 = vector.broadcast %cst_135 : f32 to vector<8x8x32xf32>
    %297 = arith.addf %296, %295 : vector<8x8x32xf32>
    %298 = arith.divf %296, %297 : vector<8x8x32xf32>
    %299 = vector.shape_cast %243 : vector<8x32xf32> to vector<1x8x32xf32>
    %300 = vector.broadcast %299 : vector<1x8x32xf32> to vector<8x8x32xf32>
    %301 = arith.mulf %300, %298 : vector<8x8x32xf32>
    %302 = vector.shape_cast %11 : vector<8x8xf32> to vector<8x8x1xf32>
    %303 = vector.broadcast %302 : vector<8x8x1xf32> to vector<8x8x32xf32>
    %304 = arith.mulf %301, %303 : vector<8x8x32xf32>
    %cst_136 = arith.constant dense<0.000000e+00> : vector<8x32xf32>
    %305 = vector.multi_reduction <add>, %304, %cst_136 [1] : vector<8x8x32xf32> to vector<8x32xf32>
    %cst_137 = arith.constant dense<0.000000e+00> : vector<8x48xf32>
    %306 = tpu.matmul %243, %30, %cst_137 {dimension_numbers = #tpu.dot_dimension_numbers<[1], [0], [0], [1], [0, 0, 1, 1], [], []>} : vector<8x32xf32>, vector<32x48xf32>, vector<8x48xf32> -> vector<8x48xf32>
    %cst_138 = arith.constant dense<0.000000e+00> : vector<6x48xf32>
    %307 = tpu.matmul %245, %31, %cst_138 {dimension_numbers = #tpu.dot_dimension_numbers<[1], [0], [0], [1], [0, 0, 1, 1], [], []>} : vector<6x32xf32>, vector<32x48xf32>, vector<6x48xf32> -> vector<6x48xf32>
    %308 = vector.shape_cast %306 : vector<8x48xf32> to vector<8x1x48xf32>
    %309 = vector.shape_cast %307 : vector<6x48xf32> to vector<1x6x48xf32>
    %310 = vector.broadcast %308 : vector<8x1x48xf32> to vector<8x6x48xf32>
    %311 = vector.broadcast %309 : vector<1x6x48xf32> to vector<8x6x48xf32>
    %312 = arith.addf %310, %311 : vector<8x6x48xf32>
    %313 = arith.addf %312, %68 : vector<8x6x48xf32>
    %314 = vector.shape_cast %33 : vector<1x48xf32> to vector<1x1x48xf32>
    %315 = vector.broadcast %314 : vector<1x1x48xf32> to vector<8x6x48xf32>
    %316 = arith.addf %313, %315 : vector<8x6x48xf32>
    %317 = arith.negf %316 : vector<8x6x48xf32>
    %318 = math.exp %317 : vector<8x6x48xf32>
    %cst_139 = arith.constant 1.000000e+00 : f32
    %319 = vector.broadcast %cst_139 : f32 to vector<8x6x48xf32>
    %320 = arith.addf %319, %318 : vector<8x6x48xf32>
    %321 = arith.divf %319, %320 : vector<8x6x48xf32>
    %322 = vector.shape_cast %17 : vector<8x6xf32> to vector<8x6x1xf32>
    %323 = vector.shape_cast %245 : vector<6x32xf32> to vector<1x6x32xf32>
    %324 = vector.extract_strided_slice %321 {offsets = [0, 0, 0], sizes = [8, 6, 32], strides = [1, 1, 1]} : vector<8x6x48xf32> to vector<8x6x32xf32>
    %325 = vector.broadcast %323 : vector<1x6x32xf32> to vector<8x6x32xf32>
    %326 = arith.mulf %325, %324 : vector<8x6x32xf32>
    %327 = vector.broadcast %322 : vector<8x6x1xf32> to vector<8x6x32xf32>
    %328 = arith.mulf %326, %327 : vector<8x6x32xf32>
    %cst_140 = arith.constant dense<0.000000e+00> : vector<8x32xf32>
    %329 = vector.multi_reduction <add>, %328, %cst_140 [1] : vector<8x6x32xf32> to vector<8x32xf32>
    %330 = vector.extract_strided_slice %321 {offsets = [0, 0, 32], sizes = [8, 6, 16], strides = [1, 1, 1]} : vector<8x6x48xf32> to vector<8x6x16xf32>
    %331 = arith.mulf %13, %330 : vector<8x6x16xf32>
    %332 = vector.broadcast %322 : vector<8x6x1xf32> to vector<8x6x16xf32>
    %333 = arith.mulf %331, %332 : vector<8x6x16xf32>
    %cst_141 = arith.constant dense<0.000000e+00> : vector<8x16xf32>
    %334 = vector.multi_reduction <add>, %333, %cst_141 [1] : vector<8x6x16xf32> to vector<8x16xf32>
    %335 = tpu.concatenate %329, %334 in 1 : vector<8x32xf32>, vector<8x16xf32> -> vector<8x48xf32>
    %cst_142 = arith.constant dense<0.000000e+00> : vector<6x48xf32>
    %336 = tpu.matmul %245, %35, %cst_142 {dimension_numbers = #tpu.dot_dimension_numbers<[1], [0], [0], [1], [0, 0, 1, 1], [], []>} : vector<6x32xf32>, vector<32x48xf32>, vector<6x48xf32> -> vector<6x48xf32>
    %cst_143 = arith.constant dense<0.000000e+00> : vector<8x48xf32>
    %337 = tpu.matmul %243, %36, %cst_143 {dimension_numbers = #tpu.dot_dimension_numbers<[1], [0], [0], [1], [0, 0, 1, 1], [], []>} : vector<8x32xf32>, vector<32x48xf32>, vector<8x48xf32> -> vector<8x48xf32>
    %338 = vector.shape_cast %336 : vector<6x48xf32> to vector<6x1x48xf32>
    %339 = vector.shape_cast %337 : vector<8x48xf32> to vector<1x8x48xf32>
    %340 = vector.broadcast %338 : vector<6x1x48xf32> to vector<6x8x48xf32>
    %341 = vector.broadcast %339 : vector<1x8x48xf32> to vector<6x8x48xf32>
    %342 = arith.addf %340, %341 : vector<6x8x48xf32>
    %343 = arith.addf %342, %72 : vector<6x8x48xf32>
    %344 = vector.shape_cast %38 : vector<1x48xf32> to vector<1x1x48xf32>
    %345 = vector.broadcast %344 : vector<1x1x48xf32> to vector<6x8x48xf32>
    %346 = arith.addf %343, %345 : vector<6x8x48xf32>
    %347 = arith.negf %346 : vector<6x8x48xf32>
    %348 = math.exp %347 : vector<6x8x48xf32>
    %cst_144 = arith.constant 1.000000e+00 : f32
    %349 = vector.broadcast %cst_144 : f32 to vector<6x8x48xf32>
    %350 = arith.addf %349, %348 : vector<6x8x48xf32>
    %351 = arith.divf %349, %350 : vector<6x8x48xf32>
    %352 = vector.shape_cast %19 : vector<6x8xf32> to vector<6x8x1xf32>
    %353 = vector.shape_cast %243 : vector<8x32xf32> to vector<1x8x32xf32>
    %354 = vector.extract_strided_slice %351 {offsets = [0, 0, 0], sizes = [6, 8, 32], strides = [1, 1, 1]} : vector<6x8x48xf32> to vector<6x8x32xf32>
    %355 = vector.broadcast %353 : vector<1x8x32xf32> to vector<6x8x32xf32>
    %356 = arith.mulf %355, %354 : vector<6x8x32xf32>
    %357 = vector.broadcast %352 : vector<6x8x1xf32> to vector<6x8x32xf32>
    %358 = arith.mulf %356, %357 : vector<6x8x32xf32>
    %cst_145 = arith.constant dense<0.000000e+00> : vector<6x32xf32>
    %359 = vector.multi_reduction <add>, %358, %cst_145 [1] : vector<6x8x32xf32> to vector<6x32xf32>
    %360 = vector.extract_strided_slice %351 {offsets = [0, 0, 32], sizes = [6, 8, 16], strides = [1, 1, 1]} : vector<6x8x48xf32> to vector<6x8x16xf32>
    %361 = arith.mulf %15, %360 : vector<6x8x16xf32>
    %362 = vector.broadcast %352 : vector<6x8x1xf32> to vector<6x8x16xf32>
    %363 = arith.mulf %361, %362 : vector<6x8x16xf32>
    %cst_146 = arith.constant dense<0.000000e+00> : vector<6x16xf32>
    %364 = vector.multi_reduction <add>, %363, %cst_146 [1] : vector<6x8x16xf32> to vector<6x16xf32>
    %365 = tpu.concatenate %359, %364 in 1 : vector<6x32xf32>, vector<6x16xf32> -> vector<6x48xf32>
    %cst_147 = arith.constant dense<0.000000e+00> : vector<6x32xf32>
    %366 = tpu.matmul %245, %40, %cst_147 {dimension_numbers = #tpu.dot_dimension_numbers<[1], [0], [0], [1], [0, 0, 1, 1], [], []>} : vector<6x32xf32>, vector<32x32xf32>, vector<6x32xf32> -> vector<6x32xf32>
    %cst_148 = arith.constant dense<0.000000e+00> : vector<6x32xf32>
    %367 = tpu.matmul %245, %41, %cst_148 {dimension_numbers = #tpu.dot_dimension_numbers<[1], [0], [0], [1], [0, 0, 1, 1], [], []>} : vector<6x32xf32>, vector<32x32xf32>, vector<6x32xf32> -> vector<6x32xf32>
    %368 = vector.shape_cast %366 : vector<6x32xf32> to vector<6x1x32xf32>
    %369 = vector.shape_cast %367 : vector<6x32xf32> to vector<1x6x32xf32>
    %370 = vector.broadcast %368 : vector<6x1x32xf32> to vector<6x6x32xf32>
    %371 = vector.broadcast %369 : vector<1x6x32xf32> to vector<6x6x32xf32>
    %372 = arith.addf %370, %371 : vector<6x6x32xf32>
    %373 = vector.shape_cast %42 : vector<1x32xf32> to vector<1x1x32xf32>
    %374 = vector.broadcast %373 : vector<1x1x32xf32> to vector<6x6x32xf32>
    %375 = arith.addf %372, %374 : vector<6x6x32xf32>
    %376 = vector.shape_cast %21 : vector<6x6xf32> to vector<6x6x1xf32>
    %377 = vector.broadcast %376 : vector<6x6x1xf32> to vector<6x6x32xf32>
    %378 = arith.addf %375, %377 : vector<6x6x32xf32>
    %379 = arith.negf %378 : vector<6x6x32xf32>
    %380 = math.exp %379 : vector<6x6x32xf32>
    %cst_149 = arith.constant 1.000000e+00 : f32
    %381 = vector.broadcast %cst_149 : f32 to vector<6x6x32xf32>
    %382 = arith.addf %381, %380 : vector<6x6x32xf32>
    %383 = arith.divf %381, %382 : vector<6x6x32xf32>
    %384 = vector.shape_cast %245 : vector<6x32xf32> to vector<6x1x32xf32>
    %385 = vector.shape_cast %23 : vector<6x6xf32> to vector<6x6x1xf32>
    %386 = vector.broadcast %384 : vector<6x1x32xf32> to vector<6x6x32xf32>
    %387 = vector.broadcast %385 : vector<6x6x1xf32> to vector<6x6x32xf32>
    %388 = arith.mulf %386, %387 : vector<6x6x32xf32>
    %389 = arith.mulf %388, %383 : vector<6x6x32xf32>
    %cst_150 = arith.constant dense<0.000000e+00> : vector<6x32xf32>
    %390 = vector.multi_reduction <add>, %389, %cst_150 [1] : vector<6x6x32xf32> to vector<6x32xf32>
    %391 = tpu.concatenate %1, %305, %335 in 1 : vector<8x32xf32>, vector<8x32xf32>, vector<8x48xf32> -> vector<8x112xf32>
    %392 = tpu.concatenate %3, %390, %365 in 1 : vector<6x48xf32>, vector<6x32xf32>, vector<6x48xf32> -> vector<6x128xf32>
    %393 = vector.shape_cast %282 : vector<1x32xf32> to vector<1x32xf32>
    %394 = vector.broadcast %393 : vector<1x32xf32> to vector<8x32xf32>
    %395 = tpu.concatenate %391, %394 in 1 : vector<8x112xf32>, vector<8x32xf32> -> vector<8x144xf32>
    %396 = tpu.concatenate %395, %243 in 1 : vector<8x144xf32>, vector<8x32xf32> -> vector<8x176xf32>
    %cst_151 = arith.constant dense<0.000000e+00> : vector<8x64xf32>
    %397 = tpu.matmul %396, %43, %cst_151 {dimension_numbers = #tpu.dot_dimension_numbers<[1], [0], [0], [1], [0, 0, 1, 1], [], []>} : vector<8x176xf32>, vector<176x64xf32>, vector<8x64xf32> -> vector<8x64xf32>
    %398 = vector.broadcast %44 : vector<1x64xf32> to vector<8x64xf32>
    %399 = arith.addf %397, %398 : vector<8x64xf32>
    %400 = arith.negf %399 : vector<8x64xf32>
    %401 = math.exp %400 : vector<8x64xf32>
    %cst_152 = arith.constant 1.000000e+00 : f32
    %402 = vector.broadcast %cst_152 : f32 to vector<8x64xf32>
    %403 = arith.addf %402, %401 : vector<8x64xf32>
    %404 = arith.divf %402, %403 : vector<8x64xf32>
    %405 = vector.extract_strided_slice %404 {offsets = [0, 0], sizes = [8, 32], strides = [1, 1]} : vector<8x64xf32> to vector<8x32xf32>
    %406 = vector.extract_strided_slice %404 {offsets = [0, 32], sizes = [8, 32], strides = [1, 1]} : vector<8x64xf32> to vector<8x32xf32>
    %cst_153 = arith.constant dense<0.000000e+00> : vector<8x32xf32>
    %407 = tpu.matmul %395, %45, %cst_153 {dimension_numbers = #tpu.dot_dimension_numbers<[1], [0], [0], [1], [0, 0, 1, 1], [], []>} : vector<8x144xf32>, vector<144x32xf32>, vector<8x32xf32> -> vector<8x32xf32>
    %408 = vector.broadcast %46 : vector<1x32xf32> to vector<8x32xf32>
    %409 = arith.addf %407, %408 : vector<8x32xf32>
    %cst_154 = arith.constant dense<0.000000e+00> : vector<8x32xf32>
    %410 = tpu.matmul %243, %47, %cst_154 {dimension_numbers = #tpu.dot_dimension_numbers<[1], [0], [0], [1], [0, 0, 1, 1], [], []>} : vector<8x32xf32>, vector<32x32xf32>, vector<8x32xf32> -> vector<8x32xf32>
    %411 = vector.broadcast %48 : vector<1x32xf32> to vector<8x32xf32>
    %412 = arith.addf %410, %411 : vector<8x32xf32>
    %413 = arith.mulf %405, %412 : vector<8x32xf32>
    %414 = arith.addf %409, %413 : vector<8x32xf32>
    %415 = math.tanh %414 : vector<8x32xf32>
    %416 = arith.mulf %406, %243 : vector<8x32xf32>
    %cst_155 = arith.constant 1.000000e+00 : f32
    %417 = vector.broadcast %cst_155 : f32 to vector<8x32xf32>
    %418 = arith.subf %417, %406 : vector<8x32xf32>
    %419 = arith.mulf %418, %415 : vector<8x32xf32>
    %420 = arith.addf %416, %419 : vector<8x32xf32>
    %421 = vector.shape_cast %282 : vector<1x32xf32> to vector<1x32xf32>
    %422 = vector.broadcast %421 : vector<1x32xf32> to vector<6x32xf32>
    %423 = tpu.concatenate %392, %422 in 1 : vector<6x128xf32>, vector<6x32xf32> -> vector<6x160xf32>
    %424 = tpu.concatenate %423, %245 in 1 : vector<6x160xf32>, vector<6x32xf32> -> vector<6x192xf32>
    %cst_156 = arith.constant dense<0.000000e+00> : vector<6x64xf32>
    %425 = tpu.matmul %424, %49, %cst_156 {dimension_numbers = #tpu.dot_dimension_numbers<[1], [0], [0], [1], [0, 0, 1, 1], [], []>} : vector<6x192xf32>, vector<192x64xf32>, vector<6x64xf32> -> vector<6x64xf32>
    %426 = vector.broadcast %50 : vector<1x64xf32> to vector<6x64xf32>
    %427 = arith.addf %425, %426 : vector<6x64xf32>
    %428 = arith.negf %427 : vector<6x64xf32>
    %429 = math.exp %428 : vector<6x64xf32>
    %cst_157 = arith.constant 1.000000e+00 : f32
    %430 = vector.broadcast %cst_157 : f32 to vector<6x64xf32>
    %431 = arith.addf %430, %429 : vector<6x64xf32>
    %432 = arith.divf %430, %431 : vector<6x64xf32>
    %433 = vector.extract_strided_slice %432 {offsets = [0, 0], sizes = [6, 32], strides = [1, 1]} : vector<6x64xf32> to vector<6x32xf32>
    %434 = vector.extract_strided_slice %432 {offsets = [0, 32], sizes = [6, 32], strides = [1, 1]} : vector<6x64xf32> to vector<6x32xf32>
    %cst_158 = arith.constant dense<0.000000e+00> : vector<6x32xf32>
    %435 = tpu.matmul %423, %51, %cst_158 {dimension_numbers = #tpu.dot_dimension_numbers<[1], [0], [0], [1], [0, 0, 1, 1], [], []>} : vector<6x160xf32>, vector<160x32xf32>, vector<6x32xf32> -> vector<6x32xf32>
    %436 = vector.broadcast %52 : vector<1x32xf32> to vector<6x32xf32>
    %437 = arith.addf %435, %436 : vector<6x32xf32>
    %cst_159 = arith.constant dense<0.000000e+00> : vector<6x32xf32>
    %438 = tpu.matmul %245, %53, %cst_159 {dimension_numbers = #tpu.dot_dimension_numbers<[1], [0], [0], [1], [0, 0, 1, 1], [], []>} : vector<6x32xf32>, vector<32x32xf32>, vector<6x32xf32> -> vector<6x32xf32>
    %439 = vector.broadcast %54 : vector<1x32xf32> to vector<6x32xf32>
    %440 = arith.addf %438, %439 : vector<6x32xf32>
    %441 = arith.mulf %433, %440 : vector<6x32xf32>
    %442 = arith.addf %437, %441 : vector<6x32xf32>
    %443 = math.tanh %442 : vector<6x32xf32>
    %444 = arith.mulf %434, %245 : vector<6x32xf32>
    %cst_160 = arith.constant 1.000000e+00 : f32
    %445 = vector.broadcast %cst_160 : f32 to vector<6x32xf32>
    %446 = arith.subf %445, %434 : vector<6x32xf32>
    %447 = arith.mulf %446, %443 : vector<6x32xf32>
    %448 = arith.addf %444, %447 : vector<6x32xf32>
    %449 = vector.broadcast %5 : vector<8x1xf32> to vector<8x32xf32>
    %450 = arith.mulf %420, %449 : vector<8x32xf32>
    %451 = vector.broadcast %7 : vector<6x1xf32> to vector<6x32xf32>
    %452 = arith.mulf %448, %451 : vector<6x32xf32>
    %cst_161 = arith.constant dense<0.000000e+00> : vector<32xf32>
    %453 = vector.multi_reduction <add>, %450, %cst_161 [0] : vector<8x32xf32> to vector<32xf32>
    %454 = vector.shape_cast %453 : vector<32xf32> to vector<1x32xf32>
    %cst_162 = arith.constant dense<0.000000e+00> : vector<1xf32>
    %455 = vector.multi_reduction <add>, %5, %cst_162 [0] : vector<8x1xf32> to vector<1xf32>
    %456 = vector.shape_cast %455 : vector<1xf32> to vector<1x1xf32>
    %457 = vector.broadcast %456 : vector<1x1xf32> to vector<1x32xf32>
    %458 = arith.divf %454, %457 : vector<1x32xf32>
    %cst_163 = arith.constant dense<0.000000e+00> : vector<32xf32>
    %459 = vector.multi_reduction <add>, %452, %cst_163 [0] : vector<6x32xf32> to vector<32xf32>
    %460 = vector.shape_cast %459 : vector<32xf32> to vector<1x32xf32>
    %cst_164 = arith.constant dense<0.000000e+00> : vector<1xf32>
    %461 = vector.multi_reduction <add>, %7, %cst_164 [0] : vector<6x1xf32> to vector<1xf32>
    %462 = vector.shape_cast %461 : vector<1xf32> to vector<1x1xf32>
    %cst_165 = arith.constant 1.000000e+00 : f32
    %463 = vector.broadcast %cst_165 : f32 to vector<1x1xf32>
    %464 = arith.addf %462, %463 : vector<1x1xf32>
    %465 = vector.broadcast %464 : vector<1x1xf32> to vector<1x32xf32>
    %466 = arith.divf %460, %465 : vector<1x32xf32>
    %467 = tpu.concatenate %458, %466 in 1 : vector<1x32xf32>, vector<1x32xf32> -> vector<1x64xf32>
    %468 = tpu.concatenate %467, %282 in 1 : vector<1x64xf32>, vector<1x32xf32> -> vector<1x96xf32>
    %cst_166 = arith.constant dense<0.000000e+00> : vector<1x64xf32>
    %469 = tpu.matmul %468, %55, %cst_166 {dimension_numbers = #tpu.dot_dimension_numbers<[1], [0], [0], [1], [0, 0, 1, 1], [], []>} : vector<1x96xf32>, vector<96x64xf32>, vector<1x64xf32> -> vector<1x64xf32>
    %470 = arith.addf %469, %56 : vector<1x64xf32>
    %471 = arith.negf %470 : vector<1x64xf32>
    %472 = math.exp %471 : vector<1x64xf32>
    %cst_167 = arith.constant 1.000000e+00 : f32
    %473 = vector.broadcast %cst_167 : f32 to vector<1x64xf32>
    %474 = arith.addf %473, %472 : vector<1x64xf32>
    %475 = arith.divf %473, %474 : vector<1x64xf32>
    %476 = vector.extract_strided_slice %475 {offsets = [0, 0], sizes = [1, 32], strides = [1, 1]} : vector<1x64xf32> to vector<1x32xf32>
    %477 = vector.extract_strided_slice %475 {offsets = [0, 32], sizes = [1, 32], strides = [1, 1]} : vector<1x64xf32> to vector<1x32xf32>
    %cst_168 = arith.constant dense<0.000000e+00> : vector<1x32xf32>
    %478 = tpu.matmul %467, %57, %cst_168 {dimension_numbers = #tpu.dot_dimension_numbers<[1], [0], [0], [1], [0, 0, 1, 1], [], []>} : vector<1x64xf32>, vector<64x32xf32>, vector<1x32xf32> -> vector<1x32xf32>
    %479 = arith.addf %478, %58 : vector<1x32xf32>
    %cst_169 = arith.constant dense<0.000000e+00> : vector<1x32xf32>
    %480 = tpu.matmul %282, %59, %cst_169 {dimension_numbers = #tpu.dot_dimension_numbers<[1], [0], [0], [1], [0, 0, 1, 1], [], []>} : vector<1x32xf32>, vector<32x32xf32>, vector<1x32xf32> -> vector<1x32xf32>
    %481 = arith.addf %480, %60 : vector<1x32xf32>
    %482 = arith.mulf %476, %481 : vector<1x32xf32>
    %483 = arith.addf %479, %482 : vector<1x32xf32>
    %484 = math.tanh %483 : vector<1x32xf32>
    %485 = arith.mulf %477, %282 : vector<1x32xf32>
    %cst_170 = arith.constant 1.000000e+00 : f32
    %486 = vector.broadcast %cst_170 : f32 to vector<1x32xf32>
    %487 = arith.subf %486, %477 : vector<1x32xf32>
    %488 = arith.mulf %487, %484 : vector<1x32xf32>
    %489 = arith.addf %485, %488 : vector<1x32xf32>
    %c0_171 = arith.constant 0 : index
    %c0_172 = arith.constant 0 : index
    %c0_173 = arith.constant 0 : index
    %490 = vector.load %arg39[%c0_171, %c0_172, %c0_173] : memref<1x8x32xf32, #tpu.memory_space<vmem>>, vector<1x8x32xf32>
    %491 = vector.shape_cast %490 : vector<1x8x32xf32> to vector<8x32xf32>
    %492 = vector.shape_cast %450 : vector<8x32xf32> to vector<1x8x32xf32>
    tpu.vector_store %arg39[%c0_171, %c0_172, %c0_173], %492 {strides = array<i32>} : memref<1x8x32xf32, #tpu.memory_space<vmem>>, vector<1x8x32xf32>,
    %c0_174 = arith.constant 0 : index
    %c0_175 = arith.constant 0 : index
    %c0_176 = arith.constant 0 : index
    %493 = vector.load %arg40[%c0_174, %c0_175, %c0_176] : memref<1x1x32xf32, #tpu.memory_space<vmem>>, vector<1x1x32xf32>
    %494 = vector.shape_cast %493 : vector<1x1x32xf32> to vector<1x32xf32>
    %495 = vector.shape_cast %489 : vector<1x32xf32> to vector<1x1x32xf32>
    tpu.vector_store %arg40[%c0_174, %c0_175, %c0_176], %495 {strides = array<i32>} : memref<1x1x32xf32, #tpu.memory_space<vmem>>, vector<1x1x32xf32>,
    return
  }
  func.func @transform_0(%arg0: i32) -> (i32, i32, i32) {
    %c0_i32 = arith.constant 0 : i32
    %c0_i32_0 = arith.constant 0 : i32
    %c0_i32_1 = arith.constant 0 : i32
    return %arg0, %c0_i32, %c0_i32_0 : i32, i32, i32
  }
  func.func @transform_1(%arg0: i32) -> (i32, i32, i32) {
    %c0_i32 = arith.constant 0 : i32
    %c0_i32_0 = arith.constant 0 : i32
    %c0_i32_1 = arith.constant 0 : i32
    return %arg0, %c0_i32, %c0_i32_0 : i32, i32, i32
  }
  func.func @transform_2(%arg0: i32) -> (i32, i32, i32) {
    %c0_i32 = arith.constant 0 : i32
    %c0_i32_0 = arith.constant 0 : i32
    %c0_i32_1 = arith.constant 0 : i32
    return %arg0, %c0_i32, %c0_i32_0 : i32, i32, i32
  }
  func.func @transform_3(%arg0: i32) -> (i32, i32, i32) {
    %c0_i32 = arith.constant 0 : i32
    %c0_i32_0 = arith.constant 0 : i32
    %c0_i32_1 = arith.constant 0 : i32
    return %arg0, %c0_i32, %c0_i32_0 : i32, i32, i32
  }
  func.func @transform_4(%arg0: i32) -> (i32, i32, i32, i32) {
    %c0_i32 = arith.constant 0 : i32
    %c0_i32_0 = arith.constant 0 : i32
    %c0_i32_1 = arith.constant 0 : i32
    %c0_i32_2 = arith.constant 0 : i32
    return %arg0, %c0_i32, %c0_i32_0, %c0_i32_1 : i32, i32, i32, i32
  }
  func.func @transform_5(%arg0: i32) -> (i32, i32, i32) {
    %c0_i32 = arith.constant 0 : i32
    %c0_i32_0 = arith.constant 0 : i32
    %c0_i32_1 = arith.constant 0 : i32
    return %arg0, %c0_i32, %c0_i32_0 : i32, i32, i32
  }
  func.func @transform_6(%arg0: i32) -> (i32, i32, i32, i32) {
    %c0_i32 = arith.constant 0 : i32
    %c0_i32_0 = arith.constant 0 : i32
    %c0_i32_1 = arith.constant 0 : i32
    %c0_i32_2 = arith.constant 0 : i32
    return %arg0, %c0_i32, %c0_i32_0, %c0_i32_1 : i32, i32, i32, i32
  }
  func.func @transform_7(%arg0: i32) -> (i32, i32, i32, i32) {
    %c0_i32 = arith.constant 0 : i32
    %c0_i32_0 = arith.constant 0 : i32
    %c0_i32_1 = arith.constant 0 : i32
    %c0_i32_2 = arith.constant 0 : i32
    return %arg0, %c0_i32, %c0_i32_0, %c0_i32_1 : i32, i32, i32, i32
  }
  func.func @transform_8(%arg0: i32) -> (i32, i32, i32) {
    %c0_i32 = arith.constant 0 : i32
    %c0_i32_0 = arith.constant 0 : i32
    %c0_i32_1 = arith.constant 0 : i32
    return %arg0, %c0_i32, %c0_i32_0 : i32, i32, i32
  }
  func.func @transform_9(%arg0: i32) -> (i32, i32, i32) {
    %c0_i32 = arith.constant 0 : i32
    %c0_i32_0 = arith.constant 0 : i32
    %c0_i32_1 = arith.constant 0 : i32
    return %arg0, %c0_i32, %c0_i32_0 : i32, i32, i32
  }
  func.func @transform_10(%arg0: i32) -> (i32, i32, i32) {
    %c0_i32 = arith.constant 0 : i32
    %c0_i32_0 = arith.constant 0 : i32
    %c0_i32_1 = arith.constant 0 : i32
    return %arg0, %c0_i32, %c0_i32_0 : i32, i32, i32
  }
  func.func @transform_11(%arg0: i32) -> (i32, i32, i32) {
    %c0_i32 = arith.constant 0 : i32
    %c0_i32_0 = arith.constant 0 : i32
    %c0_i32_1 = arith.constant 0 : i32
    return %arg0, %c0_i32, %c0_i32_0 : i32, i32, i32
  }
  func.func @transform_12(%arg0: i32) -> (i32, i32) {
    %c0_i32 = arith.constant 0 : i32
    %c0_i32_0 = arith.constant 0 : i32
    %c0_i32_1 = arith.constant 0 : i32
    return %c0_i32, %c0_i32_0 : i32, i32
  }
  func.func @transform_13(%arg0: i32) -> (i32, i32) {
    %c0_i32 = arith.constant 0 : i32
    %c0_i32_0 = arith.constant 0 : i32
    %c0_i32_1 = arith.constant 0 : i32
    return %c0_i32, %c0_i32_0 : i32, i32
  }
  func.func @transform_14(%arg0: i32) -> (i32, i32) {
    %c0_i32 = arith.constant 0 : i32
    %c0_i32_0 = arith.constant 0 : i32
    %c0_i32_1 = arith.constant 0 : i32
    return %c0_i32, %c0_i32_0 : i32, i32
  }
  func.func @transform_15(%arg0: i32) -> (i32, i32) {
    %c0_i32 = arith.constant 0 : i32
    %c0_i32_0 = arith.constant 0 : i32
    %c0_i32_1 = arith.constant 0 : i32
    return %c0_i32, %c0_i32_0 : i32, i32
  }
  func.func @transform_16(%arg0: i32) -> (i32, i32) {
    %c0_i32 = arith.constant 0 : i32
    %c0_i32_0 = arith.constant 0 : i32
    %c0_i32_1 = arith.constant 0 : i32
    return %c0_i32, %c0_i32_0 : i32, i32
  }
  func.func @transform_17(%arg0: i32) -> (i32, i32) {
    %c0_i32 = arith.constant 0 : i32
    %c0_i32_0 = arith.constant 0 : i32
    %c0_i32_1 = arith.constant 0 : i32
    return %c0_i32, %c0_i32_0 : i32, i32
  }
  func.func @transform_18(%arg0: i32) -> (i32, i32) {
    %c0_i32 = arith.constant 0 : i32
    %c0_i32_0 = arith.constant 0 : i32
    %c0_i32_1 = arith.constant 0 : i32
    return %c0_i32, %c0_i32_0 : i32, i32
  }
  func.func @transform_19(%arg0: i32) -> (i32, i32) {
    %c0_i32 = arith.constant 0 : i32
    %c0_i32_0 = arith.constant 0 : i32
    %c0_i32_1 = arith.constant 0 : i32
    return %c0_i32, %c0_i32_0 : i32, i32
  }
  func.func @transform_20(%arg0: i32) -> (i32, i32) {
    %c0_i32 = arith.constant 0 : i32
    %c0_i32_0 = arith.constant 0 : i32
    %c0_i32_1 = arith.constant 0 : i32
    return %c0_i32, %c0_i32_0 : i32, i32
  }
  func.func @transform_21(%arg0: i32) -> (i32, i32) {
    %c0_i32 = arith.constant 0 : i32
    %c0_i32_0 = arith.constant 0 : i32
    %c0_i32_1 = arith.constant 0 : i32
    return %c0_i32, %c0_i32_0 : i32, i32
  }
  func.func @transform_22(%arg0: i32) -> (i32, i32) {
    %c0_i32 = arith.constant 0 : i32
    %c0_i32_0 = arith.constant 0 : i32
    %c0_i32_1 = arith.constant 0 : i32
    return %c0_i32, %c0_i32_0 : i32, i32
  }
  func.func @transform_23(%arg0: i32) -> (i32, i32) {
    %c0_i32 = arith.constant 0 : i32
    %c0_i32_0 = arith.constant 0 : i32
    %c0_i32_1 = arith.constant 0 : i32
    return %c0_i32, %c0_i32_0 : i32, i32
  }
  func.func @transform_24(%arg0: i32) -> (i32, i32) {
    %c0_i32 = arith.constant 0 : i32
    %c0_i32_0 = arith.constant 0 : i32
    %c0_i32_1 = arith.constant 0 : i32
    return %c0_i32, %c0_i32_0 : i32, i32
  }
  func.func @transform_25(%arg0: i32) -> (i32, i32) {
    %c0_i32 = arith.constant 0 : i32
    %c0_i32_0 = arith.constant 0 : i32
    %c0_i32_1 = arith.constant 0 : i32
    return %c0_i32, %c0_i32_0 : i32, i32
  }
  func.func @transform_26(%arg0: i32) -> (i32, i32) {
    %c0_i32 = arith.constant 0 : i32
    %c0_i32_0 = arith.constant 0 : i32
    %c0_i32_1 = arith.constant 0 : i32
    return %c0_i32, %c0_i32_0 : i32, i32
  }
  func.func @transform_27(%arg0: i32) -> (i32, i32) {
    %c0_i32 = arith.constant 0 : i32
    %c0_i32_0 = arith.constant 0 : i32
    %c0_i32_1 = arith.constant 0 : i32
    return %c0_i32, %c0_i32_0 : i32, i32
  }
  func.func @transform_28(%arg0: i32) -> (i32, i32) {
    %c0_i32 = arith.constant 0 : i32
    %c0_i32_0 = arith.constant 0 : i32
    %c0_i32_1 = arith.constant 0 : i32
    return %c0_i32, %c0_i32_0 : i32, i32
  }
  func.func @transform_29(%arg0: i32) -> (i32, i32) {
    %c0_i32 = arith.constant 0 : i32
    %c0_i32_0 = arith.constant 0 : i32
    %c0_i32_1 = arith.constant 0 : i32
    return %c0_i32, %c0_i32_0 : i32, i32
  }
  func.func @transform_30(%arg0: i32) -> (i32, i32) {
    %c0_i32 = arith.constant 0 : i32
    %c0_i32_0 = arith.constant 0 : i32
    %c0_i32_1 = arith.constant 0 : i32
    return %c0_i32, %c0_i32_0 : i32, i32
  }
  func.func @transform_31(%arg0: i32) -> (i32, i32) {
    %c0_i32 = arith.constant 0 : i32
    %c0_i32_0 = arith.constant 0 : i32
    %c0_i32_1 = arith.constant 0 : i32
    return %c0_i32, %c0_i32_0 : i32, i32
  }
  func.func @transform_32(%arg0: i32) -> (i32, i32) {
    %c0_i32 = arith.constant 0 : i32
    %c0_i32_0 = arith.constant 0 : i32
    %c0_i32_1 = arith.constant 0 : i32
    return %c0_i32, %c0_i32_0 : i32, i32
  }
  func.func @transform_33(%arg0: i32) -> (i32, i32) {
    %c0_i32 = arith.constant 0 : i32
    %c0_i32_0 = arith.constant 0 : i32
    %c0_i32_1 = arith.constant 0 : i32
    return %c0_i32, %c0_i32_0 : i32, i32
  }
  func.func @transform_34(%arg0: i32) -> (i32, i32) {
    %c0_i32 = arith.constant 0 : i32
    %c0_i32_0 = arith.constant 0 : i32
    %c0_i32_1 = arith.constant 0 : i32
    return %c0_i32, %c0_i32_0 : i32, i32
  }
  func.func @transform_35(%arg0: i32) -> (i32, i32) {
    %c0_i32 = arith.constant 0 : i32
    %c0_i32_0 = arith.constant 0 : i32
    %c0_i32_1 = arith.constant 0 : i32
    return %c0_i32, %c0_i32_0 : i32, i32
  }
  func.func @transform_36(%arg0: i32) -> (i32, i32) {
    %c0_i32 = arith.constant 0 : i32
    %c0_i32_0 = arith.constant 0 : i32
    %c0_i32_1 = arith.constant 0 : i32
    return %c0_i32, %c0_i32_0 : i32, i32
  }
  func.func @transform_37(%arg0: i32) -> (i32, i32) {
    %c0_i32 = arith.constant 0 : i32
    %c0_i32_0 = arith.constant 0 : i32
    %c0_i32_1 = arith.constant 0 : i32
    return %c0_i32, %c0_i32_0 : i32, i32
  }
  func.func @transform_38(%arg0: i32) -> (i32, i32, i32) {
    %c0_i32 = arith.constant 0 : i32
    %c0_i32_0 = arith.constant 0 : i32
    %c0_i32_1 = arith.constant 0 : i32
    return %arg0, %c0_i32, %c0_i32_0 : i32, i32, i32
  }
  func.func @transform_39(%arg0: i32) -> (i32, i32, i32) {
    %c0_i32 = arith.constant 0 : i32
    %c0_i32_0 = arith.constant 0 : i32
    %c0_i32_1 = arith.constant 0 : i32
    return %arg0, %c0_i32, %c0_i32_0 : i32, i32, i32
  }
}

</mosaic_0001>

<bundles_post_ra>
// kernel: tpu_custom_call.1
= control target key start
LH: loop header
LB: loop body
LE: loop exit
PB: predicated region body
PF: predicated region fallthrough
CT: control target
= control target key end

     0   :  { %s10416_s6 = smov 1   ;;  %s10417_s10 = smov 2   ;;  %s12946_s0 = inlined_call_operand.smem [shape: u32[40], index: -1, kind: input, shape index: {}] }
   0x1   :  { %s10476_s5 = sld [smem:[%s12946_s0]]   ;;  %s10418_s14 = smov 3  }
   0x2   :  { %s10481_s9 = sld [smem:[%s12946_s0 + %s10416_s6]]   ;;  %s10419_s18 = smov 4  }
   0x3   :  { %s10486_s13 = sld [smem:[%s12946_s0 + %s10417_s10]]   ;;  %s10420_s22 = smov 5  }
   0x4   :  { %s10491_s17 = sld [smem:[%s12946_s0 + %s10418_s14]]   ;;  %s10421_s26 = smov 6  }
   0x5   :  { %s10496_s21 = sld [smem:[%s12946_s0 + %s10419_s18]]   ;;  %s10422_s30 = smov 7  }
   0x6   :  { %s10501_s25 = sld [smem:[%s12946_s0 + %s10420_s22]]   ;;  %s10423_s4 = smov 8  }
   0x7   :  { %13070 = sst [smem:[#allocation8_spill]] %s10476_s5  ;;  %s10424_s10 = smov 9  }
   0x8   :  { %13071 = sst [smem:[#allocation9_spill]] %s10481_s9  ;;  %s10425_s15 = smov 10  }
   0x9   :  { %13072 = sst [smem:[#allocation10_spill]] %s10486_s13  ;;  %s10426_s20 = smov 11  }
   0xa   :  { %13073 = sst [smem:[#allocation11_spill]] %s10491_s17  ;;  %s10428_s1 = smov 13  }
   0xb   :  { %13074 = sst [smem:[#allocation12_spill]] %s10496_s21  ;;  %s10429_s7 = smov 14  }
   0xc   :  { %13075 = sst [smem:[#allocation13_spill]] %s10501_s25  ;;  %s10431_s22 = smov 16  }
   0xd   :  { %s10506_s29 = sld [smem:[%s12946_s0 + %s10421_s26]]   ;;  %s10427_s26 = smov 12  }
   0xe   :  { %s10511_s3 = sld [smem:[%s12946_s0 + %s10422_s30]]   ;;  %s10432_s28 = smov 17  }
   0xf   :  { %s10516_s8 = sld [smem:[%s12946_s0 + %s10423_s4]]  }
  0x10   :  { %s10521_s14 = sld [smem:[%s12946_s0 + %s10424_s10]]  }
  0x11   :  { %s10526_s19 = sld [smem:[%s12946_s0 + %s10425_s15]]   ;;  %s10430_s15 = smov 15  }
  0x12   :  { %s10531_s24 = sld [smem:[%s12946_s0 + %s10426_s20]]  }
  0x13   :  { %13076 = sst [smem:[#allocation14_spill]] %s10506_s29 }
  0x14   :  { %13077 = sst [smem:[#allocation15_spill]] %s10511_s3 }
  0x15   :  { %13078 = sst [smem:[#allocation16_spill]] %s10516_s8 }
  0x16   :  { %13079 = sst [smem:[#allocation17_spill]] %s10521_s14 }
  0x17   :  { %13080 = sst [smem:[#allocation18_spill]] %s10526_s19 }
  0x18   :  { %13081 = sst [smem:[#allocation19_spill]] %s10531_s24 }
  0x19   :  { %s10536_s30 = sld [smem:[%s12946_s0 + %s10427_s26]]  }
  0x1a   :  { %s10541_s6 = sld [smem:[%s12946_s0 + %s10428_s1]]  }
  0x1b   :  { %s10546_s12 = sld [smem:[%s12946_s0 + %s10429_s7]]   ;;  %s10433_s7 = smov 18  }
  0x1c   :  { %s10551_s20 = sld [smem:[%s12946_s0 + %s10430_s15]]   ;;  %s10434_s15 = smov 19  }
  0x1d   :  { %s10556_s27 = sld [smem:[%s12946_s0 + %s10431_s22]]   ;;  %s10435_s22 = smov 20  }
  0x1e   :  { %s10561_s4 = sld [smem:[%s12946_s0 + %s10432_s28]]   ;;  %s10436_s28 = smov 21  }
  0x1f   :  { %s10566_s17 = sld [smem:[%s12946_s0 + %s10433_s7]]   ;;  %s10437_s7 = smov 22  }
  0x20   :  { %13082 = sst [smem:[#allocation20_spill]] %s10541_s6 }
  0x21   :  { %13083 = sst [smem:[#allocation21_spill]] %s10546_s12 }
  0x22   :  { %s10571_s13 = sld [smem:[%s12946_s0 + %s10434_s15]]   ;;  %s10438_s15 = smov 23  }
  0x23   :  { %s10576_s9 = sld [smem:[%s12946_s0 + %s10435_s22]]   ;;  %s10439_s22 = smov 24  }
  0x24   :  { %13084 = sst [smem:[#allocation22_spill]] %s10561_s4 }
  0x25   :  { %s10581_s5 = sld [smem:[%s12946_s0 + %s10436_s28]]   ;;  %s10440_s28 = smov 25  }
  0x26   :  { %s10586_s6 = sld [smem:[%s12946_s0 + %s10437_s7]]   ;;  %s10441_s7 = smov 26  }
  0x28   :  { %13085 = sst [smem:[#allocation23_spill]] %s10571_s13 }
  0x29   :  { %13086 = sst [smem:[#allocation24_spill]] %s10576_s9 }
  0x2a   :  { %s10591_s13 = sld [smem:[%s12946_s0 + %s10438_s15]]   ;;  %s10442_s15 = smov 27  }
  0x2b   :  { %13087 = sst [smem:[#allocation25_spill]] %s10581_s5 }
  0x2c   :  { %13088 = sst [smem:[#allocation26_spill]] %s10586_s6 }
  0x2d   :  { %s10596_s9 = sld [smem:[%s12946_s0 + %s10439_s22]]   ;;  %s10443_s22 = smov 28  }
  0x2e   :  { %s10601_s5 = sld [smem:[%s12946_s0 + %s10440_s28]]   ;;  %s10444_s28 = smov 29  }
  0x2f   :  { %s10606_s6 = sld [smem:[%s12946_s0 + %s10441_s7]]   ;;  %s10445_s7 = smov 30  }
  0x30   :  { %13089 = sst [smem:[#allocation27_spill]] %s10591_s13 }
  0x31   :  { %s10611_s13 = sld [smem:[%s12946_s0 + %s10442_s15]]   ;;  %s10446_s15 = smov 31  }
  0x33   :  { %13090 = sst [smem:[#allocation28_spill]] %s10596_s9 }
  0x34   :  { %13091 = sst [smem:[#allocation29_spill]] %s10601_s5 }
  0x35   :  { %13092 = sst [smem:[#allocation30_spill]] %s10606_s6 }
  0x36   :  { %s10616_s9 = sld [smem:[%s12946_s0 + %s10443_s22]]   ;;  %s10447_s22 = smov 32  }
  0x37   :  { %13093 = sst [smem:[#allocation31_spill]] %s10611_s13 }
  0x38   :  { %s10621_s5 = sld [smem:[%s12946_s0 + %s10444_s28]]   ;;  %s10448_s28 = smov 33  }
  0x39   :  { %s10626_s6 = sld [smem:[%s12946_s0 + %s10445_s7]]   ;;  %s10449_s7 = smov 34  }
  0x3a   :  { %s10631_s13 = sld [smem:[%s12946_s0 + %s10446_s15]]   ;;  %s10450_s15 = smov 35  }
  0x3c   :  { %13094 = sst [smem:[#allocation32_spill]] %s10616_s9 }
  0x3d   :  { %s10636_s9 = sld [smem:[%s12946_s0 + %s10447_s22]]   ;;  %s10451_s22 = smov 36  }
  0x3e   :  { %13095 = sst [smem:[#allocation33_spill]] %s10621_s5 }
  0x3f   :  { %13096 = sst [smem:[#allocation34_spill]] %s10626_s6 }
  0x40   :  { %13097 = sst [smem:[#allocation35_spill]] %s10631_s13 }
  0x41   :  { %s10641_s5 = sld [smem:[%s12946_s0 + %s10448_s28]]   ;;  %s10452_s28 = smov 37  }
  0x42   :  { %s10646_s6 = sld [smem:[%s12946_s0 + %s10449_s7]]   ;;  %s10453_s7 = smov 38  }
  0x43   :  { %13098 = sst [smem:[#allocation36_spill]] %s10636_s9 }
  0x44   :  { %s10651_s13 = sld [smem:[%s12946_s0 + %s10450_s15]]   ;;  %s10454_s15 = smov 39  }
  0x45   :  { %s10656_s9 = sld [smem:[%s12946_s0 + %s10451_s22]]  }
  0x47   :  { %13099 = sst [smem:[#allocation37_spill]] %s10641_s5 }
  0x48   :  { %13100 = sst [smem:[#allocation38_spill]] %s10646_s6 }
  0x49   :  { %s10661_s5 = sld [smem:[%s12946_s0 + %s10452_s28]]  }
  0x4a   :  { %13101 = sst [smem:[#allocation39_spill]] %s10651_s13 }
  0x4b   :  { %s10666_s6 = sld [smem:[%s12946_s0 + %s10453_s7]]  }
  0x4c   :  { %s10671_s13 = sld [smem:[%s12946_s0 + %s10454_s15]]  }
  0x4f   :  { %13102 = sst [smem:[#allocation40_spill]] %s10661_s5 }
  0x51   :  { %13103 = sst [smem:[#allocation41_spill]] %s10666_s6 }
  0x52   :  { %13104 = sst [smem:[#allocation42_spill]] %s10671_s13 }
  0x53   :  { %85 = vsyncpa [#allocation3], 0 }
  0x54   :  { %87 = vsyncpa [#allocation3 + $0x1], 0 }
  0x55   :  { %88 = vsyncpa [#allocation5], 0 }
  0x56   :  { %90 = vsyncpa [#allocation5 + $0x1], 0  ;;  %s10673_s22 = smov 0   ;;  %s10675_s23 = smov 0  }
  0x57   :  { %s10677_s26 = smov 0   ;;  %s10679_s28 = smov 0  }
  0x58 LB: > { %s13105_s5 = sld [smem:[#allocation40_spill]]  ;;  %s10694_s0 = sadd.s32 4294967295, %s10414_s28   ;;  %s10410_s26 = sphi %s10677_s26, %s13305_s26   ;;  %s10406_s23 = sphi %s10675_s23, %s13307_s23   ;;  %s10402_s22 = sphi %s10673_s22, %s13306_s22   ;;  %s10414_s28 = sphi %s10679_s28, %s13303_s28  }
  0x59   : > { %s13106_s4 = sld [smem:[#allocation22_spill]]  ;;  %s8875_s1 = sadd.s32 4294967294, %s10414_s28  }
  0x5a   : > { %s13107_s12 = sld [smem:[#allocation21_spill]]  ;;  %s10698_s2 = sadd.s32 1, %s10414_s28  }
  0x5b   : > { %13108 = sst [smem:[#allocation43_spill]] %s10402_s22  ;;  %s961_s7 = sadd.s32 1, %s10410_s26 }
  0x5c   : > { %13109 = sst [smem:[#allocation44_spill]] %s10410_s26  ;;  %s958_s10 = ssub.s32 %s10414_s28, %s10698_s2 }
  0x5d   : > { %13110 = sst [smem:[#allocation45_spill]] %s10414_s28  ;;  %p971_p0 = scmp.ne.s32.totalorder %s10410_s26, %s10406_s23 }
  0x5e   : > { %13111 = sst [smem:[#allocation46_spill]] %s10694_s0  ;;  %p959_p1 = scmp.eq.s32.totalorder %s958_s10, 0 }
  0x5f   : > { %13112 = sst [smem:[#allocation47_spill]] %s10698_s2  ;;  %p972_p2 = scmp.eq.s32.totalorder %s10694_s0, 1 }
  0x60   : > { %p977_p3 = scmp.ne.s32.totalorder %s10406_s23, %s10402_s22  ;;  %p978_p4 = scmp.eq.s32.totalorder %s8875_s1, 1 }
  0x61   : > { %s10709_s11 = scalar_select %p959_p1, %s10410_s26, %s961_s7  }
  0x62   : > { %p10711_p5 = por %p972_p2, %p971_p0  ;;  %p10715_p6 = por %p978_p4, %p977_p3 }
  0x63   : > { %13113 = sst [smem:[#allocation48_spill]] %s10709_s11  ;;  %p8878_p7 = scmp.ge.s32.totalorder %s10414_s28, 1 }
  0x64   : > { %s13114_s15 = scalar_select %p10711_p5, 1, 0 }
  0x65   : > { %s13116_s16 = scalar_select %p10715_p6, 1, 0 }
  0x66   : > { %13115 = sst [smem:[#allocation49_spill]] %s13114_s15  ;;  %p1187_p8 = scmp.lt.s32.totalorder %s10414_s28, 3 }
  0x67   : > { %13117 = sst [smem:[#allocation50_spill]] %s13116_s16 }
  0x68   : > { %p1188_p9 = pnand %p8878_p7, %p1187_p8 }
  0x6a   : > { %1191 = sbr.rel (%p1188_p9) target bundleno = 3011 (0xbc3), region = 172 }
  0x6f   : > { %v10722_v0 = vld [vmem:[%s10536_s30 + $0x58] sm:$0xff]  ;;  %p1333_p10 = scmp.lt.s32.totalorder %s10694_s0, 1  ;;  %v12965_v1 = vmov 0.0   ;;  %s13118_s21 = sld [smem:[#allocation12_spill]]  ;;  %v10727_v2 = vld [vmem:[%s10536_s30 + $0x50] sm:$0xff]  ;;  %vm10456_vm0 = vmmov 0   ;;  %v3340_v43 = vlaneseq }
  0x70   : > { %9252 = vmatprep.subr.mxu0 %v12965_v1  ;;  %9263 = vmatprep.subr.mxu1 %v12965_v1  ;;  %v10738_v3 = vld [vmem:[%s10536_s30 + $0x48] sm:$0xff]  ;;  %v10746_v4 = vld [vmem:[%s10536_s30 + $0x40] sm:$0xff]  ;;  %vm1584_vm1 = vcmask 261120   ;;  %s13119_s29 = sld [smem:[#allocation14_spill]]  ;;  %vm2169_vm2 = vcmask 130048   ;;  %v1418_v29 = vld [vmem:[%s10536_s30 + $0x18] sm:$0xff] }
  0x71   : > { %9253 = vmatpush3.msra.mxu0 %v10722_v0  ;;  %9260 = vmatprep.mubr.msk.f32.mxu0 %vm10456_vm0, %v12965_v1  ;;  %s10734_s18 = scalar_select %p1333_p10, %s10694_s0, 1  ;;  %v10828_v12 = vld [vmem:[%s13107_s12 + $0x48] sm:$0xff]  ;;  %v10840_v13 = vld [vmem:[%s13107_s12 + $0x40] sm:$0xff]  ;;  %v1417_v31 = vld [vmem:[%s10536_s30 + $0x10] sm:$0xff]  ;;  %v10996_v47 = vshrl.u32 %v3340_v43, 7  ;;  %vm4011_vm3 = vcmask 259072  }
  0x72   : > { %9254 = vmatprep.subr.mxu0 %v12965_v1  ;;  %9264 = vmatpush3.msra.mxu1 %v10722_v0  ;;  %s13120_s3 = sld [smem:[#allocation15_spill]]  ;;  %v1448_v21 = vld [vmem:[%s10556_s27 + $0x48] sm:$0xff]  ;;  %v1447_v23 = vld [vmem:[%s10556_s27 + $0x40] sm:$0xff]  ;;  %v1422_v35 = vld [vmem:[%s10536_s30 + $0x38] sm:$0xff]  ;;  %vm4181_vm4 = vcmask 1041409   ;;  %vm4183_vm5 = vcmask 1042434  }
  0x73   : > { %9255 = vmatpush3.msra.mxu0 %v10727_v2  ;;  %s9014_s1 = sshll.u32 %s10734_s18, 6  ;;  %9265 = vmatprep.subr.mxu1 %v12965_v1  ;;  %v1416_v32 = vld [vmem:[%s10536_s30 + $0x8] sm:$0xff]  ;;  %v1415_v34 = vld [vmem:[%s10536_s30] sm:$0xff]  ;;  %v1421_v36 = vld [vmem:[%s10536_s30 + $0x30] sm:$0xff]  ;;  %s13121_s8 = sld [smem:[#allocation16_spill]]  ;;  %v11009_v52 = vsub.s32 1, %v10996_v47 }
  0x74   : > { %9256 = vmatprep.subr.mxu0 %v12965_v1  ;;  %9266 = vmatpush3.msra.mxu1 %v10727_v2  ;;  %v1431_v37 = vld [vmem:[%s13107_s12 + $0x18] sm:$0xff]  ;;  %v1420_v38 = vld [vmem:[%s10536_s30 + $0x28] sm:$0xff]  ;;  %v1430_v39 = vld [vmem:[%s13107_s12 + $0x10] sm:$0xff]  ;;  %v11016_v54 = vsub.s32 0, %v10996_v47  ;;  %v11028_v58 = vsub.s32 2, %v10996_v47  ;;  %v11043_v63 = vsub.s32 3, %v10996_v47 }
  0x75   : > { %s10751_s7 = scalar_lea.vmem %s13118_s21, %s9014_s1  ;;  %9257 = vmatpush3.msra.mxu0 %v10738_v3  ;;  %9267 = vmatprep.subr.mxu1 %v12965_v1  ;;  %v1419_v40 = vld [vmem:[%s10536_s30 + $0x20] sm:$0xff]  ;;  %v1429_v41 = vld [vmem:[%s13107_s12 + $0x8] sm:$0xff]  ;;  %v1435_v44 = vld [vmem:[%s13107_s12 + $0x38] sm:$0xff]  ;;  %s13150_s14 = sld [smem:[#allocation17_spill]]  ;;  %vm4185_vm6 = vcmask 1043459   ;;  %vm4187_vm7 = vcmask 1044484  }
  0x76   : > { %v1388_v5 = vld [vmem:[%s10751_s7] sm:$0xff]  ;;  %9258 = vmatprep.subr.mxu0 %v12965_v1  ;;  %9268 = vmatpush3.msra.mxu1 %v10738_v3  ;;  %v1389_v6 = vld [vmem:[%s10751_s7 + $0x8] sm:$0xff]  ;;  %v1390_v7 = vld [vmem:[%s10751_s7 + $0x10] sm:$0xff]  ;;  %s10833_s10 = scalar_lea.vmem %s13119_s29, %s9014_s1  ;;  %s9772_s1 = smul.u32 48, %s10734_s18  ;;  %13122 = vst [vmem:[#allocation51_spill] sm:$0xff] %v11016_v54  ;;  %vm4116_vm8 = vcmask 128000  }
  0x77   : > { %9259 = vmatpush3.msra.mxu0 %v10746_v4  ;;  %9269 = vmatprep.subr.mxu1 %v12965_v1  ;;  %v1391_v8 = vld [vmem:[%s10751_s7 + $0x18] sm:$0xff]  ;;  %v1392_v9 = vld [vmem:[%s10751_s7 + $0x20] sm:$0xff]  ;;  %v1393_v10 = vld [vmem:[%s10751_s7 + $0x28] sm:$0xff]  ;;  %s13153_s25 = sld [smem:[#allocation13_spill]]  ;;  %vm4189_vm9 = vcmask 1045509   ;;  %vm4193_vm10 = vcmask 1047559  }
  0x78   : > { %9261 = vmatmul.mubr.msk.f32.vlgmr.msra.gmra.mxu0 %vm1584_vm1, %v1388_v5  ;;  %9274 = vmatprep.subr.mxu0 %v12965_v1  ;;  %v1394_v11 = vld [vmem:[%s10751_s7 + $0x30] sm:$0xff]  ;;  %v1397_v14 = vld [vmem:[%s10833_s10] sm:$0x3f]  ;;  %v1395_v15 = vld [vmem:[%s10751_s7 + $0x38] sm:$0xff]  ;;  %s10906_s7 = scalar_lea.vmem %s13120_s3, %s9772_s1  ;;  %s10989_s1 = sshll.u32 %s10734_s18, 3  ;;  %vm4191_vm11 = vcmask 1046534  }
  0x79   : > { %9275 = vmatpush3.msra.mxu0 %v10722_v0  ;;  %9270 = vmatpush3.msra.mxu1 %v10746_v4  ;;  %v1399_v16 = vld [vmem:[%s10833_s10 + $0x10] sm:$0x3f]  ;;  %v1398_v17 = vld [vmem:[%s10833_s10 + $0x8] sm:$0x3f]  ;;  %v1401_v18 = vld [vmem:[%s10833_s10 + $0x20] sm:$0x3f]  ;;  %s1371_s18 = scalar_lea.vmem %s13121_s8, %s10989_s1 }
  0x7a   : > { %9276 = vmatprep.subr.mxu0 %v12965_v1  ;;  %9271 = vmatprep.mubr.msk.f32.mxu1 %vm10456_vm0, %v12965_v1  ;;  %v1400_v19 = vld [vmem:[%s10833_s10 + $0x18] sm:$0x3f]  ;;  %v1403_v20 = vld [vmem:[%s10833_s10 + $0x30] sm:$0x3f]  ;;  %v1402_v22 = vld [vmem:[%s10833_s10 + $0x28] sm:$0x3f] }
  0x7b   : > { %9277 = vmatpush3.msra.mxu0 %v10727_v2  ;;  %9285 = vmatprep.subr.mxu1 %v12965_v1  ;;  %v1405_v24 = vld [vmem:[%s10906_s7] sm:$0xff]  ;;  %v1404_v25 = vld [vmem:[%s10833_s10 + $0x38] sm:$0x3f]  ;;  %v1407_v26 = vld [vmem:[%s10906_s7 + $0x10] sm:$0xff]  ;;  %s1375_s3 = scalar_lea.vmem %s13150_s14, %s10989_s1  ;;  %s13154_s19 = sld [smem:[#allocation18_spill]]  ;;  %vm5133_vm12 = vcmask 523264  }
  0x7c   : > { %9278 = vmatprep.subr.mxu0 %v12965_v1  ;;  %9272 = vmatmul.mubr.msk.f32.vlgmr.msra.gmra.mxu1 %vm1584_vm1, %v1389_v6  ;;  %v1406_v27 = vld [vmem:[%s10906_s7 + $0x8] sm:$0xff]  ;;  %v1409_v28 = vld [vmem:[%s10906_s7 + $0x20] sm:$0xff]  ;;  %v1408_v30 = vld [vmem:[%s10906_s7 + $0x18] sm:$0xff]  ;;  %s13156_s24 = sld [smem:[#allocation19_spill]]  ;;  %s13016_s21 = smov 80   ;;  %vm5157_vm13 = vcmask 916480  }
  0x7d   : > { %9279 = vmatpush3.msra.mxu0 %v10738_v3  ;;  %9282 = vmatprep.mubr.msk.f32.mxu0 %vm10456_vm0, %v12965_v1  ;;  %v1410_v33 = vld [vmem:[%s10906_s7 + $0x28] sm:$0xff]  ;;  %v1428_v42 = vld [vmem:[%s13107_s12] sm:$0xff]  ;;  %v1434_v45 = vld [vmem:[%s13107_s12 + $0x30] sm:$0xff]  ;;  %s13157_s8 = sld [smem:[#allocation20_spill]]  ;;  %s10462_s29 = smov 48   ;;  %vm13031_vm14 = vcmask 392192  }
  0x7e   : > { %9280 = vmatprep.subr.mxu0 %v12965_v1  ;;  %9286 = vmatpush3.msra.mxu1 %v10722_v0  ;;  %v1442_v46 = vld [vmem:[%s10556_s27 + $0x18] sm:$0xff]  ;;  %v1433_v48 = vld [vmem:[%s13107_s12 + $0x28] sm:$0xff]  ;;  %v1441_v49 = vld [vmem:[%s10556_s27 + $0x10] sm:$0xff]  ;;  %s13176_s14 = sld [smem:[#allocation26_spill]]  ;;  %vm13030_vm15 = vcmask 654336  }
  0x7f   : > { %9281 = vmatpush3.msra.mxu0 %v10746_v4  ;;  %9287 = vmatprep.subr.mxu1 %v12965_v1  ;;  %v1432_v50 = vld [vmem:[%s13107_s12 + $0x20] sm:$0xff]  ;;  %v1440_v51 = vld [vmem:[%s10556_s27 + $0x8] sm:$0xff]  ;;  %v1446_v56 = vld [vmem:[%s10556_s27 + $0x38] sm:$0xff]  ;;  %s13196_s26 = sld [smem:[#allocation10_spill]] }
  0x80   : > { %9283 = vmatmul.mubr.msk.f32.vlgmr.msra.gmra.mxu0 %vm1584_vm1, %v1390_v7  ;;  %9296 = vmatprep.subr.mxu0 %v12965_v1  ;;  %v11013_v53 = vld [vmem:[%s1371_s18] sm:$0xff]  ;;  %v1445_v59 = vld [vmem:[%s10556_s27 + $0x30] sm:$0xff]  ;;  %v1444_v61 = vld [vmem:[%s10556_s27 + $0x28] sm:$0xff]  ;;  %s13011_s18 = smov 96   ;;  %s13197_s2 = sld [smem:[#allocation11_spill]] }
  0x81   : > { %9288 = vmatpush3.msra.mxu1 %v10727_v2  ;;  %9297 = vmatpush3.msra.mxu0 %v10722_v0  ;;  %v1439_v55 = vld [vmem:[%s10556_s27] sm:$0xff]  ;;  %v3949_v57 = vrot.slane %v11013_v53, %v11009_v52  ;;  %v3942_v60 = vrot.slane %v11013_v53, %v11016_v54  ;;  %v3956_v62 = vrot.slane %v11013_v53, %v11028_v58  ;;  %s13198_s22 = sld [smem:[#allocation25_spill]] }
  0x82   : > { %9289 = vmatprep.subr.mxu1 %v12965_v1  ;;  %9298 = vmatprep.subr.mxu0 %v12965_v1  ;;  %s13200_s15 = sld [smem:[#allocation29_spill]] }
  0x83   : > { %9290 = vmatpush3.msra.mxu1 %v10738_v3  ;;  %9299 = vmatpush3.msra.mxu0 %v10727_v2  ;;  %s13208_s0 = sld [smem:[#allocation36_spill]] }
  0x84   : > { %9291 = vmatprep.subr.mxu1 %v12965_v1  ;;  %9300 = vmatprep.subr.mxu0 %v12965_v1 }
  0x85   : > { %9292 = vmatpush3.msra.mxu1 %v10746_v4  ;;  %9301 = vmatpush3.msra.mxu0 %v10738_v3  ;;  %s1344_s16 = scalar_lea.vmem %s13196_s26, %s10989_s1  ;;  %s13201_s26 = sld [smem:[#allocation27_spill]] }
  0x86   : > { %9293 = vmatprep.mubr.msk.f32.mxu1 %vm10456_vm0, %v12965_v1  ;;  %9302 = vmatprep.subr.mxu0 %v12965_v1  ;;  %s1348_s28 = scalar_lea.vmem %s13197_s2, %s10989_s1 }
  0x87   : > { %9307 = vmatprep.subr.mxu1 %v12965_v1  ;;  %9294 = vmatmul.mubr.msk.f32.vlgmr.msra.gmra.mxu1 %vm1584_vm1, %v1391_v8  ;;  %s13199_s13 = smov %s13198_s22 }
  0x88   : > { %9303 = vmatpush3.msra.mxu0 %v10746_v4  ;;  %9304 = vmatprep.mubr.msk.f32.mxu0 %vm10456_vm0, %v12965_v1 }
  0x89   : > { %9308 = vmatpush3.msra.mxu1 %v10722_v0  ;;  %9305 = vmatmul.mubr.msk.f32.vlgmr.msra.gmra.mxu0 %vm1584_vm1, %v1392_v9 }
  0x8a   : > { %9309 = vmatprep.subr.mxu1 %v12965_v1  ;;  %9318 = vmatprep.subr.mxu0 %v12965_v1 }
  0x8b   : > { %9310 = vmatpush3.msra.mxu1 %v10727_v2  ;;  %9319 = vmatpush3.msra.mxu0 %v10722_v0  ;;  %s13202_s6 = smov %s13201_s26 }
  0x8c   : > { %9311 = vmatprep.subr.mxu1 %v12965_v1  ;;  %9320 = vmatprep.subr.mxu0 %v12965_v1 }
  0x8d   : > { %9312 = vmatpush3.msra.mxu1 %v10738_v3  ;;  %9321 = vmatpush3.msra.mxu0 %v10727_v2 }
  0x8e   : > { %9313 = vmatprep.subr.mxu1 %v12965_v1  ;;  %9322 = vmatprep.subr.mxu0 %v12965_v1 }
  0x8f   : > { %9314 = vmatpush3.msra.mxu1 %v10746_v4  ;;  %9323 = vmatpush3.msra.mxu0 %v10738_v3 }
  0x90   : > { %9315 = vmatprep.mubr.msk.f32.mxu1 %vm10456_vm0, %v12965_v1  ;;  %9324 = vmatprep.subr.mxu0 %v12965_v1 }
  0x91   : > { %9329 = vmatprep.subr.mxu1 %v12965_v1  ;;  %9316 = vmatmul.mubr.msk.f32.vlgmr.msra.gmra.mxu1 %vm1584_vm1, %v1393_v10 }
  0x92   : > { %9325 = vmatpush3.msra.mxu0 %v10746_v4  ;;  %9326 = vmatprep.mubr.msk.f32.mxu0 %vm10456_vm0, %v12965_v1 }
  0x93   : > { %9330 = vmatpush3.msra.mxu1 %v10722_v0  ;;  %9327 = vmatmul.mubr.msk.f32.vlgmr.msra.gmra.mxu0 %vm1584_vm1, %v1394_v11  ;;  %v1443_v0 = vld [vmem:[%s10556_s27 + $0x20] sm:$0xff] }
  0x94   : > { %9331 = vmatprep.subr.mxu1 %v12965_v1  ;;  %9340 = vmatprep.subr.mxu0 %v12965_v1 }
  0x95   : > { %9332 = vmatpush3.msra.mxu1 %v10727_v2  ;;  %9341 = vmatpush3.msra.mxu0 %v10828_v12  ;;  %v3963_v2 = vrot.slane %v11013_v53, %v11043_v63 }
  0x96   : > { %9333 = vmatprep.subr.mxu1 %v12965_v1  ;;  %9342 = vmatprep.subr.mxu0 %v12965_v1 }
  0x97   : > { %9334 = vmatpush3.msra.mxu1 %v10738_v3  ;;  %9343 = vmatpush3.msra.mxu0 %v10840_v13  ;;  %v11054_v3 = vsub.s32 4, %v10996_v47 }
  0x98   : > { %9344 = vmatprep.mubr.msk.f32.mxu0 %vm10456_vm0, %v12965_v1  ;;  %9335 = vmatprep.subr.mxu1 %v12965_v1 }
  0x99   : > { %9345 = vmatmul.mubr.msk.f32.vlgmr.msra.gmra.mxu0 %vm2169_vm2, %v1397_v14  ;;  %9354 = vmatprep.subr.mxu0 %v12965_v1 }
  0x9a   : > { %9336 = vmatpush3.msra.mxu1 %v10746_v4  ;;  %9355 = vmatpush3.msra.mxu0 %v10828_v12  ;;  %v3970_v4 = vrot.slane %v11013_v53, %v11054_v3 }
  0x9b   : > { %9337 = vmatprep.mubr.msk.f32.mxu1 %vm10456_vm0, %v12965_v1  ;;  %9347 = vmatprep.subr.mxu1 %v12965_v1 }
  0x9c   : > { %9356 = vmatprep.subr.mxu0 %v12965_v1  ;;  %9338 = vmatmul.mubr.msk.f32.vlgmr.msra.gmra.mxu1 %vm1584_vm1, %v1395_v15 }
  0x9d   : > { %9348 = vmatpush3.msra.mxu1 %v10828_v12  ;;  %9357 = vmatpush3.msra.mxu0 %v10840_v13 }
  0x9e   : > { %9358 = vmatprep.mubr.msk.f32.mxu0 %vm10456_vm0, %v12965_v1  ;;  %9349 = vmatprep.subr.mxu1 %v12965_v1 }
  0x9f   : > { %9359 = vmatmul.mubr.msk.f32.vlgmr.msra.gmra.mxu0 %vm2169_vm2, %v1399_v16  ;;  %9368 = vmatprep.subr.mxu0 %v12965_v1 }
  0xa0   : > { %9350 = vmatpush3.msra.mxu1 %v10840_v13  ;;  %9369 = vmatpush3.msra.mxu0 %v10828_v12 }
  0xa1   : > { %9351 = vmatprep.mubr.msk.f32.mxu1 %vm10456_vm0, %v12965_v1  ;;  %9361 = vmatprep.subr.mxu1 %v12965_v1 }
  0xa2   : > { %9370 = vmatprep.subr.mxu0 %v12965_v1  ;;  %9352 = vmatmul.mubr.msk.f32.vlgmr.msra.gmra.mxu1 %vm2169_vm2, %v1398_v17 }
  0xa3   : > { %9362 = vmatpush3.msra.mxu1 %v10828_v12  ;;  %9371 = vmatpush3.msra.mxu0 %v10840_v13 }
  0xa4   : > { %9372 = vmatprep.mubr.msk.f32.mxu0 %vm10456_vm0, %v12965_v1  ;;  %9363 = vmatprep.subr.mxu1 %v12965_v1 }
  0xa5   : > { %9373 = vmatmul.mubr.msk.f32.vlgmr.msra.gmra.mxu0 %vm2169_vm2, %v1401_v18  ;;  %9382 = vmatprep.subr.mxu0 %v12965_v1 }
  0xa6   : > { %9364 = vmatpush3.msra.mxu1 %v10840_v13  ;;  %9383 = vmatpush3.msra.mxu0 %v10828_v12 }
  0xa7   : > { %9365 = vmatprep.mubr.msk.f32.mxu1 %vm10456_vm0, %v12965_v1  ;;  %9375 = vmatprep.subr.mxu1 %v12965_v1 }
  0xa8   : > { %9384 = vmatprep.subr.mxu0 %v12965_v1  ;;  %9366 = vmatmul.mubr.msk.f32.vlgmr.msra.gmra.mxu1 %vm2169_vm2, %v1400_v19 }
  0xa9   : > { %9376 = vmatpush3.msra.mxu1 %v10828_v12  ;;  %9385 = vmatpush3.msra.mxu0 %v10840_v13 }
  0xaa   : > { %9386 = vmatprep.mubr.msk.f32.mxu0 %vm10456_vm0, %v12965_v1  ;;  %9377 = vmatprep.subr.mxu1 %v12965_v1 }
  0xab   : > { %9387 = vmatmul.mubr.msk.f32.vlgmr.msra.gmra.mxu0 %vm2169_vm2, %v1403_v20  ;;  %9396 = vmatprep.subr.mxu0 %v12965_v1 }
  0xac   : > { %9378 = vmatpush3.msra.mxu1 %v10840_v13  ;;  %9397 = vmatpush3.msra.mxu0 %v1448_v21 }
  0xad   : > { %9379 = vmatprep.mubr.msk.f32.mxu1 %vm10456_vm0, %v12965_v1  ;;  %9389 = vmatprep.subr.mxu1 %v12965_v1 }
  0xae   : > { %9398 = vmatprep.subr.mxu0 %v12965_v1  ;;  %9380 = vmatmul.mubr.msk.f32.vlgmr.msra.gmra.mxu1 %vm2169_vm2, %v1402_v22 }
  0xaf   : > { %9390 = vmatpush3.msra.mxu1 %v10828_v12  ;;  %9399 = vmatpush3.msra.mxu0 %v1447_v23 }
  0xb0   : > { %9400 = vmatprep.mubr.msk.f32.mxu0 %vm10456_vm0, %v12965_v1  ;;  %9391 = vmatprep.subr.mxu1 %v12965_v1 }
  0xb1   : > { %9401 = vmatmul.mubr.msk.f32.vlgmr.msra.gmra.mxu0 %vm2169_vm2, %v1405_v24  ;;  %9410 = vmatprep.subr.mxu0 %v12965_v1 }
  0xb2   : > { %9392 = vmatpush3.msra.mxu1 %v10840_v13  ;;  %9411 = vmatpush3.msra.mxu0 %v1448_v21 }
  0xb3   : > { %9393 = vmatprep.mubr.msk.f32.mxu1 %vm10456_vm0, %v12965_v1  ;;  %9403 = vmatprep.subr.mxu1 %v12965_v1 }
  0xb4   : > { %9412 = vmatprep.subr.mxu0 %v12965_v1  ;;  %9394 = vmatmul.mubr.msk.f32.vlgmr.msra.gmra.mxu1 %vm2169_vm2, %v1404_v25 }
  0xb5   : > { %9404 = vmatpush3.msra.mxu1 %v1448_v21  ;;  %9413 = vmatpush3.msra.mxu0 %v1447_v23 }
  0xb6   : > { %9414 = vmatprep.mubr.msk.f32.mxu0 %vm10456_vm0, %v12965_v1  ;;  %9405 = vmatprep.subr.mxu1 %v12965_v1 }
  0xb7   : > { %9415 = vmatmul.mubr.msk.f32.vlgmr.msra.gmra.mxu0 %vm2169_vm2, %v1407_v26  ;;  %9424 = vmatprep.subr.mxu0 %v12965_v1 }
  0xb8   : > { %9406 = vmatpush3.msra.mxu1 %v1447_v23  ;;  %9425 = vmatpush3.msra.mxu0 %v1448_v21 }
  0xb9   : > { %9407 = vmatprep.mubr.msk.f32.mxu1 %vm10456_vm0, %v12965_v1  ;;  %9417 = vmatprep.subr.mxu1 %v12965_v1 }
  0xba   : > { %9426 = vmatprep.subr.mxu0 %v12965_v1  ;;  %9408 = vmatmul.mubr.msk.f32.vlgmr.msra.gmra.mxu1 %vm2169_vm2, %v1406_v27 }
  0xbb   : > { %9418 = vmatpush3.msra.mxu1 %v1448_v21  ;;  %9427 = vmatpush3.msra.mxu0 %v1447_v23 }
  0xbc   : > { %9428 = vmatprep.mubr.msk.f32.mxu0 %vm10456_vm0, %v12965_v1  ;;  %9419 = vmatprep.subr.mxu1 %v12965_v1 }
  0xbd   : > { %9429 = vmatmul.mubr.msk.f32.vlgmr.msra.gmra.mxu0 %vm2169_vm2, %v1409_v28  ;;  %9438 = vmatprep.subr.mxu0 %v12965_v1 }
  0xbe   : > { %9420 = vmatpush3.msra.mxu1 %v1447_v23  ;;  %9439 = vmatpush3.msra.mxu0 %v1418_v29 }
  0xbf   : > { %9421 = vmatprep.mubr.msk.f32.mxu1 %vm10456_vm0, %v12965_v1  ;;  %9431 = vmatprep.subr.mxu1 %v12965_v1 }
  0xc0   : > { %9440 = vmatprep.subr.mxu0 %v12965_v1  ;;  %9422 = vmatmul.mubr.msk.f32.vlgmr.msra.gmra.mxu1 %vm2169_vm2, %v1408_v30 }
  0xc1   : > { %9432 = vmatpush3.msra.mxu1 %v1448_v21  ;;  %9441 = vmatpush3.msra.mxu0 %v1417_v31  ;;  %v1453_v31 = vld [vmem:[%s10566_s17 + $0x18] sm:$0xff] }
  0xc2   : > { %9433 = vmatprep.subr.mxu1 %v12965_v1  ;;  %9442 = vmatprep.subr.mxu0 %v12965_v1 }
  0xc3   : > { %9434 = vmatpush3.msra.mxu1 %v1447_v23  ;;  %9443 = vmatpush3.msra.mxu0 %v1416_v32  ;;  %v1452_v32 = vld [vmem:[%s10566_s17 + $0x10] sm:$0xff] }
  0xc4   : > { %9435 = vmatprep.mubr.msk.f32.mxu1 %vm10456_vm0, %v12965_v1  ;;  %9444 = vmatprep.subr.mxu0 %v12965_v1 }
  0xc5   : > { %9449 = vmatprep.subr.mxu1 %v12965_v1  ;;  %9436 = vmatmul.mubr.msk.f32.vlgmr.msra.gmra.mxu1 %vm2169_vm2, %v1410_v33 }
  0xc6   : > { %9445 = vmatpush3.msra.mxu0 %v1415_v34  ;;  %9446 = vmatprep.mubr.msk.f32.mxu0 %vm10456_vm0, %v12965_v1 }
  0xc7   : > { %9450 = vmatpush3.msra.mxu1 %v1422_v35  ;;  %9447 = vmatmul.mubr.f32.vlgmr.msra.gmra.mxu0 %v12965_v1 }
  0xc8   : > { %9451 = vmatprep.subr.mxu1 %v12965_v1  ;;  %9460 = vmatprep.subr.mxu0 %v12965_v1 }
  0xc9   : > { %9452 = vmatpush3.msra.mxu1 %v1421_v36  ;;  %9461 = vmatpush3.msra.mxu0 %v1431_v37  ;;  %v1451_v36 = vld [vmem:[%s10566_s17 + $0x8] sm:$0xff]  ;;  %v1450_v37 = vld [vmem:[%s10566_s17] sm:$0xff] }
  0xca   : > { %9453 = vmatprep.subr.mxu1 %v12965_v1  ;;  %9462 = vmatprep.subr.mxu0 %v12965_v1 }
  0xcb   : > { %9454 = vmatpush3.msra.mxu1 %v1420_v38  ;;  %9463 = vmatpush3.msra.mxu0 %v1430_v39 }
  0xcc   : > { %9455 = vmatprep.subr.mxu1 %v12965_v1  ;;  %9464 = vmatprep.subr.mxu0 %v12965_v1 }
  0xcd   : > { %9456 = vmatpush3.msra.mxu1 %v1419_v40  ;;  %9457 = vmatprep.mubr.msk.f32.mxu1 %vm10456_vm0, %v12965_v1  ;;  %v1457_v40 = vld [vmem:[%s10566_s17 + $0x38] sm:$0xff] }
  0xce   : > { %9465 = vmatpush3.msra.mxu0 %v1429_v41  ;;  %9458 = vmatmul.mubr.f32.vlgmr.msra.gmra.mxu1 %v12965_v1  ;;  %v1456_v41 = vld [vmem:[%s10566_s17 + $0x30] sm:$0xff] }
  0xcf   : > { %9466 = vmatprep.subr.mxu0 %v12965_v1  ;;  %9471 = vmatprep.subr.mxu1 %v12965_v1 }
  0xd0   : > { %9467 = vmatpush3.msra.mxu0 %v1428_v42  ;;  %9468 = vmatprep.mubr.msk.f32.mxu0 %vm10456_vm0, %v12965_v1 }
  0xd1   : > { %9472 = vmatpush3.msra.mxu1 %v1435_v44  ;;  %9469 = vmatmul.mubr.f32.vlgmr.msra.gmra.mxu0 %v12965_v1 }
  0xd2   : > { %9473 = vmatprep.subr.mxu1 %v12965_v1  ;;  %9482 = vmatprep.subr.mxu0 %v12965_v1 }
  0xd3   : > { %9474 = vmatpush3.msra.mxu1 %v1434_v45  ;;  %9483 = vmatpush3.msra.mxu0 %v1442_v46  ;;  %v1455_v45 = vld [vmem:[%s10566_s17 + $0x28] sm:$0xff]  ;;  %v1454_v46 = vld [vmem:[%s10566_s17 + $0x20] sm:$0xff] }
  0xd4   : > { %9475 = vmatprep.subr.mxu1 %v12965_v1  ;;  %9484 = vmatprep.subr.mxu0 %v12965_v1 }
  0xd5   : > { %9476 = vmatpush3.msra.mxu1 %v1433_v48  ;;  %9485 = vmatpush3.msra.mxu0 %v1441_v49 }
  0xd6   : > { %9477 = vmatprep.subr.mxu1 %v12965_v1  ;;  %9486 = vmatprep.subr.mxu0 %v12965_v1 }
  0xd7   : > { %9478 = vmatpush3.msra.mxu1 %v1432_v50  ;;  %9479 = vmatprep.mubr.msk.f32.mxu1 %vm10456_vm0, %v12965_v1 }
  0xd8   : > { %9487 = vmatpush3.msra.mxu0 %v1440_v51  ;;  %9480 = vmatmul.mubr.f32.vlgmr.msra.gmra.mxu1 %v12965_v1  ;;  %v10457_v51 = vmov 1966171168  }
  0xd9   : > { %9488 = vmatprep.subr.mxu0 %v12965_v1  ;;  %9493 = vmatprep.subr.mxu1 %v12965_v1 }
  0xda   : > { %9489 = vmatpush3.msra.mxu0 %v1439_v55  ;;  %9490 = vmatprep.mubr.msk.f32.mxu0 %vm10456_vm0, %v12965_v1  ;;  %v3338_v55 = vunpack.c.l.s4 %v10457_v51 }
  0xdb   : > { %9494 = vmatpush3.msra.mxu1 %v1446_v56  ;;  %9491 = vmatmul.mubr.f32.vlgmr.msra.gmra.mxu0 %v12965_v1 }
  0xdc   : > { %9495 = vmatprep.subr.mxu1 %v12965_v1  ;;  %9501 = vmatprep.mubr.msk.f32.mxu1 %vm10456_vm0, %v12965_v1 }
  0xdd   : > { %9496 = vmatpush3.msra.mxu1 %v1445_v59  ;;  %3951 = vbcast.lane.b32.xlu0 %v3949_v57, 256 }
  0xde   : > { %9497 = vmatprep.subr.mxu1 %v12965_v1  ;;  %3944 = vbcast.lane.b32.xlu1 %v3942_v60, 256  ;;  %v3339_v60 = vunpack.c.0.s8 %v3338_v55 }
  0xdf   : > { %9498 = vmatpush3.msra.mxu1 %v1444_v61  ;;  %9504 = vmatprep.subr.mxu0 %v12965_v1 }
  0xe0   : > { %9499 = vmatprep.subr.mxu1 %v12965_v1  ;;  %9512 = vmatprep.mubr.msk.f32.mxu0 %vm10456_vm0, %v12965_v1 }
  0xe1   : > { %9500 = vmatpush3.msra.mxu1 %v1443_v0  ;;  %3958 = vbcast.lane.b32.xlu0 %v3956_v62, 256  ;;  %v11125_v0 = vsub.s32 %v3339_v60, %v10996_v47 }
  0xe2   : > { %9502 = vmatmul.mubr.f32.vlgmr.msra.gmra.mxu1 %v12965_v1  ;;  %9515 = vmatprep.subr.mxu1 %v12965_v1 }
  0xe3   : > { %9523 = vmatprep.mubr.msk.f32.mxu1 %vm10456_vm0, %v12965_v1  ;;  %9505 = vmatpush3.msra.mxu0 %v1453_v31  ;;  %13144 = vst [vmem:[#allocation73_spill] sm:$0xff] %v11125_v0 }
  0xe4   : > { %9506 = vmatprep.subr.mxu0 %v12965_v1  ;;  %9516 = vmatpush3.msra.mxu1 %v1457_v40 }
  0xe5   : > { %3965 = vbcast.lane.b32.xlu0 %v3963_v2, 256  ;;  %9507 = vmatpush3.msra.mxu0 %v1452_v32 }
  0xe6   : > { %9508 = vmatprep.subr.mxu0 %v12965_v1  ;;  %9517 = vmatprep.subr.mxu1 %v12965_v1 }
  0xe7   : > { %9509 = vmatpush3.msra.mxu0 %v1451_v36  ;;  %9518 = vmatpush3.msra.mxu1 %v1456_v41 }
  0xe8   : > { %9510 = vmatprep.subr.mxu0 %v12965_v1  ;;  %9519 = vmatprep.subr.mxu1 %v12965_v1 }
  0xe9   : > { %3972 = vbcast.lane.b32.xlu0 %v3970_v4, 256  ;;  %9511 = vmatpush3.msra.mxu0 %v1450_v37 }
  0xea   : > { %9513 = vmatmul.mubr.f32.vlgmr.msra.gmra.mxu0 %v12965_v1  ;;  %5167 = vmatprep.subr.mxu0 %v12965_v1 }
  0xeb   : > { %5231 = vmatprep.mubr.f32.mxu0 %v12965_v1  ;;  %9520 = vmatpush3.msra.mxu1 %v1455_v45 }
  0xec   : > { %9521 = vmatprep.subr.mxu1 %v12965_v1 }
  0xed   : > { %9522 = vmatpush3.msra.mxu1 %v1454_v46 }
  0xee   : > { %9524 = vmatmul.mubr.f32.vlgmr.msra.gmra.mxu1 %v12965_v1  ;;  %5251 = vmatprep.subr.mxu1 %v12965_v1 }
  0xef   : > { %5315 = vmatprep.mubr.f32.mxu1 %v12965_v1 }
 0x138   : > { %v11062_v5 = vpop.f32.mrf.mxu0 }
 0x139   : > { %13123 = vst [vmem:[#allocation52_spill] sm:$0xff] %v11062_v5 }
 0x13a   : > { %v9262_v6 = vpop.f32.mrf.mxu0 }
 0x13c   : > { %v11064_v7 = vpop.f32.mrf.mxu1 }
 0x13d   : > { %13124 = vst [vmem:[#allocation53_spill] sm:$0xff] %v11064_v7 }
 0x13e   : > { %v9273_v8 = vpop.f32.mrf.mxu1 }
 0x140   : > { %v11066_v9 = vpop.f32.mrf.mxu0 }
 0x141   : > { %13125 = vst [vmem:[#allocation54_spill] sm:$0xff] %v11066_v9 }
 0x142   : > { %v9284_v10 = vpop.f32.mrf.mxu0 }
 0x147   : > { %v11068_v11 = vpop.f32.mrf.mxu1 }
 0x148   : > { %13126 = vst [vmem:[#allocation55_spill] sm:$0xff] %v11068_v11 }
 0x149   : > { %v11070_v12 = vpop.f32.mrf.mxu0  ;;  %v9295_v13 = vpop.f32.mrf.mxu1 }
 0x14a   : > { %13127 = vst [vmem:[#allocation56_spill] sm:$0xff] %v11070_v12 }
 0x14b   : > { %v9306_v14 = vpop.f32.mrf.mxu0 }
 0x151   : > { %v11072_v15 = vpop.f32.mrf.mxu1 }
 0x152   : > { %13128 = vst [vmem:[#allocation57_spill] sm:$0xff] %v11072_v15 }
 0x153   : > { %v11074_v16 = vpop.f32.mrf.mxu0  ;;  %v9317_v17 = vpop.f32.mrf.mxu1 }
 0x154   : > { %13129 = vst [vmem:[#allocation58_spill] sm:$0xff] %v11074_v16 }
 0x155   : > { %v9328_v18 = vpop.f32.mrf.mxu0 }
 0x159   : > { %v11076_v19 = vpop.f32.mrf.mxu0 }
 0x15a   : > { %13130 = vst [vmem:[#allocation59_spill] sm:$0xff] %v11076_v19 }
 0x15b   : > { %v9346_v20 = vpop.f32.mrf.mxu0 }
 0x15c   : > { %v11078_v21 = vpop.f32.mrf.mxu1 }
 0x15d   : > { %13131 = vst [vmem:[#allocation60_spill] sm:$0xff] %v11078_v21 }
 0x15e   : > { %v9339_v22 = vpop.f32.mrf.mxu1 }
 0x15f   : > { %v11080_v23 = vpop.f32.mrf.mxu0 }
 0x160   : > { %13132 = vst [vmem:[#allocation61_spill] sm:$0xff] %v11080_v23 }
 0x161   : > { %v9360_v24 = vpop.f32.mrf.mxu0 }
 0x162   : > { %v11082_v25 = vpop.f32.mrf.mxu1 }
 0x163   : > { %13133 = vst [vmem:[#allocation62_spill] sm:$0xff] %v11082_v25 }
 0x164   : > { %v9353_v26 = vpop.f32.mrf.mxu1 }
 0x165   : > { %v11084_v27 = vpop.f32.mrf.mxu0 }
 0x166   : > { %13134 = vst [vmem:[#allocation63_spill] sm:$0xff] %v11084_v27 }
 0x167   : > { %v9374_v28 = vpop.f32.mrf.mxu0 }
 0x168   : > { %v11086_v29 = vpop.f32.mrf.mxu1 }
 0x169   : > { %13135 = vst [vmem:[#allocation64_spill] sm:$0xff] %v11086_v29 }
 0x16a   : > { %v9367_v30 = vpop.f32.mrf.mxu1 }
 0x16b   : > { %v11090_v33 = vpop.f32.mrf.mxu0 }
 0x16c   : > { %13136 = vst [vmem:[#allocation65_spill] sm:$0xff] %v11090_v33 }
 0x16d   : > { %v9388_v34 = vpop.f32.mrf.mxu0 }
 0x16e   : > { %v11093_v35 = vpop.f32.mrf.mxu1 }
 0x16f   : > { %13137 = vst [vmem:[#allocation66_spill] sm:$0xff] %v11093_v35 }
 0x170   : > { %v9381_v38 = vpop.f32.mrf.mxu1 }
 0x171   : > { %v11099_v39 = vpop.f32.mrf.mxu0 }
 0x172   : > { %13138 = vst [vmem:[#allocation67_spill] sm:$0xff] %v11099_v39 }
 0x173   : > { %v9402_v42 = vpop.f32.mrf.mxu0 }
 0x174   : > { %v11106_v43 = vpop.f32.mrf.mxu1 }
 0x175   : > { %13139 = vst [vmem:[#allocation68_spill] sm:$0xff] %v11106_v43 }
 0x176   : > { %v9395_v44 = vpop.f32.mrf.mxu1 }
 0x177   : > { %v11112_v48 = vpop.f32.mrf.mxu0 }
 0x178   : > { %13140 = vst [vmem:[#allocation69_spill] sm:$0xff] %v11112_v48 }
 0x179   : > { %v9416_v49 = vpop.f32.mrf.mxu0 }
 0x17a   : > { %v11115_v50 = vpop.f32.mrf.mxu1 }
 0x17b   : > { %13141 = vst [vmem:[#allocation70_spill] sm:$0xff] %v11115_v50 }
 0x17c   : > { %v9409_v56 = vpop.f32.mrf.mxu1 }
 0x17d   : > { %v11120_v57 = vpop.f32.mrf.mxu0 }
 0x17e   : > { %13142 = vst [vmem:[#allocation71_spill] sm:$0xff] %v11120_v57 }
 0x17f   : > { %v9430_v59 = vpop.f32.mrf.mxu0 }
 0x180   : > { %v11122_v61 = vpop.f32.mrf.mxu1 }
 0x181   : > { %13143 = vst [vmem:[#allocation72_spill] sm:$0xff] %v11122_v61 }
 0x182   : > { %v9423_v62 = vpop.f32.mrf.mxu1 }
 0x185   : > { %v11127_v2 = vpop.f32.mrf.mxu1 }
 0x186   : > { %13145 = vst [vmem:[#allocation74_spill] sm:$0xff] %v11127_v2 }
 0x187   : > { %v3261_v4 = vpop.f32.mrf.mxu0  ;;  %v9437_v6 = vpop.f32.mrf.mxu1 }
 0x188   : > { %v3336_v8 = vcombine.high %v3261_v4, %v3261_v4  ;;  %v3343_v10 = vrot.slane %v3261_v4, %v11125_v0 }
 0x189   : > { %v9448_v13 = vpop.f32.mrf.mxu0 }
 0x18a   : > { %v11131_v14 = vrot.slane %v3336_v8, %v11125_v0  ;;  %v3351_v17 = vcombine.high %v3343_v10, %v3343_v10  ;;  %v3359_v18 = vrot.slane %v3343_v10, %v11125_v0 }
 0x18c   : > { %v3366_v20 = vrot.slane %v11131_v14, %v11125_v0  ;;  %v3373_v22 = vrot.slane %v3351_v17, %v11125_v0  ;;  %v3381_v24 = vcombine.high %v3359_v18, %v3359_v18  ;;  %v3388_v26 = vrot.slane %v3359_v18, %v11016_v54 }
 0x18e   : > { %v3382_v28 = vcombine.high %v3366_v20, %v3366_v20  ;;  %v3392_v30 = vrot.slane %v3373_v22, %v11016_v54  ;;  %v11139_v31 = vpop.f32.mrf.mxu1  ;;  %v3396_v32 = vrot.slane %v3381_v24, %v11016_v54  ;;  %v3404_v34 = vrot.slane %v3366_v20, %v11016_v54 }
 0x18f   : > { %v11144_v36 = vadd.f32 %v3388_v26, %v11139_v31 }
 0x190   : > { %v3412_v37 = vrot.slane %v3382_v28, %v11016_v54  ;;  %v9459_v38 = vpop.f32.mrf.mxu1  ;;  %v11148_v41 = vadd.f32 %v3396_v32, %v11139_v31  ;;  %v11151_v42 = vadd.f32 %v3404_v34, %v11139_v31  ;;  %v11154_v44 = vadd.f32 %v3392_v30, %v11139_v31  ;;  %v8925_v28 = vld [vmem:[%s10551_s20] ss:$0 sm:$0xff] }
 0x191   : > { %v3697_v40 = vpop.f32.mrf.mxu0 }
 0x192   : > { %v3772_v45 = vcombine.high %v3697_v40, %v3697_v40  ;;  %v3779_v46 = vrot.slane %v3697_v40, %v11125_v0  ;;  %v11158_v49 = vadd.f32 %v3412_v37, %v11139_v31 }
 0x193   : > { %v9470_v51 = vpop.f32.mrf.mxu0 }
 0x194   : > { %v3786_v55 = vrot.slane %v3772_v45, %v11125_v0  ;;  %v3787_v56 = vcombine.high %v3779_v46, %v3779_v46  ;;  %v3795_v59 = vrot.slane %v3779_v46, %v11125_v0  ;;  %v3383_v45 = vcombine.high %v3373_v22, %v3373_v22 }
 0x196   : > { %v3802_v60 = vrot.slane %v3786_v55, %v11125_v0  ;;  %v3809_v62 = vrot.slane %v3787_v56, %v11125_v0  ;;  %v3817_v4 = vcombine.high %v3795_v59, %v3795_v59  ;;  %v3824_v6 = vrot.slane %v3795_v59, %v11016_v54 }
 0x197   : > { %v3788_v8 = vcombine.high %v3786_v55, %v3786_v55 }
 0x198   : > { %v3819_v10 = vcombine.high %v3809_v62, %v3809_v62  ;;  %v3828_v13 = vrot.slane %v3809_v62, %v11016_v54  ;;  %v3767_v17 = vpop.f32.mrf.mxu1  ;;  %v3832_v18 = vrot.slane %v3817_v4, %v11016_v54  ;;  %v3840_v20 = vrot.slane %v3802_v60, %v11016_v54 }
 0x199   : > { %v3861_v24 = vadd.f32 %v3824_v6, %v3767_v17  ;;  %v3816_v46 = vrot.slane %v3788_v8, %v11125_v0 }
 0x19a   : > { %v3836_v26 = vrot.slane %v3819_v10, %v11016_v54  ;;  %v9481_v30 = vpop.f32.mrf.mxu1  ;;  %v3862_v32 = vadd.f32 %v3828_v13, %v3767_v17  ;;  %v3863_v34 = vadd.f32 %v3832_v18, %v3767_v17  ;;  %v3865_v37 = vadd.f32 %v3840_v20, %v3767_v17 }
 0x19b   : > { %v3869_v38 = vadd.f32 %v3861_v24, %v11076_v19  ;;  %v4281_v40 = vpop.f32.mrf.mxu0  ;;  %v3400_v18 = vrot.slane %v3383_v45, %v11016_v54  ;;  %v3818_v20 = vcombine.high %v3802_v60, %v3802_v60  ;;  %v3844_v22 = vrot.slane %v3816_v46, %v11016_v54 }
 0x19c   : > { %v3864_v51 = vadd.f32 %v3836_v26, %v3767_v17  ;;  %v3870_v55 = vadd.f32 %v3862_v32, %v11082_v25  ;;  %v3871_v56 = vadd.f32 %v3863_v34, %v11080_v23  ;;  %v3873_v6 = vadd.f32 %v3865_v37, %v11084_v27 }
 0x19d   : > { %v3883_v59 = vadd.f32 %v8925_v28, %v3869_v38  ;;  %v9492_v62 = vpop.f32.mrf.mxu0  ;;  %v3820_v26 = vcombine.high %v3816_v46, %v3816_v46  ;;  %v3848_v38 = vrot.slane %v3818_v20, %v11016_v54  ;;  %v3352_v60 = vcombine.high %v11131_v14, %v11131_v14 }
 0x19e   : > { %v3872_v4 = vadd.f32 %v3864_v51, %v11086_v29  ;;  %v3884_v10 = vadd.f32 %v8925_v28, %v3870_v55  ;;  %v3885_v24 = vadd.f32 %v8925_v28, %v3871_v56  ;;  %v3887_v30 = vadd.f32 %v8925_v28, %v3873_v6 }
 0x19f   : > { %v8926_v13 = vmul.f32 -1.442695, %v3883_v59  ;;  %v3866_v51 = vadd.f32 %v3844_v22, %v3767_v17  ;;  %v11182_v55 = vadd.f32 %v3400_v18, %v11139_v31  ;;  %v3852_v56 = vrot.slane %v3820_v26, %v11016_v54 }
 0x1a0   : > { %v3886_v8 = vadd.f32 %v8925_v28, %v3872_v4  ;;  %v8927_v34 = vmul.f32 -1.442695, %v3884_v10  ;;  %v8928_v62 = vmul.f32 -1.442695, %v3885_v24  ;;  %v8930_v59 = vmul.f32 -1.442695, %v3887_v30 }
 0x1a1   : > { %9869 = vpow2.f32 %v8926_v13  ;;  %v4363_v46 = vrot.slane %v4281_v40, %v11125_v0  ;;  %v3867_v4 = vadd.f32 %v3848_v38, %v3767_v17  ;;  %v3874_v6 = vadd.f32 %v3866_v51, %v11093_v35 }
 0x1a2   : > { %v11178_v32 = vpop.f32.mrf.mxu1  ;;  %v8929_v45 = vmul.f32 -1.442695, %v3886_v8  ;;  %9871 = vpow2.f32 %v8927_v34  ;;  %v3380_v10 = vrot.slane %v3352_v60, %v11125_v0  ;;  %v3868_v13 = vadd.f32 %v3852_v56, %v3767_v17 }
 0x1a3   : > { %9873 = vpow2.f32 %v8928_v62  ;;  %v4379_v18 = vrot.slane %v4363_v46, %v11125_v0  ;;  %v3875_v14 = vadd.f32 %v3867_v4, %v11090_v33  ;;  %v3888_v20 = vadd.f32 %v8925_v28, %v3874_v6 }
 0x1a4   : > { %v9503_v37 = vpop.f32.mrf.mxu1  ;;  %9875 = vpow2.f32 %v8929_v45  ;;  %v3384_v22 = vcombine.high %v3380_v10, %v3380_v10  ;;  %v3876_v8 = vadd.f32 %v3868_v13, %v11106_v43  ;;  %v4356_v26 = vcombine.high %v4281_v40, %v4281_v40 }
 0x1a5   : > { %9877 = vpow2.f32 %v8930_v59  ;;  %v4371_v34 = vcombine.high %v4363_v46, %v4363_v46  ;;  %v4401_v38 = vcombine.high %v4379_v18, %v4379_v18  ;;  %v4406_v51 = vrot.slane %v4379_v18, %v11016_v54 }
 0x1a6   : > { %v3889_v62 = vadd.f32 %v8925_v28, %v3875_v14  ;;  %v8931_v37 = vmul.f32 -1.442695, %v3888_v20  ;;  %v3408_v17 = vrot.slane %v3380_v10, %v11016_v54  ;;  %v3416_v60 = vrot.slane %v3384_v22, %v11016_v54 }
 0x1a7   : > { %v3890_v45 = vadd.f32 %v8925_v28, %v3876_v8  ;;  %v4370_v56 = vrot.slane %v4356_v26, %v11125_v0  ;;  %v4393_v59 = vrot.slane %v4371_v34, %v11125_v0  ;;  %v4414_v4 = vrot.slane %v4401_v38, %v11016_v54  ;;  %v11211_v34 = vld [vmem:[%s13106_s4] ss:$0 sm:$0xff] }
 0x1a8   : > { %v4433_v40 = vadd.f32 %v4406_v51, %v11178_v32  ;;  %v8932_v6 = vmul.f32 -1.442695, %v3889_v62  ;;  %v11201_v18 = vadd.f32 %v3408_v17, %v11139_v31  ;;  %v11204_v10 = vadd.f32 %v3416_v60, %v11139_v31  ;;  %v11213_v62 = vpop.permute.xlu0 %3951 }
 0x1a9   : > { %v8933_v14 = vmul.f32 -1.442695, %v3890_v45  ;;  %v4386_v20 = vrot.slane %v4370_v56, %v11125_v0  ;;  %v4435_v8 = vadd.f32 %v4414_v4, %v11178_v32  ;;  %v4372_v51 = vcombine.high %v4370_v56, %v4370_v56  ;;  %13146 = vst [vmem:[#allocation75_spill] sm:$0xff] %v11213_v62 }
 0x1aa   : > { %v4439_v26 = vadd.f32 %v4433_v40, %v11099_v39 }
 0x1ab   : > { %v4422_v17 = vrot.slane %v4386_v20, %v11016_v54  ;;  %v4441_v4 = vadd.f32 %v4435_v8, %v11112_v48 }
 0x1ac   : > { %v4451_v40 = vadd.f32 %v11211_v34, %v4439_v26 }
 0x1ae   : > { %v9870_v24 = vpop.eup %9869  ;;  %v8935_v20 = vmul.f32 -1.442695, %v4451_v40 }
 0x1af   : > { %v3915_v30 = vadd.f32 1.0, %v9870_v24  ;;  %v9872_v46 = vpop.eup %9871  ;;  %v4410_v24 = vrot.slane %v4393_v59, %v11016_v54 }
 0x1b0   : > { %v9874_v13 = vpop.eup %9873 }
 0x1b1   : > { %9879 = vrcp.f32 %v3915_v30  ;;  %v9876_v28 = vpop.eup %9875  ;;  %v3916_v30 = vadd.f32 1.0, %v9872_v46  ;;  %v3917_v38 = vadd.f32 1.0, %v9874_v13  ;;  %v4434_v45 = vadd.f32 %v4410_v24, %v11178_v32 }
 0x1b2   : > { %9881 = vpow2.f32 %v8931_v37  ;;  %v9878_v22 = vpop.eup %9877  ;;  %v3918_v31 = vadd.f32 1.0, %v9876_v28  ;;  %v4402_v37 = vcombine.high %v4393_v59, %v4393_v59  ;;  %v4400_v46 = vrot.slane %v4372_v51, %v11125_v0  ;;  %v11222_v59 = vpop.permute.xlu1 %3944 }
 0x1b3   : > { %9883 = vpow2.f32 %v8932_v6  ;;  %v3919_v60 = vadd.f32 1.0, %v9878_v22  ;;  %v4437_v13 = vadd.f32 %v4422_v17, %v11178_v32  ;;  %13147 = vst [vmem:[#allocation76_spill] sm:$0xff] %v11222_v59  ;;  %v4440_v28 = vadd.f32 %v4434_v45, %v11115_v50  ;;  %v11226_v22 = vpop.permute.xlu0 %3958 }
 0x1b4   : > { %9885 = vpow2.f32 %v8933_v14  ;;  %v4418_v6 = vrot.slane %v4402_v37, %v11016_v54  ;;  %v4453_v14 = vadd.f32 %v11211_v34, %v4441_v4  ;;  %13148 = vst [vmem:[#allocation77_spill] sm:$0xff] %v11226_v22  ;;  %v4426_v26 = vrot.slane %v4400_v46, %v11016_v54 }
 0x1b5   : > { %9887 = vrcp.f32 %v3916_v30  ;;  %v4443_v51 = vadd.f32 %v4437_v13, %v11120_v57  ;;  %v11239_v46 = vsub.s32 5, %v10996_v47 }
 0x1b6   : > { %9889 = vrcp.f32 %v3917_v38  ;;  %v4436_v38 = vadd.f32 %v4418_v6, %v11178_v32  ;;  %v8937_v37 = vmul.f32 -1.442695, %v4453_v14  ;;  %v4438_v40 = vadd.f32 %v4426_v26, %v11178_v32 }
 0x1b7   : > { %9891 = vrcp.f32 %v3918_v31  ;;  %v4452_v31 = vadd.f32 %v11211_v34, %v4440_v28  ;;  %v4455_v13 = vadd.f32 %v11211_v34, %v4443_v51  ;;  %v3977_v26 = vrot.slane %v11013_v53, %v11239_v46 }
 0x1b8   : > { %9893 = vrcp.f32 %v3919_v60  ;;  %v4442_v6 = vadd.f32 %v4436_v38, %v11122_v61  ;;  %v4444_v1 = vadd.f32 %v4438_v40, %v11127_v2 }
 0x1b9   : > { %9895 = vpow2.f32 %v8935_v20  ;;  %v8936_v28 = vmul.f32 -1.442695, %v4452_v31 }
 0x1ba   : > { %9897 = vpow2.f32 %v8937_v37  ;;  %v4454_v31 = vadd.f32 %v11211_v34, %v4442_v6  ;;  %v8939_v37 = vmul.f32 -1.442695, %v4455_v13  ;;  %v4456_v6 = vadd.f32 %v11211_v34, %v4444_v1 }
 0x1bc   : > { %v8938_v1 = vmul.f32 -1.442695, %v4454_v31  ;;  %v8940_v31 = vmul.f32 -1.442695, %v4456_v6 }
 0x1be   : > { %v9880_v56 = vpop.eup %9879 }
 0x1bf   : > { %4076 = vrot.lane.b32.xlu0 %v9880_v56, %s13011_s18  ;;  %v3995_v24 = vmul.f32 0.0, %v9880_v56  ;;  %v9882_v8 = vpop.eup %9881  ;;  %v11236_v56 = vpop.permute.xlu0 %3965 }
 0x1c0   : > { %v3920_v60 = vadd.f32 1.0, %v9882_v8  ;;  %v9884_v4 = vpop.eup %9883  ;;  %13149 = vst [vmem:[#allocation78_spill] sm:$0xff] %v11236_v56 }
 0x1c1   : > { %v4003_v30 = vmul.f32 %v3995_v24, %v11222_v59  ;;  %v9886_v24 = vpop.eup %9885  ;;  %v3921_v20 = vadd.f32 1.0, %v9884_v4 }
 0x1c2   : > { %v9888_v14 = vpop.eup %9887  ;;  %9899 = vrcp.f32 %v3920_v60  ;;  %v3922_v60 = vadd.f32 1.0, %v9886_v24  ;;  %v13152_v24 = vsub.s32 6, %v10996_v47 }
 0x1c3   : > { %v4012_v17 = vsel %vm4011_vm3, %v4003_v30, 0.0  ;;  %v9890_v30 = vpop.eup %9889  ;;  %v3996_v32 = vmul.f32 0.0, %v9888_v14  ;;  %4078 = vrot.lane.b32.xlu0 %v9888_v14, %s13011_s18  ;;  %9901 = vpow2.f32 %v8936_v28  ;;  %v11251_v2 = vpop.permute.xlu0 %3972 }
 0x1c4   : > { %v4013_v45 = vrot.slane %v4012_v17, 4  ;;  %v9892_v51 = vpop.eup %9891  ;;  %v3997_v4 = vmul.f32 0.0, %v9890_v30  ;;  %4080 = vrot.lane.b32.xlu1 %v9890_v30, %s13011_s18  ;;  %13151 = vst [vmem:[#allocation79_spill] sm:$0xff] %v11251_v2  ;;  %9903 = vrcp.f32 %v3921_v20  ;;  %v3984_v28 = vrot.slane %v11013_v53, %v13152_v24 }
 0x1c5   : > { %v3998_v40 = vmul.f32 0.0, %v9892_v51  ;;  %9905 = vpow2.f32 %v8939_v37 }
 0x1c6   : > { %v4014_v8 = vadd.f32 %v4013_v45, %v4012_v17  ;;  %v9894_v17 = vpop.eup %9893  ;;  %v4004_v45 = vmul.f32 %v3996_v32, %v11213_v62  ;;  %v4005_v14 = vmul.f32 %v3997_v4, %v11226_v22  ;;  %v11265_v4 = vld [vmem:[%s1375_s3] sm:$0x3f]  ;;  %9907 = vrcp.f32 %v3922_v60  ;;  %s1357_s3 = scalar_lea.vmem %s13153_s25, %s10989_s1  ;;  %s13192_s25 = sld [smem:[#allocation30_spill]] }
 0x1c7   : > { %v3999_v61 = vmul.f32 0.0, %v9894_v17  ;;  %v4006_v30 = vmul.f32 %v3998_v40, %v11236_v56  ;;  %3979 = vbcast.lane.b32.xlu0 %v3977_v26, 256  ;;  %v9896_v26 = vpop.eup %9895  ;;  %9909 = vpow2.f32 %v8938_v1 }
 0x1c8   : > { %v4015_v38 = vrot.slane %v4014_v8, 2  ;;  %v4019_v13 = vsel %vm4011_vm3, %v4004_v45, 0.0  ;;  %v4026_v57 = vsel %vm4011_vm3, %v4005_v14, 0.0  ;;  %4084 = vrot.lane.b32.xlu1 %v9894_v17, %s13011_s18  ;;  %v4475_v60 = vadd.f32 1.0, %v9896_v26  ;;  %v9898_v33 = vpop.eup %9897 }
 0x1c9   : > { %v4020_v32 = vrot.slane %v4019_v13, 4  ;;  %v4007_v20 = vmul.f32 %v3999_v61, %v11251_v2  ;;  %v4027_v34 = vrot.slane %v4026_v57, 4  ;;  %v4033_v45 = vsel %vm4011_vm3, %v4006_v30, 0.0 }
 0x1ca   : > { %v4034_v48 = vrot.slane %v4033_v45, 4  ;;  %v4016_v50 = vadd.f32 %v4015_v38, %v4014_v8  ;;  %v4503_v61 = vrot.slane %v11265_v4, %v11009_v52  ;;  %9911 = vrcp.f32 %v4475_v60 }
 0x1cb   : > { %v4021_v40 = vadd.f32 %v4020_v32, %v4019_v13  ;;  %v4040_v37 = vsel %vm4011_vm3, %v4007_v20, 0.0  ;;  %v4028_v24 = vadd.f32 %v4027_v34, %v4026_v57  ;;  %3986 = vbcast.lane.b32.xlu0 %v3984_v28, 256  ;;  %v4510_v20 = vrot.slane %v11265_v4, %v11028_v58 }
 0x1cc   : > { %v4041_v39 = vrot.slane %v4040_v37, 4  ;;  %v4035_v14 = vadd.f32 %v4034_v48, %v4033_v45  ;;  %4082 = vrot.lane.b32.xlu1 %v9892_v51, %s13011_s18  ;;  %v4017_v38 = vrot.slane %v4016_v50, 1  ;;  %9913 = vpow2.f32 %v8940_v31 }
 0x1cd   : > { %v4022_v17 = vrot.slane %v4021_v40, 2  ;;  %v4029_v43 = vrot.slane %v4028_v24, 2 }
 0x1ce   : > { %v4042_v30 = vadd.f32 %v4041_v39, %v4040_v37  ;;  %v4036_v8 = vrot.slane %v4035_v14, 2  ;;  %v4477_v39 = vadd.f32 1.0, %v9898_v33  ;;  %v4018_v26 = vadd.f32 %v4017_v38, %v4016_v50 }
 0x1cf   : > { %v4023_v13 = vadd.f32 %v4022_v17, %v4021_v40  ;;  %v11272_v32 = vpop.eup %9899  ;;  %v4030_v57 = vadd.f32 %v4029_v43, %v4028_v24  ;;  %4505 = vbcast.lane.b32.xlu0 %v4503_v61, 256  ;;  %v4517_v61 = vrot.slane %v11265_v4, %v11043_v63  ;;  %v3562_v33 = vsub.s32 7, %v10996_v47 }
 0x1d0   : > { %v4043_v28 = vrot.slane %v4042_v30, 2  ;;  %v4037_v34 = vadd.f32 %v4036_v8, %v4035_v14  ;;  %4086 = vrot.lane.b32.xlu1 %v11272_v32, %s13011_s18  ;;  %v9902_v1 = vpop.eup %9901  ;;  %9915 = vrcp.f32 %v4477_v39  ;;  %v4524_v38 = vrot.slane %v11265_v4, %v11054_v3 }
 0x1d1   : > { %v4024_v48 = vrot.slane %v4023_v13, 1  ;;  %v4031_v51 = vrot.slane %v4030_v57, 1  ;;  %v11278_v40 = vpop.eup %9903 }
 0x1d2   : > { %v4044_v6 = vadd.f32 %v4043_v28, %v4042_v30  ;;  %v4038_v43 = vrot.slane %v4037_v34, 1  ;;  %v9906_v31 = vpop.eup %9905  ;;  %v3991_v28 = vrot.slane %v11013_v53, %v3562_v33  ;;  %v4531_v53 = vrot.slane %v11265_v4, %v11239_v46 }
 0x1d3   : > { %v4025_v45 = vadd.f32 %v4024_v48, %v4023_v13  ;;  %v4032_v37 = vadd.f32 %v4031_v51, %v4030_v57  ;;  %4512 = vbcast.lane.b32.xlu0 %v4510_v20, 256  ;;  %v11287_v30 = vpop.eup %9907  ;;  %v4476_v13 = vadd.f32 1.0, %v9902_v1  ;;  %v4479_v20 = vadd.f32 1.0, %v9906_v31  ;;  %v1396_v1 = vld [vmem:[%s1357_s3] sm:$0xff]  ;;  %s1379_s3 = scalar_lea.vmem %s13154_s19, %s10989_s1  ;;  %s13015_s19 = smov 64  }
 0x1d4   : > { %v4045_v24 = vrot.slane %v4044_v6, 1  ;;  %v4039_v17 = vadd.f32 %v4038_v43, %v4037_v34  ;;  %4088 = vrot.lane.b32.xlu1 %v11278_v40, %s13011_s18  ;;  %v9910_v48 = vpop.eup %9909  ;;  %v4496_v34 = vrot.slane %v11265_v4, %v11016_v54 }
 0x1d5   : > { %v4182_v14 = vsel %vm4181_vm4, %v4025_v45, %v4018_v26  ;;  %9917 = vrcp.f32 %v4476_v13  ;;  %v4478_v51 = vadd.f32 1.0, %v9910_v48  ;;  %v3514_v26 = vrot.slane %v1396_v1, %v11016_v54 }
 0x1d6   : > { %v4046_v50 = vadd.f32 %v4045_v24, %v4044_v6  ;;  %v4184_v60 = vsel %vm4183_vm5, %v4032_v37, %v4182_v14  ;;  %9919 = vrcp.f32 %v4479_v20  ;;  %v3528_v24 = vrot.slane %v1396_v1, %v11028_v58 }
 0x1d7   : > { %v4186_v8 = vsel %vm4185_vm6, %v4039_v17, %v4184_v60  ;;  %4519 = vbcast.lane.b32.xlu0 %v4517_v61, 256  ;;  %v11304_v39 = vpop.eup %9911  ;;  %9921 = vrcp.f32 %v4478_v51  ;;  %v3542_v61 = vrot.slane %v1396_v1, %v11054_v3  ;;  %v13155_v14 = vsub.s32 6, %v10996_v47 }
 0x1d8   : > { %v11293_v57 = vsel %vm4187_vm7, %v4046_v50, %v4186_v8  ;;  %4090 = vrot.lane.b32.xlu1 %v11287_v30, %s13011_s18  ;;  %v1413_v50 = vld [vmem:[%s1379_s3] sm:$0x3f]  ;;  %v3521_v8 = vrot.slane %v1396_v1, %v11009_v52  ;;  %v3549_v48 = vrot.slane %v1396_v1, %v11239_v46  ;;  %s1383_s3 = scalar_lea.vmem %s13156_s24, %s10989_s1  ;;  %v3437_v47 = vadd.f32 %v11151_v42, %v11070_v12  ;;  %s13191_s24 = sld [smem:[#allocation28_spill]] }
 0x1d9   : > { %v9914_v6 = vpop.eup %9913  ;;  %v3556_v31 = vrot.slane %v1396_v1, %v13155_v14  ;;  %v4933_v13 = vrot.slane %v1413_v50, %v11016_v54  ;;  %v4961_v20 = vrot.slane %v1413_v50, %v11054_v3  ;;  %v4940_v51 = vrot.slane %v1413_v50, %v11009_v52 }
 0x1da   : > { %v4480_v43 = vadd.f32 1.0, %v9914_v6  ;;  %v4954_v6 = vrot.slane %v1413_v50, %v11043_v63  ;;  %v3438_v42 = vadd.f32 %v11201_v18, %v11072_v15 }
 0x1db   : > { %4526 = vbcast.lane.b32.xlu0 %v4524_v38, 256  ;;  %v4947_v38 = vrot.slane %v1413_v50, %v11028_v58 }
 0x1dc   : > { %3993 = vbcast.lane.b32.xlu1 %v3991_v28, 256  ;;  %9923 = vrcp.f32 %v4480_v43  ;;  %v3535_v28 = vrot.slane %v1396_v1, %v11043_v63  ;;  %v8916_v43 = vld [vmem:[%s13157_s8] ss:$0 sm:$0xff] }
 0x1dd   : > { %v11310_v45 = vpop.eup %9915 }
 0x1df   : > { %4595 = vrot.lane.b32.xlu0 %v11304_v39, %s13011_s18 }
 0x1e0   : > { %4498 = vbcast.lane.b32.xlu1 %v4496_v34, 256  ;;  %v3563_v34 = vrot.slane %v1396_v1, %v3562_v33  ;;  %v3439_v1 = vadd.f32 %v11158_v49, %v11074_v16 }
 0x1e2   : > { %v11315_v37 = vpop.eup %9917 }
 0x1e3   : > { %4599 = vrot.lane.b32.xlu0 %v11310_v45, %s13011_s18  ;;  %v11320_v4 = vpop.eup %9919 }
 0x1e4   : > { %4533 = vbcast.lane.b32.xlu1 %v4531_v53, 256  ;;  %v11327_v17 = vpop.eup %9921  ;;  %v3433_v53 = vadd.f32 %v11144_v36, %v11062_v5 }
 0x1e6   : > { %v3447_v33 = vadd.f32 %v8916_v43, %v3433_v53 }
 0x1e7   : > { %3516 = vbcast.lane.b32.xlu0 %v3514_v26, 256  ;;  %v3435_v26 = vadd.f32 %v11148_v41, %v11066_v9  ;;  %v3434_v41 = vadd.f32 %v11154_v44, %v11064_v7 }
 0x1e8   : > { %4597 = vrot.lane.b32.xlu1 %v11315_v37, %s13011_s18 }
 0x1e9   : > { %v11333_v60 = vpop.eup %9923  ;;  %v3449_v14 = vadd.f32 %v8916_v43, %v3435_v26 }
 0x1eb   : > { %3530 = vbcast.lane.b32.xlu0 %v3528_v24, 256  ;;  %v4968_v24 = vrot.slane %v1413_v50, %v11239_v46  ;;  %v3453_v50 = vadd.f32 %v8916_v43, %v3439_v1 }
 0x1ec   : > { %4603 = vrot.lane.b32.xlu1 %v11320_v4, %s13011_s18 }
 0x1ed   : > { %v8923_v44 = vmul.f32 -1.442695, %v3453_v50  ;;  %v10133_v50 = vld [vmem:[%s10833_s10] sm:$0x3f] }
 0x1ef   : > { %3544 = vbcast.lane.b32.xlu0 %v3542_v61, 256  ;;  %v11355_v61 = vld [vmem:[%s1383_s3] sm:$0x3f]  ;;  %s13013_s3 = smov 32  }
 0x1f0   : > { %4601 = vrot.lane.b32.xlu1 %v11327_v17, %s13011_s18  ;;  %v5017_v36 = vrot.slane %v11355_v61, %v11016_v54  ;;  %v5031_v49 = vrot.slane %v11355_v61, %v11028_v58 }
 0x1f3   : > { %3558 = vbcast.lane.b32.xlu0 %v3556_v31, 256  ;;  %v3451_v31 = vadd.f32 %v8916_v43, %v3437_v47 }
 0x1f4   : > { %4605 = vrot.lane.b32.xlu1 %v11333_v60, %s13011_s18  ;;  %s13175_s18 = sld [smem:[#allocation24_spill]] }
 0x1f7   : > { %4935 = vbcast.lane.b32.xlu0 %v4933_v13, 256  ;;  %v8917_v13 = vmul.f32 -1.442695, %v3447_v33 }
 0x1f8   : > { %3523 = vbcast.lane.b32.xlu1 %v3521_v8, 256  ;;  %v3436_v8 = vadd.f32 %v11182_v55, %v11068_v11  ;;  %v5045_v55 = vrot.slane %v11355_v61, %v11054_v3 }
 0x1f9   : > { %9925 = vpow2.f32 %v8917_v13 }
 0x1fb   : > { %4949 = vbcast.lane.b32.xlu0 %v4947_v38, 256  ;;  %v8919_v38 = vmul.f32 -1.442695, %v3449_v14 }
 0x1fc   : > { %3537 = vbcast.lane.b32.xlu1 %v3535_v28, 256  ;;  %v3440_v28 = vadd.f32 %v11204_v10, %v11078_v21  ;;  %v4538_v21 = vmul.f32 0.0, %v11327_v17  ;;  %v11448_v17 = vmul.f32 0.0, %v11333_v60 }
 0x1fd   : > { %9927 = vpow2.f32 %v8919_v38  ;;  %v4760_v38 = vpop.f32.mrf.mxu0 }
 0x1ff   : > { %4963 = vbcast.lane.b32.xlu0 %v4961_v20, 256  ;;  %v8921_v20 = vmul.f32 -1.442695, %v3451_v31 }
 0x200   : > { %3551 = vbcast.lane.b32.xlu1 %v3549_v48, 256  ;;  %v3448_v48 = vadd.f32 %v8916_v43, %v3434_v41 }
 0x201   : > { %9929 = vpow2.f32 %v8921_v20  ;;  %v4842_v20 = vrot.slane %v4760_v38, %v11125_v0 }
 0x202   : > { %v8918_v18 = vmul.f32 -1.442695, %v3448_v48  ;;  %9931 = vpow2.f32 %v8923_v44 }
 0x204   : > { %3565 = vbcast.lane.b32.xlu1 %v3563_v34, 256  ;;  %v3450_v34 = vadd.f32 %v8916_v43, %v3436_v8  ;;  %9933 = vpow2.f32 %v8918_v18  ;;  %v4858_v18 = vrot.slane %v4842_v20, %v11125_v0 }
 0x206   : > { %v8920_v53 = vmul.f32 -1.442695, %v3450_v34  ;;  %v9926_v10 = vpop.eup %9925  ;;  %v9514_v34 = vpop.f32.mrf.mxu0 }
 0x207   : > { %v3479_v33 = vadd.f32 1.0, %v9926_v10 }
 0x208   : > { %4942 = vbcast.lane.b32.xlu1 %v4940_v51, 256  ;;  %v3452_v51 = vadd.f32 %v8916_v43, %v3438_v42  ;;  %9935 = vpow2.f32 %v8920_v53 }
 0x20a   : > { %v8922_v58 = vmul.f32 -1.442695, %v3452_v51 }
 0x20c   : > { %4956 = vbcast.lane.b32.xlu1 %v4954_v6, 256  ;;  %v3454_v6 = vadd.f32 %v8916_v43, %v3440_v28  ;;  %9937 = vpow2.f32 %v8922_v58  ;;  %v4835_v28 = vcombine.high %v4760_v38, %v4760_v38 }
 0x20e   : > { %v8924_v26 = vmul.f32 -1.442695, %v3454_v6  ;;  %v4850_v6 = vcombine.high %v4842_v20, %v4842_v20 }
 0x210   : > { %4970 = vbcast.lane.b32.xlu1 %v4968_v24, 256  ;;  %9939 = vpow2.f32 %v8924_v26  ;;  %v9928_v24 = vpop.eup %9927  ;;  %v4872_v10 = vrot.slane %v4850_v6, %v11125_v0 }
 0x211   : > { %v9930_v47 = vpop.eup %9929  ;;  %v3481_v14 = vadd.f32 1.0, %v9928_v24  ;;  %9941 = vrcp.f32 %v3479_v33  ;;  %v4885_v33 = vrot.slane %v4858_v18, %v11016_v54 }
 0x212   : > { %v9932_v1 = vpop.eup %9931  ;;  %v3483_v3 = vadd.f32 1.0, %v9930_v47  ;;  %v4880_v47 = vcombine.high %v4858_v18, %v4858_v18 }
 0x213   : > { %v9934_v43 = vpop.eup %9933  ;;  %9943 = vrcp.f32 %v3481_v14  ;;  %v4881_v14 = vcombine.high %v4872_v10, %v4872_v10 }
 0x214   : > { %5019 = vbcast.lane.b32.xlu1 %v5017_v36, 256  ;;  %v3485_v36 = vadd.f32 1.0, %v9932_v1  ;;  %9945 = vrcp.f32 %v3483_v3  ;;  %v4889_v3 = vrot.slane %v4872_v10, %v11016_v54 }
 0x215   : > { %v9936_v31 = vpop.eup %9935  ;;  %v4897_v38 = vrot.slane %v4881_v14, %v11016_v54 }
 0x216   : > { %9947 = vrcp.f32 %v3485_v36  ;;  %v3482_v44 = vadd.f32 1.0, %v9936_v31  ;;  %v4893_v36 = vrot.slane %v4880_v47, %v11016_v54 }
 0x218   : > { %5033 = vbcast.lane.b32.xlu1 %v5031_v49, 256  ;;  %v3480_v49 = vadd.f32 1.0, %v9934_v43  ;;  %v4830_v43 = vpop.f32.mrf.mxu1 }
 0x219   : > { %v9938_v13 = vpop.eup %9937  ;;  %v11394_v20 = vadd.f32 %v4893_v36, %v4830_v43 }
 0x21a   : > { %v3484_v51 = vadd.f32 1.0, %v9938_v13  ;;  %9949 = vrcp.f32 %v3480_v49  ;;  %v10134_v49 = vld [vmem:[%s10833_s10 + $0x8] sm:$0x3f]  ;;  %v9525_v34 = vpop.f32.mrf.mxu1 }
 0x21b   : > { %9951 = vrcp.f32 %v3482_v44  ;;  %v11420_v34 = vmul.f32 0.0, %v11287_v30 }
 0x21c   : > { %5047 = vbcast.lane.b32.xlu1 %v5045_v55, 256  ;;  %v4849_v55 = vrot.slane %v4835_v28, %v11125_v0  ;;  %9953 = vrcp.f32 %v3484_v51 }
 0x21d   : > { %v9940_v42 = vpop.eup %9939 }
 0x21e   : > { %v3486_v53 = vadd.f32 1.0, %v9940_v42  ;;  %v4851_v58 = vcombine.high %v4849_v55, %v4849_v55  ;;  %v4865_v26 = vrot.slane %v4849_v55, %v11125_v0  ;;  %v9942_v51 = vpop.eup %9941  ;;  %v10135_v55 = vld [vmem:[%s10833_s10 + $0x10] sm:$0x3f] }
 0x220   : > { %v4879_v1 = vrot.slane %v4851_v58, %v11125_v0  ;;  %9955 = vrcp.f32 %v3486_v53  ;;  %v4901_v31 = vrot.slane %v4865_v26, %v11016_v54  ;;  %v9944_v18 = vpop.eup %9943  ;;  %v4000_v58 = vmul.f32 0.0, %v11272_v32 }
 0x221   : > { %v11402_v26 = vadd.f32 %v4897_v38, %v4830_v43 }
 0x222   : > { %v4905_v44 = vrot.slane %v4879_v1, %v11016_v54  ;;  %v9946_v1 = vpop.eup %9945 }
 0x224   : > { %v11407_v14 = vadd.f32 %v4905_v44, %v4830_v43  ;;  %v4001_v44 = vmul.f32 0.0, %v11278_v40 }
 0x231   : > { %v4077_v41 = vpop.permute.xlu0 %4076 }
 0x232   : > { %v4100_v8 = vmul.f32 %v10133_v50, %v4077_v41  ;;  %v11388_v50 = vadd.f32 %v4885_v33, %v4830_v43 }
 0x234   : > { %v4108_v48 = vmul.f32 %v4100_v8, %v11222_v59  ;;  %v11390_v8 = vadd.f32 %v4889_v3, %v4830_v43  ;;  %v4537_v59 = vmul.f32 0.0, %v11310_v45 }
 0x235   : > { %v4079_v13 = vpop.permute.xlu0 %4078 }
 0x236   : > { %v4117_v24 = vsel %vm4116_vm8, %v4108_v48, 0.0  ;;  %v4081_v42 = vpop.permute.xlu1 %4080  ;;  %v4101_v28 = vmul.f32 %v10134_v49, %v4079_v13  ;;  %v11396_v48 = vadd.f32 %v4901_v31, %v4830_v43  ;;  %v11411_v13 = vmul.f32 0.0, %v9942_v51  ;;  %v10136_v49 = vld [vmem:[%s10833_s10 + $0x20] sm:$0x3f] }
 0x237   : > { %v4118_v41 = vrot.slane %v4117_v24, 4  ;;  %v4102_v6 = vmul.f32 %v10135_v55, %v4081_v42  ;;  %v9948_v42 = vpop.eup %9947 }
 0x238   : > { %v4109_v53 = vmul.f32 %v4101_v28, %v11213_v62  ;;  %v11431_v40 = vmul.f32 0.0, %v9948_v42 }
 0x239   : > { %v4119_v10 = vadd.f32 %v4118_v41, %v4117_v24  ;;  %v4110_v47 = vmul.f32 %v4102_v6, %v11226_v22  ;;  %v11405_v33 = vpop.permute.xlu0 %3979  ;;  %v11415_v41 = vmul.f32 0.0, %v9944_v18 }
 0x23a   : > { %13158 = vst [vmem:[#allocation80_spill] sm:$0xff] %v11405_v33  ;;  %v4124_v3 = vsel %vm4116_vm8, %v4109_v53, 0.0  ;;  %v4085_v36 = vpop.permute.xlu1 %4084  ;;  %v4008_v31 = vmul.f32 %v4000_v58, %v11405_v33  ;;  %v11425_v58 = vmul.f32 0.0, %v9946_v1 }
 0x23b   : > { %v4131_v32 = vsel %vm4116_vm8, %v4110_v47, 0.0  ;;  %v4125_v38 = vrot.slane %v4124_v3, 4  ;;  %v4104_v24 = vmul.f32 %v10136_v49, %v4085_v36  ;;  %v4120_v55 = vrot.slane %v4119_v10, 2  ;;  %v9950_v47 = vpop.eup %9949 }
 0x23c   : > { %v4132_v28 = vrot.slane %v4131_v32, 4  ;;  %v4047_v43 = vsel %vm4011_vm3, %v4008_v31, 0.0  ;;  %v4536_v49 = vmul.f32 0.0, %v11315_v37  ;;  %v11429_v31 = vmul.f32 0.0, %v11304_v39  ;;  %v9952_v30 = vpop.eup %9951 }
 0x23d   : > { %v4126_v51 = vadd.f32 %v4125_v38, %v4124_v3  ;;  %v4112_v6 = vmul.f32 %v4104_v24, %v11251_v2  ;;  %v11423_v53 = vpop.permute.xlu0 %3986  ;;  %v4048_v18 = vrot.slane %v4047_v43, 4  ;;  %v10137_v38 = vld [vmem:[%s10833_s10 + $0x18] sm:$0x3f]  ;;  %v9954_v2 = vpop.eup %9953  ;;  %v11438_v37 = vmul.f32 0.0, %v11320_v4 }
 0x23e   : > { %13159 = vst [vmem:[#allocation81_spill] sm:$0xff] %v11423_v53  ;;  %v4083_v36 = vpop.permute.xlu1 %4082  ;;  %v4133_v22 = vadd.f32 %v4132_v28, %v4131_v32  ;;  %v9956_v39 = vpop.eup %9955  ;;  %v4121_v16 = vadd.f32 %v4120_v55, %v4119_v10  ;;  %v4009_v32 = vmul.f32 %v4001_v44, %v11423_v53  ;;  %v11451_v55 = vmul.f32 0.0, %v9952_v30 }
 0x23f   : > { %v4127_v62 = vrot.slane %v4126_v51, 2  ;;  %v4145_v3 = vsel %vm4116_vm8, %v4112_v6, 0.0  ;;  %v4103_v24 = vmul.f32 %v10137_v38, %v4083_v36  ;;  %v11444_v6 = vmul.f32 0.0, %v9950_v47  ;;  %v10138_v47 = vld [vmem:[%s10833_s10 + $0x28] sm:$0x3f] }
 0x240   : > { %v4146_v1 = vrot.slane %v4145_v3, 4  ;;  %v4049_v38 = vadd.f32 %v4048_v18, %v4047_v43  ;;  %v4134_v4 = vrot.slane %v4133_v22, 2  ;;  %v4122_v43 = vrot.slane %v4121_v16, 1 }
 0x241   : > { %v4111_v42 = vmul.f32 %v4103_v24, %v11236_v56  ;;  %v11442_v28 = vpop.permute.xlu0 %4505  ;;  %v4128_v36 = vadd.f32 %v4127_v62, %v4126_v51  ;;  %v11453_v24 = vmul.f32 0.0, %v9954_v2  ;;  %v11456_v62 = vmul.f32 0.0, %v9956_v39  ;;  %v10139_v39 = vld [vmem:[%s10833_s10 + $0x30] sm:$0x3f] }
 0x242   : > { %v4087_v15 = vpop.permute.xlu1 %4086  ;;  %v4542_v45 = vmul.f32 %v4536_v49, %v11442_v28  ;;  %v4147_v44 = vadd.f32 %v4146_v1, %v4145_v3  ;;  %v4054_v51 = vsel %vm4011_vm3, %v4009_v32, 0.0  ;;  %v4050_v2 = vrot.slane %v4049_v38, 2 }
 0x243   : > { %v4138_v10 = vsel %vm4116_vm8, %v4111_v42, 0.0  ;;  %v4105_v12 = vmul.f32 %v10138_v47, %v4087_v15  ;;  %v4129_v30 = vrot.slane %v4128_v36, 1  ;;  %v4135_v11 = vadd.f32 %v4134_v4, %v4133_v22 }
 0x244   : > { %v4139_v56 = vrot.slane %v4138_v10, 4  ;;  %v4554_v60 = vsel %vm1584_vm1, %v4542_v45, 0.0  ;;  %v4148_v32 = vrot.slane %v4147_v44, 2  ;;  %v4055_v45 = vrot.slane %v4054_v51, 4 }
 0x245   : > { %v11460_v18 = vpop.permute.xlu0 %4512  ;;  %v4113_v3 = vmul.f32 %v4105_v12, %v11405_v33  ;;  %v4555_v15 = vrot.slane %v4554_v60, 4  ;;  %v4123_v12 = vadd.f32 %v4122_v43, %v4121_v16  ;;  %v4130_v22 = vadd.f32 %v4129_v30, %v4128_v36 }
 0x246   : > { %13160 = vst [vmem:[#allocation82_spill] sm:$0xff] %v11460_v18  ;;  %v4140_v42 = vadd.f32 %v4139_v56, %v4138_v10  ;;  %v4089_v1 = vpop.permute.xlu1 %4088  ;;  %v4543_v9 = vmul.f32 %v4537_v59, %v11460_v18  ;;  %v4136_v59 = vrot.slane %v4135_v11, 1  ;;  %v4149_v23 = vadd.f32 %v4148_v32, %v4147_v44 }
 0x247   : > { %v4106_v47 = vmul.f32 %v10139_v39, %v4089_v1  ;;  %v4152_v5 = vsel %vm4116_vm8, %v4113_v3, 0.0  ;;  %v4556_v27 = vadd.f32 %v4555_v15, %v4554_v60  ;;  %v4051_v39 = vadd.f32 %v4050_v2, %v4049_v38  ;;  %v10140_v38 = vld [vmem:[%s10833_s10 + $0x38] sm:$0x3f] }
 0x248   : > { %v4141_v7 = vrot.slane %v4140_v42, 2  ;;  %v4153_v35 = vrot.slane %v4152_v5, 4  ;;  %v4561_v56 = vsel %vm1584_vm1, %v4543_v9, 0.0  ;;  %v4204_v44 = vsel %vm4181_vm4, %v4130_v22, %v4123_v12 }
 0x249   : > { %v4114_v49 = vmul.f32 %v4106_v47, %v11423_v53  ;;  %v11470_v10 = vpop.permute.xlu0 %4519  ;;  %v4562_v4 = vrot.slane %v4561_v56, 4  ;;  %v11475_v53 = vadd.f32 %v4055_v45, %v4054_v51  ;;  %v4557_v16 = vrot.slane %v4556_v27, 2 }
 0x24a   : > { %v4091_v33 = vpop.permute.xlu1 %4090  ;;  %v4544_v1 = vmul.f32 %v4538_v21, %v11470_v10  ;;  %v4154_v29 = vadd.f32 %v4153_v35, %v4152_v5  ;;  %v4142_v9 = vadd.f32 %v4141_v7, %v4140_v42  ;;  %v4052_v51 = vrot.slane %v4051_v39, 1 }
 0x24b   : > { %v4159_v3 = vsel %vm4116_vm8, %v4114_v49, 0.0  ;;  %v4563_v15 = vadd.f32 %v4562_v4, %v4561_v56  ;;  %v4107_v5 = vmul.f32 %v10140_v38, %v4091_v33  ;;  %v4137_v49 = vadd.f32 %v4136_v59, %v4135_v11 }
 0x24c   : > { %v4160_v60 = vrot.slane %v4159_v3, 4  ;;  %v4568_v47 = vsel %vm1584_vm1, %v4544_v1, 0.0  ;;  %v4155_v43 = vrot.slane %v4154_v29, 2  ;;  %v4150_v42 = vrot.slane %v4149_v23, 1 }
 0x24d   : > { %v11477_v36 = vpop.permute.xlu0 %4526  ;;  %v4569_v2 = vrot.slane %v4568_v47, 4  ;;  %v4564_v45 = vrot.slane %v4563_v15, 2  ;;  %v4143_v4 = vrot.slane %v4142_v9, 1  ;;  %v11489_v33 = vadd.f32 %v4557_v16, %v4556_v27 }
 0x24e   : > { %v4161_v30 = vadd.f32 %v4160_v60, %v4159_v3  ;;  %v11482_v35 = vpop.permute.xlu1 %3993  ;;  %v4205_v12 = vsel %vm4183_vm5, %v4137_v49, %v4204_v44  ;;  %v4156_v11 = vadd.f32 %v4155_v43, %v4154_v29  ;;  %v4545_v60 = vmul.f32 %v11438_v37, %v11477_v36  ;;  %v10141_v29 = vld [vmem:[%s10906_s7] sm:$0xff] }
 0x24f   : > { %13161 = vst [vmem:[#allocation83_spill] sm:$0xff] %v11482_v35  ;;  %v4115_v56 = vmul.f32 %v4107_v5, %v11482_v35  ;;  %v4010_v22 = vmul.f32 %v11420_v34, %v11482_v35  ;;  %v4570_v7 = vadd.f32 %v4569_v2, %v4568_v47  ;;  %v4151_v16 = vadd.f32 %v4150_v42, %v4149_v23  ;;  %v10142_v2 = vld [vmem:[%s10906_s7 + $0x10] sm:$0xff] }
 0x250   : > { %v4162_v32 = vrot.slane %v4161_v30, 2  ;;  %v11501_v44 = vadd.f32 %v4564_v45, %v4563_v15  ;;  %v11504_v34 = vadd.f32 %v4052_v51, %v4051_v39  ;;  %v4144_v49 = vadd.f32 %v4143_v4, %v4142_v9 }
 0x251   : > { %v4596_v3 = vpop.permute.xlu0 %4595  ;;  %v4166_v59 = vsel %vm4116_vm8, %v4115_v56, 0.0  ;;  %v4157_v47 = vrot.slane %v4156_v11, 1  ;;  %v4571_v9 = vrot.slane %v4570_v7, 2  ;;  %v4575_v51 = vsel %vm1584_vm1, %v4545_v60, 0.0 }
 0x252   : > { %v11497_v38 = vpop.permute.xlu1 %4498  ;;  %v4163_v5 = vadd.f32 %v4162_v32, %v4161_v30  ;;  %v4167_v21 = vrot.slane %v4166_v59, 4  ;;  %v4613_v43 = vmul.f32 %v10141_v29, %v4596_v3  ;;  %v4206_v29 = vsel %vm4185_vm6, %v4144_v49, %v4205_v12 }
 0x253   : > { %13162 = vst [vmem:[#allocation84_spill] sm:$0xff] %v11497_v38  ;;  %v4541_v27 = vmul.f32 %v11429_v31, %v11497_v38  ;;  %v11509_v31 = vsel %vm4011_vm3, %v4010_v22, 0.0  ;;  %v4158_v56 = vadd.f32 %v4157_v47, %v4156_v11  ;;  %v11527_v25 = vadd.f32 %v4571_v9, %v4570_v7 }
 0x254   : > { %v4168_v30 = vadd.f32 %v4167_v21, %v4166_v59  ;;  %v4619_v23 = vmul.f32 %v4613_v43, %v11497_v38  ;;  %v4164_v42 = vrot.slane %v4163_v5, 1  ;;  %v4062_v22 = vrot.slane %v11509_v31, 4 }
 0x255   : > { %v4547_v37 = vsel %vm1584_vm1, %v4541_v27, 0.0  ;;  %v4600_v1 = vpop.permute.xlu0 %4599  ;;  %v4576_v43 = vrot.slane %v4575_v51, 4  ;;  %v4207_v12 = vsel %vm4187_vm7, %v4151_v16, %v4206_v29 }
 0x256   : > { %v11512_v15 = vpop.permute.xlu1 %4533  ;;  %v4615_v39 = vmul.f32 %v10142_v2, %v4600_v1  ;;  %v4169_v32 = vrot.slane %v4168_v30, 2  ;;  %v4548_v45 = vrot.slane %v4547_v37, 4  ;;  %v4625_v4 = vsel %vm2169_vm2, %v4619_v23, 0.0  ;;  %v10143_v23 = vld [vmem:[%s10906_s7 + $0x8] sm:$0xff] }
 0x257   : > { %v4626_v59 = vrot.slane %v4625_v4, 4  ;;  %v11534_v11 = vadd.f32 %v4576_v43, %v4575_v51  ;;  %v4208_v7 = vsel %vm4189_vm9, %v4158_v56, %v4207_v12  ;;  %v4546_v16 = vmul.f32 %v11448_v17, %v11512_v15 }
 0x258   : > { %v4621_v3 = vmul.f32 %v4615_v39, %v11460_v18  ;;  %v4170_v1 = vadd.f32 %v4169_v32, %v4168_v30  ;;  %v4165_v39 = vadd.f32 %v4164_v42, %v4163_v5  ;;  %v4549_v19 = vadd.f32 %v4548_v45, %v4547_v37  ;;  %v10144_v45 = vld [vmem:[%s10906_s7 + $0x20] sm:$0xff] }
 0x259   : > { %v11520_v27 = vpop.permute.xlu0 %3516  ;;  %v4627_v49 = vadd.f32 %v4626_v59, %v4625_v4 }
 0x25a   : > { %13163 = vst [vmem:[#allocation85_spill] sm:$0xff] %v11520_v27  ;;  %v4639_v60 = vsel %vm2169_vm2, %v4621_v3, 0.0  ;;  %v4598_v2 = vpop.permute.xlu1 %4597  ;;  %v3567_v21 = vmul.f32 %v11520_v27, %v11411_v13  ;;  %v4171_v18 = vrot.slane %v4170_v1, 1  ;;  %v4550_v42 = vrot.slane %v4549_v19, 2 }
 0x25b   : > { %v4640_v38 = vrot.slane %v4639_v60, 4  ;;  %v4614_v35 = vmul.f32 %v10143_v23, %v4598_v2  ;;  %v11553_v2 = vadd.f32 %v4062_v22, %v11509_v31  ;;  %v13166_v22 = vrot.slane %v11355_v61, %v11009_v52 }
 0x25c   : > { %v3575_v30 = vsel %vm1584_vm1, %v3567_v21, 0.0  ;;  %v4172_v5 = vadd.f32 %v4171_v18, %v4170_v1  ;;  %v4628_v18 = vrot.slane %v4627_v49, 2 }
 0x25d   : > { %v4641_v32 = vadd.f32 %v4640_v38, %v4639_v60  ;;  %v4620_v3 = vmul.f32 %v4614_v35, %v11442_v28  ;;  %v3576_v54 = vrot.slane %v3575_v30, 4  ;;  %v11532_v13 = vpop.permute.xlu0 %3530  ;;  %v4209_v35 = vsel %vm4191_vm11, %v4165_v39, %v4208_v7 }
 0x25e   : > { %13164 = vst [vmem:[#allocation86_spill] sm:$0xff] %v11532_v13  ;;  %v4604_v47 = vpop.permute.xlu1 %4603  ;;  %v3569_v37 = vmul.f32 %v11532_v13, %v11415_v41  ;;  %v4210_v4 = vsel %vm4193_vm10, %v4172_v5, %v4209_v35  ;;  %v11557_v39 = vsel %vm1584_vm1, %v4546_v16, 0.0 }
 0x25f   : > { %v4632_v9 = vsel %vm2169_vm2, %v4620_v3, 0.0  ;;  %v3577_v38 = vadd.f32 %v3576_v54, %v3575_v30  ;;  %v4617_v51 = vmul.f32 %v10144_v45, %v4604_v47  ;;  %v4642_v56 = vrot.slane %v4641_v32, 2  ;;  %4211 = vrot.lane.b32.xlu0 %v4210_v4, %s13013_s3  ;;  %v10145_v30 = vld [vmem:[%s10906_s7 + $0x18] sm:$0xff] }
 0x260   : > { %v4633_v21 = vrot.slane %v4632_v9, 4  ;;  %v3589_v41 = vsel %vm1584_vm1, %v3569_v37, 0.0  ;;  %v11560_v3 = vadd.f32 %v4550_v42, %v4549_v19  ;;  %v4629_v37 = vadd.f32 %v4628_v18, %v4627_v49  ;;  %v10146_v18 = vld [vmem:[%s10906_s7 + $0x28] sm:$0xff] }
 0x261   : > { %v3578_v59 = vrot.slane %v3577_v38, 2  ;;  %v11547_v17 = vpop.permute.xlu0 %3544  ;;  %v4623_v1 = vmul.f32 %v4617_v51, %v11477_v36  ;;  %v3590_v29 = vrot.slane %v3589_v41, 4  ;;  %v4643_v35 = vadd.f32 %v4642_v56, %v4641_v32 }
 0x262   : > { %13165 = vst [vmem:[#allocation87_spill] sm:$0xff] %v11547_v17  ;;  %v4634_v54 = vadd.f32 %v4633_v21, %v4632_v9  ;;  %v4602_v43 = vpop.permute.xlu1 %4601  ;;  %v3571_v60 = vmul.f32 %v11547_v17, %v11425_v58 }
 0x263   : > { %v4616_v12 = vmul.f32 %v10145_v30, %v4602_v43  ;;  %v4653_v5 = vsel %vm2169_vm2, %v4623_v1, 0.0  ;;  %v3591_v9 = vadd.f32 %v3590_v29, %v3589_v41  ;;  %5026 = vbcast.lane.b32.xlu0 %v13166_v22, 256  ;;  %v3579_v42 = vadd.f32 %v3578_v59, %v3577_v38 }
 0x264   : > { %v4635_v47 = vrot.slane %v4634_v54, 2  ;;  %v3603_v7 = vsel %vm1584_vm1, %v3571_v60, 0.0  ;;  %v4654_v58 = vrot.slane %v4653_v5, 4  ;;  %v13168_v43 = vrot.slane %v11475_v53, 2 }
 0x265   : > { %v4622_v31 = vmul.f32 %v4616_v12, %v11470_v10  ;;  %v11568_v16 = vpop.permute.xlu0 %3558  ;;  %v3604_v4 = vrot.slane %v3603_v7, 4  ;;  %v3592_v59 = vrot.slane %v3591_v9, 2  ;;  %v4630_v60 = vrot.slane %v4629_v37, 1 }
 0x266   : > { %13167 = vst [vmem:[#allocation88_spill] sm:$0xff] %v11568_v16  ;;  %v4636_v19 = vadd.f32 %v4635_v47, %v4634_v54  ;;  %v4606_v21 = vpop.permute.xlu1 %4605  ;;  %v3573_v45 = vmul.f32 %v11568_v16, %v11431_v40  ;;  %v4655_v51 = vadd.f32 %v4654_v58, %v4653_v5  ;;  %v4058_v32 = vadd.f32 %v13168_v43, %v11475_v53 }
 0x267   : > { %v4646_v49 = vsel %vm2169_vm2, %v4622_v31, 0.0  ;;  %v4618_v41 = vmul.f32 %v10146_v18, %v4606_v21  ;;  %v13169_v54 = vrot.slane %v11355_v61, %v11043_v63  ;;  %v4644_v30 = vrot.slane %v4643_v35, 1 }
 0x268   : > { %v4637_v29 = vrot.slane %v4636_v19, 1  ;;  %v4647_v52 = vrot.slane %v4646_v49, 4  ;;  %v4656_v56 = vrot.slane %v4655_v51, 2  ;;  %v3617_v47 = vsel %vm1584_vm1, %v3573_v45, 0.0 }
 0x269   : > { %v4624_v40 = vmul.f32 %v4618_v41, %v11512_v15  ;;  %5040 = vbcast.lane.b32.xlu0 %v13169_v54, 256  ;;  %v3580_v58 = vrot.slane %v3579_v42, 1  ;;  %v3605_v31 = vadd.f32 %v3604_v4, %v3603_v7  ;;  %v4059_v43 = vrot.slane %v4058_v32, 1 }
 0x26a   : > { %v4648_v12 = vadd.f32 %v4647_v52, %v4646_v49  ;;  %v11584_v5 = vpop.permute.xlu1 %3523  ;;  %v4638_v21 = vadd.f32 %v4637_v29, %v4636_v19  ;;  %v4657_v63 = vadd.f32 %v4656_v56, %v4655_v51  ;;  %v3593_v54 = vadd.f32 %v3592_v59, %v3591_v9 }
 0x26b   : > { %13170 = vst [vmem:[#allocation89_spill] sm:$0xff] %v11584_v5  ;;  %v4660_v53 = vsel %vm2169_vm2, %v4624_v40, 0.0  ;;  %v3568_v22 = vmul.f32 %v11584_v5, %v11444_v6  ;;  %v3618_v23 = vrot.slane %v3617_v47, 4  ;;  %v13171_v45 = vrot.slane %v11355_v61, %v11239_v46 }
 0x26c   : > { %v4649_v18 = vrot.slane %v4648_v12, 2  ;;  %v4661_v41 = vrot.slane %v4660_v53, 4  ;;  %v4631_v52 = vadd.f32 %v4630_v60, %v4629_v37  ;;  %v4645_v6 = vadd.f32 %v4644_v30, %v4643_v35 }
 0x26d   : > { %v3582_v49 = vsel %vm1584_vm1, %v3568_v22, 0.0  ;;  %5054 = vbcast.lane.b32.xlu0 %v13171_v45, 256  ;;  %v3581_v19 = vadd.f32 %v3580_v58, %v3579_v42  ;;  %v3606_v29 = vrot.slane %v3605_v31, 2  ;;  %v3594_v38 = vrot.slane %v3593_v54, 1 }
 0x26e   : > { %v4650_v7 = vadd.f32 %v4649_v18, %v4648_v12  ;;  %v4662_v4 = vadd.f32 %v4661_v41, %v4660_v53  ;;  %v3583_v40 = vrot.slane %v3582_v49, 4  ;;  %v11593_v1 = vpop.permute.xlu1 %3537  ;;  %v4685_v22 = vsel %vm4181_vm4, %v4638_v21, %v4631_v52 }
 0x26f   : > { %13172 = vst [vmem:[#allocation90_spill] sm:$0xff] %v11593_v1  ;;  %v3570_v51 = vmul.f32 %v11593_v1, %v11451_v55  ;;  %v3619_v46 = vadd.f32 %v3618_v23, %v3617_v47  ;;  %v4658_v37 = vrot.slane %v4657_v63, 1  ;;  %v3607_v42 = vadd.f32 %v3606_v29, %v3605_v31  ;;  %v13257_v1 = vld [vmem:[#allocation83_spill] sm:$0xff] }
 0x270   : > { %v4651_v9 = vrot.slane %v4650_v7, 1  ;;  %v4663_v56 = vrot.slane %v4662_v4, 2  ;;  %v3584_v59 = vadd.f32 %v3583_v40, %v3582_v49  ;;  %v4686_v30 = vsel %vm4183_vm5, %v4645_v6, %v4685_v22 }
 0x271   : > { %v3596_v61 = vsel %vm1584_vm1, %v3570_v51, 0.0  ;;  %v4060_v58 = vadd.f32 %v4059_v43, %v4058_v32  ;;  %v3595_v47 = vadd.f32 %v3594_v38, %v3593_v54  ;;  %v3620_v45 = vrot.slane %v3619_v46, 2 }
 0x272   : > { %v4664_v60 = vadd.f32 %v4663_v56, %v4662_v4  ;;  %v3585_v12 = vrot.slane %v3584_v59, 2  ;;  %v3597_v53 = vrot.slane %v3596_v61, 4  ;;  %v11599_v18 = vpop.permute.xlu1 %3551  ;;  %v4652_v35 = vadd.f32 %v4651_v9, %v4650_v7 }
 0x273   : > { %13173 = vst [vmem:[#allocation91_spill] sm:$0xff] %v11599_v18  ;;  %v3572_v55 = vmul.f32 %v11599_v18, %v11453_v24  ;;  %v4659_v4 = vadd.f32 %v4658_v37, %v4657_v63  ;;  %v3608_v24 = vrot.slane %v3607_v42, 1  ;;  %v4064_v38 = vrot.slane %v11553_v2, 2 }
 0x274   : > { %v3586_v41 = vadd.f32 %v3585_v12, %v3584_v59  ;;  %v3598_v21 = vadd.f32 %v3597_v53, %v3596_v61  ;;  %v4665_v49 = vrot.slane %v4664_v60, 1  ;;  %v4687_v23 = vsel %vm4185_vm6, %v4652_v35, %v4686_v30  ;;  %v1474_v53 = vld [vmem:[%s13175_s18 + $0x78] sm:$0xff] }
 0x275   : > { %v3610_v52 = vsel %vm1584_vm1, %v3572_v55, 0.0  ;;  %v4688_v43 = vsel %vm4187_vm7, %v4659_v4, %v4687_v23  ;;  %v3621_v56 = vadd.f32 %v3620_v45, %v3619_v46  ;;  %v4065_v22 = vadd.f32 %v4064_v38, %v11553_v2  ;;  %v1473_v46 = vld [vmem:[%s13175_s18 + $0x70] sm:$0xff]  ;;  %5168 = vmatpush1.msra.mxu0 %v1474_v53  ;;  %v1472_v45 = vld [vmem:[%s13175_s18 + $0x68] sm:$0xff] }
 0x276   : > { %v3587_v40 = vrot.slane %v3586_v41, 1  ;;  %v3599_v51 = vrot.slane %v3598_v21, 2  ;;  %v3611_v7 = vrot.slane %v3610_v52, 4  ;;  %v11606_v31 = vpop.permute.xlu1 %3565  ;;  %v4666_v29 = vadd.f32 %v4665_v49, %v4664_v60 }
 0x277   : > { %13174 = vst [vmem:[#allocation92_spill] sm:$0xff] %v11606_v31  ;;  %v3574_v32 = vmul.f32 %v11606_v31, %v11456_v62  ;;  %v4190_v62 = vsel %vm4189_vm9, %v11504_v34, %v11293_v57  ;;  %v13177_v35 = vrot.slane %v11560_v3, 1  ;;  %v13178_v2 = vrot.slane %v11557_v39, 4  ;;  %v13230_v31 = vld [vmem:[#allocation66_spill] sm:$0xff] }
 0x278   : > { %v3588_v54 = vadd.f32 %v3587_v40, %v3586_v41  ;;  %v3600_v6 = vadd.f32 %v3599_v51, %v3598_v21  ;;  %v3612_v9 = vadd.f32 %v3611_v7, %v3610_v52  ;;  %v4689_v63 = vsel %vm4189_vm9, %v4666_v29, %v4688_v43  ;;  %v1497_v52 = vld [vmem:[%s13176_s14 + $0x78] sm:$0xff]  ;;  %v1471_v43 = vld [vmem:[%s13175_s18 + $0x60] sm:$0xff] }
 0x279   : > { %v3624_v59 = vsel %vm1584_vm1, %v3574_v32, 0.0  ;;  %4690 = vrot.lane.b32.xlu1 %v4689_v63, %s13013_s3  ;;  %v4553_v55 = vadd.f32 %v13177_v35, %v11560_v3  ;;  %v4584_v30 = vadd.f32 %v13178_v2, %v11557_v39  ;;  %v4066_v34 = vrot.slane %v4065_v22, 1  ;;  %v1496_v3 = vld [vmem:[%s13176_s14 + $0x70] sm:$0xff]  ;;  %5252 = vmatpush1.msra.mxu1 %v1497_v52  ;;  %v1491_v52 = vld [vmem:[%s13176_s14 + $0x48] sm:$0xff] }
 0x27a   : > { %v5118_v61 = vsel %vm4181_vm4, %v3588_v54, %v3581_v19  ;;  %v3601_v37 = vrot.slane %v3600_v6, 1  ;;  %v3613_v60 = vrot.slane %v3612_v9, 2  ;;  %v3625_v12 = vrot.slane %v3624_v59, 4  ;;  %v1469_v35 = vld [vmem:[%s13175_s18 + $0x50] sm:$0xff] }
 0x27b   : > { %v5119_v57 = vsel %vm4183_vm5, %v3595_v47, %v5118_v61  ;;  %v4192_v49 = vsel %vm4191_vm11, %v4060_v58, %v4190_v62  ;;  %v13179_v23 = vmov 0.0   ;;  %v3609_v4 = vadd.f32 %v3608_v24, %v3607_v42  ;;  %v1495_v42 = vld [vmem:[%s13176_s14 + $0x68] sm:$0xff]  ;;  %v1470_v62 = vld [vmem:[%s13175_s18 + $0x58] sm:$0xff] }
 0x27c   : > { %v3602_v19 = vadd.f32 %v3601_v37, %v3600_v6  ;;  %v3614_v41 = vadd.f32 %v3613_v60, %v3612_v9  ;;  %v3626_v21 = vadd.f32 %v3625_v12, %v3624_v59  ;;  %5169 = vmatprep.subr.mxu0 %v13179_v23  ;;  %v3622_v40 = vrot.slane %v3621_v56, 1  ;;  %5253 = vmatprep.subr.mxu1 %v13179_v23 }
 0x27d   : > { %v4067_v51 = vadd.f32 %v4066_v34, %v4065_v22  ;;  %v4573_v39 = vrot.slane %v11527_v25, 1  ;;  %5170 = vmatpush1.msra.mxu0 %v1473_v46  ;;  %v13180_v58 = vrot.slane %v11534_v11, 2  ;;  %v13181_v24 = vrot.slane %v11489_v33, 1  ;;  %5254 = vmatpush1.msra.mxu1 %v1496_v3 }
 0x27e   : > { %v3615_v47 = vrot.slane %v3614_v41, 1  ;;  %v3627_v7 = vrot.slane %v3626_v21, 2  ;;  %v5120_v29 = vsel %vm4185_vm6, %v3602_v19, %v5119_v57  ;;  %5171 = vmatprep.subr.mxu0 %v13179_v23  ;;  %v13182_v63 = vrot.slane %v11501_v44, 1  ;;  %5255 = vmatprep.subr.mxu1 %v13179_v23  ;;  %v1468_v19 = vld [vmem:[%s13175_s18 + $0x48] sm:$0xff] }
 0x27f   : > { %v4579_v32 = vadd.f32 %v13180_v58, %v11534_v11  ;;  %v4560_v38 = vadd.f32 %v13181_v24, %v11489_v33  ;;  %v5121_v54 = vsel %vm4187_vm7, %v3609_v4, %v5120_v29  ;;  %v11648_v6 = vsel %vm4193_vm10, %v4067_v51, %v4192_v49  ;;  %5172 = vmatpush1.msra.mxu0 %v1472_v45  ;;  %v1494_v33 = vld [vmem:[%s13176_s14 + $0x60] sm:$0xff]  ;;  %v1466_v4 = vld [vmem:[%s13175_s18 + $0x38] sm:$0xff]  ;;  %v1488_v29 = vld [vmem:[%s13176_s14 + $0x30] sm:$0xff] }
 0x280   : > { %v3616_v9 = vadd.f32 %v3615_v47, %v3614_v41  ;;  %v3628_v11 = vadd.f32 %v3627_v7, %v3626_v21  ;;  %v4567_v59 = vadd.f32 %v13182_v63, %v11501_v44  ;;  %5173 = vmatprep.subr.mxu0 %v13179_v23  ;;  %v3623_v61 = vadd.f32 %v3622_v40, %v3621_v56  ;;  %v1493_v56 = vld [vmem:[%s13176_s14 + $0x58] sm:$0xff]  ;;  %v1492_v21 = vld [vmem:[%s13176_s14 + $0x50] sm:$0xff]  ;;  %v1490_v40 = vld [vmem:[%s13176_s14 + $0x40] sm:$0xff] }
 0x281   : > { %v4580_v22 = vrot.slane %v4579_v32, 1  ;;  %v4585_v37 = vrot.slane %v4584_v30, 2  ;;  %v4673_v60 = vsel %vm4181_vm4, %v4560_v38, %v4553_v55  ;;  %5174 = vmatpush1.msra.mxu0 %v1471_v43  ;;  %5256 = vmatpush1.msra.mxu1 %v1495_v42  ;;  %v4574_v44 = vadd.f32 %v4573_v39, %v11527_v25  ;;  %v1465_v39 = vld [vmem:[%s13175_s18 + $0x30] sm:$0xff]  ;;  %v1489_v47 = vld [vmem:[%s13176_s14 + $0x38] sm:$0xff]  ;;  %v1464_v7 = vld [vmem:[%s13175_s18 + $0x28] sm:$0xff] }
 0x282   : > { %v3629_v12 = vrot.slane %v3628_v11, 1  ;;  %v5122_v53 = vsel %vm4189_vm9, %v3616_v9, %v5121_v54  ;;  %v4674_v46 = vsel %vm4183_vm5, %v4567_v59, %v4673_v60  ;;  %5175 = vmatprep.subr.mxu0 %v13179_v23  ;;  %5257 = vmatprep.subr.mxu1 %v13179_v23  ;;  %v1463_v58 = vld [vmem:[%s13175_s18 + $0x20] sm:$0xff]  ;;  %v1462_v43 = vld [vmem:[%s13175_s18 + $0x18] sm:$0xff]  ;;  %v1461_v24 = vld [vmem:[%s13175_s18 + $0x10] sm:$0xff]  ;;  %v11705_v54 = vpop.permute.xlu0 %4935 }
 0x283   : > { %v5123_v2 = vsel %vm4191_vm11, %v3623_v61, %v5122_v53  ;;  %v4581_v55 = vadd.f32 %v4580_v22, %v4579_v32  ;;  %5176 = vmatpush1.msra.mxu0 %v1470_v62  ;;  %5258 = vmatpush1.msra.mxu1 %v1494_v33  ;;  %v4586_v34 = vadd.f32 %v4585_v37, %v4584_v30  ;;  %v1467_v30 = vld [vmem:[%s13175_s18 + $0x40] sm:$0xff]  ;;  %v1487_v32 = vld [vmem:[%s13176_s14 + $0x28] sm:$0xff]  ;;  %v1485_v38 = vld [vmem:[%s13176_s14 + $0x18] sm:$0xff] }
 0x284   : > { %v3630_v57 = vadd.f32 %v3629_v12, %v3628_v11  ;;  %v4675_v25 = vsel %vm4185_vm6, %v4574_v44, %v4674_v46  ;;  %5177 = vmatprep.subr.mxu0 %v13179_v23  ;;  %5259 = vmatprep.subr.mxu1 %v13179_v23  ;;  %v1486_v42 = vld [vmem:[%s13176_s14 + $0x20] sm:$0xff]  ;;  %v1460_v9 = vld [vmem:[%s13175_s18 + $0x8] sm:$0xff]  ;;  %v1484_v11 = vld [vmem:[%s13176_s14 + $0x10] sm:$0xff] }
 0x285   : > { %v4676_v41 = vsel %vm4187_vm7, %v4581_v55, %v4675_v25  ;;  %5178 = vmatpush1.msra.mxu0 %v1469_v35  ;;  %5260 = vmatpush1.msra.mxu1 %v1493_v56  ;;  %v4587_v45 = vrot.slane %v4586_v34, 1  ;;  %v1459_v63 = vld [vmem:[%s13175_s18] sm:$0xff]  ;;  %v1483_v22 = vld [vmem:[%s13176_s14 + $0x8] sm:$0xff]  ;;  %v1478_v44 = vld [vmem:[%s13175_s18 + $0x98] sm:$0xff] }
 0x286   : > { %v5124_v49 = vsel %vm4193_vm10, %v3630_v57, %v5123_v2  ;;  %5179 = vmatprep.subr.mxu0 %v13179_v23  ;;  %5261 = vmatprep.subr.mxu1 %v13179_v23  ;;  %v1480_v62 = vld [vmem:[%s13175_s18 + $0xa8] sm:$0xff]  ;;  %v1482_v33 = vld [vmem:[%s13176_s14] sm:$0xff]  ;;  %v11721_v37 = vpop.permute.xlu0 %4949  ;;  %v1477_v35 = vld [vmem:[%s13175_s18 + $0x90] sm:$0xff] }
 0x287   : > { %5125 = vrot.lane.b32.xlu0 %v5124_v49, %s13013_s3  ;;  %5180 = vmatpush1.msra.mxu0 %v1468_v19  ;;  %v4588_v3 = vadd.f32 %v4587_v45, %v4586_v34  ;;  %s13183_s3 = sld [smem:[#allocation23_spill]]  ;;  %v1479_v60 = vld [vmem:[%s13175_s18 + $0xa0] sm:$0xff]  ;;  %v1499_v53 = vld [vmem:[%s13176_s14 + $0x88] sm:$0xff] }
 0x288   : > { %5181 = vmatprep.subr.mxu0 %v13179_v23  ;;  %5262 = vmatpush1.msra.mxu1 %v1492_v21  ;;  %v1476_v55 = vld [vmem:[%s13175_s18 + $0x88] sm:$0xff]  ;;  %v1475_v34 = vld [vmem:[%s13175_s18 + $0x80] sm:$0xff] }
 0x289   : > { %5182 = vmatpush1.msra.mxu0 %v1467_v30  ;;  %5263 = vmatprep.subr.mxu1 %v13179_v23  ;;  %v11683_v51 = vsel %vm4189_vm9, %v4588_v3, %v4676_v41 }
 0x28a   : > { %5183 = vmatprep.subr.mxu0 %v13179_v23  ;;  %5264 = vmatpush1.msra.mxu1 %v1491_v52  ;;  %v11738_v2 = vpop.permute.xlu0 %4963 }
 0x28b   : > { %5184 = vmatpush1.msra.mxu0 %v1466_v4  ;;  %5265 = vmatprep.subr.mxu1 %v13179_v23 }
 0x28c   : > { %5185 = vmatprep.subr.mxu0 %v13179_v23  ;;  %5266 = vmatpush1.msra.mxu1 %v1490_v40 }
 0x28d   : > { %5186 = vmatpush1.msra.mxu0 %v1465_v39  ;;  %5267 = vmatprep.subr.mxu1 %v13179_v23  ;;  %v8941_v59 = vld [vmem:[%s13183_s3] ss:$0 sm:$0xff] }
 0x28e   : > { %5187 = vmatprep.subr.mxu0 %v13179_v23  ;;  %5268 = vmatpush1.msra.mxu1 %v1489_v47  ;;  %v4924_v61 = vadd.f32 %v8941_v59, %v11388_v50  ;;  %v4926_v12 = vadd.f32 %v8941_v59, %v11394_v20  ;;  %v1498_v50 = vld [vmem:[%s13176_s14 + $0x80] sm:$0xff]  ;;  %v4928_v56 = vadd.f32 %v8941_v59, %v11396_v48  ;;  %v11748_v48 = vpop.permute.xlu1 %4942 }
 0x28f   : > { %5188 = vmatpush1.msra.mxu0 %v1464_v7  ;;  %5269 = vmatprep.subr.mxu1 %v13179_v23  ;;  %v4925_v21 = vadd.f32 %v8941_v59, %v11390_v8  ;;  %v4927_v49 = vadd.f32 %v8941_v59, %v11402_v26  ;;  %v4929_v4 = vadd.f32 %v8941_v59, %v11407_v14 }
 0x290   : > { %5189 = vmatprep.subr.mxu0 %v13179_v23  ;;  %5270 = vmatpush1.msra.mxu1 %v1488_v29  ;;  %v4972_v46 = vadd.f32 %v11705_v54, %v4924_v61  ;;  %v4974_v20 = vadd.f32 %v11721_v37, %v4926_v12  ;;  %v4976_v19 = vadd.f32 %v11738_v2, %v4928_v56 }
 0x291   : > { %5190 = vmatpush1.msra.mxu0 %v1463_v58  ;;  %5271 = vmatprep.subr.mxu1 %v13179_v23  ;;  %v4973_v30 = vadd.f32 %v11748_v48, %v4925_v21 }
 0x292   : > { %5191 = vmatprep.subr.mxu0 %v13179_v23  ;;  %5272 = vmatpush1.msra.mxu1 %v1487_v32  ;;  %v8942_v57 = vmul.f32 -1.442695, %v4972_v46  ;;  %v8944_v25 = vmul.f32 -1.442695, %v4974_v20  ;;  %v8946_v41 = vmul.f32 -1.442695, %v4976_v19  ;;  %v11752_v45 = vpop.permute.xlu1 %4956 }
 0x293   : > { %5192 = vmatpush1.msra.mxu0 %v1462_v43  ;;  %5273 = vmatprep.subr.mxu1 %v13179_v23  ;;  %v4975_v52 = vadd.f32 %v11752_v45, %v4927_v49  ;;  %v8943_v3 = vmul.f32 -1.442695, %v4973_v30 }
 0x294   : > { %5193 = vmatprep.subr.mxu0 %v13179_v23  ;;  %5274 = vmatpush1.msra.mxu1 %v1486_v42  ;;  %9957 = vpow2.f32 %v8942_v57 }
 0x295   : > { %5194 = vmatpush1.msra.mxu0 %v1461_v24  ;;  %5275 = vmatprep.subr.mxu1 %v13179_v23  ;;  %9959 = vpow2.f32 %v8944_v25  ;;  %v8945_v7 = vmul.f32 -1.442695, %v4975_v52 }
 0x296   : > { %5195 = vmatprep.subr.mxu0 %v13179_v23  ;;  %5276 = vmatpush1.msra.mxu1 %v1485_v38  ;;  %9961 = vpow2.f32 %v8946_v41  ;;  %v11757_v39 = vpop.permute.xlu1 %4970 }
 0x297   : > { %5196 = vmatpush1.msra.mxu0 %v1460_v9  ;;  %5277 = vmatprep.subr.mxu1 %v13179_v23  ;;  %9963 = vpow2.f32 %v8943_v3  ;;  %v4977_v8 = vadd.f32 %v11757_v39, %v4929_v4 }
 0x298   : > { %5197 = vmatprep.subr.mxu0 %v13179_v23  ;;  %5278 = vmatpush1.msra.mxu1 %v1484_v11  ;;  %9965 = vpow2.f32 %v8945_v7 }
 0x299   : > { %5198 = vmatpush1.msra.mxu0 %v1459_v63  ;;  %5279 = vmatprep.subr.mxu1 %v13179_v23  ;;  %v8947_v32 = vmul.f32 -1.442695, %v4977_v8 }
 0x29a   : > { %5219 = vmatprep.subr.mxu0 %v13179_v23  ;;  %5280 = vmatpush1.msra.mxu1 %v1483_v22  ;;  %v11760_v42 = vpop.permute.xlu1 %5019 }
 0x29b   : > { %5220 = vmatpush2.msra.mxu0 %v1480_v62  ;;  %5281 = vmatprep.subr.mxu1 %v13179_v23  ;;  %13184 = vst [vmem:[#allocation93_spill] sm:$0xff] %v11760_v42  ;;  %v5056_v11 = vmul.f32 0.0, %v11760_v42 }
 0x29c   : > { %5221 = vmatprep.subr.mxu0 %v13179_v23  ;;  %5282 = vmatpush1.msra.mxu1 %v1482_v33 }
 0x29d   : > { %5222 = vmatpush2.msra.mxu0 %v1479_v60  ;;  %5311 = vmatprep.subr.mxu1 %v13179_v23 }
 0x29e   : > { %5223 = vmatprep.subr.mxu0 %v13179_v23  ;;  %5312 = vmatpush2.msra.mxu1 %v1499_v53  ;;  %v11762_v14 = vpop.permute.xlu1 %5033 }
 0x29f   : > { %5224 = vmatpush2.msra.mxu0 %v1478_v44  ;;  %5313 = vmatprep.subr.mxu1 %v13179_v23  ;;  %13185 = vst [vmem:[#allocation94_spill] sm:$0xff] %v11762_v14  ;;  %v5058_v59 = vmul.f32 0.0, %v11762_v14 }
 0x2a0   : > { %5225 = vmatprep.subr.mxu0 %v13179_v23  ;;  %5314 = vmatpush2.msra.mxu1 %v1498_v50 }
 0x2a1   : > { %5226 = vmatpush2.msra.mxu0 %v1477_v35  ;;  %9526 = vmatprep.subr.mxu1 %v13179_v23  ;;  %v9958_v40 = vpop.eup %9957 }
 0x2a2   : > { %5227 = vmatprep.subr.mxu0 %v13179_v23  ;;  %v9960_v47 = vpop.eup %9959  ;;  %v4996_v29 = vadd.f32 1.0, %v9958_v40  ;;  %v11766_v62 = vpop.permute.xlu1 %5047 }
 0x2a3   : > { %5228 = vmatpush2.msra.mxu0 %v1476_v55  ;;  %v4998_v58 = vadd.f32 1.0, %v9960_v47  ;;  %v9962_v26 = vpop.eup %9961  ;;  %13186 = vst [vmem:[#allocation95_spill] sm:$0xff] %v11766_v62  ;;  %v5060_v53 = vmul.f32 0.0, %v11766_v62 }
 0x2a4   : > { %5229 = vmatprep.subr.mxu0 %v13179_v23  ;;  %9967 = vrcp.f32 %v4996_v29  ;;  %v5000_v43 = vadd.f32 1.0, %v9962_v26  ;;  %v9964_v24 = vpop.eup %9963 }
 0x2a5   : > { %5230 = vmatpush2.msra.mxu0 %v1475_v34  ;;  %9969 = vrcp.f32 %v4998_v58  ;;  %v9966_v38 = vpop.eup %9965  ;;  %v4997_v9 = vadd.f32 1.0, %v9964_v24 }
 0x2a6   : > { %5416 = vmatprep.subr.mxu0 %v13179_v23  ;;  %9971 = vpow2.f32 %v8947_v32  ;;  %v4999_v33 = vadd.f32 1.0, %v9966_v38 }
 0x2a7   : > { %9973 = vrcp.f32 %v5000_v43 }
 0x2a8   : > { %9975 = vrcp.f32 %v4997_v9 }
 0x2a9   : > { %9977 = vrcp.f32 %v4999_v33 }
 0x2b1   : > { %v9968_v63 = vpop.eup %9967 }
 0x2b2   : > { %v9970_v22 = vpop.eup %9969  ;;  %v5062_v61 = vmul.f32 %v9968_v63, %v5056_v11 }
 0x2b3   : > { %v9972_v60 = vpop.eup %9971  ;;  %v5064_v12 = vmul.f32 %v9970_v22, %v5058_v59 }
 0x2b4   : > { %v9974_v44 = vpop.eup %9973  ;;  %v5001_v50 = vadd.f32 1.0, %v9972_v60  ;;  %v5068_v46 = vsel %vm4011_vm3, %v5062_v61, 0.0 }
 0x2b5   : > { %v5082_v35 = vsel %vm4011_vm3, %v5064_v12, 0.0  ;;  %v5066_v20 = vmul.f32 %v9974_v44, %v5060_v53  ;;  %v5069_v56 = vrot.slane %v5068_v46, 4  ;;  %v9976_v49 = vpop.eup %9975 }
 0x2b6   : > { %9979 = vrcp.f32 %v5001_v50  ;;  %v5083_v55 = vrot.slane %v5082_v35, 4  ;;  %v9978_v7 = vpop.eup %9977 }
 0x2b7   : > { %v5096_v34 = vsel %vm4011_vm3, %v5066_v20, 0.0  ;;  %v5070_v19 = vadd.f32 %v5069_v56, %v5068_v46 }
 0x2b8   : > { %v5084_v41 = vadd.f32 %v5083_v55, %v5082_v35  ;;  %v5097_v21 = vrot.slane %v5096_v34, 4 }
 0x2b9   : > { %v5071_v3 = vrot.slane %v5070_v19, 2 }
 0x2ba   : > { %v5085_v40 = vrot.slane %v5084_v41, 2  ;;  %v5098_v47 = vadd.f32 %v5097_v21, %v5096_v34 }
 0x2bb   : > { %v5072_v58 = vadd.f32 %v5071_v3, %v5070_v19 }
 0x2bc   : > { %v5086_v32 = vadd.f32 %v5085_v40, %v5084_v41  ;;  %v5099_v24 = vrot.slane %v5098_v47, 2 }
 0x2bd   : > { %v5073_v22 = vrot.slane %v5072_v58, 1 }
 0x2be   : > { %v5087_v60 = vrot.slane %v5086_v32, 1  ;;  %v5100_v12 = vadd.f32 %v5099_v24, %v5098_v47 }
 0x2bf   : > { %v5074_v35 = vadd.f32 %v5073_v22, %v5072_v58 }
 0x2c0   : > { %v5101_v34 = vrot.slane %v5100_v12, 1 }
 0x2c2   : > { %v5102_v3 = vadd.f32 %v5101_v34, %v5100_v12  ;;  %v1519_v12 = vld [vmem:[%s13192_s25 + $0x68] sm:$0xff] }
 0x2c3   : > { %v9980_v38 = vpop.eup %9979 }
 0x2d1   : > { %v4212_v57 = vpop.permute.xlu0 %4211 }
 0x2d2   : > { %v4214_v25 = vsel %vm1584_vm1, %v11648_v6, %v4212_v57  ;;  %v5088_v57 = vadd.f32 %v5087_v60, %v5086_v32  ;;  %v1502_v60 = vld [vmem:[%s13191_s24 + $0x8] sm:$0xff] }
 0x2d3   : > { %5129 = vrot.lane.b32.xlu1 %v4214_v25, %s13015_s19  ;;  %s13190_s19 = sld [smem:[#allocation8_spill]] }
 0x2d5   : > { %v11775_v30 = vpop.permute.xlu0 %5026 }
 0x2d6   : > { %13187 = vst [vmem:[#allocation96_spill] sm:$0xff] %v11775_v30  ;;  %v5057_v52 = vmul.f32 0.0, %v11775_v30 }
 0x2d8   : > { %v5063_v4 = vmul.f32 %v9976_v49, %v5057_v52 }
 0x2d9   : > { %s11797_s11 = scalar_lea.vmem %s13190_s19, %s10989_s1  ;;  %s13194_s19 = sld [smem:[#allocation9_spill]] }
 0x2da   : > { %v5075_v6 = vsel %vm4011_vm3, %v5063_v4, 0.0  ;;  %v1384_v24 = vld [vmem:[%s11797_s11] sm:$0xff] }
 0x2db   : > { %v11778_v8 = vpop.permute.xlu0 %5040  ;;  %v5076_v26 = vrot.slane %v5075_v6, 4 }
 0x2dc   : > { %13188 = vst [vmem:[#allocation97_spill] sm:$0xff] %v11778_v8  ;;  %v5059_v29 = vmul.f32 0.0, %v11778_v8 }
 0x2dd   : > { %v5077_v9 = vadd.f32 %v5076_v26, %v5075_v6 }
 0x2de   : > { %v5065_v43 = vmul.f32 %v9978_v7, %v5059_v29 }
 0x2df   : > { %v11782_v11 = vpop.permute.xlu0 %5054  ;;  %v5078_v33 = vrot.slane %v5077_v9, 2 }
 0x2e0   : > { %13189 = vst [vmem:[#allocation98_spill] sm:$0xff] %v11782_v11  ;;  %v5089_v63 = vsel %vm4011_vm3, %v5065_v43, 0.0  ;;  %v5061_v59 = vmul.f32 0.0, %v11782_v11 }
 0x2e1   : > { %v5090_v61 = vrot.slane %v5089_v63, 4  ;;  %v5079_v44 = vadd.f32 %v5078_v33, %v5077_v9  ;;  %v1503_v33 = vld [vmem:[%s13191_s24 + $0x10] sm:$0xff] }
 0x2e2   : > { %v5067_v53 = vmul.f32 %v9980_v38, %v5061_v59  ;;  %v1521_v59 = vld [vmem:[%s13192_s25 + $0x78] sm:$0xff] }
 0x2e3   : > { %v5091_v50 = vadd.f32 %v5090_v61, %v5089_v63  ;;  %v5080_v20 = vrot.slane %v5079_v44, 1  ;;  %v1504_v63 = vld [vmem:[%s13191_s24 + $0x18] sm:$0xff]  ;;  %v1520_v61 = vld [vmem:[%s13192_s25 + $0x70] sm:$0xff] }
 0x2e4   : > { %v5103_v46 = vsel %vm4011_vm3, %v5067_v53, 0.0  ;;  %v1501_v53 = vld [vmem:[%s13191_s24] sm:$0xff]  ;;  %vm5698_vm3 = vcmask 5120  }
 0x2e5   : > { %v5092_v56 = vrot.slane %v5091_v50, 2  ;;  %v5104_v55 = vrot.slane %v5103_v46, 4  ;;  %v5081_v25 = vadd.f32 %v5080_v20, %v5079_v44  ;;  %v1518_v44 = vld [vmem:[%s13192_s25 + $0x60] sm:$0xff] }
 0x2e7   : > { %v5093_v19 = vadd.f32 %v5092_v56, %v5091_v50  ;;  %v5105_v41 = vadd.f32 %v5104_v55, %v5103_v46  ;;  %v5141_v52 = vsel %vm4181_vm4, %v5081_v25, %v5074_v35  ;;  %v1517_v50 = vld [vmem:[%s13192_s25 + $0x58] sm:$0xff]  ;;  %v1516_v35 = vld [vmem:[%s13192_s25 + $0x50] sm:$0xff]  ;;  %v1515_v56 = vld [vmem:[%s13192_s25 + $0x48] sm:$0xff] }
 0x2e8   : > { %v5142_v4 = vsel %vm4183_vm5, %v5088_v57, %v5141_v52  ;;  %v1514_v57 = vld [vmem:[%s13192_s25 + $0x40] sm:$0xff]  ;;  %v1513_v25 = vld [vmem:[%s13192_s25 + $0x38] sm:$0xff] }
 0x2e9   : > { %v5094_v21 = vrot.slane %v5093_v19, 1  ;;  %v5106_v49 = vrot.slane %v5105_v41, 2 }
 0x2eb   : > { %v4691_v40 = vpop.permute.xlu1 %4690  ;;  %v5095_v47 = vadd.f32 %v5094_v21, %v5093_v19  ;;  %v5107_v7 = vadd.f32 %v5106_v49, %v5105_v41  ;;  %v1512_v41 = vld [vmem:[%s13192_s25 + $0x30] sm:$0xff]  ;;  %v1511_v49 = vld [vmem:[%s13192_s25 + $0x28] sm:$0xff] }
 0x2ec   : > { %v4693_v6 = vsel %vm1584_vm1, %v11683_v51, %v4691_v40  ;;  %v1509_v40 = vld [vmem:[%s13192_s25 + $0x18] sm:$0xff] }
 0x2ed   : > { %5150 = vrot.lane.b32.xlu1 %v4693_v6, %s13016_s21  ;;  %v5108_v29 = vrot.slane %v5107_v7, 1  ;;  %v5143_v58 = vsel %vm4185_vm6, %v5095_v47, %v5142_v4  ;;  %s11889_s21 = scalar_lea.vmem %s13194_s19, %s10989_s1  ;;  %s13195_s19 = sld [smem:[#allocation34_spill]] }
 0x2ee   : > { %v5144_v26 = vsel %vm4187_vm7, %v5102_v3, %v5143_v58  ;;  %v1510_v3 = vld [vmem:[%s13192_s25 + $0x20] sm:$0xff]  ;;  %s13206_s1 = sld [smem:[#allocation33_spill]] }
 0x2ef   : > { %v5109_v32 = vadd.f32 %v5108_v29, %v5107_v7  ;;  %v1508_v7 = vld [vmem:[%s13192_s25 + $0x10] sm:$0xff]  ;;  %v1507_v29 = vld [vmem:[%s13192_s25 + $0x8] sm:$0xff] }
 0x2f1   : > { %v5145_v43 = vsel %vm4189_vm9, %v5109_v32, %v5144_v26  ;;  %v1506_v26 = vld [vmem:[%s13192_s25] sm:$0xff] }
 0x2f2   : > { %5146 = vrot.lane.b32.xlu0 %v5145_v43, %s10462_s29  ;;  %s13193_s29 = sld [smem:[#allocation32_spill]]  ;;  %v1529_v43 = vld [vmem:[%s13192_s25 + $0xb8] sm:$0xff] }
 0x2f8   : > { %v1546_v46 = vld [vmem:[%s13193_s29 + $0x78] sm:$0xff]  ;;  %v1545_v20 = vld [vmem:[%s13193_s29 + $0x70] sm:$0xff]  ;;  %v1544_v55 = vld [vmem:[%s13193_s29 + $0x68] sm:$0xff] }
 0x2f9   : > { %v5126_v51 = vpop.permute.xlu0 %5125  ;;  %v1543_v34 = vld [vmem:[%s13193_s29 + $0x60] sm:$0xff]  ;;  %v1542_v19 = vld [vmem:[%s13193_s29 + $0x58] sm:$0xff]  ;;  %v1541_v21 = vld [vmem:[%s13193_s29 + $0x50] sm:$0xff] }
 0x2fa   : > { %v5132_v38 = vsel %vm1584_vm1, %v1384_v24, %v5126_v51  ;;  %v1540_v52 = vld [vmem:[%s13193_s29 + $0x48] sm:$0xff]  ;;  %v1539_v4 = vld [vmem:[%s13193_s29 + $0x40] sm:$0xff]  ;;  %v1538_v47 = vld [vmem:[%s13193_s29 + $0x38] sm:$0xff] }
 0x2fb   : > { %v1537_v6 = vld [vmem:[%s13193_s29 + $0x30] sm:$0xff]  ;;  %v1536_v58 = vld [vmem:[%s13193_s29 + $0x28] sm:$0xff]  ;;  %v1535_v32 = vld [vmem:[%s13193_s29 + $0x20] sm:$0xff] }
 0x2fc   : > { %v1534_v51 = vld [vmem:[%s13193_s29 + $0x18] sm:$0xff]  ;;  %v1528_v24 = vld [vmem:[%s13192_s25 + $0xb0] sm:$0xff] }
 0x345   : > { %v5130_v9 = vpop.permute.xlu1 %5129 }
 0x346   : > { %v5134_v22 = vsel %vm5133_vm12, %v5132_v38, %v5130_v9  ;;  %v1533_v38 = vld [vmem:[%s13193_s29 + $0x10] sm:$0xff]  ;;  %v1527_v9 = vld [vmem:[%s13192_s25 + $0xa8] sm:$0xff] }
 0x347   : > { %8949 = vmatmul.mubr.msk.f32.vlgmr.msra.gmra.mxu0 %vm5157_vm13, %v5134_v22  ;;  %8952 = vmatmul.mubr.msk.f32.vlgmr.msra.gmra.mxu1 %vm5157_vm13, %v5134_v22  ;;  %v1531_v22 = vld [vmem:[%s13193_s29] sm:$0xff] }
 0x348   : > { %9527 = vmatpush3.msra.mxu1 %v1504_v63  ;;  %5417 = vmatpush1.msra.mxu0 %v1521_v59  ;;  %v1532_v63 = vld [vmem:[%s13193_s29 + $0x8] sm:$0xff]  ;;  %v1526_v59 = vld [vmem:[%s13192_s25 + $0xa0] sm:$0xff] }
 0x349   : > { %9528 = vmatprep.subr.mxu1 %v13179_v23  ;;  %5418 = vmatprep.subr.mxu0 %v13179_v23 }
 0x34a   : > { %9529 = vmatpush3.msra.mxu1 %v1503_v33  ;;  %5419 = vmatpush1.msra.mxu0 %v1520_v61  ;;  %v1525_v33 = vld [vmem:[%s13192_s25 + $0x98] sm:$0xff] }
 0x34b   : > { %9530 = vmatprep.subr.mxu1 %v13179_v23  ;;  %5420 = vmatprep.subr.mxu0 %v13179_v23  ;;  %v1550_v61 = vld [vmem:[%s13193_s29 + $0x98] sm:$0xff] }
 0x34c   : > { %9531 = vmatpush3.msra.mxu1 %v1502_v60  ;;  %5421 = vmatpush1.msra.mxu0 %v1519_v12  ;;  %v1524_v60 = vld [vmem:[%s13192_s25 + $0x90] sm:$0xff] }
 0x34d   : > { %9532 = vmatprep.subr.mxu1 %v13179_v23  ;;  %5422 = vmatprep.subr.mxu0 %v13179_v23  ;;  %v1549_v12 = vld [vmem:[%s13193_s29 + $0x90] sm:$0xff] }
 0x34e   : > { %9533 = vmatpush3.msra.mxu1 %v1501_v53  ;;  %5423 = vmatpush1.msra.mxu0 %v1518_v44  ;;  %v1385_v44 = vld [vmem:[%s11889_s21] sm:$0x3f] }
 0x34f   : > { %9534 = vmatprep.mubr.msk.f32.mxu1 %vm10456_vm0, %v13179_v23  ;;  %5424 = vmatprep.subr.mxu0 %v13179_v23 }
 0x350   : > { %5498 = vmatprep.subr.mxu1 %v13179_v23  ;;  %9535 = vmatmul.mubr.f32.vlgmr.msra.gmra.mxu1 %v13179_v23 }
 0x351   : > { %5425 = vmatpush1.msra.mxu0 %v1517_v50  ;;  %5499 = vmatpush1.msra.mxu1 %v1546_v46  ;;  %v1523_v50 = vld [vmem:[%s13192_s25 + $0x88] sm:$0xff] }
 0x352   : > { %5426 = vmatprep.subr.mxu0 %v13179_v23  ;;  %5500 = vmatprep.subr.mxu1 %v13179_v23  ;;  %v1548_v46 = vld [vmem:[%s13193_s29 + $0x88] sm:$0xff] }
 0x353   : > { %5427 = vmatpush1.msra.mxu0 %v1516_v35  ;;  %5501 = vmatpush1.msra.mxu1 %v1545_v20  ;;  %v1522_v35 = vld [vmem:[%s13192_s25 + $0x80] sm:$0xff] }
 0x354   : > { %5428 = vmatprep.subr.mxu0 %v13179_v23  ;;  %5502 = vmatprep.subr.mxu1 %v13179_v23 }
 0x355   : > { %5429 = vmatpush1.msra.mxu0 %v1515_v56  ;;  %5503 = vmatpush1.msra.mxu1 %v1544_v55  ;;  %v1547_v56 = vld [vmem:[%s13193_s29 + $0x80] sm:$0xff] }
 0x356   : > { %5430 = vmatprep.subr.mxu0 %v13179_v23  ;;  %5504 = vmatprep.subr.mxu1 %v13179_v23 }
 0x357   : > { %5431 = vmatpush1.msra.mxu0 %v1514_v57  ;;  %5505 = vmatpush1.msra.mxu1 %v1543_v34  ;;  %v1555_v34 = vld [vmem:[%s13195_s19 + $0x18] sm:$0xff] }
 0x358   : > { %5432 = vmatprep.subr.mxu0 %v13179_v23  ;;  %5506 = vmatprep.subr.mxu1 %v13179_v23 }
 0x359   : > { %5433 = vmatpush1.msra.mxu0 %v1513_v25  ;;  %5507 = vmatpush1.msra.mxu1 %v1542_v19  ;;  %v1554_v25 = vld [vmem:[%s13195_s19 + $0x10] sm:$0xff]  ;;  %v1553_v19 = vld [vmem:[%s13195_s19 + $0x8] sm:$0xff] }
 0x35a   : > { %5434 = vmatprep.subr.mxu0 %v13179_v23  ;;  %5508 = vmatprep.subr.mxu1 %v13179_v23 }
 0x35b   : > { %5435 = vmatpush1.msra.mxu0 %v1512_v41  ;;  %5509 = vmatpush1.msra.mxu1 %v1541_v21  ;;  %v1552_v41 = vld [vmem:[%s13195_s19] sm:$0xff]  ;;  %v10463_v21 = vmov 0  }
 0x35c   : > { %5436 = vmatprep.subr.mxu0 %v13179_v23  ;;  %5510 = vmatprep.subr.mxu1 %v13179_v23 }
 0x35d   : > { %5437 = vmatpush1.msra.mxu0 %v1511_v49  ;;  %5511 = vmatpush1.msra.mxu1 %v1540_v52  ;;  %v1386_v49 = vld [vmem:[%s1344_s16] sm:$0xff] }
 0x35e   : > { %5438 = vmatprep.subr.mxu0 %v13179_v23  ;;  %5512 = vmatprep.subr.mxu1 %v13179_v23  ;;  %v1387_v52 = vld [vmem:[%s1348_s28] sm:$0x3f]  ;;  %s13203_s28 = sld [smem:[#allocation31_spill]] }
 0x35f   : > { %5439 = vmatpush1.msra.mxu0 %v1510_v3  ;;  %5513 = vmatpush1.msra.mxu1 %v1539_v4  ;;  %v5151_v55 = vpop.permute.xlu1 %5150  ;;  %v5699_v3 = vsel %vm5698_vm3, %v1387_v52, 0.0  ;;  %vm5675_vm3 = vcmask 7168  }
 0x360   : > { %5440 = vmatprep.subr.mxu0 %v13179_v23  ;;  %5514 = vmatprep.subr.mxu1 %v13179_v23  ;;  %v5700_v4 = vrot.slane %v5699_v3, 4 }
 0x361   : > { %5441 = vmatpush1.msra.mxu0 %v1509_v40  ;;  %5515 = vmatpush1.msra.mxu1 %v1538_v47 }
 0x362   : > { %5442 = vmatprep.subr.mxu0 %v13179_v23  ;;  %5516 = vmatprep.subr.mxu1 %v13179_v23  ;;  %v5701_v40 = vadd.f32 %v5700_v4, %v5699_v3 }
 0x363   : > { %5443 = vmatpush1.msra.mxu0 %v1508_v7  ;;  %5517 = vmatpush1.msra.mxu1 %v1537_v6 }
 0x364   : > { %5444 = vmatprep.subr.mxu0 %v13179_v23  ;;  %5518 = vmatprep.subr.mxu1 %v13179_v23  ;;  %v5147_v53 = vpop.permute.xlu0 %5146  ;;  %v5702_v47 = vrot.slane %v5701_v40, 2 }
 0x365   : > { %5445 = vmatpush1.msra.mxu0 %v1507_v29  ;;  %5519 = vmatpush1.msra.mxu1 %v1536_v58  ;;  %v5154_v20 = vsel %vm13031_vm14, %v1385_v44, %v5147_v53  ;;  %v8951_v53 = vld [vmem:[%s13201_s26] ss:$0 sm:$0xff]  ;;  %s13207_s26 = smov 32   ;;  %vm5720_vm14 = vcmask 785408  }
 0x366   : > { %5446 = vmatprep.subr.mxu0 %v13179_v23  ;;  %5520 = vmatprep.subr.mxu1 %v13179_v23  ;;  %v5156_v57 = vsel %vm13030_vm15, %v5154_v20, %v5151_v55  ;;  %v5703_v7 = vadd.f32 %v5702_v47, %v5701_v40  ;;  %vm5690_vm15 = vcmask 521472  }
 0x367   : > { %5447 = vmatpush1.msra.mxu0 %v1506_v26  ;;  %5521 = vmatpush1.msra.mxu1 %v1535_v32  ;;  %v8948_v26 = vld [vmem:[%s13198_s22] ss:$0 sm:$0xff]  ;;  %s13204_s22 = sld [smem:[#allocation35_spill]] }
 0x368   : > { %5464 = vmatprep.subr.mxu0 %v13179_v23  ;;  %5522 = vmatprep.subr.mxu1 %v13179_v23  ;;  %v5704_v6 = vrot.slane %v5703_v7, 1 }
 0x369   : > { %5465 = vmatpush2.msra.mxu0 %v1529_v43  ;;  %5523 = vmatpush1.msra.mxu1 %v1534_v51 }
 0x36a   : > { %5466 = vmatprep.subr.mxu0 %v13179_v23  ;;  %5524 = vmatprep.subr.mxu1 %v13179_v23  ;;  %v5705_v29 = vadd.f32 %v5704_v6, %v5703_v7 }
 0x36b   : > { %5467 = vmatpush2.msra.mxu0 %v1528_v24  ;;  %5525 = vmatpush1.msra.mxu1 %v1533_v38 }
 0x36c   : > { %5468 = vmatprep.subr.mxu0 %v13179_v23  ;;  %5526 = vmatprep.subr.mxu1 %v13179_v23  ;;  %v5706_v58 = vadd.f32 1.0, %v5705_v29 }
 0x36d   : > { %5469 = vmatpush2.msra.mxu0 %v1527_v9  ;;  %5527 = vmatpush1.msra.mxu1 %v1532_v63  ;;  %s13205_s16 = smov %s13204_s22 }
 0x36e   : > { %5470 = vmatprep.subr.mxu0 %v13179_v23  ;;  %5528 = vmatprep.subr.mxu1 %v13179_v23 }
 0x36f   : > { %5471 = vmatpush2.msra.mxu0 %v1526_v59  ;;  %5529 = vmatpush1.msra.mxu1 %v1531_v22 }
 0x370   : > { %5472 = vmatprep.subr.mxu0 %v13179_v23  ;;  %5554 = vmatprep.subr.mxu1 %v13179_v23 }
 0x371   : > { %5473 = vmatpush2.msra.mxu0 %v1525_v33  ;;  %5555 = vmatpush2.msra.mxu1 %v1550_v61  ;;  %v8953_v61 = vld [vmem:[%s13200_s15] ss:$0 sm:$0xff] }
 0x372   : > { %5474 = vmatprep.subr.mxu0 %v13179_v23  ;;  %5556 = vmatprep.subr.mxu1 %v13179_v23 }
 0x373   : > { %5475 = vmatpush2.msra.mxu0 %v1524_v60  ;;  %5557 = vmatpush2.msra.mxu1 %v1549_v12  ;;  %v5676_v60 = vsel %vm5675_vm3, %v1386_v49, 0.0  ;;  %vm5667_vm3 = vcmask 523520  }
 0x374   : > { %5476 = vmatprep.subr.mxu0 %v13179_v23  ;;  %5558 = vmatprep.subr.mxu1 %v13179_v23  ;;  %v5677_v44 = vrot.slane %v5676_v60, 4 }
 0x375   : > { %5477 = vmatpush2.msra.mxu0 %v1523_v50  ;;  %5559 = vmatpush2.msra.mxu1 %v1548_v46 }
 0x376   : > { %5478 = vmatprep.subr.mxu0 %v13179_v23  ;;  %5560 = vmatprep.subr.mxu1 %v13179_v23 }
 0x377   : > { %5479 = vmatpush2.msra.mxu0 %v1522_v35  ;;  %5480 = vmatprep.mubr.f32.mxu0 %v13179_v23 }
 0x378   : > { %5561 = vmatpush2.msra.mxu1 %v1547_v56  ;;  %5562 = vmatprep.mubr.f32.mxu1 %v13179_v23  ;;  %v5678_v56 = vadd.f32 %v5677_v44, %v5676_v60 }
 0x379   : > { %5481 = vmatmul.mubr.f32.vlgmr.msra.gmra.mxu0 %v5156_v57  ;;  %5563 = vmatmul.mubr.f32.vlgmr.msra.gmra.mxu1 %v5156_v57 }
 0x37a   : > { %9537 = vmatprep.subr.mxu1 %v13179_v23  ;;  %9545 = vmatprep.mubr.msk.f32.mxu1 %vm10456_vm0, %v13179_v23  ;;  %v5679_v55 = vrot.slane %v5678_v56, 2 }
 0x37b   : > { %9538 = vmatpush3.msra.mxu1 %v1555_v34  ;;  %9548 = vmatprep.subr.mxu0 %v13179_v23  ;;  %v8954_v34 = vld [vmem:[%s13203_s28] ss:$0 sm:$0xff]  ;;  %s13209_s28 = sld [smem:[#allocation38_spill]] }
 0x37c   : > { %9539 = vmatprep.subr.mxu1 %v13179_v23  ;;  %9572 = vmatprep.mubr.msk.f32.mxu0 %vm10456_vm0, %v13179_v23  ;;  %v5680_v57 = vadd.f32 %v5679_v55, %v5678_v56 }
 0x37d   : > { %9540 = vmatpush3.msra.mxu1 %v1554_v25  ;;  %9867 = vset.pattern.permute.xlu0 %v10463_v21 }
 0x37e   : > { %9541 = vmatprep.subr.mxu1 %v13179_v23  ;;  %9868 = vset.pattern.permute.xlu1 %v10463_v21  ;;  %v5681_v25 = vrot.slane %v5680_v57, 1 }
 0x37f   : > { %9542 = vmatpush3.msra.mxu1 %v1553_v19  ;;  %5657 = vperm.xlu0 %9867, %v1386_v49  }
 0x380   : > { %9543 = vmatprep.subr.mxu1 %v13179_v23  ;;  %v5682_v40 = vadd.f32 %v5681_v25, %v5680_v57  ;;  %v1563_v57 = vld [vmem:[%s13208_s0 + $0x30] sm:$0xff] }
 0x381   : > { %9544 = vmatpush3.msra.mxu1 %v1552_v41  ;;  %s13210_s2 = smov %s13209_s28 }
 0x382   : > { %9546 = vmatmul.mubr.f32.vlgmr.msra.gmra.mxu1 %v13179_v23  ;;  %9575 = vmatprep.subr.mxu1 %v13179_v23  ;;  %v1575_v60 = vld [vmem:[%s13210_s2 + $0x28] sm:$0xff]  ;;  %v1572_v25 = vld [vmem:[%s13210_s2 + $0x10] sm:$0xff] }
 0x383   : > { %9591 = vmatprep.mubr.msk.f32.mxu1 %vm10456_vm0, %v13179_v23  ;;  %5663 = vperm.xlu0 %9867, %v1387_v52  }
 0x387   : > { %5709 = vperm.xlu0 %9867, %v5706_v58   ;;  %v8957_v58 = vld [vmem:[%s13204_s22] ss:$0 sm:$0xff]  ;;  %s13212_s22 = smov 96  }
 0x407   : > { %v5233_v32 = vpop.f32.mrf.mxu0  ;;  %v5317_v43 = vpop.f32.mrf.mxu1 }
 0x408   : > { %v5234_v51 = vadd.f32 %v8948_v26, %v5233_v32  ;;  %v5318_v46 = vadd.f32 %v8951_v53, %v5317_v43  ;;  %v8956_v32 = vld [vmem:[%s13206_s1] ss:$0 sm:$0xff] }
 0x409   : > { %v5235_v24 = vpop.f32.mrf.mxu0  ;;  %v5319_v38 = vpop.f32.mrf.mxu1  ;;  %v1574_v53 = vld [vmem:[%s13210_s2 + $0x20] sm:$0xff] }
 0x40a   : > { %v8950_v9 = vmul.f32 -1.442695, %v5234_v51 }
 0x40c   : > { %9981 = vpow2.f32 %v8950_v9 }
 0x410   : > { %v5393_v63 = vpop.f32.mrf.mxu1 }
 0x411   : > { %v5394_v12 = vadd.f32 %v8953_v61, %v5393_v63  ;;  %v1568_v63 = vld [vmem:[%s13208_s0 + $0x58] sm:$0xff]  ;;  %v1576_v61 = vld [vmem:[%s13210_s2 + $0x30] sm:$0xff] }
 0x412   : > { %v9536_v59 = vpop.f32.mrf.mxu1  ;;  %9549 = vmatpush3.msra.mxu0 %v1568_v63 }
 0x413   : > { %v1567_v59 = vld [vmem:[%s13208_s0 + $0x50] sm:$0xff]  ;;  %9550 = vmatprep.subr.mxu0 %v13179_v23 }
 0x414   : > { %9551 = vmatpush3.msra.mxu0 %v1567_v59 }
 0x415   : > { %9552 = vmatprep.subr.mxu0 %v13179_v23 }
 0x419   : > { %v9982_v22 = vpop.eup %9981 }
 0x41a   : > { %v5240_v33 = vadd.f32 1.0, %v9982_v22  ;;  %v1577_v22 = vld [vmem:[%s13209_s28 + $0x38] sm:$0xff]  ;;  %s13219_s28 = sld [smem:[#allocation37_spill]] }
 0x41b   : > { %9576 = vmatpush3.msra.mxu1 %v1577_v22 }
 0x41c   : > { %9983 = vrcp.f32 %v5240_v33  ;;  %v1566_v33 = vld [vmem:[%s13208_s0 + $0x48] sm:$0xff]  ;;  %9577 = vmatprep.subr.mxu1 %v13179_v23 }
 0x41d   : > { %9578 = vmatpush3.msra.mxu1 %v1576_v61  ;;  %9553 = vmatpush3.msra.mxu0 %v1566_v33 }
 0x41e   : > { %9579 = vmatprep.subr.mxu1 %v13179_v23  ;;  %9554 = vmatprep.subr.mxu0 %v13179_v23 }
 0x41f   : > { %9580 = vmatpush3.msra.mxu1 %v1575_v60 }
 0x420   : > { %9581 = vmatprep.subr.mxu1 %v13179_v23 }
 0x421   : > { %9582 = vmatpush3.msra.mxu1 %v1574_v53 }
 0x422   : > { %9583 = vmatprep.subr.mxu1 %v13179_v23 }
 0x429   : > { %v11934_v50 = vpop.eup %9983 }
 0x42a   : > { %v5397_v35 = vmul.f32 %v11934_v50, %v5394_v12  ;;  %v1565_v12 = vld [vmem:[%s13208_s0 + $0x40] sm:$0xff]  ;;  %v5401_v44 = vsub.f32 1.0, %v11934_v50  ;;  %v5400_v56 = vmul.f32 0.0, %v11934_v50 }
 0x42b   : > { %9555 = vmatpush3.msra.mxu0 %v1565_v12 }
 0x42c   : > { %v5398_v20 = vadd.f32 %v5397_v35, %v5318_v46  ;;  %v1564_v46 = vld [vmem:[%s13208_s0 + $0x38] sm:$0xff]  ;;  %9556 = vmatprep.subr.mxu0 %v13179_v23 }
 0x42d   : > { %9557 = vmatpush3.msra.mxu0 %v1564_v46 }
 0x42e   : > { %9985 = vtanh.f32 %v5398_v20  ;;  %v1573_v20 = vld [vmem:[%s13210_s2 + $0x18] sm:$0xff]  ;;  %9558 = vmatprep.subr.mxu0 %v13179_v23 }
 0x42f   : > { %9584 = vmatpush3.msra.mxu1 %v1573_v20  ;;  %9559 = vmatpush3.msra.mxu0 %v1563_v57 }
 0x430   : > { %9585 = vmatprep.subr.mxu1 %v13179_v23  ;;  %9560 = vmatprep.subr.mxu0 %v13179_v23 }
 0x431   : > { %9586 = vmatpush3.msra.mxu1 %v1572_v25 }
 0x432   : > { %9587 = vmatprep.subr.mxu1 %v13179_v23 }
 0x439   : > { %v5482_v19 = vpop.f32.mrf.mxu0  ;;  %v5564_v41 = vpop.f32.mrf.mxu1 }
 0x43a   : > { %v5483_v21 = vadd.f32 %v8954_v34, %v5482_v19  ;;  %v5565_v51 = vadd.f32 %v8956_v32, %v5564_v41  ;;  %v11965_v34 = vpop.permute.xlu0 %5657  ;;  %v1562_v41 = vld [vmem:[%s13208_s0 + $0x28] sm:$0xff]  ;;  %v1557_v32 = vld [vmem:[%s13208_s0] sm:$0xff] }
 0x43b   : > { %v9986_v49 = vpop.eup %9985  ;;  %v5484_v52 = vpop.f32.mrf.mxu0  ;;  %13211 = vst [vmem:[#allocation99_spill] sm:$0xff] %v11965_v34  ;;  %9561 = vmatpush3.msra.mxu0 %v1562_v41  ;;  %v1582_v41 = vld [vmem:[%s10656_s9 + $0x18] sm:$0xff] }
 0x43c   : > { %v5566_v3 = vpop.f32.mrf.mxu1  ;;  %v8955_v4 = vmul.f32 -1.442695, %v5483_v21  ;;  %5403 = vrot.lane.b32.xlu1 %v9986_v49, %s13207_s26  ;;  %v1561_v21 = vld [vmem:[%s13208_s0 + $0x20] sm:$0xff]  ;;  %v1571_v49 = vld [vmem:[%s13210_s2 + $0x8] sm:$0xff]  ;;  %9562 = vmatprep.subr.mxu0 %v13179_v23 }
 0x43d   : > { %v1560_v3 = vld [vmem:[%s13208_s0 + $0x18] sm:$0xff]  ;;  %9563 = vmatpush3.msra.mxu0 %v1561_v21  ;;  %9588 = vmatpush3.msra.mxu1 %v1571_v49 }
 0x43e   : > { %9987 = vpow2.f32 %v8955_v4  ;;  %v1570_v4 = vld [vmem:[%s13210_s2] sm:$0xff]  ;;  %9564 = vmatprep.subr.mxu0 %v13179_v23  ;;  %9589 = vmatprep.subr.mxu1 %v13179_v23  ;;  %v12002_v60 = vpop.permute.xlu0 %5663 }
 0x43f   : > { %9565 = vmatpush3.msra.mxu0 %v1560_v3  ;;  %9590 = vmatpush3.msra.mxu1 %v1570_v4  ;;  %13214 = vst [vmem:[#allocation101_spill] sm:$0xff] %v12002_v60  ;;  %v10147_v3 = vld [vmem:[%s10536_s30 + $0x18] sm:$0xff]  ;;  %v1580_v4 = vld [vmem:[%s10656_s9 + $0x8] sm:$0xff] }
 0x440   : > { %5685 = vperm.xlu1 %9868, %v5682_v40   ;;  %9566 = vmatprep.subr.mxu0 %v13179_v23 }
 0x441   : > { %9594 = vmatprep.subr.mxu1 %v13179_v23 }
 0x442   : > { %v5640_v47 = vpop.f32.mrf.mxu1 }
 0x443   : > { %v5641_v26 = vadd.f32 %v8957_v58, %v5640_v47  ;;  %v1559_v47 = vld [vmem:[%s13208_s0 + $0x10] sm:$0xff] }
 0x444   : > { %v9547_v7 = vpop.f32.mrf.mxu1  ;;  %9567 = vmatpush3.msra.mxu0 %v1559_v47  ;;  %v1579_v47 = vld [vmem:[%s10656_s9] sm:$0xff] }
 0x445   : > { %9568 = vmatprep.subr.mxu0 %v13179_v23 }
 0x44b   : > { %v9988_v6 = vpop.eup %9987 }
 0x44c   : > { %v5489_v29 = vadd.f32 1.0, %v9988_v6  ;;  %v1558_v6 = vld [vmem:[%s13208_s0 + $0x8] sm:$0xff] }
 0x44d   : > { %9569 = vmatpush3.msra.mxu0 %v1558_v6 }
 0x44e   : > { %9989 = vrcp.f32 %v5489_v29  ;;  %9570 = vmatprep.subr.mxu0 %v13179_v23 }
 0x44f   : > { %9571 = vmatpush3.msra.mxu0 %v1557_v32  ;;  %v10153_v32 = vld [vmem:[%s10536_s30 + $0x30] sm:$0xff] }
 0x450   : > { %9605 = vmatprep.subr.mxu0 %v13179_v23 }
 0x45b   : > { %v11941_v43 = vpop.eup %9989 }
 0x45c   : > { %v5644_v24 = vmul.f32 %v11941_v43, %v5641_v26  ;;  %v5648_v63 = vsub.f32 1.0, %v11941_v43  ;;  %v5647_v22 = vmul.f32 0.0, %v11941_v43 }
 0x45e   : > { %v5645_v38 = vadd.f32 %v5644_v24, %v5565_v51 }
 0x460   : > { %9991 = vtanh.f32 %v5645_v38 }
 0x46d   : > { %v9992_v9 = vpop.eup %9991 }
 0x46e   : > { %5650 = vrot.lane.b32.xlu1 %v9992_v9, %s13207_s26 }
 0x4ae   : > { %v5404_v35 = vpop.permute.xlu1 %5403 }
 0x4af   : > { %v5406_v55 = vmul.f32 %v5404_v35, %v5401_v44  ;;  %v5710_v35 = vpop.permute.xlu0 %5709 }
 0x4b1   : > { %v5407_v19 = vadd.f32 %v5406_v55, %v5400_v56 }
 0x4b3   : > { %v11973_v50 = vmul.f32 %v11965_v34, %v5407_v19 }
 0x4b5   : > { %5955 = vrot.lane.b32.xlu0 %v11973_v50, %s13212_s22  ;;  %v5668_v52 = vsel %vm5667_vm3, %v11973_v50, 0.0 }
 0x4b6   : > { %v5669_v40 = vrot.slane %v5668_v52, 4 }
 0x4b8   : > { %v5670_v7 = vadd.f32 %v5669_v40, %v5668_v52  ;;  %v1581_v52 = vld [vmem:[%s10656_s9 + $0x10] sm:$0xff] }
 0x4b9   : > { %v10148_v40 = vld [vmem:[%s10536_s30 + $0x10] sm:$0xff] }
 0x4ba   : > { %v5671_v58 = vrot.slane %v5670_v7, 2 }
 0x4bb   : > { %v5686_v29 = vpop.permute.xlu1 %5685 }
 0x4bc   : > { %9993 = vrcp.f32 %v5686_v29  ;;  %v5672_v26 = vadd.f32 %v5671_v58, %v5670_v7  ;;  %v10149_v7 = vld [vmem:[%s10536_s30 + $0x8] sm:$0xff]  ;;  %v10150_v29 = vld [vmem:[%s10536_s30] sm:$0xff]  ;;  %v10151_v58 = vld [vmem:[%s10536_s30 + $0x38] sm:$0xff] }
 0x4bd   : > { %9995 = vrcp.f32 %v5710_v35  ;;  %v10164_v35 = vld [vmem:[%s10556_s27 + $0x8] sm:$0xff] }
 0x4be   : > { %v5673_v51 = vrot.slane %v5672_v26, 1 }
 0x4c0   : > { %v5674_v24 = vadd.f32 %v5673_v51, %v5672_v26  ;;  %v10152_v26 = vld [vmem:[%s13107_s12 + $0x18] sm:$0xff]  ;;  %v10154_v51 = vld [vmem:[%s13107_s12 + $0x10] sm:$0xff] }
 0x4c9   : > { %v11996_v38 = vpop.eup %9993 }
 0x4ca   : > { %13213 = vst [vmem:[#allocation100_spill] sm:$0xff] %v11996_v38  ;;  %v5689_v9 = vmul.f32 %v11996_v38, %v5674_v24  ;;  %v12011_v57 = vpop.eup %9995  ;;  %v10155_v24 = vld [vmem:[%s10536_s30 + $0x28] sm:$0xff] }
 0x4cb   : > { %13216 = vst [vmem:[#allocation103_spill] sm:$0xff] %v12011_v57 }
 0x4cc   : > { %5715 = vrot.lane.b32.xlu1 %v5689_v9, %s13212_s22  ;;  %v10156_v9 = vld [vmem:[%s13107_s12 + $0x8] sm:$0xff] }
 0x4e0   : > { %v5651_v59 = vpop.permute.xlu1 %5650 }
 0x4e1   : > { %v5653_v33 = vmul.f32 %v5651_v59, %v5648_v63  ;;  %v10157_v63 = vld [vmem:[%s10536_s30 + $0x20] sm:$0xff] }
 0x4e2   : > { %v10158_v59 = vld [vmem:[%s13107_s12] sm:$0xff] }
 0x4e3   : > { %v5654_v61 = vadd.f32 %v5653_v33, %v5647_v22  ;;  %v10159_v22 = vld [vmem:[%s13107_s12 + $0x38] sm:$0xff] }
 0x4e4   : > { %v10160_v33 = vld [vmem:[%s10556_s27 + $0x18] sm:$0xff] }
 0x4e5   : > { %v12005_v12 = vmul.f32 %v12002_v60, %v5654_v61  ;;  %v10161_v61 = vld [vmem:[%s13107_s12 + $0x30] sm:$0xff] }
 0x4e6   : > { %v13226_v60 = vld [vmem:[#allocation62_spill] sm:$0xff] }
 0x4e7   : > { %13215 = vst [vmem:[#allocation102_spill] sm:$0xff] %v12005_v12  ;;  %6436 = vrot.lane.b32.xlu1 %v12005_v12, %s13212_s22  ;;  %v5691_v53 = vsel %vm5690_vm15, %v12005_v12, 0.0 }
 0x4e8   : > { %v5692_v44 = vrot.slane %v5691_v53, 4 }
 0x4ea   : > { %v5693_v46 = vadd.f32 %v5692_v44, %v5691_v53  ;;  %v10162_v53 = vld [vmem:[%s10556_s27 + $0x10] sm:$0xff]  ;;  %v10163_v44 = vld [vmem:[%s13107_s12 + $0x28] sm:$0xff] }
 0x4ec   : > { %v5694_v43 = vrot.slane %v5693_v46, 2 }
 0x4ee   : > { %v5695_v20 = vadd.f32 %v5694_v43, %v5693_v46  ;;  %v10165_v43 = vld [vmem:[%s13107_s12 + $0x20] sm:$0xff]  ;;  %s13220_s12 = smov %s13219_s28 }
 0x4f0   : > { %v5696_v56 = vrot.slane %v5695_v20, 1 }
 0x4f2   : > { %v5697_v55 = vadd.f32 %v5696_v56, %v5695_v20  ;;  %v10166_v20 = vld [vmem:[%s10556_s27] sm:$0xff]  ;;  %v10167_v56 = vld [vmem:[%s10556_s27 + $0x38] sm:$0xff] }
 0x4f4   : > { %v5713_v25 = vmul.f32 %v12011_v57, %v5697_v55  ;;  %v10168_v55 = vld [vmem:[%s10566_s17 + $0x18] sm:$0xff] }
 0x527   : > { %v12034_v6 = vpop.permute.xlu0 %5955 }
 0x528   : > { %13217 = vst [vmem:[#allocation104_spill] sm:$0xff] %v12034_v6 }
 0x53e   : > { %v5716_v19 = vpop.permute.xlu1 %5715 }
 0x53f   : > { %v5718_v21 = vsel %vm1584_vm1, %v5716_v19, %v5713_v25  ;;  %v10169_v25 = vld [vmem:[%s10556_s27 + $0x30] sm:$0xff] }
 0x540   : > { %v5719_v49 = vsel %vm5133_vm12, %v5718_v21, 0.0  ;;  %9592 = vmatmul.mubr.msk.f32.vlgmr.msra.gmra.mxu1 %vm5133_vm12, %v5718_v21  ;;  %v10170_v19 = vld [vmem:[%s10566_s17 + $0x10] sm:$0xff]  ;;  %v10172_v21 = vld [vmem:[%s10566_s17 + $0x8] sm:$0xff] }
 0x541   : > { %9595 = vmatpush3.msra.mxu1 %v1582_v41  ;;  %9573 = vmatmul.mubr.msk.f32.vlgmr.msra.gmra.mxu0 %vm5720_vm14, %v5719_v49  ;;  %v10171_v41 = vld [vmem:[%s10556_s27 + $0x28] sm:$0xff]  ;;  %v10173_v49 = vld [vmem:[%s10556_s27 + $0x20] sm:$0xff] }
 0x542   : > { %9596 = vmatprep.subr.mxu1 %v13179_v23  ;;  %9606 = vmatpush3.msra.mxu0 %v10147_v3  ;;  %v10175_v3 = vld [vmem:[%s10566_s17 + $0x38] sm:$0xff] }
 0x543   : > { %9597 = vmatpush3.msra.mxu1 %v1581_v52  ;;  %9607 = vmatprep.subr.mxu0 %v13179_v23  ;;  %v10174_v52 = vld [vmem:[%s10566_s17] sm:$0xff] }
 0x544   : > { %9598 = vmatprep.subr.mxu1 %v13179_v23  ;;  %9608 = vmatpush3.msra.mxu0 %v10148_v40  ;;  %v10177_v40 = vld [vmem:[%s13175_s18 + $0x78] sm:$0xff] }
 0x545   : > { %9599 = vmatpush3.msra.mxu1 %v1580_v4  ;;  %9609 = vmatprep.subr.mxu0 %v13179_v23  ;;  %v10176_v4 = vld [vmem:[%s10566_s17 + $0x30] sm:$0xff] }
 0x546   : > { %9600 = vmatprep.subr.mxu1 %v13179_v23  ;;  %9610 = vmatpush3.msra.mxu0 %v10149_v7  ;;  %v10179_v7 = vld [vmem:[%s13175_s18 + $0x70] sm:$0xff] }
 0x547   : > { %9601 = vmatpush3.msra.mxu1 %v1579_v47  ;;  %9602 = vmatprep.mubr.msk.f32.mxu1 %vm10456_vm0, %v13179_v23  ;;  %v10178_v47 = vld [vmem:[%s10566_s17 + $0x28] sm:$0xff] }
 0x548   : > { %9611 = vmatprep.subr.mxu0 %v13179_v23  ;;  %9603 = vmatmul.mubr.f32.vlgmr.msra.gmra.mxu1 %v13179_v23 }
 0x549   : > { %9612 = vmatpush3.msra.mxu0 %v10150_v29  ;;  %9613 = vmatprep.mubr.msk.f32.mxu0 %vm10456_vm0, %v13179_v23  ;;  %v10180_v29 = vld [vmem:[%s10566_s17 + $0x20] sm:$0xff] }
 0x54a   : > { %9616 = vmatprep.subr.mxu1 %v13179_v23  ;;  %9614 = vmatmul.mubr.msk.f32.vlgmr.msra.gmra.mxu0 %vm1584_vm1, %v12034_v6 }
 0x54b   : > { %9617 = vmatpush3.msra.mxu1 %v10151_v58  ;;  %9627 = vmatprep.subr.mxu0 %v13179_v23  ;;  %v10181_v58 = vld [vmem:[%s13175_s18 + $0x68] sm:$0xff] }
 0x54c   : > { %9618 = vmatprep.subr.mxu1 %v13179_v23  ;;  %9628 = vmatpush3.msra.mxu0 %v10152_v26  ;;  %v10182_v26 = vld [vmem:[%s13176_s14 + $0x78] sm:$0xff] }
 0x54d   : > { %9619 = vmatpush3.msra.mxu1 %v10153_v32  ;;  %9629 = vmatprep.subr.mxu0 %v13179_v23  ;;  %v10183_v32 = vld [vmem:[%s13175_s18 + $0x60] sm:$0xff] }
 0x54e   : > { %9620 = vmatprep.subr.mxu1 %v13179_v23  ;;  %9630 = vmatpush3.msra.mxu0 %v10154_v51  ;;  %v10184_v51 = vld [vmem:[%s13176_s14 + $0x70] sm:$0xff] }
 0x54f   : > { %9621 = vmatpush3.msra.mxu1 %v10155_v24  ;;  %9631 = vmatprep.subr.mxu0 %v13179_v23  ;;  %v10185_v24 = vld [vmem:[%s13175_s18 + $0x58] sm:$0xff] }
 0x550   : > { %9622 = vmatprep.subr.mxu1 %v13179_v23  ;;  %9632 = vmatpush3.msra.mxu0 %v10156_v9  ;;  %v10186_v9 = vld [vmem:[%s13176_s14 + $0x68] sm:$0xff] }
 0x551   : > { %9623 = vmatpush3.msra.mxu1 %v10157_v63  ;;  %9624 = vmatprep.mubr.msk.f32.mxu1 %vm10456_vm0, %v13179_v23  ;;  %v10187_v63 = vld [vmem:[%s13175_s18 + $0x50] sm:$0xff] }
 0x552   : > { %9633 = vmatprep.subr.mxu0 %v13179_v23  ;;  %9625 = vmatmul.mubr.msk.f32.vlgmr.msra.gmra.mxu1 %vm1584_vm1, %v12034_v6 }
 0x553   : > { %9634 = vmatpush3.msra.mxu0 %v10158_v59  ;;  %9635 = vmatprep.mubr.msk.f32.mxu0 %vm10456_vm0, %v13179_v23  ;;  %v10188_v59 = vld [vmem:[%s13176_s14 + $0x60] sm:$0xff] }
 0x554   : > { %9638 = vmatprep.subr.mxu1 %v13179_v23  ;;  %9636 = vmatmul.mubr.msk.f32.vlgmr.msra.gmra.mxu0 %vm1584_vm1, %v12034_v6 }
 0x555   : > { %9639 = vmatpush3.msra.mxu1 %v10159_v22  ;;  %9649 = vmatprep.subr.mxu0 %v13179_v23  ;;  %v10189_v22 = vld [vmem:[%s13175_s18 + $0x48] sm:$0xff] }
 0x556   : > { %9640 = vmatprep.subr.mxu1 %v13179_v23  ;;  %9650 = vmatpush3.msra.mxu0 %v10160_v33  ;;  %v10190_v33 = vld [vmem:[%s13176_s14 + $0x58] sm:$0xff] }
 0x557   : > { %9641 = vmatpush3.msra.mxu1 %v10161_v61  ;;  %9651 = vmatprep.subr.mxu0 %v13179_v23  ;;  %v10191_v61 = vld [vmem:[%s13175_s18 + $0x40] sm:$0xff] }
 0x558   : > { %9642 = vmatprep.subr.mxu1 %v13179_v23  ;;  %9652 = vmatpush3.msra.mxu0 %v10162_v53  ;;  %v10192_v53 = vld [vmem:[%s13176_s14 + $0x50] sm:$0xff] }
 0x559   : > { %9643 = vmatpush3.msra.mxu1 %v10163_v44  ;;  %9653 = vmatprep.subr.mxu0 %v13179_v23  ;;  %v12076_v46 = vpop.permute.xlu1 %6436  ;;  %v10193_v44 = vld [vmem:[%s13175_s18 + $0x38] sm:$0xff] }
 0x55a   : > { %13218 = vst [vmem:[#allocation105_spill] sm:$0xff] %v12076_v46  ;;  %9644 = vmatprep.subr.mxu1 %v13179_v23  ;;  %9654 = vmatpush3.msra.mxu0 %v10164_v35  ;;  %v10194_v35 = vld [vmem:[%s13176_s14 + $0x48] sm:$0xff] }
 0x55b   : > { %9645 = vmatpush3.msra.mxu1 %v10165_v43  ;;  %9646 = vmatprep.mubr.msk.f32.mxu1 %vm10456_vm0, %v13179_v23  ;;  %v10195_v43 = vld [vmem:[%s13175_s18 + $0x30] sm:$0xff] }
 0x55c   : > { %9655 = vmatprep.subr.mxu0 %v13179_v23  ;;  %9647 = vmatmul.mubr.msk.f32.vlgmr.msra.gmra.mxu1 %vm1584_vm1, %v12076_v46 }
 0x55d   : > { %9656 = vmatpush3.msra.mxu0 %v10166_v20  ;;  %9657 = vmatprep.mubr.msk.f32.mxu0 %vm10456_vm0, %v13179_v23  ;;  %v10196_v20 = vld [vmem:[%s13176_s14 + $0x40] sm:$0xff] }
 0x55e   : > { %9660 = vmatprep.subr.mxu1 %v13179_v23  ;;  %9658 = vmatmul.mubr.msk.f32.vlgmr.msra.gmra.mxu0 %vm1584_vm1, %v12076_v46 }
 0x55f   : > { %9661 = vmatpush3.msra.mxu1 %v10167_v56  ;;  %9671 = vmatprep.subr.mxu0 %v13179_v23  ;;  %v10197_v56 = vld [vmem:[%s13175_s18 + $0x28] sm:$0xff] }
 0x560   : > { %9662 = vmatprep.subr.mxu1 %v13179_v23  ;;  %9672 = vmatpush3.msra.mxu0 %v10168_v55  ;;  %v10198_v55 = vld [vmem:[%s13176_s14 + $0x38] sm:$0xff] }
 0x561   : > { %9663 = vmatpush3.msra.mxu1 %v10169_v25  ;;  %9673 = vmatprep.subr.mxu0 %v13179_v23  ;;  %v10199_v25 = vld [vmem:[%s13175_s18 + $0x20] sm:$0xff] }
 0x562   : > { %9664 = vmatprep.subr.mxu1 %v13179_v23  ;;  %9674 = vmatpush3.msra.mxu0 %v10170_v19  ;;  %v10200_v19 = vld [vmem:[%s13176_s14 + $0x30] sm:$0xff] }
 0x563   : > { %9665 = vmatpush3.msra.mxu1 %v10171_v41  ;;  %9675 = vmatprep.subr.mxu0 %v13179_v23  ;;  %v10201_v41 = vld [vmem:[%s13175_s18 + $0x18] sm:$0xff] }
 0x564   : > { %9666 = vmatprep.subr.mxu1 %v13179_v23  ;;  %9676 = vmatpush3.msra.mxu0 %v10172_v21  ;;  %v10202_v21 = vld [vmem:[%s13176_s14 + $0x28] sm:$0xff] }
 0x565   : > { %9667 = vmatpush3.msra.mxu1 %v10173_v49  ;;  %9668 = vmatprep.mubr.msk.f32.mxu1 %vm10456_vm0, %v13179_v23  ;;  %v10203_v49 = vld [vmem:[%s13175_s18 + $0x10] sm:$0xff] }
 0x566   : > { %9677 = vmatprep.subr.mxu0 %v13179_v23  ;;  %9669 = vmatmul.mubr.msk.f32.vlgmr.msra.gmra.mxu1 %vm1584_vm1, %v12034_v6  ;;  %v10219_v6 = vld [vmem:[%s10551_s20] ss:$0 sm:$0xff] }
 0x567   : > { %9678 = vmatpush3.msra.mxu0 %v10174_v52  ;;  %9679 = vmatprep.mubr.msk.f32.mxu0 %vm10456_vm0, %v13179_v23  ;;  %v10204_v52 = vld [vmem:[%s13176_s14 + $0x20] sm:$0xff] }
 0x568   : > { %9682 = vmatprep.subr.mxu1 %v13179_v23  ;;  %9680 = vmatmul.mubr.msk.f32.vlgmr.msra.gmra.mxu0 %vm1584_vm1, %v12076_v46 }
 0x569   : > { %9683 = vmatpush3.msra.mxu1 %v10175_v3  ;;  %9690 = vmatprep.mubr.msk.f32.mxu1 %vm10456_vm0, %v13179_v23  ;;  %v10205_v3 = vld [vmem:[%s13175_s18 + $0x8] sm:$0xff] }
 0x56a   : > { %9684 = vmatprep.subr.mxu1 %v13179_v23  ;;  %7845 = vmatprep.subr.mxu0 %v13179_v23 }
 0x56b   : > { %9685 = vmatpush3.msra.mxu1 %v10176_v4  ;;  %7846 = vmatpush1.msra.mxu0 %v10177_v40  ;;  %v10206_v4 = vld [vmem:[%s13176_s14 + $0x18] sm:$0xff]  ;;  %v10207_v40 = vld [vmem:[%s13175_s18] sm:$0xff] }
 0x56c   : > { %9686 = vmatprep.subr.mxu1 %v13179_v23  ;;  %7847 = vmatprep.subr.mxu0 %v13179_v23 }
 0x56d   : > { %9687 = vmatpush3.msra.mxu1 %v10178_v47  ;;  %7848 = vmatpush1.msra.mxu0 %v10179_v7  ;;  %v10208_v47 = vld [vmem:[%s13176_s14 + $0x10] sm:$0xff]  ;;  %v10209_v7 = vld [vmem:[%s13175_s18 + $0xa8] sm:$0xff] }
 0x56e   : > { %9688 = vmatprep.subr.mxu1 %v13179_v23  ;;  %7849 = vmatprep.subr.mxu0 %v13179_v23 }
 0x56f   : > { %9689 = vmatpush3.msra.mxu1 %v10180_v29  ;;  %7850 = vmatpush1.msra.mxu0 %v10181_v58  ;;  %v10210_v29 = vld [vmem:[%s13176_s14 + $0x8] sm:$0xff]  ;;  %v10211_v58 = vld [vmem:[%s13175_s18 + $0xa0] sm:$0xff] }
 0x570   : > { %9691 = vmatmul.mubr.msk.f32.vlgmr.msra.gmra.mxu1 %vm1584_vm1, %v12076_v46  ;;  %7923 = vmatprep.subr.mxu1 %v13179_v23  ;;  %v13227_v46 = vld [vmem:[#allocation61_spill] sm:$0xff] }
 0x571   : > { %7924 = vmatpush1.msra.mxu1 %v10182_v26  ;;  %7851 = vmatprep.subr.mxu0 %v13179_v23  ;;  %v10212_v26 = vld [vmem:[%s13176_s14] sm:$0xff] }
 0x572   : > { %7925 = vmatprep.subr.mxu1 %v13179_v23  ;;  %7852 = vmatpush1.msra.mxu0 %v10183_v32  ;;  %v10213_v32 = vld [vmem:[%s13175_s18 + $0x98] sm:$0xff] }
 0x573   : > { %7926 = vmatpush1.msra.mxu1 %v10184_v51  ;;  %7853 = vmatprep.subr.mxu0 %v13179_v23  ;;  %v10214_v51 = vld [vmem:[%s13176_s14 + $0x88] sm:$0xff] }
 0x574   : > { %7927 = vmatprep.subr.mxu1 %v13179_v23  ;;  %7854 = vmatpush1.msra.mxu0 %v10185_v24  ;;  %v10215_v24 = vld [vmem:[%s13175_s18 + $0x90] sm:$0xff] }
 0x575   : > { %7928 = vmatpush1.msra.mxu1 %v10186_v9  ;;  %7855 = vmatprep.subr.mxu0 %v13179_v23  ;;  %v10216_v9 = vld [vmem:[%s13176_s14 + $0x80] sm:$0xff] }
 0x576   : > { %7929 = vmatprep.subr.mxu1 %v13179_v23  ;;  %7856 = vmatpush1.msra.mxu0 %v10187_v63  ;;  %v10217_v63 = vld [vmem:[%s13175_s18 + $0x88] sm:$0xff] }
 0x577   : > { %7930 = vmatpush1.msra.mxu1 %v10188_v59  ;;  %7857 = vmatprep.subr.mxu0 %v13179_v23  ;;  %v10218_v59 = vld [vmem:[%s13175_s18 + $0x80] sm:$0xff] }
 0x578   : > { %7931 = vmatprep.subr.mxu1 %v13179_v23  ;;  %7858 = vmatpush1.msra.mxu0 %v10189_v22  ;;  %v1569_v22 = vld [vmem:[%s13219_s28] sm:$0x1]  ;;  %s13222_s28 = sld [smem:[#allocation39_spill]] }
 0x579   : > { %7932 = vmatpush1.msra.mxu1 %v10190_v33  ;;  %7859 = vmatprep.subr.mxu0 %v13179_v23 }
 0x57a   : > { %7933 = vmatprep.subr.mxu1 %v13179_v23  ;;  %7860 = vmatpush1.msra.mxu0 %v10191_v61 }
 0x57b   : > { %7934 = vmatpush1.msra.mxu1 %v10192_v53  ;;  %7861 = vmatprep.subr.mxu0 %v13179_v23 }
 0x57c   : > { %7935 = vmatprep.subr.mxu1 %v13179_v23  ;;  %7862 = vmatpush1.msra.mxu0 %v10193_v44 }
 0x57d   : > { %7936 = vmatpush1.msra.mxu1 %v10194_v35  ;;  %7863 = vmatprep.subr.mxu0 %v13179_v23 }
 0x57e   : > { %7937 = vmatprep.subr.mxu1 %v13179_v23  ;;  %7864 = vmatpush1.msra.mxu0 %v10195_v43  ;;  %s13223_s14 = smov %s13222_s28 }
 0x57f   : > { %7938 = vmatpush1.msra.mxu1 %v10196_v20  ;;  %7865 = vmatprep.subr.mxu0 %v13179_v23 }
 0x580   : > { %7939 = vmatprep.subr.mxu1 %v13179_v23  ;;  %7866 = vmatpush1.msra.mxu0 %v10197_v56 }
 0x581   : > { %7940 = vmatpush1.msra.mxu1 %v10198_v55  ;;  %7867 = vmatprep.subr.mxu0 %v13179_v23 }
 0x582   : > { %7941 = vmatprep.subr.mxu1 %v13179_v23  ;;  %7868 = vmatpush1.msra.mxu0 %v10199_v25 }
 0x583   : > { %7942 = vmatpush1.msra.mxu1 %v10200_v19  ;;  %7869 = vmatprep.subr.mxu0 %v13179_v23 }
 0x584   : > { %7943 = vmatprep.subr.mxu1 %v13179_v23  ;;  %7870 = vmatpush1.msra.mxu0 %v10201_v41 }
 0x585   : > { %7944 = vmatpush1.msra.mxu1 %v10202_v21  ;;  %7871 = vmatprep.subr.mxu0 %v13179_v23 }
 0x586   : > { %7945 = vmatprep.subr.mxu1 %v13179_v23  ;;  %7872 = vmatpush1.msra.mxu0 %v10203_v49 }
 0x587   : > { %7946 = vmatpush1.msra.mxu1 %v10204_v52  ;;  %7873 = vmatprep.subr.mxu0 %v13179_v23 }
 0x588   : > { %7947 = vmatprep.subr.mxu1 %v13179_v23  ;;  %7874 = vmatpush1.msra.mxu0 %v10205_v3 }
 0x589   : > { %7948 = vmatpush1.msra.mxu1 %v10206_v4  ;;  %7875 = vmatprep.subr.mxu0 %v13179_v23 }
 0x58a   : > { %7949 = vmatprep.subr.mxu1 %v13179_v23  ;;  %7876 = vmatpush1.msra.mxu0 %v10207_v40 }
 0x58b   : > { %7950 = vmatpush1.msra.mxu1 %v10208_v47  ;;  %7897 = vmatprep.subr.mxu0 %v13179_v23 }
 0x58c   : > { %7951 = vmatprep.subr.mxu1 %v13179_v23  ;;  %7898 = vmatpush2.msra.mxu0 %v10209_v7  ;;  %v13221_v7 = vld [vmem:[#allocation51_spill] sm:$0xff] }
 0x58d   : > { %7952 = vmatpush1.msra.mxu1 %v10210_v29  ;;  %7899 = vmatprep.subr.mxu0 %v13179_v23 }
 0x58e   : > { %7953 = vmatprep.subr.mxu1 %v13179_v23  ;;  %7900 = vmatpush2.msra.mxu0 %v10211_v58 }
 0x58f   : > { %7954 = vmatpush1.msra.mxu1 %v10212_v26  ;;  %7901 = vmatprep.subr.mxu0 %v13179_v23 }
 0x590   : > { %7983 = vmatprep.subr.mxu1 %v13179_v23  ;;  %7902 = vmatpush2.msra.mxu0 %v10213_v32 }
 0x591   : > { %7984 = vmatpush2.msra.mxu1 %v10214_v51  ;;  %7903 = vmatprep.subr.mxu0 %v13179_v23 }
 0x592   : > { %7985 = vmatprep.subr.mxu1 %v13179_v23  ;;  %7904 = vmatpush2.msra.mxu0 %v10215_v24 }
 0x593   : > { %7986 = vmatpush2.msra.mxu1 %v10216_v9  ;;  %7905 = vmatprep.subr.mxu0 %v13179_v23 }
 0x594   : > { %9693 = vmatprep.subr.mxu1 %v13179_v23  ;;  %7906 = vmatpush2.msra.mxu0 %v10217_v63 }
 0x595   : > { %7907 = vmatprep.subr.mxu0 %v13179_v23 }
 0x596   : > { %7908 = vmatpush2.msra.mxu0 %v10218_v59 }
 0x597   : > { %8081 = vmatprep.subr.mxu0 %v13179_v23 }
 0x600   : > { %v12210_v33 = vpop.f32.mrf.mxu1 }
 0x601   : > { %v5790_v61 = vpop.f32.mrf.mxu0 }
 0x602   : > { %v5791_v53 = vadd.f32 %v5790_v61, %v1569_v22  ;;  %v9593_v44 = vpop.f32.mrf.mxu1 }
 0x603   : > { %v9574_v35 = vpop.f32.mrf.mxu0 }
 0x604   : > { %v8959_v43 = vmul.f32 -1.442695, %v5791_v53 }
 0x606   : > { %9997 = vpow2.f32 %v8959_v43 }
 0x608   : > { %v5939_v20 = vpop.f32.mrf.mxu1 }
 0x60a   : > { %v6025_v56 = vpop.f32.mrf.mxu0  ;;  %v9604_v55 = vpop.f32.mrf.mxu1 }
 0x60b   : > { %v6100_v25 = vcombine.high %v6025_v56, %v6025_v56  ;;  %v6107_v19 = vrot.slane %v6025_v56, %v11125_v0 }
 0x60c   : > { %v9615_v41 = vpop.f32.mrf.mxu0 }
 0x60d   : > { %v6114_v21 = vrot.slane %v6100_v25, %v11125_v0  ;;  %v6115_v49 = vcombine.high %v6107_v19, %v6107_v19  ;;  %v6123_v52 = vrot.slane %v6107_v19, %v11125_v0 }
 0x60f   : > { %v6116_v3 = vcombine.high %v6114_v21, %v6114_v21  ;;  %v6130_v4 = vrot.slane %v6114_v21, %v11125_v0  ;;  %v6137_v40 = vrot.slane %v6115_v49, %v11125_v0  ;;  %v6145_v47 = vcombine.high %v6123_v52, %v6123_v52 }
 0x610   : > { %v6152_v29 = vrot.slane %v6123_v52, %v13221_v7 }
 0x611   : > { %v6144_v58 = vrot.slane %v6116_v3, %v11125_v0  ;;  %v6146_v26 = vcombine.high %v6130_v4, %v6130_v4  ;;  %v6147_v32 = vcombine.high %v6137_v40, %v6137_v40  ;;  %v6156_v51 = vrot.slane %v6137_v40, %v13221_v7 }
 0x612   : > { %v6160_v24 = vrot.slane %v6145_v47, %v13221_v7  ;;  %v6168_v9 = vrot.slane %v6130_v4, %v13221_v7  ;;  %v6095_v63 = vpop.f32.mrf.mxu1 }
 0x613   : > { %v9998_v59 = vpop.eup %9997  ;;  %v6148_v22 = vcombine.high %v6144_v58, %v6144_v58  ;;  %v6164_v61 = vrot.slane %v6147_v32, %v13221_v7  ;;  %v6172_v53 = vrot.slane %v6144_v58, %v13221_v7  ;;  %v6176_v44 = vrot.slane %v6146_v26, %v13221_v7 }
 0x614   : > { %v5797_v35 = vadd.f32 1.0, %v9998_v59  ;;  %v12225_v43 = vadd.f32 %v6152_v29, %v6095_v63  ;;  %v12227_v56 = vadd.f32 %v6156_v51, %v6095_v63  ;;  %v12229_v55 = vadd.f32 %v6160_v24, %v6095_v63  ;;  %v6431_v25 = vpop.f32.mrf.mxu0  ;;  %v9626_v19 = vpop.f32.mrf.mxu1  ;;  %v1583_v51 = vld [vmem:[%s13105_s5] sm:$0x1] }
 0x615   : > { %v6180_v41 = vrot.slane %v6148_v22, %v13221_v7  ;;  %v12232_v21 = vadd.f32 %v6164_v61, %v6095_v63  ;;  %v12234_v49 = vadd.f32 %v6168_v9, %v6095_v63  ;;  %v12236_v52 = vadd.f32 %v6172_v53, %v6095_v63  ;;  %v1578_v22 = vld [vmem:[%s13222_s28] sm:$0x1]  ;;  %s10464_s28 = smov 112  }
 0x616   : > { %9999 = vrcp.f32 %v5797_v35  ;;  %v12238_v3 = vadd.f32 %v6176_v44, %v6095_v63  ;;  %v9637_v4 = vpop.f32.mrf.mxu0  ;;  %v6518_v29 = vrot.slane %v6431_v25, %v11125_v0  ;;  %v6511_v58 = vcombine.high %v6431_v25, %v6431_v25 }
 0x617   : > { %v12240_v40 = vadd.f32 %v6180_v41, %v6095_v63  ;;  %v5940_v44 = vadd.f32 %v5939_v20, %v1583_v51  ;;  %v5870_v41 = vadd.f32 %v12210_v33, %v1578_v22  ;;  %v13225_v22 = vld [vmem:[#allocation59_spill] sm:$0xff] }
 0x618   : > { %v6526_v24 = vcombine.high %v6518_v29, %v6518_v29  ;;  %v6534_v9 = vrot.slane %v6518_v29, %v11125_v0  ;;  %v6525_v35 = vrot.slane %v6511_v58, %v11125_v0 }
 0x61a   : > { %v6548_v61 = vrot.slane %v6526_v24, %v11125_v0  ;;  %v6556_v53 = vcombine.high %v6534_v9, %v6534_v9  ;;  %v6563_v63 = vrot.slane %v6534_v9, %v13221_v7  ;;  %v6527_v20 = vcombine.high %v6525_v35, %v6525_v35 }
 0x61b   : > { %v6541_v51 = vrot.slane %v6525_v35, %v11125_v0 }
 0x61c   : > { %v12242_v47 = vpop.f32.mrf.mxu1  ;;  %v6567_v25 = vrot.slane %v6548_v61, %v13221_v7  ;;  %v6571_v29 = vrot.slane %v6556_v53, %v13221_v7 }
 0x61d   : > { %v6579_v38 = vrot.slane %v6541_v51, %v13221_v7 }
 0x61e   : > { %v12245_v26 = vpop.f32.mrf.mxu0  ;;  %v9648_v32 = vpop.f32.mrf.mxu1  ;;  %v6601_v24 = vadd.f32 %v6567_v25, %v12242_v47  ;;  %v6602_v33 = vadd.f32 %v6571_v29, %v12242_v47  ;;  %v6555_v25 = vrot.slane %v6527_v20, %v11125_v0 }
 0x61f   : > { %v6558_v32 = vcombine.high %v6548_v61, %v6548_v61 }
 0x620   : > { %v9659_v59 = vpop.f32.mrf.mxu0  ;;  %v6610_v35 = vadd.f32 %v6602_v33, %v13227_v46  ;;  %v6559_v29 = vcombine.high %v6555_v25, %v6555_v25  ;;  %v7057_v46 = vrot.slane %v12245_v26, %v11125_v0 }
 0x621   : > { %v6600_v59 = vadd.f32 %v6563_v63, %v12242_v47  ;;  %v6575_v9 = vrot.slane %v6558_v32, %v13221_v7  ;;  %v6609_v63 = vadd.f32 %v6601_v24, %v13226_v60  ;;  %v6604_v60 = vadd.f32 %v6579_v38, %v12242_v47  ;;  %v13228_v24 = vld [vmem:[#allocation64_spill] sm:$0xff] }
 0x623   : > { %v12253_v19 = vpop.eup %9999  ;;  %v6608_v61 = vadd.f32 %v6600_v59, %v13225_v22  ;;  %v6603_v34 = vadd.f32 %v6575_v9, %v12242_v47  ;;  %v6617_v23 = vadd.f32 %v10219_v6, %v6609_v63  ;;  %v6583_v59 = vrot.slane %v6555_v25, %v13221_v7  ;;  %v13229_v25 = vld [vmem:[#allocation63_spill] sm:$0xff] }
 0x624   : > { %13224 = vst [vmem:[#allocation106_spill] sm:$0xff] %v12253_v19  ;;  %v5943_v4 = vmul.f32 %v12253_v19, %v5940_v44  ;;  %v6591_v9 = vrot.slane %v6559_v29, %v13221_v7  ;;  %v13231_v29 = vld [vmem:[#allocation65_spill] sm:$0xff] }
 0x625   : > { %v6616_v32 = vadd.f32 %v10219_v6, %v6608_v61  ;;  %v6611_v20 = vadd.f32 %v6603_v34, %v13228_v24  ;;  %v6605_v61 = vadd.f32 %v6583_v59, %v12242_v47  ;;  %v7050_v59 = vcombine.high %v12245_v26, %v12245_v26 }
 0x626   : > { %v12261_v57 = vadd.f32 %v5943_v4, %v5870_v41  ;;  %v12263_v58 = vpop.f32.mrf.mxu1  ;;  %v6557_v4 = vcombine.high %v6541_v51, %v6541_v51  ;;  %v8974_v51 = vmul.f32 -1.442695, %v6617_v23  ;;  %v6607_v24 = vadd.f32 %v6591_v9, %v12242_v47 }
 0x627   : > { %v6619_v38 = vadd.f32 %v10219_v6, %v6611_v20  ;;  %v6613_v8 = vadd.f32 %v6605_v61, %v13230_v31  ;;  %v7064_v61 = vrot.slane %v7050_v59, %v11125_v0 }
 0x628   : > { %v7426_v44 = vpop.f32.mrf.mxu0  ;;  %v9670_v53 = vpop.f32.mrf.mxu1  ;;  %v6587_v22 = vrot.slane %v6557_v4, %v13221_v7  ;;  %v6612_v4 = vadd.f32 %v6604_v60, %v13229_v25 }
 0x629   : > { %v6618_v53 = vadd.f32 %v10219_v6, %v6610_v35  ;;  %v7065_v35 = vcombine.high %v7057_v46, %v7057_v46  ;;  %v7501_v23 = vcombine.high %v7426_v44, %v7426_v44  ;;  %v8976_v60 = vmul.f32 -1.442695, %v6619_v38 }
 0x62a   : > { %v9681_v41 = vpop.f32.mrf.mxu0  ;;  %v6606_v63 = vadd.f32 %v6587_v22, %v12242_v47  ;;  %v6620_v22 = vadd.f32 %v10219_v6, %v6612_v4  ;;  %v7508_v20 = vrot.slane %v7426_v44, %v11125_v0  ;;  %v6621_v9 = vadd.f32 %v10219_v6, %v6613_v8 }
 0x62b   : > { %v8973_v41 = vmul.f32 -1.442695, %v6616_v32  ;;  %v8975_v34 = vmul.f32 -1.442695, %v6618_v53  ;;  %v7073_v32 = vrot.slane %v7057_v46, %v11125_v0  ;;  %v7087_v53 = vrot.slane %v7065_v35, %v11125_v0  ;;  %v13232_v46 = vld [vmem:[#allocation68_spill] sm:$0xff] }
 0x62c   : > { %v6615_v47 = vadd.f32 %v6607_v24, %v13232_v46  ;;  %v7516_v26 = vcombine.high %v7508_v20, %v7508_v20  ;;  %v7524_v35 = vrot.slane %v7508_v20, %v11125_v0  ;;  %v7080_v24 = vrot.slane %v7064_v61, %v11125_v0 }
 0x62d   : > { %10001 = vpow2.f32 %v8973_v41  ;;  %v7100_v41 = vrot.slane %v7073_v32, %v13221_v7  ;;  %v7095_v25 = vcombine.high %v7073_v32, %v7073_v32  ;;  %v7104_v4 = vrot.slane %v7087_v53, %v13221_v7 }
 0x62e   : > { %10003 = vpow2.f32 %v8974_v51  ;;  %v7515_v51 = vrot.slane %v7501_v23, %v11125_v0  ;;  %v7546_v32 = vcombine.high %v7524_v35, %v7524_v35  ;;  %v7551_v20 = vrot.slane %v7524_v35, %v13221_v7 }
 0x62f   : > { %10005 = vpow2.f32 %v8975_v34  ;;  %v7127_v44 = vadd.f32 %v7100_v41, %v12263_v58  ;;  %v6623_v34 = vadd.f32 %v10219_v6, %v6615_v47  ;;  %v7128_v41 = vadd.f32 %v7104_v4, %v12263_v58 }
 0x630   : > { %v12279_v11 = vpop.f32.mrf.mxu1  ;;  %10007 = vpow2.f32 %v8976_v60  ;;  %v7517_v38 = vcombine.high %v7515_v51, %v7515_v51  ;;  %v7531_v8 = vrot.slane %v7515_v51, %v11125_v0  ;;  %v7108_v60 = vrot.slane %v7095_v25, %v13221_v7 }
 0x631   : > { %v8980_v25 = vmul.f32 -1.442695, %v6623_v34 }
 0x632   : > { %v9692_v33 = vpop.f32.mrf.mxu1  ;;  %v7545_v59 = vrot.slane %v7517_v38, %v11125_v0  ;;  %v7559_v38 = vrot.slane %v7546_v32, %v13221_v7  ;;  %v7066_v32 = vcombine.high %v7064_v61, %v7064_v61 }
 0x633   : > { %v6614_v33 = vadd.f32 %v6606_v63, %v13231_v29  ;;  %v8977_v63 = vmul.f32 -1.442695, %v6620_v22  ;;  %v8978_v29 = vmul.f32 -1.442695, %v6621_v9 }
 0x634   : > { %v7571_v18 = vrot.slane %v7545_v59, %v13221_v7  ;;  %v7096_v59 = vcombine.high %v7087_v53, %v7087_v53  ;;  %v7094_v53 = vrot.slane %v7066_v32, %v11125_v0 }
 0x635   : > { %v6622_v31 = vadd.f32 %v10219_v6, %v6614_v33  ;;  %10009 = vpow2.f32 %v8977_v63  ;;  %v7538_v33 = vrot.slane %v7516_v26, %v11125_v0  ;;  %v13233_v6 = vld [vmem:[#allocation67_spill] sm:$0xff]  ;;  %v7567_v63 = vrot.slane %v7531_v8, %v13221_v7 }
 0x636   : > { %v7133_v46 = vadd.f32 %v7127_v44, %v13233_v6  ;;  %10011 = vpow2.f32 %v8978_v29  ;;  %v12316_v44 = vadd.f32 %v7551_v20, %v12279_v11  ;;  %v12323_v29 = vadd.f32 %v7559_v38, %v12279_v11 }
 0x637   : > { %v8979_v23 = vmul.f32 -1.442695, %v6622_v31  ;;  %v7547_v31 = vcombine.high %v7538_v33, %v7538_v33  ;;  %v7555_v51 = vrot.slane %v7538_v33, %v13221_v7  ;;  %v12329_v6 = vadd.f32 %v7567_v63, %v12279_v11 }
 0x638   : > { %v7116_v20 = vrot.slane %v7080_v24, %v13221_v7  ;;  %v7112_v38 = vrot.slane %v7096_v59, %v13221_v7 }
 0x639   : > { %v7563_v4 = vrot.slane %v7547_v31, %v13221_v7  ;;  %v12320_v8 = vadd.f32 %v7555_v51, %v12279_v11  ;;  %v12335_v31 = vadd.f32 %v7571_v18, %v12279_v11  ;;  %v7120_v18 = vrot.slane %v7094_v53, %v13221_v7 }
 0x63a   : > { %v10002_v22 = vpop.eup %10001  ;;  %v7131_v63 = vadd.f32 %v7116_v20, %v12263_v58 }
 0x63b   : > { %v10004_v47 = vpop.eup %10003  ;;  %v6648_v9 = vadd.f32 1.0, %v10002_v22  ;;  %v13234_v22 = vld [vmem:[#allocation70_spill] sm:$0xff]  ;;  %v12326_v34 = vadd.f32 %v7563_v4, %v12279_v11  ;;  %v13235_v4 = vld [vmem:[#allocation69_spill] sm:$0xff]  ;;  %v7130_v11 = vadd.f32 %v7112_v38, %v12263_v58 }
 0x63c   : > { %v6649_v26 = vadd.f32 1.0, %v10004_v47  ;;  %v10006_v35 = vpop.eup %10005  ;;  %v7134_v33 = vadd.f32 %v7128_v41, %v13234_v22  ;;  %v7129_v47 = vadd.f32 %v7108_v60, %v12263_v58 }
 0x63d   : > { %10013 = vrcp.f32 %v6648_v9  ;;  %v10220_v9 = vld [vmem:[%s13106_s4] ss:$0 sm:$0xff]  ;;  %v6650_v51 = vadd.f32 1.0, %v10006_v35 }
 0x63e   : > { %10015 = vrcp.f32 %v6649_v26  ;;  %v7139_v41 = vadd.f32 %v10220_v9, %v7133_v46  ;;  %v10008_v26 = vpop.eup %10007  ;;  %v7140_v61 = vadd.f32 %v10220_v9, %v7134_v33  ;;  %v7135_v24 = vadd.f32 %v7129_v47, %v13235_v4 }
 0x63f   : > { %10017 = vpow2.f32 %v8979_v23  ;;  %v6651_v60 = vadd.f32 1.0, %v10008_v26  ;;  %v13236_v23 = vld [vmem:[#allocation71_spill] sm:$0xff]  ;;  %v7132_v47 = vadd.f32 %v7120_v18, %v12263_v58 }
 0x640   : > { %10019 = vpow2.f32 %v8980_v25  ;;  %v8983_v22 = vmul.f32 -1.442695, %v7139_v41  ;;  %v8984_v16 = vmul.f32 -1.442695, %v7140_v61  ;;  %v7137_v35 = vadd.f32 %v7131_v63, %v13236_v23  ;;  %v13237_v41 = vld [vmem:[#allocation72_spill] sm:$0xff]  ;;  %v13238_v63 = vld [vmem:[#allocation74_spill] sm:$0xff] }
 0x641   : > { %10021 = vrcp.f32 %v6650_v51  ;;  %v7141_v33 = vadd.f32 %v10220_v9, %v7135_v24  ;;  %v7136_v51 = vadd.f32 %v7130_v11, %v13237_v41  ;;  %v7138_v4 = vadd.f32 %v7132_v47, %v13238_v63 }
 0x642   : > { %v10010_v46 = vpop.eup %10009  ;;  %10023 = vpow2.f32 %v8983_v22  ;;  %v7143_v26 = vadd.f32 %v10220_v9, %v7137_v35 }
 0x643   : > { %v10012_v32 = vpop.eup %10011  ;;  %v6652_v59 = vadd.f32 1.0, %v10010_v46  ;;  %10025 = vrcp.f32 %v6651_v60  ;;  %v8985_v61 = vmul.f32 -1.442695, %v7141_v33  ;;  %v7142_v24 = vadd.f32 %v10220_v9, %v7136_v51 }
 0x644   : > { %10027 = vpow2.f32 %v8984_v16  ;;  %v6653_v53 = vadd.f32 1.0, %v10012_v32  ;;  %v8987_v16 = vmul.f32 -1.442695, %v7143_v26  ;;  %v7144_v46 = vadd.f32 %v10220_v9, %v7138_v4 }
 0x645   : > { %10029 = vrcp.f32 %v6652_v59  ;;  %v8986_v18 = vmul.f32 -1.442695, %v7142_v24 }
 0x646   : > { %10031 = vpow2.f32 %v8985_v61  ;;  %v8988_v32 = vmul.f32 -1.442695, %v7144_v46 }
 0x647   : > { %10033 = vrcp.f32 %v6653_v53 }
 0x648   : > { %10035 = vpow2.f32 %v8987_v16 }
 0x64a   : > { %v10014_v25 = vpop.eup %10013 }
 0x64b   : > { %v10016_v20 = vpop.eup %10015  ;;  %6680 = vrot.lane.b32.xlu0 %v10014_v25, %s13207_s26 }
 0x64c   : > { %6682 = vrot.lane.b32.xlu1 %v10016_v20, %s13207_s26  ;;  %v10018_v38 = vpop.eup %10017 }
 0x64d   : > { %v10020_v22 = vpop.eup %10019  ;;  %v6654_v58 = vadd.f32 1.0, %v10018_v38 }
 0x64e   : > { %v10022_v60 = vpop.eup %10021  ;;  %v6655_v23 = vadd.f32 1.0, %v10020_v22 }
 0x64f   : > { %6776 = vrot.lane.b32.xlu0 %v10014_v25, %s13212_s22  ;;  %v10024_v11 = vpop.eup %10023  ;;  %10037 = vrcp.f32 %v6654_v58 }
 0x650   : > { %6778 = vrot.lane.b32.xlu1 %v10016_v20, %s13212_s22  ;;  %v10026_v35 = vpop.eup %10025  ;;  %10039 = vpow2.f32 %v8986_v18  ;;  %v7163_v59 = vadd.f32 1.0, %v10024_v11 }
 0x651   : > { %v10028_v33 = vpop.eup %10027  ;;  %10041 = vrcp.f32 %v6655_v23 }
 0x652   : > { %v10030_v25 = vpop.eup %10029  ;;  %v7164_v20 = vadd.f32 1.0, %v10028_v33  ;;  %10043 = vpow2.f32 %v8988_v32  ;;  %v13241_v32 = vld [vmem:[#allocation54_spill] sm:$0xff] }
 0x653   : > { %6684 = vrot.lane.b32.xlu0 %v10022_v60, %s13207_s26  ;;  %v10032_v9 = vpop.eup %10031  ;;  %10045 = vrcp.f32 %v7163_v59  ;;  %v6199_v59 = vadd.f32 %v12229_v55, %v13241_v32 }
 0x654   : > { %6780 = vrot.lane.b32.xlu1 %v10022_v60, %s13212_s22  ;;  %v10034_v47 = vpop.eup %10033  ;;  %10047 = vrcp.f32 %v7164_v20  ;;  %v7165_v51 = vadd.f32 1.0, %v10032_v9  ;;  %v10221_v9 = vld [vmem:[%s13157_s8] ss:$0 sm:$0xff] }
 0x655   : > { %v10036_v41 = vpop.eup %10035 }
 0x656   : > { %v7167_v53 = vadd.f32 1.0, %v10036_v41  ;;  %10049 = vrcp.f32 %v7165_v51  ;;  %v13243_v41 = vld [vmem:[#allocation56_spill] sm:$0xff] }
 0x657   : > { %6686 = vrot.lane.b32.xlu0 %v10026_v35, %s13207_s26  ;;  %v6201_v51 = vadd.f32 %v12234_v49, %v13243_v41 }
 0x658   : > { %6782 = vrot.lane.b32.xlu1 %v10026_v35, %s13212_s22  ;;  %10051 = vrcp.f32 %v7167_v53  ;;  %v13240_v35 = vld [vmem:[#allocation53_spill] sm:$0xff] }
 0x659   : > { %v6198_v33 = vadd.f32 %v12227_v56, %v13240_v35  ;;  %v6209_v55 = vadd.f32 %v10221_v9, %v6201_v51 }
 0x65b   : > { %6688 = vrot.lane.b32.xlu0 %v10030_v25, %s13207_s26  ;;  %v8967_v49 = vmul.f32 -1.442695, %v6209_v55 }
 0x65c   : > { %6784 = vrot.lane.b32.xlu1 %v10030_v25, %s13212_s22  ;;  %v10038_v26 = vpop.eup %10037  ;;  %v13242_v25 = vld [vmem:[#allocation55_spill] sm:$0xff] }
 0x65d   : > { %v10040_v61 = vpop.eup %10039  ;;  %v6200_v20 = vadd.f32 %v12232_v21, %v13242_v25 }
 0x65e   : > { %v10042_v38 = vpop.eup %10041  ;;  %v7166_v4 = vadd.f32 1.0, %v10040_v61  ;;  %v13244_v61 = vld [vmem:[#allocation57_spill] sm:$0xff] }
 0x65f   : > { %6690 = vrot.lane.b32.xlu0 %v10034_v47, %s13207_s26  ;;  %v10044_v63 = vpop.eup %10043  ;;  %v6202_v53 = vadd.f32 %v12236_v52, %v13244_v61  ;;  %v6208_v56 = vadd.f32 %v10221_v9, %v6200_v20 }
 0x660   : > { %6786 = vrot.lane.b32.xlu1 %v10034_v47, %s13212_s22  ;;  %v10046_v24 = vpop.eup %10045  ;;  %v7168_v22 = vadd.f32 1.0, %v10044_v63  ;;  %10053 = vrcp.f32 %v7166_v4 }
 0x661   : > { %v10048_v16 = vpop.eup %10047 }
 0x662   : > { %10055 = vrcp.f32 %v7168_v22 }
 0x663   : > { %6692 = vrot.lane.b32.xlu0 %v10038_v26, %s13207_s26  ;;  %v10050_v58 = vpop.eup %10049  ;;  %10057 = vtanh.f32 %v12261_v57  ;;  %v13239_v57 = vld [vmem:[#allocation52_spill] sm:$0xff] }
 0x664   : > { %6788 = vrot.lane.b32.xlu1 %v10038_v26, %s13212_s22  ;;  %v6197_v23 = vadd.f32 %v12225_v43, %v13239_v57  ;;  %v6206_v26 = vadd.f32 %v10221_v9, %v6198_v33  ;;  %v13245_v43 = vld [vmem:[#allocation58_spill] sm:$0xff] }
 0x665   : > { %v10052_v60 = vpop.eup %10051  ;;  %v6203_v63 = vadd.f32 %v12238_v3, %v13245_v43  ;;  %v10222_v3 = vld [vmem:[%s13183_s3] ss:$0 sm:$0xff] }
 0x666   : > { %v6205_v47 = vadd.f32 %v10221_v9, %v6197_v23  ;;  %v7585_v57 = vadd.f32 %v10222_v3, %v12320_v8  ;;  %v7586_v33 = vadd.f32 %v10222_v3, %v12323_v29 }
 0x667   : > { %6694 = vrot.lane.b32.xlu0 %v10042_v38, %s13207_s26  ;;  %v6211_v22 = vadd.f32 %v10221_v9, %v6203_v63  ;;  %v13247_v63 = vld [vmem:[#allocation76_spill] sm:$0xff] }
 0x668   : > { %6790 = vrot.lane.b32.xlu1 %v10042_v38, %s13212_s22  ;;  %v6207_v38 = vadd.f32 %v10221_v9, %v6199_v59  ;;  %v8963_v4 = vmul.f32 -1.442695, %v6205_v47  ;;  %v7591_v32 = vadd.f32 %v7585_v57, %v11748_v48  ;;  %v7592_v41 = vadd.f32 %v7586_v33, %v11721_v37 }
 0x66a   : > { %v8965_v21 = vmul.f32 -1.442695, %v6207_v38  ;;  %10059 = vpow2.f32 %v8963_v4  ;;  %v8993_v38 = vmul.f32 -1.442695, %v7592_v41 }
 0x66b   : > { %7187 = vrot.lane.b32.xlu0 %v10046_v24, %s13207_s26 }
 0x66c   : > { %7189 = vrot.lane.b32.xlu1 %v10048_v16, %s13207_s26 }
 0x66d   : > { %v10054_v46 = vpop.eup %10053 }
 0x66f   : > { %7259 = vrot.lane.b32.xlu0 %v10046_v24, %s13212_s22  ;;  %v10056_v18 = vpop.eup %10055  ;;  %v8964_v24 = vmul.f32 -1.442695, %v6206_v26 }
 0x670   : > { %7261 = vrot.lane.b32.xlu1 %v10048_v16, %s13212_s22  ;;  %v10058_v11 = vpop.eup %10057  ;;  %v6210_v16 = vadd.f32 %v10221_v9, %v6202_v53  ;;  %v7587_v53 = vadd.f32 %v10222_v3, %v12326_v34  ;;  %v7589_v34 = vadd.f32 %v10222_v3, %v12335_v31 }
 0x671   : > { %10061 = vpow2.f32 %v8964_v24 }
 0x672   : > { %10063 = vpow2.f32 %v8965_v21  ;;  %v8968_v52 = vmul.f32 -1.442695, %v6210_v16  ;;  %v7588_v16 = vadd.f32 %v10222_v3, %v12329_v6  ;;  %v13248_v21 = vld [vmem:[#allocation75_spill] sm:$0xff] }
 0x673   : > { %7191 = vrot.lane.b32.xlu0 %v10050_v58, %s13207_s26 }
 0x674   : > { %7263 = vrot.lane.b32.xlu1 %v10050_v58, %s13212_s22  ;;  %v8966_v58 = vmul.f32 -1.442695, %v6208_v56 }
 0x676   : > { %10065 = vpow2.f32 %v8966_v58 }
 0x677   : > { %7195 = vrot.lane.b32.xlu0 %v10052_v60, %s13207_s26  ;;  %10067 = vpow2.f32 %v8967_v49  ;;  %v10060_v47 = vpop.eup %10059 }
 0x678   : > { %7267 = vrot.lane.b32.xlu1 %v10052_v60, %s13212_s22  ;;  %v13246_v60 = vld [vmem:[#allocation60_spill] sm:$0xff]  ;;  %10069 = vpow2.f32 %v8968_v52  ;;  %v6237_v29 = vadd.f32 1.0, %v10060_v47 }
 0x679   : > { %v10223_v52 = vld [vmem:[%s10833_s10] sm:$0x3f] }
 0x67b   : > { %7193 = vrot.lane.b32.xlu0 %v10054_v46, %s13207_s26 }
 0x67c   : > { %7265 = vrot.lane.b32.xlu1 %v10054_v46, %s13212_s22  ;;  %v6204_v46 = vadd.f32 %v12240_v40, %v13246_v60 }
 0x67e   : > { %v6212_v23 = vadd.f32 %v10221_v9, %v6204_v46  ;;  %v10062_v26 = vpop.eup %10061  ;;  %v7593_v46 = vadd.f32 %v7587_v53, %v11752_v45  ;;  %v7595_v45 = vadd.f32 %v7589_v34, %v11757_v39 }
 0x67f   : > { %7197 = vrot.lane.b32.xlu0 %v10056_v18, %s13207_s26  ;;  %v10064_v61 = vpop.eup %10063  ;;  %v6238_v37 = vadd.f32 1.0, %v10062_v26 }
 0x680   : > { %7269 = vrot.lane.b32.xlu1 %v10056_v18, %s13212_s22  ;;  %v8969_v18 = vmul.f32 -1.442695, %v6211_v22  ;;  %v8970_v25 = vmul.f32 -1.442695, %v6212_v23  ;;  %v6239_v24 = vadd.f32 1.0, %v10064_v61 }
 0x681   : > { %v8996_v26 = vmul.f32 -1.442695, %v7595_v45 }
 0x682   : > { %10071 = vpow2.f32 %v8969_v18 }
 0x683   : > { %5949 = vrot.lane.b32.xlu0 %v10058_v11, %s13207_s26  ;;  %v7584_v11 = vadd.f32 %v10222_v3, %v12316_v44  ;;  %v8992_v44 = vmul.f32 -1.442695, %v7591_v32  ;;  %10073 = vpow2.f32 %v8970_v25  ;;  %v10066_v48 = vpop.eup %10065 }
 0x684   : > { %v10068_v55 = vpop.eup %10067  ;;  %v6240_v49 = vadd.f32 1.0, %v10066_v48 }
 0x685   : > { %v7590_v35 = vadd.f32 %v7584_v11, %v11705_v54  ;;  %v10070_v58 = vpop.eup %10069  ;;  %v10224_v11 = vld [vmem:[%s10833_s10 + $0x8] sm:$0x3f] }
 0x686   : > { %v6242_v32 = vadd.f32 1.0, %v10070_v58 }
 0x687   : > { %v8991_v20 = vmul.f32 -1.442695, %v7590_v35  ;;  %v6241_v35 = vadd.f32 1.0, %v10068_v55 }
 0x689   : > { %10075 = vpow2.f32 %v8991_v20 }
 0x68a   : > { %10077 = vpow2.f32 %v8992_v44 }
 0x68b   : > { %10079 = vrcp.f32 %v6237_v29 }
 0x68c   : > { %10081 = vpow2.f32 %v8993_v38 }
 0x68d   : > { %10083 = vrcp.f32 %v6238_v37 }
 0x68e   : > { %10085 = vrcp.f32 %v6239_v24 }
 0x68f   : > { %v10072_v60 = vpop.eup %10071  ;;  %10087 = vrcp.f32 %v6240_v49 }
 0x690   : > { %v6243_v3 = vadd.f32 1.0, %v10072_v60  ;;  %10089 = vrcp.f32 %v6241_v35  ;;  %v10227_v60 = vld [vmem:[%s10833_s10 + $0x20] sm:$0x3f] }
 0x691   : > { %10091 = vrcp.f32 %v6242_v32 }
 0x692   : > { %10093 = vrcp.f32 %v6243_v3 }
 0x6bd   : > { %v6681_v40 = vpop.permute.xlu0 %6680 }
 0x6be   : > { %v6683_v59 = vpop.permute.xlu1 %6682  ;;  %v6704_v8 = vmul.f32 %v6681_v40, %v12005_v12  ;;  %v7594_v40 = vadd.f32 %v7588_v16, %v11738_v2 }
 0x6bf   : > { %v6705_v54 = vmul.f32 %v6683_v59, %v12005_v12  ;;  %v8994_v59 = vmul.f32 -1.442695, %v7593_v46 }
 0x6c0   : > { %v6712_v56 = vmul.f32 %v6704_v8, %v13247_v63  ;;  %v8995_v2 = vmul.f32 -1.442695, %v7594_v40  ;;  %v13250_v40 = vld [vmem:[#allocation78_spill] sm:$0xff] }
 0x6c1   : > { %v6777_v51 = vpop.permute.xlu0 %6776  ;;  %v6713_v22 = vmul.f32 %v6705_v54, %v13248_v21  ;;  %10095 = vpow2.f32 %v8994_v59 }
 0x6c2   : > { %v6779_v9 = vpop.permute.xlu1 %6778  ;;  %v6800_v18 = vmul.f32 %v10223_v52, %v6777_v51  ;;  %v6720_v6 = vsel %vm5690_vm15, %v6712_v56, 0.0  ;;  %10097 = vpow2.f32 %v8995_v2 }
 0x6c3   : > { %v6801_v57 = vmul.f32 %v10224_v11, %v6779_v9  ;;  %v6727_v31 = vsel %vm5690_vm15, %v6713_v22, 0.0  ;;  %v6721_v25 = vrot.slane %v6720_v6, 4  ;;  %v10074_v9 = vpop.eup %10073  ;;  %10099 = vpow2.f32 %v8996_v26  ;;  %v13252_v26 = vld [vmem:[#allocation80_spill] sm:$0xff] }
 0x6c4   : > { %v6808_v20 = vmul.f32 %v6800_v18, %v13247_v63  ;;  %v6728_v44 = vrot.slane %v6727_v31, 4  ;;  %v10076_v39 = vpop.eup %10075  ;;  %v10225_v63 = vld [vmem:[%s10833_s10 + $0x10] sm:$0x3f]  ;;  %v12423_v16 = vadd.f32 1.0, %v10074_v9 }
 0x6c5   : > { %v6685_v43 = vpop.permute.xlu0 %6684  ;;  %v6809_v47 = vmul.f32 %v6801_v57, %v13248_v21  ;;  %v6722_v54 = vadd.f32 %v6721_v25, %v6720_v6  ;;  %v10078_v53 = vpop.eup %10077  ;;  %v10226_v21 = vld [vmem:[%s10833_s10 + $0x18] sm:$0x3f] }
 0x6c6   : > { %v6781_v4 = vpop.permute.xlu1 %6780  ;;  %v6706_v51 = vmul.f32 %v6685_v43, %v12005_v12  ;;  %v6816_v61 = vsel %vm4116_vm8, %v6808_v20, 0.0  ;;  %v6729_v38 = vadd.f32 %v6728_v44, %v6727_v31  ;;  %v13249_v43 = vld [vmem:[#allocation77_spill] sm:$0xff]  ;;  %v12429_v18 = vpop.eup %10079  ;;  %v7615_v11 = vadd.f32 1.0, %v10078_v53  ;;  %v13251_v25 = vld [vmem:[#allocation79_spill] sm:$0xff] }
 0x6c7   : > { %v6823_v29 = vsel %vm4116_vm8, %v6809_v47, 0.0  ;;  %v6802_v56 = vmul.f32 %v10225_v63, %v6781_v4  ;;  %v6817_v49 = vrot.slane %v6816_v61, 4  ;;  %v12431_v4 = vadd.f32 1.0, %v10076_v39  ;;  %v10082_v35 = vpop.eup %10081  ;;  %v10228_v47 = vld [vmem:[%s10833_s10 + $0x28] sm:$0x3f] }
 0x6c8   : > { %v6714_v37 = vmul.f32 %v6706_v51, %v13249_v43  ;;  %v6824_v34 = vrot.slane %v6823_v29, 4  ;;  %v6723_v57 = vrot.slane %v6722_v54, 2  ;;  %v6730_v6 = vrot.slane %v6729_v38, 2  ;;  %v12436_v45 = vpop.eup %10083 }
 0x6c9   : > { %v6687_v23 = vpop.permute.xlu0 %6686  ;;  %v6810_v32 = vmul.f32 %v6802_v56, %v13249_v43  ;;  %v12442_v51 = vpop.eup %10085  ;;  %v12448_v53 = vadd.f32 1.0, %v10082_v35  ;;  %10101 = vrcp.f32 %v7615_v11 }
 0x6ca   : > { %v6783_v33 = vpop.permute.xlu1 %6782  ;;  %v6707_v55 = vmul.f32 %v6687_v23, %v12005_v12  ;;  %v6825_v2 = vadd.f32 %v6824_v34, %v6823_v29  ;;  %v6724_v43 = vadd.f32 %v6723_v57, %v6722_v54  ;;  %v12450_v56 = vadd.f32 %v6730_v6, %v6729_v38  ;;  %v13254_v29 = vld [vmem:[#allocation81_spill] sm:$0xff]  ;;  %v10229_v54 = vld [vmem:[%s10833_s10 + $0x30] sm:$0x3f] }
 0x6cb   : > { %v6803_v22 = vmul.f32 %v10226_v21, %v6783_v33  ;;  %v6734_v33 = vsel %vm5690_vm15, %v6714_v37, 0.0  ;;  %10103 = vrcp.f32 %v12431_v4 }
 0x6cc   : > { %v6715_v31 = vmul.f32 %v6707_v55, %v13250_v40  ;;  %v6735_v37 = vrot.slane %v6734_v33, 4  ;;  %v6830_v55 = vsel %vm4116_vm8, %v6810_v32, 0.0  ;;  %10105 = vrcp.f32 %v12423_v16 }
 0x6cd   : > { %v6689_v41 = vpop.permute.xlu0 %6688  ;;  %v6811_v59 = vmul.f32 %v6803_v22, %v13250_v40  ;;  %v6831_v6 = vrot.slane %v6830_v55, 4  ;;  %10107 = vrcp.f32 %v12448_v53 }
 0x6ce   : > { %v6785_v8 = vpop.permute.xlu1 %6784  ;;  %v6708_v58 = vmul.f32 %v6689_v41, %v12005_v12  ;;  %v6736_v35 = vadd.f32 %v6735_v37, %v6734_v33 }
 0x6cf   : > { %v6804_v46 = vmul.f32 %v10227_v60, %v6785_v8  ;;  %v6818_v8 = vadd.f32 %v6817_v49, %v6816_v61  ;;  %v6741_v61 = vsel %vm5690_vm15, %v6715_v31, 0.0  ;;  %v6832_v17 = vadd.f32 %v6831_v6, %v6830_v55 }
 0x6d0   : > { %v6716_v20 = vmul.f32 %v6708_v58, %v13251_v25  ;;  %v6837_v58 = vsel %vm4116_vm8, %v6811_v59, 0.0  ;;  %v6742_v32 = vrot.slane %v6741_v61, 4  ;;  %v6737_v30 = vrot.slane %v6736_v35, 2 }
 0x6d1   : > { %v6691_v48 = vpop.permute.xlu0 %6690  ;;  %v6812_v9 = vmul.f32 %v6804_v46, %v13251_v25  ;;  %v6819_v46 = vrot.slane %v6818_v8, 2 }
 0x6d2   : > { %v6787_v24 = vpop.permute.xlu1 %6786  ;;  %v6709_v52 = vmul.f32 %v6691_v48, %v12005_v12  ;;  %v12446_v48 = vpop.eup %10087  ;;  %v6748_v49 = vsel %vm5690_vm15, %v6716_v20, 0.0  ;;  %v6743_v42 = vadd.f32 %v6742_v32, %v6741_v61 }
 0x6d3   : > { %v6805_v41 = vmul.f32 %v10228_v47, %v6787_v24  ;;  %13253 = vst [vmem:[#allocation59_spill] sm:$0xff] %v12446_v48  ;;  %v12455_v22 = vpop.eup %10089  ;;  %v6844_v11 = vsel %vm4116_vm8, %v6812_v9, 0.0  ;;  %v6749_v25 = vrot.slane %v6748_v49, 4  ;;  %v10230_v47 = vld [vmem:[%s10833_s10 + $0x38] sm:$0x3f]  ;;  %s13267_s10 = smov 80  }
 0x6d4   : > { %v6717_v39 = vmul.f32 %v6709_v52, %v13252_v26  ;;  %v12461_v38 = vpop.eup %10091  ;;  %v6826_v52 = vrot.slane %v6825_v2, 2  ;;  %v6845_v9 = vrot.slane %v6844_v11, 4 }
 0x6d5   : > { %v6693_v23 = vpop.permute.xlu0 %6692  ;;  %v6813_v34 = vmul.f32 %v6805_v41, %v13252_v26  ;;  %13255 = vst [vmem:[#allocation62_spill] sm:$0xff] %v12461_v38 }
 0x6d6   : > { %v6789_v3 = vpop.permute.xlu1 %6788  ;;  %v6710_v44 = vmul.f32 %v6693_v23, %v12005_v12  ;;  %v6755_v57 = vsel %vm5690_vm15, %v6717_v39, 0.0  ;;  %v12465_v23 = vpop.eup %10093  ;;  %v6827_v62 = vadd.f32 %v6826_v52, %v6825_v2  ;;  %v6846_v27 = vadd.f32 %v6845_v9, %v6844_v11 }
 0x6d7   : > { %v6806_v60 = vmul.f32 %v10229_v54, %v6789_v3  ;;  %13256 = vst [vmem:[#allocation61_spill] sm:$0xff] %v12465_v23  ;;  %v12468_v59 = vpop.eup %10095  ;;  %v6838_v3 = vrot.slane %v6837_v58, 4  ;;  %v6756_v26 = vrot.slane %v6755_v57, 4  ;;  %v6851_v39 = vsel %vm4116_vm8, %v6813_v34, 0.0 }
 0x6d8   : > { %v6718_v24 = vmul.f32 %v6710_v44, %v13254_v29  ;;  %v12476_v37 = vpop.eup %10097  ;;  %v6820_v54 = vadd.f32 %v6819_v46, %v6818_v8  ;;  %v6852_v13 = vrot.slane %v6851_v39, 4  ;;  %v6732_v52 = vrot.slane %v12450_v56, 1 }
 0x6d9   : > { %v6695_v63 = vpop.permute.xlu0 %6694  ;;  %v6814_v33 = vmul.f32 %v6806_v60, %v13254_v29  ;;  %v6839_v5 = vadd.f32 %v6838_v3, %v6837_v58  ;;  %v6750_v60 = vadd.f32 %v6749_v25, %v6748_v49  ;;  %v6757_v8 = vadd.f32 %v6756_v26, %v6755_v57 }
 0x6da   : > { %v6791_v21 = vpop.permute.xlu1 %6790  ;;  %v6711_v40 = vmul.f32 %v6695_v63, %v12005_v12  ;;  %v6762_v20 = vsel %vm5690_vm15, %v6718_v24, 0.0  ;;  %v6725_v63 = vrot.slane %v6724_v43, 1  ;;  %v6828_v6 = vrot.slane %v6827_v62, 1 }
 0x6db   : > { %v6807_v41 = vmul.f32 %v10230_v47, %v6791_v21  ;;  %v6763_v24 = vrot.slane %v6762_v20, 4  ;;  %v12480_v47 = vpop.eup %10099  ;;  %v6858_v2 = vsel %vm4116_vm8, %v6814_v33, 0.0  ;;  %v6744_v3 = vrot.slane %v6743_v42, 2 }
 0x6dc   : > { %v6719_v14 = vmul.f32 %v6711_v40, %v13257_v1  ;;  %v6726_v55 = vadd.f32 %v6725_v63, %v6724_v43  ;;  %v6833_v40 = vrot.slane %v6832_v17, 2  ;;  %v6840_v49 = vrot.slane %v6839_v5, 2 }
 0x6dd   : > { %v7188_v31 = vpop.permute.xlu0 %7187  ;;  %v6815_v21 = vmul.f32 %v6807_v41, %v13257_v1  ;;  %v6821_v1 = vrot.slane %v6820_v54, 1  ;;  %v6764_v61 = vadd.f32 %v6763_v24, %v6762_v20  ;;  %v6853_v11 = vadd.f32 %v6852_v13, %v6851_v39 }
 0x6de   : > { %v12472_v44 = vpop.permute.xlu1 %7189  ;;  %v6769_v34 = vsel %vm5690_vm15, %v6719_v14, 0.0  ;;  %v12490_v14 = vpop.eup %10101  ;;  %v6859_v57 = vrot.slane %v6858_v2, 4  ;;  %v6738_v25 = vadd.f32 %v6737_v30, %v6736_v35  ;;  %v6751_v41 = vrot.slane %v6750_v60, 2 }
 0x6df   : > { %v6770_v58 = vrot.slane %v6769_v34, 4  ;;  %v6865_v32 = vsel %vm4116_vm8, %v6815_v21, 0.0  ;;  %13258 = vst [vmem:[#allocation64_spill] sm:$0xff] %v12490_v14  ;;  %v6847_v9 = vrot.slane %v6846_v27, 2  ;;  %v6758_v26 = vrot.slane %v6757_v8, 2 }
 0x6e0   : > { %v6733_v43 = vadd.f32 %v6732_v52, %v12450_v56  ;;  %v6822_v33 = vadd.f32 %v6821_v1, %v6820_v54  ;;  %v6866_v63 = vrot.slane %v6865_v32, 4  ;;  %v7205_v12 = vmul.f32 %v7188_v31, %v11973_v50  ;;  %v13259_v52 = vld [vmem:[#allocation84_spill] sm:$0xff] }
 0x6e1   : > { %v12483_v29 = vpop.permute.xlu0 %7259  ;;  %v6829_v24 = vadd.f32 %v6828_v6, %v6827_v62  ;;  %v6834_v0 = vadd.f32 %v6833_v40, %v6832_v17  ;;  %v6765_v21 = vrot.slane %v6764_v61, 2  ;;  %v6771_v7 = vadd.f32 %v6770_v58, %v6769_v34 }
 0x6e2   : > { %v12486_v46 = vpop.permute.xlu1 %7261  ;;  %v6745_v14 = vadd.f32 %v6744_v3, %v6743_v42  ;;  %v6841_v38 = vadd.f32 %v6840_v49, %v6839_v5  ;;  %v6854_v13 = vrot.slane %v6853_v11, 2  ;;  %v6860_v39 = vadd.f32 %v6859_v57, %v6858_v2  ;;  %v10231_v49 = vld [vmem:[%s10906_s7] sm:$0xff] }
 0x6e3   : > { %v6739_v30 = vrot.slane %v6738_v25, 1  ;;  %v6752_v35 = vadd.f32 %v6751_v41, %v6750_v60  ;;  %v6848_v23 = vadd.f32 %v6847_v9, %v6846_v27  ;;  %v6759_v48 = vadd.f32 %v6758_v26, %v6757_v8 }
 0x6e4   : > { %v6880_v56 = vsel %vm4181_vm4, %v6733_v43, %v6726_v55  ;;  %v6867_v54 = vadd.f32 %v6866_v63, %v6865_v32  ;;  %v7211_v1 = vmul.f32 %v7205_v12, %v13259_v52  ;;  %v7206_v62 = vmul.f32 %v12472_v44, %v11973_v50 }
 0x6e5   : > { %v7192_v20 = vpop.permute.xlu0 %7191  ;;  %v12499_v17 = vsel %vm4181_vm4, %v6829_v24, %v6822_v33  ;;  %v6835_v31 = vrot.slane %v6834_v0, 1  ;;  %v6766_v5 = vadd.f32 %v6765_v21, %v6764_v61  ;;  %v6772_v42 = vrot.slane %v6771_v7, 2 }
 0x6e6   : > { %v7264_v19 = vpop.permute.xlu1 %7263  ;;  %v6746_v34 = vrot.slane %v6745_v14, 1  ;;  %v6842_v2 = vrot.slane %v6841_v38, 1  ;;  %v6855_v60 = vadd.f32 %v6854_v13, %v6853_v11  ;;  %v6861_v27 = vrot.slane %v6860_v39, 2  ;;  %v10232_v13 = vld [vmem:[%s10906_s7 + $0x8] sm:$0xff] }
 0x6e7   : > { %v6740_v6 = vadd.f32 %v6739_v30, %v6738_v25  ;;  %v6753_v55 = vrot.slane %v6752_v35, 1  ;;  %v6849_v40 = vrot.slane %v6848_v23, 1  ;;  %v6760_v58 = vrot.slane %v6759_v48, 1 }
 0x6e8   : > { %v6868_v32 = vrot.slane %v6867_v54, 2  ;;  %v7217_v44 = vsel %vm5667_vm3, %v7211_v1, 0.0  ;;  %v7212_v3 = vmul.f32 %v7206_v62, %v11442_v28  ;;  %v7277_v61 = vmul.f32 %v10231_v49, %v12483_v29 }
 0x6e9   : > { %v7196_v8 = vpop.permute.xlu0 %7195  ;;  %v6836_v57 = vadd.f32 %v6835_v31, %v6834_v0  ;;  %v6767_v41 = vrot.slane %v6766_v5, 1  ;;  %v6773_v9 = vadd.f32 %v6772_v42, %v6771_v7  ;;  %v7207_v11 = vmul.f32 %v7192_v20, %v11973_v50  ;;  %v13260_v31 = vld [vmem:[#allocation82_spill] sm:$0xff] }
 0x6ea   : > { %v7268_v12 = vpop.permute.xlu1 %7267  ;;  %v6747_v26 = vadd.f32 %v6746_v34, %v6745_v14  ;;  %v6843_v25 = vadd.f32 %v6842_v2, %v6841_v38  ;;  %v6856_v43 = vrot.slane %v6855_v60, 1  ;;  %v6862_v33 = vadd.f32 %v6861_v27, %v6860_v39  ;;  %v10233_v34 = vld [vmem:[%s10906_s7 + $0x10] sm:$0xff] }
 0x6eb   : > { %v6754_v63 = vadd.f32 %v6753_v55, %v6752_v35  ;;  %v6850_v24 = vadd.f32 %v6849_v40, %v6848_v23  ;;  %v7218_v21 = vrot.slane %v7217_v44, 4  ;;  %v7278_v30 = vmul.f32 %v10232_v13, %v12486_v46 }
 0x6ec   : > { %v6761_v1 = vadd.f32 %v6760_v58, %v6759_v48  ;;  %v6869_v62 = vadd.f32 %v6868_v32, %v6867_v54  ;;  %v7224_v29 = vsel %vm5667_vm3, %v7212_v3, 0.0  ;;  %v7283_v0 = vmul.f32 %v7277_v61, %v13259_v52 }
 0x6ed   : > { %v7194_v7 = vpop.permute.xlu0 %7193  ;;  %v7213_v20 = vmul.f32 %v7207_v11, %v13260_v31  ;;  %v6768_v14 = vadd.f32 %v6767_v41, %v6766_v5  ;;  %v6774_v38 = vrot.slane %v6773_v9, 1  ;;  %v6881_v39 = vsel %vm4183_vm5, %v6740_v6, %v6880_v56 }
 0x6ee   : > { %v7266_v35 = vpop.permute.xlu1 %7265  ;;  %v6857_v23 = vadd.f32 %v6856_v43, %v6855_v60  ;;  %v6863_v42 = vrot.slane %v6862_v33, 1  ;;  %v7279_v2 = vmul.f32 %v10233_v34, %v7264_v19  ;;  %v6882_v46 = vsel %vm4185_vm6, %v6747_v26, %v6881_v39 }
 0x6ef   : > { %v12514_v48 = vadd.f32 %v7218_v21, %v7217_v44  ;;  %v7284_v54 = vmul.f32 %v7278_v30, %v11442_v28  ;;  %v6775_v27 = vadd.f32 %v6774_v38, %v6773_v9  ;;  %v6883_v52 = vsel %vm4187_vm7, %v6754_v63, %v6882_v46  ;;  %v10234_v9 = vld [vmem:[%s10906_s7 + $0x18] sm:$0xff]  ;;  %v10235_v21 = vld [vmem:[%s10906_s7 + $0x20] sm:$0xff] }
 0x6f0   : > { %v7225_v55 = vrot.slane %v7224_v29, 4  ;;  %v7289_v5 = vsel %vm2169_vm2, %v7283_v0, 0.0  ;;  %v7209_v56 = vmul.f32 %v7196_v8, %v11973_v50  ;;  %v6884_v60 = vsel %vm4189_vm9, %v6761_v1, %v6883_v52 }
 0x6f1   : > { %v7231_v6 = vsel %vm5667_vm3, %v7213_v20, 0.0  ;;  %v6885_v19 = vsel %vm4191_vm11, %v6768_v14, %v6884_v60  ;;  %v6870_v40 = vrot.slane %v6869_v62, 1  ;;  %v7208_v58 = vmul.f32 %v7194_v7, %v11973_v50  ;;  %v7198_v49 = vpop.permute.xlu0 %7197  ;;  %v10236_v7 = vld [vmem:[%s10906_s7 + $0x28] sm:$0xff]  ;;  %s13270_s7 = smov 64  }
 0x6f2   : > { %v7285_v28 = vmul.f32 %v7279_v2, %v13260_v31  ;;  %v6886_v32 = vsel %vm4193_vm10, %v6775_v27, %v6885_v19  ;;  %v6864_v44 = vadd.f32 %v6863_v42, %v6862_v33  ;;  %v6899_v3 = vsel %vm4183_vm5, %v6836_v57, %v12499_v17  ;;  %v7270_v26 = vpop.permute.xlu1 %7269 }
 0x6f3   : > { %6887 = vrot.lane.b32.xlu1 %v6886_v32, %s13212_s22  ;;  %v6871_v8 = vadd.f32 %v6870_v40, %v6869_v62  ;;  %v6900_v61 = vsel %vm4185_vm6, %v6843_v25, %v6899_v3  ;;  %v7214_v41 = vmul.f32 %v7208_v58, %v11470_v10  ;;  %v7280_v11 = vmul.f32 %v10234_v9, %v7266_v35 }
 0x6f4   : > { %v7232_v43 = vrot.slane %v7231_v6, 4  ;;  %v7215_v63 = vmul.f32 %v7209_v56, %v11477_v36  ;;  %v7281_v33 = vmul.f32 %v10235_v21, %v7268_v12  ;;  %v6901_v13 = vsel %vm4187_vm7, %v6850_v24, %v6900_v61 }
 0x6f5   : > { %v6902_v17 = vsel %vm4189_vm9, %v6857_v23, %v6901_v13  ;;  %v7238_v57 = vsel %vm5667_vm3, %v7214_v41, 0.0  ;;  %v7286_v30 = vmul.f32 %v7280_v11, %v11470_v10  ;;  %v7210_v25 = vmul.f32 %v7198_v49, %v11973_v50 }
 0x6f6   : > { %v7296_v1 = vsel %vm2169_vm2, %v7284_v54, 0.0  ;;  %v6903_v62 = vsel %vm4191_vm11, %v6864_v44, %v6902_v17  ;;  %v7239_v0 = vrot.slane %v7238_v57, 4  ;;  %v7282_v31 = vmul.f32 %v10236_v7, %v7270_v26  ;;  %v13261_v44 = vld [vmem:[#allocation59_spill] sm:$0xff]  ;;  %v13264_v7 = vld [vmem:[#allocation64_spill] sm:$0xff] }
 0x6f7   : > { %v7290_v20 = vrot.slane %v7289_v5, 4  ;;  %v7303_v12 = vsel %vm2169_vm2, %v7285_v28, 0.0  ;;  %v6904_v24 = vsel %vm4193_vm10, %v6871_v8, %v6903_v62  ;;  %6269 = vrot.lane.b32.xlu1 %v12429_v18, %s13207_s26  ;;  %v7216_v14 = vmul.f32 %v7210_v25, %v11512_v15  ;;  %v10104_v25 = vpop.eup %10103 }
 0x6f8   : > { %v7226_v10 = vadd.f32 %v7225_v55, %v7224_v29  ;;  %v7245_v38 = vsel %vm5667_vm3, %v7215_v63, 0.0  ;;  %6905 = vrot.lane.b32.xlu0 %v6904_v24, %s13207_s26  ;;  %v7310_v39 = vsel %vm2169_vm2, %v7286_v30, 0.0  ;;  %v7288_v35 = vmul.f32 %v7282_v31, %v11512_v15  ;;  %v13263_v63 = vld [vmem:[#allocation62_spill] sm:$0xff]  ;;  %v10106_v31 = vpop.eup %10105 }
 0x6f9   : > { %v7297_v23 = vrot.slane %v7296_v1, 4  ;;  %v7233_v42 = vadd.f32 %v7232_v43, %v7231_v6  ;;  %v7287_v34 = vmul.f32 %v7281_v33, %v11477_v36  ;;  %v7252_v2 = vsel %vm5667_vm3, %v7216_v14, 0.0  ;;  %v10108_v14 = vpop.eup %10107 }
 0x6fa   : > { %v7304_v18 = vrot.slane %v7303_v12, 4  ;;  %v7240_v46 = vadd.f32 %v7239_v0, %v7238_v57  ;;  %v7253_v54 = vrot.slane %v7252_v2, 4  ;;  %v7618_v29 = vadd.f32 1.0, %v12476_v37 }
 0x6fb   : > { %v7246_v27 = vrot.slane %v7245_v38, 4  ;;  %v7311_v52 = vrot.slane %v7310_v39, 4  ;;  %6273 = vrot.lane.b32.xlu1 %v12442_v51, %s13207_s26  ;;  %v7220_v36 = vrot.slane %v12514_v48, 2  ;;  %v7227_v15 = vrot.slane %v7226_v10, 2 }
 0x6fc   : > { %6271 = vrot.lane.b32.xlu0 %v12436_v45, %s13207_s26  ;;  %v7324_v4 = vsel %vm2169_vm2, %v7288_v35, 0.0  ;;  %v7291_v55 = vadd.f32 %v7290_v20, %v7289_v5  ;;  %v7298_v56 = vadd.f32 %v7297_v23, %v7296_v1  ;;  %v7234_v16 = vrot.slane %v7233_v42, 2 }
 0x6fd   : > { %v7317_v37 = vsel %vm2169_vm2, %v7287_v34, 0.0  ;;  %v7617_v60 = vadd.f32 1.0, %v12468_v59  ;;  %v7305_v6 = vadd.f32 %v7304_v18, %v7303_v12  ;;  %v7241_v19 = vrot.slane %v7240_v46, 2 }
 0x6fe   : > { %v7254_v51 = vadd.f32 %v7253_v54, %v7252_v2  ;;  %v7247_v40 = vadd.f32 %v7246_v27, %v7245_v38  ;;  %v7312_v53 = vadd.f32 %v7311_v52, %v7310_v39  ;;  %v7325_v58 = vrot.slane %v7324_v4, 4 }
 0x6ff   : > { %6277 = vrot.lane.b32.xlu1 %v12455_v22, %s13207_s26  ;;  %v7619_v45 = vadd.f32 1.0, %v12480_v47  ;;  %v7221_v28 = vadd.f32 %v7220_v36, %v12514_v48  ;;  %v7228_v5 = vadd.f32 %v7227_v15, %v7226_v10  ;;  %v7318_v32 = vrot.slane %v7317_v37, 4  ;;  %v13262_v47 = vld [vmem:[#allocation61_spill] sm:$0xff] }
 0x700   : > { %6275 = vrot.lane.b32.xlu0 %v13261_v44, %s13207_s26  ;;  %10109 = vrcp.f32 %v7618_v29  ;;  %v7292_v59 = vrot.slane %v7291_v55, 2  ;;  %v7299_v3 = vrot.slane %v7298_v56, 2  ;;  %v7235_v49 = vadd.f32 %v7234_v16, %v7233_v42 }
 0x701   : > { %10111 = vrcp.f32 %v7617_v60  ;;  %v7306_v8 = vrot.slane %v7305_v6, 2  ;;  %v7242_v61 = vadd.f32 %v7241_v19, %v7240_v46  ;;  %v7255_v41 = vrot.slane %v7254_v51, 2 }
 0x702   : > { %v7248_v9 = vrot.slane %v7247_v40, 2  ;;  %v7313_v11 = vrot.slane %v7312_v53, 2  ;;  %v7326_v22 = vadd.f32 %v7325_v58, %v7324_v4  ;;  %v7222_v48 = vrot.slane %v7221_v28, 1 }
 0x703   : > { %6281 = vrot.lane.b32.xlu1 %v13262_v47, %s13207_s26  ;;  %v7229_v26 = vrot.slane %v7228_v5, 1  ;;  %v7319_v43 = vadd.f32 %v7318_v32, %v7317_v37  ;;  %v7293_v21 = vadd.f32 %v7292_v59, %v7291_v55  ;;  %v7300_v33 = vadd.f32 %v7299_v3, %v7298_v56  ;;  %v13269_v47 = vld [vmem:[#allocation102_spill] sm:$0xff] }
 0x704   : > { %6279 = vrot.lane.b32.xlu0 %v13263_v63, %s13207_s26  ;;  %v7236_v13 = vrot.slane %v7235_v49, 1  ;;  %10113 = vrcp.f32 %v7619_v45  ;;  %v7307_v17 = vadd.f32 %v7306_v8, %v7305_v6  ;;  %v7243_v57 = vrot.slane %v7242_v61, 1  ;;  %v5950_v6 = vpop.permute.xlu0 %5949 }
 0x705   : > { %v7256_v30 = vadd.f32 %v7255_v41, %v7254_v51  ;;  %v7249_v1 = vadd.f32 %v7248_v9, %v7247_v40  ;;  %v7314_v62 = vadd.f32 %v7313_v11, %v7312_v53  ;;  %v7327_v0 = vrot.slane %v7326_v22, 2  ;;  %v13265_v51 = vld [vmem:[#allocation106_spill] sm:$0xff]  ;;  %v13266_v9 = vld [vmem:[#allocation51_spill] sm:$0xff] }
 0x706   : > { %v7223_v20 = vadd.f32 %v7222_v48, %v7221_v28  ;;  %v7230_v12 = vadd.f32 %v7229_v26, %v7228_v5  ;;  %v7320_v24 = vrot.slane %v7319_v43, 2  ;;  %v7294_v10 = vrot.slane %v7293_v21, 1 }
 0x707   : > { %7723 = vrot.lane.b32.xlu1 %v13264_v7, %s13207_s26  ;;  %v7301_v38 = vrot.slane %v7300_v33, 1  ;;  %v7237_v39 = vadd.f32 %v7236_v13, %v7235_v49  ;;  %v7308_v35 = vrot.slane %v7307_v17, 1  ;;  %v7244_v23 = vadd.f32 %v7243_v57, %v7242_v61 }
 0x708   : > { %7721 = vrot.lane.b32.xlu0 %v10104_v25, %s13207_s26  ;;  %v7257_v42 = vrot.slane %v7256_v30, 1  ;;  %v7250_v34 = vrot.slane %v7249_v1, 1  ;;  %v7315_v2 = vrot.slane %v7314_v62, 1  ;;  %v7328_v18 = vadd.f32 %v7327_v0, %v7326_v22  ;;  %v13268_v22 = vld [vmem:[#allocation73_spill] sm:$0xff] }
 0x709   : > { %v7321_v46 = vadd.f32 %v7320_v24, %v7319_v43  ;;  %v7337_v54 = vsel %vm4181_vm4, %v7230_v12, %v7223_v20  ;;  %v7295_v29 = vadd.f32 %v7294_v10, %v7293_v21  ;;  %v7302_v27 = vadd.f32 %v7301_v38, %v7300_v33  ;;  %v13271_v25 = vld [vmem:[#allocation85_spill] sm:$0xff] }
 0x70a   : > { %v7338_v52 = vsel %vm4183_vm5, %v7237_v39, %v7337_v54  ;;  %v7309_v15 = vadd.f32 %v7308_v35, %v7307_v17  ;;  %v7258_v4 = vadd.f32 %v7257_v42, %v7256_v30  ;;  %v7251_v16 = vadd.f32 %v7250_v34, %v7249_v1  ;;  %v13272_v35 = vld [vmem:[#allocation86_spill] sm:$0xff] }
 0x70b   : > { %7725 = vrot.lane.b32.xlu1 %v10108_v14, %s13207_s26  ;;  %v7339_v55 = vsel %vm4185_vm6, %v7244_v23, %v7338_v52  ;;  %v7316_v37 = vadd.f32 %v7315_v2, %v7314_v62  ;;  %v7329_v60 = vrot.slane %v7328_v18, 1  ;;  %v7322_v19 = vrot.slane %v7321_v46, 1 }
 0x70c   : > { %6283 = vrot.lane.b32.xlu0 %v10106_v31, %s13207_s26  ;;  %v5947_v40 = vsub.f32 1.0, %v13265_v51  ;;  %v7340_v53 = vsel %vm4187_vm7, %v7251_v16, %v7339_v55  ;;  %v7351_v58 = vsel %vm4181_vm4, %v7302_v27, %v7295_v29  ;;  %v5946_v49 = vmul.f32 0.0, %v13265_v51  ;;  %v13274_v29 = vld [vmem:[#allocation93_spill] sm:$0xff]  ;;  %v13275_v51 = vld [vmem:[#allocation87_spill] sm:$0xff] }
 0x70d   : > { %v10110_v36 = vpop.eup %10109  ;;  %v7341_v28 = vsel %vm4189_vm9, %v7258_v4, %v7340_v53  ;;  %v7352_v5 = vsel %vm4183_vm5, %v7309_v15, %v7351_v58  ;;  %v7330_v44 = vadd.f32 %v7329_v60, %v7328_v18  ;;  %v7323_v3 = vadd.f32 %v7322_v19, %v7321_v46  ;;  %v13273_v18 = vld [vmem:[#allocation89_spill] sm:$0xff]  ;;  %v13276_v53 = vld [vmem:[#allocation96_spill] sm:$0xff] }
 0x70e   : > { %v10112_v56 = vpop.eup %10111  ;;  %v5952_v45 = vmul.f32 %v5950_v6, %v5947_v40  ;;  %v7353_v59 = vsel %vm4185_vm6, %v7316_v37, %v7352_v5  ;;  %v7639_v48 = vrot.slane %v13269_v47, %v13268_v22  ;;  %v7632_v43 = vcombine.high %v13269_v47, %v13269_v47 }
 0x70f   : > { %7729 = vrot.lane.b32.xlu1 %v10110_v36, %s13207_s26  ;;  %v7354_v61 = vsel %vm4187_vm7, %v7323_v3, %v7353_v59 }
 0x710   : > { %7727 = vrot.lane.b32.xlu0 %v10112_v56, %s13207_s26  ;;  %v12594_v8 = vadd.f32 %v5952_v45, %v5946_v49  ;;  %v7355_v41 = vsel %vm4189_vm9, %v7330_v44, %v7354_v61  ;;  %v7655_v63 = vrot.slane %v7639_v48, %v13268_v22  ;;  %v7647_v21 = vcombine.high %v7639_v48, %v7639_v48  ;;  %v13277_v45 = vld [vmem:[#allocation94_spill] sm:$0xff]  ;;  %v13279_v48 = vld [vmem:[#allocation95_spill] sm:$0xff] }
 0x711   : > { %v10114_v32 = vpop.eup %10113  ;;  %v7646_v57 = vrot.slane %v7632_v43, %v13268_v22  ;;  %v13278_v44 = vld [vmem:[#allocation90_spill] sm:$0xff] }
 0x712   : > { %v7832_v11 = vrot.slane %v12594_v8, %v13266_v9  ;;  %v7669_v62 = vrot.slane %v7647_v21, %v13268_v22  ;;  %v7677_v0 = vcombine.high %v7655_v63, %v7655_v63  ;;  %v7682_v31 = vrot.slane %v7655_v63, %v13266_v9 }
 0x713   : > { %7342 = vrot.lane.b32.xlu1 %v7341_v28, %s13212_s22  ;;  %v7662_v14 = vrot.slane %v7646_v57, %v13268_v22  ;;  %v7648_v10 = vcombine.high %v7646_v57, %v7646_v57 }
 0x714   : > { %7731 = vrot.lane.b32.xlu0 %v10114_v32, %s13207_s26  ;;  %v7686_v42 = vrot.slane %v7669_v62, %v13266_v9  ;;  %v7690_v34 = vrot.slane %v7677_v0, %v13266_v9  ;;  %v7709_v27 = vmul.f32 %v7682_v31, %v13274_v29  ;;  %v7678_v52 = vcombine.high %v7669_v62, %v7669_v62 }
 0x715   : > { %v7698_v55 = vrot.slane %v7662_v14, %v13266_v9  ;;  %v12628_v56 = vrot.slane %v7648_v10, %v13268_v22 }
 0x716   : > { %v7710_v58 = vmul.f32 %v7686_v42, %v13276_v53  ;;  %v12636_v28 = vmul.f32 %v7690_v34, %v13277_v45  ;;  %v7694_v49 = vrot.slane %v7678_v52, %v13266_v9 }
 0x717   : > { %v7702_v31 = vrot.slane %v12628_v56, %v13266_v9 }
 0x718   : > { %7356 = vrot.lane.b32.xlu0 %v7355_v41, %s13207_s26 }
 0x71c   : > { %7834 = vrot.lane.b32.xlu0 %v7832_v11, %s13267_s10 }
 0x765   : > { %v6888_v26 = vpop.permute.xlu1 %6887 }
 0x769   : > { %v6270_v33 = vpop.permute.xlu1 %6269 }
 0x76a   : > { %v6906_v13 = vpop.permute.xlu0 %6905  ;;  %v6293_v17 = vmul.f32 %v6270_v33, %v11973_v50 }
 0x76b   : > { %v6908_v30 = vsel %vm1584_vm1, %v6888_v26, %v6906_v13  ;;  %v12643_v26 = vmul.f32 %v7698_v55, %v13279_v48 }
 0x76c   : > { %7804 = vrot.lane.b32.xlu1 %v6908_v30, %s13270_s7  ;;  %v6301_v1 = vmul.f32 %v6293_v17, %v13271_v25  ;;  %v13280_v30 = vld [vmem:[#allocation88_spill] sm:$0xff]  ;;  %s10465_s7 = smov 16  }
 0x76d   : > { %v6274_v7 = vpop.permute.xlu1 %6273 }
 0x76e   : > { %v6309_v20 = vsel %vm5667_vm3, %v6301_v1, 0.0  ;;  %v6272_v12 = vpop.permute.xlu0 %6271  ;;  %v6295_v24 = vmul.f32 %v6274_v7, %v11973_v50 }
 0x76f   : > { %v6310_v38 = vrot.slane %v6309_v20, 4  ;;  %v6294_v39 = vmul.f32 %v6272_v12, %v11973_v50 }
 0x770   : > { %7838 = vrot.lane.b32.xlu1 %v11973_v50, %s10464_s28  ;;  %v6303_v23 = vmul.f32 %v6295_v24, %v13272_v35  ;;  %v13281_v24 = vld [vmem:[#allocation91_spill] sm:$0xff] }
 0x771   : > { %v6311_v2 = vadd.f32 %v6310_v38, %v6309_v20  ;;  %v6302_v46 = vmul.f32 %v6294_v39, %v13273_v18  ;;  %v6278_v54 = vpop.permute.xlu1 %6277 }
 0x772   : > { %v6323_v36 = vsel %vm5667_vm3, %v6303_v23, 0.0  ;;  %v6276_v15 = vpop.permute.xlu0 %6275  ;;  %v6297_v4 = vmul.f32 %v6278_v54, %v11973_v50 }
 0x773   : > { %v6312_v16 = vrot.slane %v6311_v2, 2  ;;  %v6316_v37 = vsel %vm5667_vm3, %v6302_v46, 0.0  ;;  %v6324_v60 = vrot.slane %v6323_v36, 4  ;;  %v6296_v6 = vmul.f32 %v6276_v15, %v11973_v50 }
 0x774   : > { %v6317_v19 = vrot.slane %v6316_v37, 4  ;;  %8074 = vrot.lane.b32.xlu1 %v7832_v11, %s13212_s22  ;;  %v6305_v40 = vmul.f32 %v6297_v4, %v13275_v51 }
 0x775   : > { %v6313_v5 = vadd.f32 %v6312_v16, %v6311_v2  ;;  %v6325_v32 = vadd.f32 %v6324_v60, %v6323_v36  ;;  %v6304_v59 = vmul.f32 %v6296_v6, %v13278_v44  ;;  %v6282_v3 = vpop.permute.xlu1 %6281  ;;  %v13282_v6 = vld [vmem:[#allocation97_spill] sm:$0xff] }
 0x776   : > { %v6318_v61 = vadd.f32 %v6317_v19, %v6316_v37  ;;  %v6337_v41 = vsel %vm5667_vm3, %v6305_v40, 0.0  ;;  %v6280_v22 = vpop.permute.xlu0 %6279  ;;  %v6299_v11 = vmul.f32 %v6282_v3, %v11973_v50  ;;  %v7712_v19 = vmul.f32 %v7694_v49, %v13282_v6 }
 0x777   : > { %v6314_v43 = vrot.slane %v6313_v5, 1  ;;  %v6326_v63 = vrot.slane %v6325_v32, 2  ;;  %v6330_v21 = vsel %vm5667_vm3, %v6304_v59, 0.0  ;;  %v6338_v33 = vrot.slane %v6337_v41, 4 }
 0x778   : > { %v6319_v13 = vrot.slane %v6318_v61, 2  ;;  %v6331_v17 = vrot.slane %v6330_v21, 4  ;;  %v6298_v57 = vmul.f32 %v6280_v22, %v11973_v50  ;;  %v6307_v25 = vmul.f32 %v6299_v11, %v13280_v30 }
 0x779   : > { %v6315_v1 = vadd.f32 %v6314_v43, %v6313_v5  ;;  %v6327_v62 = vadd.f32 %v6326_v63, %v6325_v32  ;;  %v6339_v0 = vadd.f32 %v6338_v33, %v6337_v41  ;;  %v7724_v7 = vpop.permute.xlu1 %7723  ;;  %v13283_v41 = vld [vmem:[#allocation92_spill] sm:$0xff]  ;;  %v13284_v63 = vld [vmem:[#allocation98_spill] sm:$0xff] }
 0x77a   : > { %v6320_v20 = vadd.f32 %v6319_v13, %v6318_v61  ;;  %v6332_v12 = vadd.f32 %v6331_v17, %v6330_v21  ;;  %v6306_v14 = vmul.f32 %v6298_v57, %v13281_v24  ;;  %v6351_v10 = vsel %vm5667_vm3, %v6307_v25, 0.0  ;;  %v7722_v38 = vpop.permute.xlu0 %7721 }
 0x77b   : > { %v6328_v39 = vrot.slane %v6327_v62, 1  ;;  %v6340_v35 = vrot.slane %v6339_v0, 2  ;;  %v6352_v23 = vrot.slane %v6351_v10, 4  ;;  %v7739_v42 = vmul.f32 %v7722_v38, %v7709_v27 }
 0x77c   : > { %v6321_v34 = vrot.slane %v6320_v20, 1  ;;  %v6333_v2 = vrot.slane %v6332_v12, 2  ;;  %v6344_v18 = vsel %vm5667_vm3, %v6306_v14, 0.0  ;;  %v7740_v46 = vmul.f32 %v7724_v7, %v7710_v58 }
 0x77d   : > { %v6329_v54 = vadd.f32 %v6328_v39, %v6327_v62  ;;  %v6341_v29 = vadd.f32 %v6340_v35, %v6339_v0  ;;  %v6345_v52 = vrot.slane %v6344_v18, 4  ;;  %v6353_v9 = vadd.f32 %v6352_v23, %v6351_v10  ;;  %v7726_v16 = vpop.permute.xlu1 %7725 }
 0x77e   : > { %v6322_v36 = vadd.f32 %v6321_v34, %v6320_v20  ;;  %v6334_v15 = vadd.f32 %v6333_v2, %v6332_v12  ;;  %v7745_v4 = vsel %vm5690_vm15, %v7739_v42, 0.0  ;;  %v7752_v55 = vsel %vm5690_vm15, %v7740_v46, 0.0  ;;  %v6284_v56 = vpop.permute.xlu0 %6283 }
 0x77f   : > { %v6346_v37 = vadd.f32 %v6345_v52, %v6344_v18  ;;  %v6354_v60 = vrot.slane %v6353_v9, 2  ;;  %v7746_v27 = vrot.slane %v7745_v4, 4  ;;  %v7753_v53 = vrot.slane %v7752_v55, 4 }
 0x780   : > { %v7795_v51 = vsel %vm4181_vm4, %v6322_v36, %v6315_v1  ;;  %v6335_v40 = vrot.slane %v6334_v15, 1  ;;  %v6300_v58 = vmul.f32 %v6284_v56, %v11973_v50  ;;  %v6342_v5 = vrot.slane %v6341_v29, 1 }
 0x781   : > { %v7796_v45 = vsel %vm4183_vm5, %v6329_v54, %v7795_v51  ;;  %v6347_v32 = vrot.slane %v6346_v37, 2  ;;  %v6355_v44 = vadd.f32 %v6354_v60, %v6353_v9  ;;  %v7747_v3 = vadd.f32 %v7746_v27, %v7745_v4  ;;  %v7730_v30 = vpop.permute.xlu1 %7729 }
 0x782   : > { %v6336_v59 = vadd.f32 %v6335_v40, %v6334_v15  ;;  %v7754_v61 = vadd.f32 %v7753_v53, %v7752_v55  ;;  %v6308_v22 = vmul.f32 %v6300_v58, %v13283_v41  ;;  %v7728_v11 = vpop.permute.xlu0 %7727  ;;  %v7741_v49 = vmul.f32 %v7726_v16, %v12636_v28 }
 0x783   : > { %v6348_v48 = vadd.f32 %v6347_v32, %v6346_v37  ;;  %v7742_v43 = vmul.f32 %v7728_v11, %v7712_v19  ;;  %v7714_v21 = vmul.f32 %v7702_v31, %v13284_v63  ;;  %v7748_v13 = vrot.slane %v7747_v3, 2 }
 0x784   : > { %v7797_v33 = vsel %vm4185_vm6, %v6336_v59, %v7796_v45  ;;  %v7755_v17 = vrot.slane %v7754_v61, 2  ;;  %v6358_v57 = vsel %vm5667_vm3, %v6308_v22, 0.0  ;;  %v6343_v25 = vadd.f32 %v6342_v5, %v6341_v29 }
 0x785   : > { %v6349_v1 = vrot.slane %v6348_v48, 1  ;;  %v6359_v62 = vrot.slane %v6358_v57, 4  ;;  %v7759_v0 = vsel %vm5690_vm15, %v7741_v49, 0.0  ;;  %v6356_v7 = vrot.slane %v6355_v44, 1 }
 0x786   : > { %v7756_v20 = vadd.f32 %v7755_v17, %v7754_v61  ;;  %v7760_v12 = vrot.slane %v7759_v0, 4  ;;  %v7766_v28 = vsel %vm5690_vm15, %v7742_v43, 0.0  ;;  %v7732_v24 = vpop.permute.xlu0 %7731  ;;  %v7749_v14 = vadd.f32 %v7748_v13, %v7747_v3 }
 0x787   : > { %v6360_v31 = vadd.f32 %v6359_v62, %v6358_v57  ;;  %v7767_v10 = vrot.slane %v7766_v28, 4  ;;  %v7743_v38 = vmul.f32 %v7730_v30, %v12643_v26  ;;  %v6350_v39 = vadd.f32 %v6349_v1, %v6348_v48  ;;  %v7343_v57 = vpop.permute.xlu1 %7342  ;;  %v10237_v1 = vld [vmem:[%s11797_s11] sm:$0xff]  ;;  %s12872_s11 = sand.u32 1, %s10406_s23  }
 0x788   : > { %v7757_v35 = vrot.slane %v7756_v20, 1  ;;  %v7761_v23 = vadd.f32 %v7760_v12, %v7759_v0  ;;  %v7744_v42 = vmul.f32 %v7732_v24, %v7714_v21  ;;  %v7798_v46 = vsel %vm4187_vm7, %v6343_v25, %v7797_v33  ;;  %s8587_s3 = scalar_lea.sflag [#allocation3], %s12872_s11 }
 0x789   : > { %v6361_v34 = vrot.slane %v6360_v31, 2  ;;  %v7768_v2 = vadd.f32 %v7767_v10, %v7766_v28  ;;  %v7773_v18 = vsel %vm5690_vm15, %v7743_v38, 0.0  ;;  %v6357_v54 = vadd.f32 %v6356_v7, %v6355_v44  ;;  %v10241_v10 = vld [vmem:[%s13192_s25 + $0x78] sm:$0xff] }
 0x78a   : > { %v7762_v29 = vrot.slane %v7761_v23, 2  ;;  %v7774_v52 = vrot.slane %v7773_v18, 4  ;;  %v7357_v9 = vpop.permute.xlu0 %7356  ;;  %v7750_v36 = vrot.slane %v7749_v14, 1  ;;  %v7780_v55 = vsel %vm5690_vm15, %v7744_v42, 0.0  ;;  %v13287_v42 = vld [vmem:[#allocation104_spill] sm:$0xff] }
 0x78b   : > { %v6362_v15 = vadd.f32 %v6361_v34, %v6360_v31  ;;  %v7769_v4 = vrot.slane %v7768_v2, 2  ;;  %v7781_v16 = vrot.slane %v7780_v55, 4  ;;  %v7758_v37 = vadd.f32 %v7757_v35, %v7756_v20  ;;  %v10238_v20 = vld [vmem:[%s13191_s24 + $0x18] sm:$0xff]  ;;  %v10240_v31 = vld [vmem:[%s13191_s24 + $0x8] sm:$0xff]  ;;  %v10242_v35 = vld [vmem:[%s13191_s24] sm:$0xff] }
 0x78c   : > { %v7763_v26 = vadd.f32 %v7762_v29, %v7761_v23  ;;  %v7775_v56 = vadd.f32 %v7774_v52, %v7773_v18  ;;  %v7799_v6 = vsel %vm4189_vm9, %v6350_v39, %v7798_v46  ;;  %v7751_v45 = vadd.f32 %v7750_v36, %v7749_v14  ;;  %v10239_v14 = vld [vmem:[%s13191_s24 + $0x10] sm:$0xff]  ;;  %v10244_v34 = vld [vmem:[%s13192_s25 + $0x68] sm:$0xff]  ;;  %v10246_v18 = vld [vmem:[%s13192_s25 + $0x60] sm:$0xff] }
 0x78d   : > { %v6363_v60 = vrot.slane %v6362_v15, 1  ;;  %v7770_v27 = vadd.f32 %v7769_v4, %v7768_v2  ;;  %v7782_v40 = vadd.f32 %v7781_v16, %v7780_v55  ;;  %v7800_v58 = vsel %vm4191_vm11, %v6357_v54, %v7799_v6  ;;  %v10243_v23 = vld [vmem:[%s13192_s25 + $0x70] sm:$0xff]  ;;  %v10245_v2 = vld [vmem:[%s13193_s29 + $0x78] sm:$0xff]  ;;  %v10249_v29 = vld [vmem:[%s13193_s29 + $0x68] sm:$0xff] }
 0x78e   : > { %v7764_v19 = vrot.slane %v7763_v26, 1  ;;  %v7776_v51 = vrot.slane %v7775_v56, 2  ;;  %v7835_v53 = vpop.permute.xlu0 %7834  ;;  %v7815_v61 = vsel %vm4181_vm4, %v7758_v37, %v7751_v45  ;;  %v7359_v30 = vsel %vm1584_vm1, %v7343_v57, %v7357_v9  ;;  %v10247_v46 = vld [vmem:[%s13193_s29 + $0x70] sm:$0xff]  ;;  %v10248_v54 = vld [vmem:[%s13192_s25 + $0x58] sm:$0xff]  ;;  %v10251_v9 = vld [vmem:[%s13193_s29 + $0x60] sm:$0xff] }
 0x78f   : > { %v6364_v5 = vadd.f32 %v6363_v60, %v6362_v15  ;;  %v7771_v32 = vrot.slane %v7770_v27, 1  ;;  %8999 = vmatprep.mubr.msk.f32.mxu1 %vm2169_vm2, %v7835_v53  ;;  %v7783_v3 = vrot.slane %v7782_v40, 2  ;;  %v13285_v28 = vmov 0.0   ;;  %v10250_v52 = vld [vmem:[%s13192_s25 + $0x50] sm:$0xff]  ;;  %v10252_v36 = vld [vmem:[%s13192_s25 + $0x48] sm:$0xff]  ;;  %v10253_v15 = vld [vmem:[%s13193_s29 + $0x58] sm:$0xff] }
 0x790   : > { %v7765_v44 = vadd.f32 %v7764_v19, %v7763_v26  ;;  %v7777_v59 = vadd.f32 %v7776_v51, %v7775_v56  ;;  %vm13286_vm4 = vcmask 392192   ;;  %v10254_v4 = vld [vmem:[%s13192_s25 + $0x40] sm:$0xff]  ;;  %v10255_v55 = vld [vmem:[%s13193_s29 + $0x50] sm:$0xff]  ;;  %v10256_v26 = vld [vmem:[%s13192_s25 + $0x38] sm:$0xff] }
 0x791   : > { %v7772_v41 = vadd.f32 %v7771_v32, %v7770_v27  ;;  %v7801_v22 = vsel %vm4193_vm10, %v6364_v5, %v7800_v58  ;;  %v7784_v48 = vadd.f32 %v7783_v3, %v7782_v40  ;;  %v10257_v56 = vld [vmem:[%s13193_s29 + $0x48] sm:$0xff]  ;;  %v10258_v16 = vld [vmem:[%s13192_s25 + $0x30] sm:$0xff]  ;;  %v10259_v37 = vld [vmem:[%s13193_s29 + $0x40] sm:$0xff] }
 0x792   : > { %v7778_v11 = vrot.slane %v7777_v59, 1  ;;  %v7816_v49 = vsel %vm4183_vm5, %v7765_v44, %v7815_v61  ;;  %v7807_v62 = vsel %vm1584_vm1, %v10237_v1, %v7801_v22  ;;  %v10260_v60 = vld [vmem:[%s13192_s25 + $0x28] sm:$0xff]  ;;  %v10261_v27 = vld [vmem:[%s13193_s29 + $0x38] sm:$0xff]  ;;  %v10262_v6 = vld [vmem:[%s13192_s25 + $0x20] sm:$0xff]  ;;  %vm13289_vm5 = vcmask 654336  }
 0x793   : > { %v7785_v63 = vrot.slane %v7784_v48, 1  ;;  %v7817_v21 = vsel %vm4185_vm6, %v7772_v41, %v7816_v49  ;;  %v10263_v19 = vld [vmem:[%s13193_s29 + $0x30] sm:$0xff]  ;;  %v10264_v51 = vld [vmem:[%s13192_s25 + $0x18] sm:$0xff]  ;;  %v10265_v40 = vld [vmem:[%s13193_s29 + $0x28] sm:$0xff] }
 0x794   : > { %v7779_v43 = vadd.f32 %v7778_v11, %v7777_v59  ;;  %v10267_v58 = vld [vmem:[%s13193_s29 + $0x20] sm:$0xff]  ;;  %v10268_v45 = vld [vmem:[%s13192_s25 + $0x8] sm:$0xff]  ;;  %v10269_v5 = vld [vmem:[%s13193_s29 + $0x18] sm:$0xff] }
 0x795   : > { %v7786_v33 = vadd.f32 %v7785_v63, %v7784_v48  ;;  %v10270_v32 = vld [vmem:[%s13192_s25] sm:$0xff]  ;;  %v10271_v44 = vld [vmem:[%s13193_s29 + $0x10] sm:$0xff]  ;;  %v10272_v59 = vld [vmem:[%s13192_s25 + $0xb8] sm:$0xff] }
 0x796   : > { %v7818_v13 = vsel %vm4187_vm7, %v7779_v43, %v7817_v21  ;;  %v10273_v3 = vld [vmem:[%s13193_s29 + $0x8] sm:$0xff]  ;;  %v10274_v61 = vld [vmem:[%s13192_s25 + $0xb0] sm:$0xff]  ;;  %v10275_v41 = vld [vmem:[%s13193_s29] sm:$0xff] }
 0x797   : > { %v7819_v17 = vsel %vm4189_vm9, %v7786_v33, %v7818_v13  ;;  %v10276_v22 = vld [vmem:[%s13192_s25 + $0xa8] sm:$0xff]  ;;  %v10277_v48 = vld [vmem:[%s13193_s29 + $0x98] sm:$0xff]  ;;  %v10278_v49 = vld [vmem:[%s13192_s25 + $0xa0] sm:$0xff] }
 0x798   : > { %7820 = vrot.lane.b32.xlu0 %v7819_v17, %s10465_s7  ;;  %v10279_v43 = vld [vmem:[%s13193_s29 + $0x90] sm:$0xff]  ;;  %v10280_v63 = vld [vmem:[%s11889_s21] sm:$0x3f]  ;;  %v10281_v33 = vld [vmem:[%s13192_s25 + $0x98] sm:$0xff]  ;;  %s13291_s21 = sld [smem:[#allocation31_spill]] }
 0x799   : > { %v10282_v17 = vld [vmem:[%s13193_s29 + $0x88] sm:$0xff]  ;;  %s13296_s7 = sld [smem:[#allocation46_spill]] }
 0x79a   : > { %v10285_v1 = vld [vmem:[%s13192_s25 + $0x88] sm:$0xff] }
 0x79c   : > { %7824 = vrot.lane.b32.xlu0 %v7359_v30, %s13267_s10  ;;  %v10283_v30 = vld [vmem:[%s13192_s25 + $0x90] sm:$0xff]  ;;  %s8879_s10 = sshll.u32 %s12872_s11, 3 }
 0x79d   : > { %s12888_s28 = scalar_lea.vmem [#allocation2], %s8879_s10 }
 0x7de   : > { %v7805_v25 = vpop.permute.xlu1 %7804 }
 0x7df   : > { %v7808_v0 = vsel %vm5133_vm12, %v7807_v62, %v7805_v25  ;;  %v10284_v25 = vld [vmem:[%s13193_s29 + $0x80] sm:$0xff]  ;;  %v10286_v62 = vld [vmem:[%s13195_s19 + $0x18] sm:$0xff] }
 0x7e0   : > { %v7837_v7 = vsel %vm5157_vm13, %v7808_v0, %v7835_v53  ;;  %v10287_v0 = vld [vmem:[%s13192_s25 + $0x80] sm:$0xff] }
 0x7e1   : > { %7988 = vmatmul.mubr.f32.vlgmr.msra.gmra.mxu1 %v7837_v7 }
 0x7e2   : > { %9694 = vmatpush3.msra.mxu1 %v10238_v20  ;;  %v7839_v12 = vpop.permute.xlu1 %7838  ;;  %9701 = vmatprep.mubr.msk.f32.mxu1 %vm10456_vm0, %v13285_v28  ;;  %v10289_v20 = vld [vmem:[%s13195_s19 + $0x8] sm:$0xff] }
 0x7e3   : > { %v7841_v24 = vsel %vm2169_vm2, %v7835_v53, %v7839_v12  ;;  %9695 = vmatprep.subr.mxu1 %v13285_v28  ;;  %v10266_v53 = vld [vmem:[%s13192_s25 + $0x10] sm:$0xff]  ;;  %vm13288_vm2 = vmmov %vm13286_vm4  ;;  %v10290_v12 = vld [vmem:[%s13195_s19] sm:$0xff] }
 0x7e4   : > { %9696 = vmatpush3.msra.mxu1 %v10239_v14  ;;  %8997 = vmatprep.mubr.msk.f32.mxu0 %vm13286_vm4, %v7841_v24  ;;  %v10291_v24 = vld [vmem:[%s13208_s0 + $0x58] sm:$0xff]  ;;  %v13290_v14 = vld [vmem:[#allocation105_spill] sm:$0xff] }
 0x7e5   : > { %9697 = vmatprep.subr.mxu1 %v13285_v28  ;;  %7910 = vmatmul.mubr.f32.vlgmr.msra.gmra.mxu0 %v7837_v7  ;;  %v10288_v7 = vld [vmem:[%s13195_s19 + $0x10] sm:$0xff] }
 0x7e6   : > { %9698 = vmatpush3.msra.mxu1 %v10240_v31  ;;  %8082 = vmatpush1.msra.mxu0 %v10241_v10  ;;  %v8075_v38 = vpop.permute.xlu1 %8074  ;;  %v10292_v31 = vld [vmem:[%s13208_s0 + $0x50] sm:$0xff]  ;;  %v10293_v10 = vld [vmem:[%s13210_s2 + $0x38] sm:$0xff] }
 0x7e7   : > { %v8077_v39 = vsel %vm1584_vm1, %v8075_v38, %v13269_v47  ;;  %9699 = vmatprep.subr.mxu1 %v13285_v28  ;;  %8083 = vmatprep.subr.mxu0 %v13285_v28 }
 0x7e8   : > { %9700 = vmatpush3.msra.mxu1 %v10242_v35  ;;  %8084 = vmatpush1.msra.mxu0 %v10243_v23  ;;  %v10296_v35 = vld [vmem:[%s13208_s0 + $0x40] sm:$0xff]  ;;  %v10297_v23 = vld [vmem:[%s13210_s2 + $0x28] sm:$0xff] }
 0x7e9   : > { %9702 = vmatmul.mubr.msk.f32.vlgmr.msra.gmra.mxu1 %vm1584_vm1, %v13287_v42  ;;  %8085 = vmatprep.subr.mxu0 %v13285_v28  ;;  %v10298_v42 = vld [vmem:[%s13208_s0 + $0x38] sm:$0xff] }
 0x7ea   : > { %9001 = vmatprep.mubr.msk.f32.mxu0 %vm5133_vm12, %v8077_v39  ;;  %8159 = vmatprep.subr.mxu1 %v13285_v28  ;;  %v10295_v39 = vld [vmem:[%s13210_s2 + $0x30] sm:$0xff] }
 0x7eb   : > { %8086 = vmatpush1.msra.mxu0 %v10244_v34  ;;  %8160 = vmatpush1.msra.mxu1 %v10245_v2  ;;  %v10299_v34 = vld [vmem:[%s13210_s2 + $0x20] sm:$0xff]  ;;  %v10300_v2 = vld [vmem:[%s13208_s0 + $0x30] sm:$0xff] }
 0x7ec   : > { %9003 = vmatprep.mubr.msk.f32.mxu1 %vm1584_vm1, %v8075_v38  ;;  %8087 = vmatprep.subr.mxu0 %v13285_v28  ;;  %v10294_v38 = vld [vmem:[%s13208_s0 + $0x48] sm:$0xff] }
 0x7ed   : > { %8161 = vmatprep.subr.mxu1 %v13285_v28  ;;  %8088 = vmatpush1.msra.mxu0 %v10246_v18  ;;  %v10301_v18 = vld [vmem:[%s13210_s2 + $0x18] sm:$0xff] }
 0x7ee   : > { %8162 = vmatpush1.msra.mxu1 %v10247_v46  ;;  %8089 = vmatprep.subr.mxu0 %v13285_v28  ;;  %v10302_v46 = vld [vmem:[%s13208_s0 + $0x28] sm:$0xff] }
 0x7ef   : > { %8163 = vmatprep.subr.mxu1 %v13285_v28  ;;  %8090 = vmatpush1.msra.mxu0 %v10248_v54  ;;  %v10303_v54 = vld [vmem:[%s13210_s2 + $0x10] sm:$0xff] }
 0x7f0   : > { %8164 = vmatpush1.msra.mxu1 %v10249_v29  ;;  %8091 = vmatprep.subr.mxu0 %v13285_v28  ;;  %v10304_v29 = vld [vmem:[%s13208_s0 + $0x20] sm:$0xff] }
 0x7f1   : > { %8165 = vmatprep.subr.mxu1 %v13285_v28  ;;  %8092 = vmatpush1.msra.mxu0 %v10250_v52  ;;  %v10305_v52 = vld [vmem:[%s13210_s2 + $0x8] sm:$0xff] }
 0x7f2   : > { %8166 = vmatpush1.msra.mxu1 %v10251_v9  ;;  %8093 = vmatprep.subr.mxu0 %v13285_v28  ;;  %v10306_v9 = vld [vmem:[%s13208_s0 + $0x18] sm:$0xff] }
 0x7f3   : > { %8167 = vmatprep.subr.mxu1 %v13285_v28  ;;  %8094 = vmatpush1.msra.mxu0 %v10252_v36  ;;  %v10307_v36 = vld [vmem:[%s13210_s2] sm:$0xff]  ;;  %s8604_s2 = sshll.u32 %s12888_s28, 4  ;;  %s8605_s2 = int_to_ptr.vmem [resolvable:$true] %s8604_s2 }
 0x7f4   : > { %8168 = vmatpush1.msra.mxu1 %v10253_v15  ;;  %8095 = vmatprep.subr.mxu0 %v13285_v28  ;;  %v10308_v15 = vld [vmem:[%s13208_s0 + $0x10] sm:$0xff]  ;;  %s10324_s4 = scalar_lea.vmem %s8605_s2, 128 }
 0x7f5   : > { %8169 = vmatprep.subr.mxu1 %v13285_v28  ;;  %8096 = vmatpush1.msra.mxu0 %v10254_v4  ;;  %v10309_v4 = vld [vmem:[%s13208_s0 + $0x8] sm:$0xff]  ;;  %p10325_p11 = scmp.ne.s32.totalorder %s8605_s2, %s10324_s4 }
 0x7f6   : > { %8170 = vmatpush1.msra.mxu1 %v10255_v55  ;;  %8097 = vmatprep.subr.mxu0 %v13285_v28  ;;  %v10310_v55 = vld [vmem:[%s13208_s0] sm:$0xff]  ;;  %s9010_s0 = sshll.u32 %s13296_s7, 7 }
 0x7f7   : > { %8171 = vmatprep.subr.mxu1 %v13285_v28  ;;  %8098 = vmatpush1.msra.mxu0 %v10256_v26  ;;  %p10326_p12 = pnand %p10325_p11, %p10711_p5 }
 0x7f8   : > { %8172 = vmatpush1.msra.mxu1 %v10257_v56  ;;  %8099 = vmatprep.subr.mxu0 %v13285_v28 }
 0x7f9   : > { %8173 = vmatprep.subr.mxu1 %v13285_v28  ;;  %8100 = vmatpush1.msra.mxu0 %v10258_v16  ;;  %p10327_p13 = pneg %p10326_p12 }
 0x7fa   : > { %8174 = vmatpush1.msra.mxu1 %v10259_v37  ;;  %8101 = vmatprep.subr.mxu0 %v13285_v28  ;;  %v10311_v37 = vld [vmem:[%s13199_s13] ss:$0 sm:$0xff] }
 0x7fb   : > { %8175 = vmatprep.subr.mxu1 %v13285_v28  ;;  %8102 = vmatpush1.msra.mxu0 %v10260_v60 }
 0x7fc   : > { %8176 = vmatpush1.msra.mxu1 %v10261_v27  ;;  %8103 = vmatprep.subr.mxu0 %v13285_v28 }
 0x7fd   : > { %8177 = vmatprep.subr.mxu1 %v13285_v28  ;;  %8104 = vmatpush1.msra.mxu0 %v10262_v6 }
 0x7fe   : > { %8178 = vmatpush1.msra.mxu1 %v10263_v19  ;;  %8105 = vmatprep.subr.mxu0 %v13285_v28 }
 0x7ff   : > { %8179 = vmatprep.subr.mxu1 %v13285_v28  ;;  %8106 = vmatpush1.msra.mxu0 %v10264_v51 }
 0x800   : > { %8180 = vmatpush1.msra.mxu1 %v10265_v40  ;;  %8107 = vmatprep.subr.mxu0 %v13285_v28 }
 0x801   : > { %8181 = vmatprep.subr.mxu1 %v13285_v28  ;;  %8108 = vmatpush1.msra.mxu0 %v10266_v53 }
 0x802   : > { %8182 = vmatpush1.msra.mxu1 %v10267_v58  ;;  %8109 = vmatprep.subr.mxu0 %v13285_v28  ;;  %v10312_v58 = vld [vmem:[%s13200_s15] ss:$0 sm:$0xff] }
 0x803   : > { %8183 = vmatprep.subr.mxu1 %v13285_v28  ;;  %8110 = vmatpush1.msra.mxu0 %v10268_v45 }
 0x804   : > { %8184 = vmatpush1.msra.mxu1 %v10269_v5  ;;  %8111 = vmatprep.subr.mxu0 %v13285_v28 }
 0x805   : > { %8185 = vmatprep.subr.mxu1 %v13285_v28  ;;  %8112 = vmatpush1.msra.mxu0 %v10270_v32  ;;  %v10313_v32 = vld [vmem:[%s13202_s6] ss:$0 sm:$0xff] }
 0x806   : > { %8186 = vmatpush1.msra.mxu1 %v10271_v44  ;;  %8129 = vmatprep.subr.mxu0 %v13285_v28 }
 0x807   : > { %8187 = vmatprep.subr.mxu1 %v13285_v28  ;;  %8130 = vmatpush2.msra.mxu0 %v10272_v59 }
 0x808   : > { %8188 = vmatpush1.msra.mxu1 %v10273_v3  ;;  %8131 = vmatprep.subr.mxu0 %v13285_v28 }
 0x809   : > { %8189 = vmatprep.subr.mxu1 %v13285_v28  ;;  %8132 = vmatpush2.msra.mxu0 %v10274_v61 }
 0x80a   : > { %8190 = vmatpush1.msra.mxu1 %v10275_v41  ;;  %8133 = vmatprep.subr.mxu0 %v13285_v28  ;;  %v7821_v11 = vpop.permute.xlu0 %7820 }
 0x80b   : > { %8215 = vmatprep.subr.mxu1 %v13285_v28  ;;  %8134 = vmatpush2.msra.mxu0 %v10276_v22  ;;  %v7827_v21 = vsel %vm13288_vm2, %v10280_v63, %v7821_v11  ;;  %v10314_v11 = vld [vmem:[%s13291_s21] ss:$0 sm:$0xff]  ;;  %s13297_s21 = sld [smem:[#allocation41_spill]] }
 0x80c   : > { %8216 = vmatpush2.msra.mxu1 %v10277_v48  ;;  %8135 = vmatprep.subr.mxu0 %v13285_v28 }
 0x80d   : > { %8217 = vmatprep.subr.mxu1 %v13285_v28  ;;  %8136 = vmatpush2.msra.mxu0 %v10278_v49 }
 0x80e   : > { %8218 = vmatpush2.msra.mxu1 %v10279_v43  ;;  %8137 = vmatprep.subr.mxu0 %v13285_v28  ;;  %v7825_v13 = vpop.permute.xlu0 %7824 }
 0x80f   : > { %8219 = vmatprep.subr.mxu1 %v13285_v28  ;;  %8138 = vmatpush2.msra.mxu0 %v10281_v33  ;;  %v7828_v57 = vsel %vm13289_vm5, %v7827_v21, %v7825_v13 }
 0x810   : > { %8220 = vmatpush2.msra.mxu1 %v10282_v17  ;;  %8139 = vmatprep.subr.mxu0 %v13285_v28 }
 0x811   : > { %8221 = vmatprep.subr.mxu1 %v13285_v28  ;;  %8140 = vmatpush2.msra.mxu0 %v10283_v30 }
 0x812   : > { %8222 = vmatpush2.msra.mxu1 %v10284_v25  ;;  %8141 = vmatprep.subr.mxu0 %v13285_v28 }
 0x813   : > { %8224 = vmatmul.mubr.f32.vlgmr.msra.gmra.mxu1 %v7828_v57  ;;  %9704 = vmatprep.subr.mxu1 %v13285_v28 }
 0x814   : > { %8142 = vmatpush2.msra.mxu0 %v10285_v1  ;;  %9705 = vmatpush3.msra.mxu1 %v10286_v62  ;;  %v10316_v1 = vld [vmem:[%s13206_s1] ss:$0 sm:$0xff]  ;;  %s8602_s1 = scalar_lea.hbm %s13297_s21, %s9010_s0 }
 0x815   : > { %8143 = vmatprep.subr.mxu0 %v13285_v28  ;;  %9706 = vmatprep.subr.mxu1 %v13285_v28 }
 0x816   : > { %8144 = vmatpush2.msra.mxu0 %v10287_v0  ;;  %9707 = vmatpush3.msra.mxu1 %v10288_v7 }
 0x817   : > { %8146 = vmatmul.mubr.f32.vlgmr.msra.gmra.mxu0 %v7828_v57  ;;  %9708 = vmatprep.subr.mxu1 %v13285_v28  ;;  %v10315_v57 = vld [vmem:[%s13205_s16] ss:$0 sm:$0xff] }
 0x818   : > { %9709 = vmatpush3.msra.mxu1 %v10289_v20  ;;  %9712 = vmatprep.mubr.msk.f32.mxu1 %vm10456_vm0, %v13285_v28 }
 0x819   : > { %9710 = vmatprep.subr.mxu1 %v13285_v28  ;;  %9715 = vmatprep.subr.mxu0 %v13285_v28 }
 0x81a   : > { %9711 = vmatpush3.msra.mxu1 %v10290_v12  ;;  %9716 = vmatpush3.msra.mxu0 %v10291_v24 }
 0x81b   : > { %9713 = vmatmul.mubr.msk.f32.vlgmr.msra.gmra.mxu1 %vm1584_vm1, %v13290_v14  ;;  %9717 = vmatprep.subr.mxu0 %v13285_v28 }
 0x81c   : > { %9718 = vmatpush3.msra.mxu0 %v10292_v31  ;;  %9742 = vmatprep.subr.mxu1 %v13285_v28 }
 0x81d   : > { %9719 = vmatprep.subr.mxu0 %v13285_v28  ;;  %9743 = vmatpush3.msra.mxu1 %v10293_v10 }
 0x81e   : > { %9720 = vmatpush3.msra.mxu0 %v10294_v38  ;;  %9744 = vmatprep.subr.mxu1 %v13285_v28  ;;  %v13292_v38 = vld [vmem:[#allocation99_spill] sm:$0xff] }
 0x81f   : > { %9721 = vmatprep.subr.mxu0 %v13285_v28  ;;  %9745 = vmatpush3.msra.mxu1 %v10295_v39 }
 0x820   : > { %9722 = vmatpush3.msra.mxu0 %v10296_v35  ;;  %9746 = vmatprep.subr.mxu1 %v13285_v28 }
 0x821   : > { %9723 = vmatprep.subr.mxu0 %v13285_v28  ;;  %9747 = vmatpush3.msra.mxu1 %v10297_v23 }
 0x822   : > { %9724 = vmatpush3.msra.mxu0 %v10298_v42  ;;  %9748 = vmatprep.subr.mxu1 %v13285_v28 }
 0x823   : > { %9725 = vmatprep.subr.mxu0 %v13285_v28  ;;  %9749 = vmatpush3.msra.mxu1 %v10299_v34 }
 0x824   : > { %9726 = vmatpush3.msra.mxu0 %v10300_v2  ;;  %9750 = vmatprep.subr.mxu1 %v13285_v28 }
 0x825   : > { %9727 = vmatprep.subr.mxu0 %v13285_v28  ;;  %9751 = vmatpush3.msra.mxu1 %v10301_v18 }
 0x826   : > { %9728 = vmatpush3.msra.mxu0 %v10302_v46  ;;  %9752 = vmatprep.subr.mxu1 %v13285_v28 }
 0x827   : > { %9729 = vmatprep.subr.mxu0 %v13285_v28  ;;  %9753 = vmatpush3.msra.mxu1 %v10303_v54  ;;  %v13293_v54 = vld [vmem:[#allocation100_spill] sm:$0xff] }
 0x828   : > { %9730 = vmatpush3.msra.mxu0 %v10304_v29  ;;  %9754 = vmatprep.subr.mxu1 %v13285_v28 }
 0x829   : > { %9731 = vmatprep.subr.mxu0 %v13285_v28  ;;  %9755 = vmatpush3.msra.mxu1 %v10305_v52 }
 0x82a   : > { %9732 = vmatpush3.msra.mxu0 %v10306_v9  ;;  %9756 = vmatprep.subr.mxu1 %v13285_v28 }
 0x82b   : > { %9733 = vmatprep.subr.mxu0 %v13285_v28  ;;  %9757 = vmatpush3.msra.mxu1 %v10307_v36 }
 0x82c   : > { %9734 = vmatpush3.msra.mxu0 %v10308_v15  ;;  %9758 = vmatprep.mubr.msk.f32.mxu1 %vm10456_vm0, %v13285_v28 }
 0x82d   : > { %9735 = vmatprep.subr.mxu0 %v13285_v28  ;;  %9761 = vmatprep.subr.mxu1 %v13285_v28 }
 0x82e   : > { %9736 = vmatpush3.msra.mxu0 %v10309_v4  ;;  %9739 = vmatprep.mubr.msk.f32.mxu0 %vm10456_vm0, %v13285_v28  ;;  %v13294_v4 = vld [vmem:[#allocation101_spill] sm:$0xff] }
 0x82f   : > { %9737 = vmatprep.subr.mxu0 %v13285_v28 }
 0x830   : > { %9738 = vmatpush3.msra.mxu0 %v10310_v55 }
 0x8a1   : > { %v7989_v26 = vpop.f32.mrf.mxu1 }
 0x8a2   : > { %v7990_v44 = vadd.f32 %v10313_v32, %v7989_v26  ;;  %v10318_v32 = vld [vmem:[%s10656_s9 + $0x10] sm:$0xff] }
 0x8a3   : > { %v7991_v56 = vpop.f32.mrf.mxu1 }
 0x8a5   : > { %v7911_v16 = vpop.f32.mrf.mxu0 }
 0x8a6   : > { %v7912_v60 = vadd.f32 %v10311_v37, %v7911_v16 }
 0x8a7   : > { %v7913_v27 = vpop.f32.mrf.mxu0 }
 0x8a8   : > { %v8998_v6 = vmul.f32 -1.442695, %v7912_v60 }
 0x8a9   : > { %v8059_v19 = vpop.f32.mrf.mxu1 }
 0x8aa   : > { %10115 = vpow2.f32 %v8998_v6  ;;  %v8060_v45 = vadd.f32 %v10312_v58, %v8059_v19  ;;  %v13295_v19 = vld [vmem:[#allocation103_spill] sm:$0xff] }
 0x8ab   : > { %v9703_v51 = vpop.f32.mrf.mxu1 }
 0x8b7   : > { %v10116_v40 = vpop.eup %10115 }
 0x8b8   : > { %v7918_v53 = vadd.f32 1.0, %v10116_v40 }
 0x8ba   : > { %10117 = vrcp.f32 %v7918_v53 }
 0x8c7   : > { %v10118_v5 = vpop.eup %10117 }
 0x8c8   : > { %v8063_v59 = vmul.f32 %v10118_v5, %v8060_v45  ;;  %v8067_v12 = vsub.f32 1.0, %v10118_v5  ;;  %v8066_v14 = vmul.f32 %v10118_v5, %v11973_v50  ;;  %v10317_v45 = vld [vmem:[%s10656_s9 + $0x18] sm:$0xff] }
 0x8ca   : > { %v8064_v3 = vadd.f32 %v8063_v59, %v7990_v44  ;;  %v10319_v44 = vld [vmem:[%s10656_s9 + $0x8] sm:$0xff] }
 0x8cc   : > { %10119 = vtanh.f32 %v8064_v3  ;;  %v10320_v3 = vld [vmem:[%s10656_s9] sm:$0xff] }
 0x8d3   : > { %v8225_v61 = vpop.f32.mrf.mxu1 }
 0x8d4   : > { %v8226_v62 = vadd.f32 %v10316_v1, %v8225_v61 }
 0x8d5   : > { %v8227_v41 = vpop.f32.mrf.mxu1 }
 0x8d7   : > { %v8147_v22 = vpop.f32.mrf.mxu0 }
 0x8d8   : > { %v8148_v48 = vadd.f32 %v10314_v11, %v8147_v22  ;;  %v10321_v22 = vld [vmem:[%s13220_s12] sm:$0x1] }
 0x8d9   : > { %v10120_v49 = vpop.eup %10119  ;;  %v8149_v43 = vpop.f32.mrf.mxu0 }
 0x8da   : > { %v9002_v63 = vmul.f32 -1.442695, %v8148_v48  ;;  %8069 = vrot.lane.b32.xlu1 %v10120_v49, %s13207_s26 }
 0x8db   : > { %v8295_v21 = vpop.f32.mrf.mxu1 }
 0x8dc   : > { %10121 = vpow2.f32 %v9002_v63  ;;  %v8296_v30 = vadd.f32 %v10315_v57, %v8295_v21 }
 0x8dd   : > { %v9714_v33 = vpop.f32.mrf.mxu1 }
 0x8e9   : > { %v10122_v13 = vpop.eup %10121 }
 0x8ea   : > { %v8154_v17 = vadd.f32 1.0, %v10122_v13  ;;  %v10322_v13 = vld [vmem:[%s13105_s5] sm:$0x1]  ;;  %s10466_s5 = smov [#allocation2]  }
 0x8eb   : > { %s10328_s6 = sshll.u32 %s10466_s5, 4  ;;  %s10329_s6 = int_to_ptr.vmem [resolvable:$false] %s10328_s6 }
 0x8ec   : > { %10123 = vrcp.f32 %v8154_v17  ;;  %s10330_s8 = scalar_lea.vmem %s10329_s6, 256  ;;  %p10331_p0 = scmp.lt.s32.totalorder %s8605_s2, %s10329_s6 }
 0x8ed   : > { %p10332_p1 = scmp.lt.s32.totalorder %s10330_s8, %s10324_s4 }
 0x8ef   : > { %p10333_p2 = por %p10332_p1, %p10331_p0 }
 0x8f1   : > { %p10334_p3 = pnand %p10333_p2, %p10327_p13 }
 0x8f9   : > { %v10124_v25 = vpop.eup %10123 }
 0x8fa   : > { %v8299_v0 = vmul.f32 %v10124_v25, %v8296_v30  ;;  %v8303_v52 = vsub.f32 1.0, %v10124_v25  ;;  %v8302_v36 = vmul.f32 %v10124_v25, %v13269_v47  ;;  %v10323_v30 = vld [vmem:[%s13223_s14] sm:$0x1] }
 0x8fc   : > { %v8300_v7 = vadd.f32 %v8299_v0, %v8226_v62 }
 0x8fe   : > { %10125 = vtanh.f32 %v8300_v7 }
 0x90b   : > { %v10126_v20 = vpop.eup %10125 }
 0x90c   : > { %8305 = vrot.lane.b32.xlu0 %v10126_v20, %s13207_s26 }
 0x910   : > { %8334 = vrot.lane.b32.xlu0 %v12594_v8, %s13207_s26 }
 0x94c   : > { %v8070_v24 = vpop.permute.xlu1 %8069 }
 0x94d   : > { %v8072_v31 = vmul.f32 %v8070_v24, %v8067_v12 }
 0x94f   : > { %v8073_v10 = vadd.f32 %v8072_v31, %v8066_v14 }
 0x951   : > { %v8310_v39 = vmul.f32 %v8073_v10, %v13292_v38 }
 0x953   : > { %v8312_v35 = vsel %vm5667_vm3, %v8310_v39, 0.0 }
 0x954   : > { %v8313_v23 = vrot.slane %v8312_v35, 4 }
 0x956   : > { %v8314_v42 = vadd.f32 %v8313_v23, %v8312_v35 }
 0x958   : > { %v8315_v34 = vrot.slane %v8314_v42, 2 }
 0x95a   : > { %v8316_v2 = vadd.f32 %v8315_v34, %v8314_v42 }
 0x95c   : > { %v8317_v18 = vrot.slane %v8316_v2, 1 }
 0x95e   : > { %v8318_v46 = vadd.f32 %v8317_v18, %v8316_v2 }
 0x960   : > { %v8319_v29 = vmul.f32 %v13293_v54, %v8318_v46 }
 0x962   : > { %8329 = vrot.lane.b32.xlu1 %v8319_v29, %s13212_s22 }
 0x966   : > { %8490 = vrot.lane.b32.xlu1 %v12594_v8, %s13212_s22 }
 0x96a   : > { %8576 = vrot.lane.b32.xlu1 %v8310_v39, %s13212_s22 }
 0x97e   : > { %v8306_v50 = vpop.permute.xlu0 %8305 }
 0x97f   : > { %v8308_v9 = vmul.f32 %v8306_v50, %v8303_v52 }
 0x981   : > { %v8309_v15 = vadd.f32 %v8308_v9, %v8302_v36 }
 0x982   : > { %v8335_v47 = vpop.permute.xlu0 %8334 }
 0x983   : > { %v8311_v55 = vmul.f32 %v8309_v15, %v13294_v4 }
 0x985   : > { %v8320_v26 = vsel %vm5690_vm15, %v8311_v55, 0.0 }
 0x986   : > { %v8321_v56 = vrot.slane %v8320_v26, 4 }
 0x988   : > { %v8322_v16 = vadd.f32 %v8321_v56, %v8320_v26 }
 0x98a   : > { %v8323_v37 = vrot.slane %v8322_v16, 2 }
 0x98c   : > { %v8324_v60 = vadd.f32 %v8323_v37, %v8322_v16 }
 0x98e   : > { %v8325_v27 = vrot.slane %v8324_v60, 1 }
 0x990   : > { %v8326_v6 = vadd.f32 %v8325_v27, %v8324_v60 }
 0x992   : > { %v8327_v51 = vmul.f32 %v13295_v19, %v8326_v6 }
 0x9d4   : > { %v8330_v40 = vpop.permute.xlu1 %8329 }
 0x9d5   : > { %v8332_v53 = vsel %vm1584_vm1, %v8330_v40, %v8327_v51 }
 0x9d6   : > { %v8337_v58 = vsel %vm5133_vm12, %v8332_v53, %v8335_v47  ;;  %9759 = vmatmul.mubr.msk.f32.vlgmr.msra.gmra.mxu1 %vm5133_vm12, %v8332_v53 }
 0x9d7   : > { %9762 = vmatpush3.msra.mxu1 %v10317_v45  ;;  %9740 = vmatmul.mubr.msk.f32.vlgmr.msra.gmra.mxu0 %vm5720_vm14, %v8337_v58 }
 0x9d8   : > { %9763 = vmatprep.subr.mxu1 %v13285_v28  ;;  %v8491_v5 = vpop.permute.xlu1 %8490  ;;  %9769 = vmatprep.mubr.msk.f32.mxu1 %vm10456_vm0, %v13285_v28 }
 0x9d9   : > { %9764 = vmatpush3.msra.mxu1 %v10318_v32 }
 0x9da   : > { %9765 = vmatprep.subr.mxu1 %v13285_v28 }
 0x9db   : > { %9766 = vmatpush3.msra.mxu1 %v10319_v44 }
 0x9dc   : > { %9767 = vmatprep.subr.mxu1 %v13285_v28  ;;  %v8577_v59 = vpop.permute.xlu1 %8576 }
 0x9dd   : > { %9768 = vmatpush3.msra.mxu1 %v10320_v3  ;;  %8579 = vst.msk [vmem:[%s12888_s28] sm:$0xff] %vm1584_vm1, %v8577_v59 }
 0x9de   : > { %9770 = vmatmul.mubr.msk.f32.vlgmr.msra.gmra.mxu1 %vm1584_vm1, %v8491_v5 }
 0xa96   : > { %v8486_v61 = vpop.f32.mrf.mxu1 }
 0xa97   : > { %v8407_v41 = vpop.f32.mrf.mxu0  ;;  %v8487_v25 = vadd.f32 %v10323_v30, %v8486_v61 }
 0xa98   : > { %v8408_v11 = vadd.f32 %v10321_v22, %v8407_v41  ;;  %v9760_v48 = vpop.f32.mrf.mxu1 }
 0xa99   : > { %v9741_v49 = vpop.f32.mrf.mxu0 }
 0xa9a   : > { %v9006_v43 = vmul.f32 -1.442695, %v8408_v11 }
 0xa9c   : > { %10127 = vpow2.f32 %v9006_v43 }
 0xa9e   : > { %v8560_v28 = vpop.f32.mrf.mxu1 }
 0xa9f   : > { %v8561_v17 = vadd.f32 %v10322_v13, %v8560_v28 }
 0xaa0   : > { %v9771_v63 = vpop.f32.mrf.mxu1 }
 0xaa9   : > { %v10128_v21 = vpop.eup %10127 }
 0xaaa   : > { %v8414_v33 = vadd.f32 1.0, %v10128_v21 }
 0xaac   : > { %10129 = vrcp.f32 %v8414_v33 }
 0xab9   : > { %v10130_v57 = vpop.eup %10129 }
 0xaba   : > { %v8564_v1 = vmul.f32 %v10130_v57, %v8561_v17 }
 0xabc   : > { %v8565_v62 = vadd.f32 %v8564_v1, %v8487_v25 }
 0xabe   : > { %10131 = vtanh.f32 %v8565_v62 }
 0xacb   : > { %v10132_v0 = vpop.eup %10131 }
 0xacc   : > { %8570 = vrot.lane.b32.xlu0 %v10132_v0, %s13207_s26 }
 0xacd   : > { %10337 = shalt.err (!%p10334_p3)
}
 0xace   : > { %s10338_s26 = scalar_lea.hbm %s8602_s1, 128  ;;  %s10342_s0 = scalar_lea.hbm %s13297_s21, 256 }
 0xacf   : > { %p10339_p4 = scmp.ne.s32.totalorder %s8602_s1, %s10338_s26  ;;  %p10343_p9 = scmp.lt.s32.totalorder %s8602_s1, %s13297_s21 }
 0xad0   : > { %p10344_p10 = scmp.lt.s32.totalorder %s10342_s0, %s10338_s26 }
 0xad1   : > { %p10340_p7 = pnand %p10339_p4, %p10711_p5 }
 0xad2   : > { %p10345_p11 = por %p10344_p10, %p10343_p9 }
 0xad3   : > { %p10341_p8 = pneg %p10340_p7 }
 0xad5   : > { %p10346_p12 = pnand %p10345_p11, %p10341_p8 }
 0xad7   : > { %10349 = shalt.err (!%p10346_p12)
}
 0xad8   : > { %s13299_s5 = sld [smem:[#allocation42_spill]]  ;;  %v8568_v7 = vsub.f32 1.0, %v10130_v57  ;;  %v8567_v12 = vmul.f32 %v10130_v57, %v12594_v8  ;;  %s9011_s8 = sshll.u32 %s13296_s7, 4  ;;  %vm8584_vm0 = vcmask 253952  }
 0xad9   : > { %9773 = dma.vmem_to_hbm [thread:$0]  (%p10711_p5), %s8605_s2, 128, %s8602_s1, %s8587_s3  }
 0xada   : > { %s1332_s6 = scalar_lea.vmem [#allocation4], %s12872_s11  ;;  %s8592_s26 = scalar_lea.sflag [#allocation5], %s12872_s11 }
 0xadb   : > { %s8617_s4 = sshll.u32 %s1332_s6, 4  ;;  %s10467_s2 = smov [#allocation4]   ;;  %s8618_s4 = int_to_ptr.vmem [resolvable:$true] %s8617_s4 }
 0xadc   : > { %s10350_s3 = scalar_lea.vmem %s8618_s4, 16  ;;  %s10354_s1 = sshll.u32 %s10467_s2, 4  ;;  %s10355_s1 = int_to_ptr.vmem [resolvable:$false] %s10354_s1 }
 0xadd   : > { %p10351_p13 = scmp.ne.s32.totalorder %s8618_s4, %s10350_s3  ;;  %s10356_s0 = scalar_lea.vmem %s10355_s1, 32 }
 0xade   : > { %s12914_s28 = scalar_lea.hbm %s13299_s5, %s9011_s8  ;;  %p10357_p2 = scmp.lt.s32.totalorder %s8618_s4, %s10355_s1 }
 0xadf   : > { %p10352_p0 = pnand %p10351_p13, %p10711_p5  ;;  %p10358_p3 = scmp.lt.s32.totalorder %s10356_s0, %s10350_s3 }
 0xae1   : > { %p10353_p1 = pneg %p10352_p0  ;;  %p10359_p4 = por %p10358_p3, %p10357_p2 }
 0xae3   : > { %p10360_p7 = pnand %p10359_p4, %p10353_p1 }
 0xb3e   : > { %v8571_v20 = vpop.permute.xlu0 %8570 }
 0xb3f   : > { %v8573_v24 = vmul.f32 %v8571_v20, %v8568_v7 }
 0xb41   : > { %v8574_v14 = vadd.f32 %v8573_v24, %v8567_v12 }
 0xb43   : > { %8581 = vrot.lane.b32.xlu0 %v8574_v14, %s13212_s22 }
 0xbb5   : > { %v8582_v31 = vpop.permute.xlu0 %8581 }
 0xbb6   : > { %8585 = vst.msk [vmem:[%s1332_s6] sm:$0x1] %vm8584_vm0, %v8582_v31 }
 0xbb7   : > { %10363 = shalt.err (!%p10360_p7)
}
 0xbb8   : > { %s10364_s22 = scalar_lea.hbm %s12914_s28, 16  ;;  %s10368_s11 = scalar_lea.hbm %s13299_s5, 32 }
 0xbb9   : > { %p10365_p8 = scmp.ne.s32.totalorder %s12914_s28, %s10364_s22  ;;  %p10369_p11 = scmp.lt.s32.totalorder %s12914_s28, %s13299_s5 }
 0xbba   : > { %p10370_p12 = scmp.lt.s32.totalorder %s10368_s11, %s10364_s22 }
 0xbbb   : > { %p10366_p9 = pnand %p10365_p8, %p10711_p5 }
 0xbbc   : > { %p10371_p13 = por %p10370_p12, %p10369_p11 }
 0xbbd   : > { %p10367_p10 = pneg %p10366_p9 }
 0xbbf   : > { %p10372_p0 = pnand %p10371_p13, %p10367_p10 }
 0xbc1   : > { %10375 = shalt.err (!%p10372_p0)
}
 0xbc2   : > { %9774 = dma.vmem_to_hbm [thread:$0]  (%p10711_p5), %s8618_s4, 16, %s12914_s28, %s8592_s26  }
 0xbc3 PF: > { %s13300_s7 = sld [smem:[#allocation45_spill]] }
 0xbc4   : > { %s13301_s8 = sld [smem:[#allocation43_spill]] }
 0xbc9   : > { %p9784_p1 = scmp.ge.s32.totalorder %s13300_s7, 2 }
 0xbca   : > { %s8629_s3 = sand.u32 1, %s13301_s8  }
 0xbcb   : > { %p9778_p2 = pnand %p9784_p1, %p10715_p6  ;;  %s8630_s2 = scalar_lea.sflag [#allocation3], %s8629_s3 }
 0xbcd   : > { %p9779_p3 = pneg %p9778_p2 }
 0xbcf   : > { %10393 = dma.done.wait (%p9779_p3), %s8630_s2, 128  }
 0xbd0   : > { %10395 = vsyncadd (%p9779_p3), %s8630_s2, 4294967168  ;;  %s8639_s1 = scalar_lea.sflag [#allocation5], %s8629_s3 }
 0xbd1   : > { %10397 = dma.done.wait (%p9779_p3), %s8639_s1, 16  }
 0xbd2   : > { %10399 = vsyncadd (%p9779_p3), %s8639_s1, 4294967280  ;;  %s13303_s28 = sld [smem:[#allocation47_spill]]  ;;  %s13306_s22 = smov %s10406_s23 }
 0xbd3   : > { %s13304_s10 = sld [smem:[#allocation44_spill]] }
 0xbd4   : > { %s13305_s26 = sld [smem:[#allocation48_spill]] }
 0xbd8   : > { %p93_p5 = scmp.ge.s32.totalorder %s13303_s28, 4  }
 0xbd9   : > { %s13307_s23 = smov %s13304_s10 }
 0xbda   :  { %95 = sbr.rel (!%p93_p5) target bundleno = 88 (0x58), region = 296 }
 0xbdf   :  { %8643 = vsyncpa [#allocation3], 1 }
 0xbe0   :  { %8645 = vsyncpa [#allocation3 + $0x1], 1 }
 0xbe1   :  { %8646 = vsyncpa [#allocation5], 1 }
 0xbe2   :  { %8648 = vsyncpa [#allocation5 + $0x1], 1 }

</bundles_post_ra>
